<compile_context>
chip_gen: v5e
topology: v5e:2x2
jax: 0.10.0
libtpu: 0.0.40
codegen_flags: <defaults>
</compile_context>

<pallas_src>
import jax
import jax.numpy as jnp
import numpy as np
from jax.experimental import pallas as pl
from jax.experimental.pallas import tpu as pltpu

INPUT_CHANNELS = 12
OUTPUT_CHANNELS = (24, 48, 96)
STATE_VECTOR_SIZE = 22
H = W = 8
HW = H * W                      # 64 rows per sample: row r = n*64 + h*8 + w
CPAD = 128                      # lane-dense channel padding (activations / Cout)
CIN_PADS = (16, 32, 48)         # conv contraction dims (Cin rounded up to 16)
PH = PW = 4                     # pooled spatial dims
NPOS = PH * PW                  # 16 pooled positions per sample
FC_K = (NPOS + 1) * CPAD        # 2176 = 16 pooled 128-ch slabs + 1 state slab
FC1_N, FC2_N, FC3_N = 256, 128, 1
PAD0 = 16                       # halo rows above/below the activation rows

_TAPS = tuple((dh, dw) for dh in (-1, 0, 1) for dw in (-1, 0, 1))

VMEM_SPEC = pl.BlockSpec(memory_space=pltpu.MemorySpace.VMEM)
ANY_SPEC = pl.BlockSpec(memory_space=pl.ANY)


# ------------------------------- fused kernel ------------------------------- #

def _cnn_fused_kernel(x_ref, st_ref,
                      cw1_ref, cb1_ref, cw2_ref, cb2_ref, cw3_ref, cb3_ref,
                      w1_hbm, b1_ref, w2_hbm, b2_ref, w3_hbm, b3_ref,
                      o_ref,
                      pad_ref, fc_ref, w1_vmem, w2_vmem, w3_vmem, dma_sem):
    R = x_ref.shape[0]                      # N * 64 rows
    n_batch = R // HW

    # Kick off the FC weight DMAs immediately so they overlap the conv stack.
    cp1 = pltpu.make_async_copy(w1_hbm, w1_vmem, dma_sem.at[0])
    cp2 = pltpu.make_async_copy(w2_hbm, w2_vmem, dma_sem.at[1])
    cp3 = pltpu.make_async_copy(w3_hbm, w3_vmem, dma_sem.at[2])
    cp1.start(); cp2.start(); cp3.start()

    # Zero only the halo rows; interior rows are always overwritten before use.
    halo_zeros = jnp.zeros((PAD0, CPAD), jnp.float32)
    pad_ref[pl.ds(0, PAD0), :] = halo_zeros
    pad_ref[pl.ds(PAD0 + R, PAD0), :] = halo_zeros

    # Per-row (h, w) coordinates and per-tap validity masks ('same' padding).
    r_idx = jax.lax.broadcasted_iota(jnp.int32, (R, 1), 0)
    hh = (r_idx >> 3) & 7
    ww = r_idx & 7
    masks = [(hh + dh >= 0) & (hh + dh <= 7) & (ww + dw >= 0) & (ww + dw <= 7)
             for dh, dw in _TAPS]

    def shifted(s):
        # rows of the halo buffer starting at offset s, i.e. act[r + s]
        return pad_ref[pl.ds(PAD0 + s, R), :]

    def conv3x3_relu(act, w_ref, b_ref):
        k = w_ref.shape[1]                  # small contraction dim (16/32/48)
        pad_ref[pl.ds(PAD0, R), :] = act
        acc = jnp.zeros((R, CPAD), jnp.float32)
        for t, (dh, dw) in enumerate(_TAPS):
            if dh == 0 and dw == 0:
                xt = act[:, :k]
            else:
                xt = jnp.where(masks[t], shifted(dh * W + dw)[:, :k], 0.0)
            acc = acc + jnp.dot(xt.astype(jnp.bfloat16), w_ref[t],
                                preferred_element_type=jnp.float32)
        return jnp.maximum(acc + b_ref[...], 0.0)

    a = conv3x3_relu(x_ref[...], cw1_ref, cb1_ref)
    a = conv3x3_relu(a, cw2_ref, cb2_ref)
    a = conv3x3_relu(a, cw3_ref, cb3_ref)

    # 2x2 max-pool fused into the conv3 epilogue. Valid pooled values end up at
    # rows with even (h, w); other rows are never read below.
    pad_ref[pl.ds(PAD0, R), :] = a
    m = jnp.maximum(jnp.maximum(a, shifted(1)),
                    jnp.maximum(shifted(W), shifted(W + 1)))
    pad_ref[pl.ds(PAD0, R), :] = m

    # Flatten + state concat: build a lane-aligned (N, 17*128) FC1 input tile
    # (FC1 weights were permuted/padded at init to match this layout).
    for n in range(n_batch):
        for pos in range(NPOS):
            ph, pw = divmod(pos, PW)
            r = n * HW + (2 * ph) * W + 2 * pw
            fc_ref[pl.ds(n, 1), pl.ds(pos * CPAD, CPAD)] = \
                pad_ref[pl.ds(PAD0 + r, 1), :]
        fc_ref[pl.ds(n, 1), pl.ds(NPOS * CPAD, CPAD)] = st_ref[pl.ds(n, 1), :]

    fc_in = fc_ref[...].astype(jnp.bfloat16)                       # (N, 2176)
    cp1.wait()
    h1 = jnp.maximum(
        jnp.dot(fc_in, w1_vmem[...], preferred_element_type=jnp.float32)
        + b1_ref[...], 0.0)
    # TODO(synk): nn.Dropout(0.5) is identity in eval mode; not applied here.
    cp2.wait()
    h2 = jnp.maximum(
        jnp.dot(h1.astype(jnp.bfloat16), w2_vmem[...],
                preferred_element_type=jnp.float32)
        + b2_ref[...], 0.0)
    cp3.wait()
    # Final logit path kept in f32 (numerically conservative; cost negligible).
    z = jnp.dot(h2, w3_vmem[...], preferred_element_type=jnp.float32) + b3_ref[...]
    o_ref[...] = 1.0 / (1.0 + jnp.exp(-z))                         # sigmoid


# --------------------------- parameter preparation -------------------------- #

def init_torch_params(key):
    """Random params in PyTorch layouts: conv (Cout,Cin,3,3), linear (out,in)."""
    params = {"convs": [], "fcs": []}
    cin = INPUT_CHANNELS
    for cout in OUTPUT_CHANNELS:
        key, kw, kb = jax.random.split(key, 3)
        scale = 1.0 / np.sqrt(cin * 9.0)
        params["convs"].append(
            (jax.random.normal(kw, (cout, cin, 3, 3), jnp.float32) * scale,
             jax.random.normal(kb, (cout,), jnp.float32) * scale))
        cin = cout
    fc_dims = [(OUTPUT_CHANNELS[-1] * PH * PW + STATE_VECTOR_SIZE, FC1_N),
               (FC1_N, FC2_N), (FC2_N, FC3_N)]
    for fin, fout in fc_dims:
        key, kw, kb = jax.random.split(key, 3)
        scale = 1.0 / np.sqrt(float(fin))
        params["fcs"].append(
            (jax.random.normal(kw, (fout, fin), jnp.float32) * scale,
             jax.random.normal(kb, (fout,), jnp.float32) * scale))
    return params


def prepare_params(tp):
    """One-time prep: pad channels, pre-transpose / pre-permute and quantize
    weights into the exact layouts/dtypes the fused kernel consumes."""
    prepped = []
    # conv layers -> (9, Cin_pad16, 128) bf16 tap-major weights + (1,128) f32 bias
    for li, (w, b) in enumerate(tp["convs"]):
        cout, cin = w.shape[0], w.shape[1]
        kpad = CIN_PADS[li]
        wp = jnp.transpose(w, (2, 3, 1, 0)).reshape(9, cin, cout)    # (tap, ci, co)
        wp = jnp.pad(wp, ((0, 0), (0, kpad - cin), (0, CPAD - cout)))
        bp = jnp.pad(b, (0, CPAD - cout)).reshape(1, CPAD)
        prepped += [wp.astype(jnp.bfloat16), bp]
    (w1, b1), (w2, b2), (w3, b3) = tp["fcs"]
    # fc1: torch feature index k = c*16 + (ph*4+pw); kernel feeds
    # [pos*128 + c | 2048 + state] -> permute & pad the weight rows to match.
    nflat = OUTPUT_CHANNELS[-1] * NPOS                               # 1536
    w1_img = w1[:, :nflat].reshape(FC1_N, OUTPUT_CHANNELS[-1], NPOS)  # (j, c, pos)
    w1_img = jnp.transpose(w1_img, (2, 1, 0))                         # (pos, c, j)
    w1_img = jnp.pad(w1_img, ((0, 0), (0, CPAD - OUTPUT_CHANNELS[-1]), (0, 0)))
    w1_img = w1_img.reshape(NPOS * CPAD, FC1_N)
    w1_st = jnp.pad(w1[:, nflat:].T, ((0, CPAD - STATE_VECTOR_SIZE), (0, 0)))
    w1p = jnp.concatenate([w1_img, w1_st], axis=0).astype(jnp.bfloat16)  # (2176,256)
    w2p = w2.T.astype(jnp.bfloat16)                                   # (256, 128)
    w3p = jnp.pad(w3.T, ((0, 0), (0, CPAD - FC3_N)))                  # (128, 128) f32
    b3p = jnp.pad(b3, (0, CPAD - FC3_N)).reshape(1, CPAD)
    prepped += [w1p, b1.reshape(1, FC1_N), w2p, b2.reshape(1, FC2_N), w3p, b3p]
    return tuple(prepped)


# --------------------------------- forward ---------------------------------- #

def cnn_forward(prepped, x_nchw, state_vector):
    """x_nchw: (N, 12, 8, 8), state_vector: (N, 22) -> (N, 1)."""
    n = x_nchw.shape[0]
    r = n * HW
    # Tiny one-shot layout prep in XLA (a few KB): NCHW -> (N*H*W, 128) rows.
    x2d = jnp.pad(jnp.transpose(x_nchw.astype(jnp.float32), (0, 2, 3, 1)),
                  ((0, 0), (0, 0), (0, 0), (0, CPAD - INPUT_CHANNELS))
                  ).reshape(r, CPAD)
    st = jnp.pad(state_vector.astype(jnp.float32),
                 ((0, 0), (0, CPAD - STATE_VECTOR_SIZE)))

    flops = (2 * r * CPAD * 9 * sum(CIN_PADS)
             + 2 * n * (FC_K * FC1_N + FC1_N * FC2_N + FC2_N * CPAD))
    bytes_acc = int(4 * (x2d.size + st.size + n * CPAD)
                    + sum(int(p.size) * p.dtype.itemsize for p in prepped))

    # in_specs: everything VMEM-resident except the FC weight matrices (indices
    # 8, 10, 12), which stay in HBM (pl.ANY) and are async-copied in the kernel.
    in_specs = [VMEM_SPEC] * (2 + len(prepped))
    in_specs[8] = ANY_SPEC    # w1p
    in_specs[10] = ANY_SPEC   # w2p
    in_specs[12] = ANY_SPEC   # w3p

    out = pl.pallas_call(
        _cnn_fused_kernel,
        out_shape=jax.ShapeDtypeStruct((n, CPAD), jnp.float32),
        in_specs=in_specs,
        out_specs=VMEM_SPEC,
        scratch_shapes=[
            pltpu.VMEM((2 * PAD0 + r, CPAD), jnp.float32),   # halo/shift buffer
            pltpu.VMEM((n, FC_K), jnp.float32),              # FC1 input tile
            pltpu.VMEM((FC_K, FC1_N), jnp.bfloat16),         # w1 landing buffer
            pltpu.VMEM((FC1_N, FC2_N), jnp.bfloat16),        # w2 landing buffer
            pltpu.VMEM((FC2_N, CPAD), jnp.float32),          # w3 landing buffer
            pltpu.SemaphoreType.DMA((3,)),                   # FC weight DMA sems
        ],
        cost_estimate=pl.CostEstimate(flops=flops, transcendentals=n * CPAD,
                                      bytes_accessed=bytes_acc),
    )(x2d, st, *prepped)
    return out[:, :FC3_N]


# ------------------------------ pure-JAX reference --------------------------- #

def _reference_forward(tp, x, state):
    hi = jax.lax.Precision.HIGHEST
    a = x.astype(jnp.float32)
    for w, b in tp["convs"]:
        a = jax.lax.conv_general_dilated(
            a, w, window_strides=(1, 1), padding="SAME",
            dimension_numbers=("NCHW", "OIHW", "NCHW"), precision=hi)
        a = jnp.maximum(a + b[None, :, None, None], 0.0)
    n, c, h, w_ = a.shape
    a = a.reshape(n, c, h // 2, 2, w_ // 2, 2).max(axis=(3, 5))
    z = jnp.concatenate([a.reshape(n, -1), state.astype(jnp.float32)], axis=1)
    (w1, b1), (w2, b2), (w3, b3) = tp["fcs"]
    z = jnp.maximum(jnp.dot(z, w1.T, precision=hi) + b1, 0.0)
    z = jnp.maximum(jnp.dot(z, w2.T, precision=hi) + b2, 0.0)
    return jax.nn.sigmoid(jnp.dot(z, w3.T, precision=hi) + b3)


def _quantize_weights_like_kernel(tp):
    """Round the same weights to bf16 that the kernel quantizes, so the
    reference comparison isolates kernel numerics from intended quantization."""
    bf = lambda w: w.astype(jnp.bfloat16).astype(jnp.float32)
    q = {"convs": [(bf(w), b) for w, b in tp["convs"]]}
    (w1, b1), (w2, b2), (w3, b3) = tp["fcs"]
    q["fcs"] = [(bf(w1), b1), (bf(w2), b2), (w3, b3)]   # FC3 kept f32 in kernel
    return q


# ----------------------------------- main ------------------------------------ #

if __name__ == "__main__":
    key = jax.random.PRNGKey(0)
    key, kx, ks, kp = jax.random.split(key, 4)

    n = 2
    x = jax.random.normal(kx, (n, INPUT_CHANNELS, H, W), jnp.float32)
    state_vector = jax.random.normal(ks, (n, STATE_VECTOR_SIZE), jnp.float32)

    torch_params = init_torch_params(kp)
    prepped = prepare_params(torch_params)

    out = jax.block_until_ready(jax.jit(cnn_forward)(prepped, x, state_vector))
    assert out.shape == (n, 1), out.shape
    assert bool(jnp.all(jnp.isfinite(out)))
    assert bool(jnp.all((out >= 0.0) & (out <= 1.0)))

    # Compare against a reference using the same bf16-rounded weights (only the
    # in-kernel activation rounding at the MXU boundary differs).
    ref = _reference_forward(_quantize_weights_like_kernel(torch_params),
                             x, state_vector)
    np.testing.assert_allclose(np.asarray(out), np.asarray(ref),
                               rtol=1e-2, atol=1e-2)
    print("KERNEL_OK")
</pallas_src>

<mosaic_0001>
module attributes {stable_mosaic.version = 11 : i64} {
  func.func @_cnn_fused_kernel(%arg0: memref<128x128xf32, #tpu.memory_space<vmem>>, %arg1: memref<2x128xf32, #tpu.memory_space<vmem>>, %arg2: memref<9x16x128xbf16, #tpu.memory_space<vmem>>, %arg3: memref<1x128xf32, #tpu.memory_space<vmem>>, %arg4: memref<9x32x128xbf16, #tpu.memory_space<vmem>>, %arg5: memref<1x128xf32, #tpu.memory_space<vmem>>, %arg6: memref<9x48x128xbf16, #tpu.memory_space<vmem>>, %arg7: memref<1x128xf32, #tpu.memory_space<vmem>>, %arg8: memref<2176x256xbf16, #tpu.memory_space<any>>, %arg9: memref<1x256xf32, #tpu.memory_space<vmem>>, %arg10: memref<256x128xbf16, #tpu.memory_space<any>>, %arg11: memref<1x128xf32, #tpu.memory_space<vmem>>, %arg12: memref<128x128xf32, #tpu.memory_space<any>>, %arg13: memref<1x128xf32, #tpu.memory_space<vmem>>, %arg14: memref<2x128xf32, #tpu.memory_space<vmem>>, %arg15: memref<160x128xf32, #tpu.memory_space<vmem>>, %arg16: memref<2x2176xf32, #tpu.memory_space<vmem>>, %arg17: memref<2176x256xbf16, #tpu.memory_space<vmem>>, %arg18: memref<256x128xbf16, #tpu.memory_space<vmem>>, %arg19: memref<128x128xf32, #tpu.memory_space<vmem>>, %arg20: memref<3x!tpu.dma_semaphore, #tpu.memory_space<semaphore_mem>>) attributes {dimension_semantics = [], scalar_prefetch = 0 : i64, scratch_operands = 6 : i64, tpu.core_type = #tpu.core_type<tc>} {
    %c0_i32 = arith.constant 0 : i32
    %0 = tpu.memref_slice %arg20[%c0_i32] : memref<3x!tpu.dma_semaphore, #tpu.memory_space<semaphore_mem>> -> memref<1x!tpu.dma_semaphore, #tpu.memory_space<semaphore_mem>>
    %1 = tpu.memref_squeeze %0 : memref<1x!tpu.dma_semaphore, #tpu.memory_space<semaphore_mem>> -> memref<!tpu.dma_semaphore, #tpu.memory_space<semaphore_mem>>
    tpu.enqueue_dma source(%arg8 : memref<2176x256xbf16, #tpu.memory_space<any>>) target(%arg17 : memref<2176x256xbf16, #tpu.memory_space<vmem>>) target_semaphore(%1 : memref<!tpu.dma_semaphore, #tpu.memory_space<semaphore_mem>>)
    %c1_i32 = arith.constant 1 : i32
    %2 = tpu.memref_slice %arg20[%c1_i32] : memref<3x!tpu.dma_semaphore, #tpu.memory_space<semaphore_mem>> -> memref<1x!tpu.dma_semaphore, #tpu.memory_space<semaphore_mem>>
    %3 = tpu.memref_squeeze %2 : memref<1x!tpu.dma_semaphore, #tpu.memory_space<semaphore_mem>> -> memref<!tpu.dma_semaphore, #tpu.memory_space<semaphore_mem>>
    tpu.enqueue_dma source(%arg10 : memref<256x128xbf16, #tpu.memory_space<any>>) target(%arg18 : memref<256x128xbf16, #tpu.memory_space<vmem>>) target_semaphore(%3 : memref<!tpu.dma_semaphore, #tpu.memory_space<semaphore_mem>>)
    %c2_i32 = arith.constant 2 : i32
    %4 = tpu.memref_slice %arg20[%c2_i32] : memref<3x!tpu.dma_semaphore, #tpu.memory_space<semaphore_mem>> -> memref<1x!tpu.dma_semaphore, #tpu.memory_space<semaphore_mem>>
    %5 = tpu.memref_squeeze %4 : memref<1x!tpu.dma_semaphore, #tpu.memory_space<semaphore_mem>> -> memref<!tpu.dma_semaphore, #tpu.memory_space<semaphore_mem>>
    tpu.enqueue_dma source(%arg12 : memref<128x128xf32, #tpu.memory_space<any>>) target(%arg19 : memref<128x128xf32, #tpu.memory_space<vmem>>) target_semaphore(%5 : memref<!tpu.dma_semaphore, #tpu.memory_space<semaphore_mem>>)
    %cst = arith.constant 0.000000e+00 : f32
    %6 = vector.broadcast %cst : f32 to vector<16x128xf32>
    %c0 = arith.constant 0 : index
    %c0_0 = arith.constant 0 : index
    %7 = vector.load %arg15[%c0, %c0_0] : memref<160x128xf32, #tpu.memory_space<vmem>>, vector<16x128xf32>
    tpu.vector_store %arg15[%c0, %c0_0], %6 {strides = array<i32>} : memref<160x128xf32, #tpu.memory_space<vmem>>, vector<16x128xf32>,
    %c144 = arith.constant 144 : index
    %c0_1 = arith.constant 0 : index
    %8 = vector.load %arg15[%c144, %c0_1] : memref<160x128xf32, #tpu.memory_space<vmem>>, vector<16x128xf32>
    tpu.vector_store %arg15[%c144, %c0_1], %6 {strides = array<i32>} : memref<160x128xf32, #tpu.memory_space<vmem>>, vector<16x128xf32>,
    %9 = tpu.iota {dimensions = array<i32: 0>} : vector<128x1xi32>
    %c3_i32 = arith.constant 3 : i32
    %10 = vector.broadcast %c3_i32 : i32 to vector<128x1xi32>
    %11 = arith.shrsi %9, %10 : vector<128x1xi32>
    %c7_i32 = arith.constant 7 : i32
    %12 = vector.broadcast %c7_i32 : i32 to vector<128x1xi32>
    %13 = arith.andi %11, %12 : vector<128x1xi32>
    %c7_i32_2 = arith.constant 7 : i32
    %14 = vector.broadcast %c7_i32_2 : i32 to vector<128x1xi32>
    %15 = arith.andi %9, %14 : vector<128x1xi32>
    %c-1_i32 = arith.constant -1 : i32
    %16 = vector.broadcast %c-1_i32 : i32 to vector<128x1xi32>
    %17 = arith.addi %13, %16 : vector<128x1xi32>
    %c0_i32_3 = arith.constant 0 : i32
    %18 = vector.broadcast %c0_i32_3 : i32 to vector<128x1xi32>
    %19 = arith.cmpi sge, %17, %18 : vector<128x1xi32>
    %c-1_i32_4 = arith.constant -1 : i32
    %20 = vector.broadcast %c-1_i32_4 : i32 to vector<128x1xi32>
    %21 = arith.addi %13, %20 : vector<128x1xi32>
    %c7_i32_5 = arith.constant 7 : i32
    %22 = vector.broadcast %c7_i32_5 : i32 to vector<128x1xi32>
    %23 = arith.cmpi sle, %21, %22 : vector<128x1xi32>
    %24 = arith.andi %19, %23 : vector<128x1xi1>
    %c-1_i32_6 = arith.constant -1 : i32
    %25 = vector.broadcast %c-1_i32_6 : i32 to vector<128x1xi32>
    %26 = arith.addi %15, %25 : vector<128x1xi32>
    %c0_i32_7 = arith.constant 0 : i32
    %27 = vector.broadcast %c0_i32_7 : i32 to vector<128x1xi32>
    %28 = arith.cmpi sge, %26, %27 : vector<128x1xi32>
    %29 = arith.andi %24, %28 : vector<128x1xi1>
    %c-1_i32_8 = arith.constant -1 : i32
    %30 = vector.broadcast %c-1_i32_8 : i32 to vector<128x1xi32>
    %31 = arith.addi %15, %30 : vector<128x1xi32>
    %c7_i32_9 = arith.constant 7 : i32
    %32 = vector.broadcast %c7_i32_9 : i32 to vector<128x1xi32>
    %33 = arith.cmpi sle, %31, %32 : vector<128x1xi32>
    %34 = arith.andi %29, %33 : vector<128x1xi1>
    %c-1_i32_10 = arith.constant -1 : i32
    %35 = vector.broadcast %c-1_i32_10 : i32 to vector<128x1xi32>
    %36 = arith.addi %13, %35 : vector<128x1xi32>
    %c0_i32_11 = arith.constant 0 : i32
    %37 = vector.broadcast %c0_i32_11 : i32 to vector<128x1xi32>
    %38 = arith.cmpi sge, %36, %37 : vector<128x1xi32>
    %c-1_i32_12 = arith.constant -1 : i32
    %39 = vector.broadcast %c-1_i32_12 : i32 to vector<128x1xi32>
    %40 = arith.addi %13, %39 : vector<128x1xi32>
    %c7_i32_13 = arith.constant 7 : i32
    %41 = vector.broadcast %c7_i32_13 : i32 to vector<128x1xi32>
    %42 = arith.cmpi sle, %40, %41 : vector<128x1xi32>
    %43 = arith.andi %38, %42 : vector<128x1xi1>
    %c0_i32_14 = arith.constant 0 : i32
    %44 = vector.broadcast %c0_i32_14 : i32 to vector<128x1xi32>
    %45 = arith.addi %15, %44 : vector<128x1xi32>
    %c0_i32_15 = arith.constant 0 : i32
    %46 = vector.broadcast %c0_i32_15 : i32 to vector<128x1xi32>
    %47 = arith.cmpi sge, %45, %46 : vector<128x1xi32>
    %48 = arith.andi %43, %47 : vector<128x1xi1>
    %c0_i32_16 = arith.constant 0 : i32
    %49 = vector.broadcast %c0_i32_16 : i32 to vector<128x1xi32>
    %50 = arith.addi %15, %49 : vector<128x1xi32>
    %c7_i32_17 = arith.constant 7 : i32
    %51 = vector.broadcast %c7_i32_17 : i32 to vector<128x1xi32>
    %52 = arith.cmpi sle, %50, %51 : vector<128x1xi32>
    %53 = arith.andi %48, %52 : vector<128x1xi1>
    %c-1_i32_18 = arith.constant -1 : i32
    %54 = vector.broadcast %c-1_i32_18 : i32 to vector<128x1xi32>
    %55 = arith.addi %13, %54 : vector<128x1xi32>
    %c0_i32_19 = arith.constant 0 : i32
    %56 = vector.broadcast %c0_i32_19 : i32 to vector<128x1xi32>
    %57 = arith.cmpi sge, %55, %56 : vector<128x1xi32>
    %c-1_i32_20 = arith.constant -1 : i32
    %58 = vector.broadcast %c-1_i32_20 : i32 to vector<128x1xi32>
    %59 = arith.addi %13, %58 : vector<128x1xi32>
    %c7_i32_21 = arith.constant 7 : i32
    %60 = vector.broadcast %c7_i32_21 : i32 to vector<128x1xi32>
    %61 = arith.cmpi sle, %59, %60 : vector<128x1xi32>
    %62 = arith.andi %57, %61 : vector<128x1xi1>
    %c1_i32_22 = arith.constant 1 : i32
    %63 = vector.broadcast %c1_i32_22 : i32 to vector<128x1xi32>
    %64 = arith.addi %15, %63 : vector<128x1xi32>
    %c0_i32_23 = arith.constant 0 : i32
    %65 = vector.broadcast %c0_i32_23 : i32 to vector<128x1xi32>
    %66 = arith.cmpi sge, %64, %65 : vector<128x1xi32>
    %67 = arith.andi %62, %66 : vector<128x1xi1>
    %c1_i32_24 = arith.constant 1 : i32
    %68 = vector.broadcast %c1_i32_24 : i32 to vector<128x1xi32>
    %69 = arith.addi %15, %68 : vector<128x1xi32>
    %c7_i32_25 = arith.constant 7 : i32
    %70 = vector.broadcast %c7_i32_25 : i32 to vector<128x1xi32>
    %71 = arith.cmpi sle, %69, %70 : vector<128x1xi32>
    %72 = arith.andi %67, %71 : vector<128x1xi1>
    %c0_i32_26 = arith.constant 0 : i32
    %73 = vector.broadcast %c0_i32_26 : i32 to vector<128x1xi32>
    %74 = arith.addi %13, %73 : vector<128x1xi32>
    %c0_i32_27 = arith.constant 0 : i32
    %75 = vector.broadcast %c0_i32_27 : i32 to vector<128x1xi32>
    %76 = arith.cmpi sge, %74, %75 : vector<128x1xi32>
    %c0_i32_28 = arith.constant 0 : i32
    %77 = vector.broadcast %c0_i32_28 : i32 to vector<128x1xi32>
    %78 = arith.addi %13, %77 : vector<128x1xi32>
    %c7_i32_29 = arith.constant 7 : i32
    %79 = vector.broadcast %c7_i32_29 : i32 to vector<128x1xi32>
    %80 = arith.cmpi sle, %78, %79 : vector<128x1xi32>
    %81 = arith.andi %76, %80 : vector<128x1xi1>
    %c-1_i32_30 = arith.constant -1 : i32
    %82 = vector.broadcast %c-1_i32_30 : i32 to vector<128x1xi32>
    %83 = arith.addi %15, %82 : vector<128x1xi32>
    %c0_i32_31 = arith.constant 0 : i32
    %84 = vector.broadcast %c0_i32_31 : i32 to vector<128x1xi32>
    %85 = arith.cmpi sge, %83, %84 : vector<128x1xi32>
    %86 = arith.andi %81, %85 : vector<128x1xi1>
    %c-1_i32_32 = arith.constant -1 : i32
    %87 = vector.broadcast %c-1_i32_32 : i32 to vector<128x1xi32>
    %88 = arith.addi %15, %87 : vector<128x1xi32>
    %c7_i32_33 = arith.constant 7 : i32
    %89 = vector.broadcast %c7_i32_33 : i32 to vector<128x1xi32>
    %90 = arith.cmpi sle, %88, %89 : vector<128x1xi32>
    %91 = arith.andi %86, %90 : vector<128x1xi1>
    %c0_i32_34 = arith.constant 0 : i32
    %92 = vector.broadcast %c0_i32_34 : i32 to vector<128x1xi32>
    %93 = arith.addi %13, %92 : vector<128x1xi32>
    %c0_i32_35 = arith.constant 0 : i32
    %94 = vector.broadcast %c0_i32_35 : i32 to vector<128x1xi32>
    %95 = arith.cmpi sge, %93, %94 : vector<128x1xi32>
    %c0_i32_36 = arith.constant 0 : i32
    %96 = vector.broadcast %c0_i32_36 : i32 to vector<128x1xi32>
    %97 = arith.addi %13, %96 : vector<128x1xi32>
    %c7_i32_37 = arith.constant 7 : i32
    %98 = vector.broadcast %c7_i32_37 : i32 to vector<128x1xi32>
    %99 = arith.cmpi sle, %97, %98 : vector<128x1xi32>
    %100 = arith.andi %95, %99 : vector<128x1xi1>
    %c1_i32_38 = arith.constant 1 : i32
    %101 = vector.broadcast %c1_i32_38 : i32 to vector<128x1xi32>
    %102 = arith.addi %15, %101 : vector<128x1xi32>
    %c0_i32_39 = arith.constant 0 : i32
    %103 = vector.broadcast %c0_i32_39 : i32 to vector<128x1xi32>
    %104 = arith.cmpi sge, %102, %103 : vector<128x1xi32>
    %105 = arith.andi %100, %104 : vector<128x1xi1>
    %c1_i32_40 = arith.constant 1 : i32
    %106 = vector.broadcast %c1_i32_40 : i32 to vector<128x1xi32>
    %107 = arith.addi %15, %106 : vector<128x1xi32>
    %c7_i32_41 = arith.constant 7 : i32
    %108 = vector.broadcast %c7_i32_41 : i32 to vector<128x1xi32>
    %109 = arith.cmpi sle, %107, %108 : vector<128x1xi32>
    %110 = arith.andi %105, %109 : vector<128x1xi1>
    %c1_i32_42 = arith.constant 1 : i32
    %111 = vector.broadcast %c1_i32_42 : i32 to vector<128x1xi32>
    %112 = arith.addi %13, %111 : vector<128x1xi32>
    %c0_i32_43 = arith.constant 0 : i32
    %113 = vector.broadcast %c0_i32_43 : i32 to vector<128x1xi32>
    %114 = arith.cmpi sge, %112, %113 : vector<128x1xi32>
    %c1_i32_44 = arith.constant 1 : i32
    %115 = vector.broadcast %c1_i32_44 : i32 to vector<128x1xi32>
    %116 = arith.addi %13, %115 : vector<128x1xi32>
    %c7_i32_45 = arith.constant 7 : i32
    %117 = vector.broadcast %c7_i32_45 : i32 to vector<128x1xi32>
    %118 = arith.cmpi sle, %116, %117 : vector<128x1xi32>
    %119 = arith.andi %114, %118 : vector<128x1xi1>
    %c-1_i32_46 = arith.constant -1 : i32
    %120 = vector.broadcast %c-1_i32_46 : i32 to vector<128x1xi32>
    %121 = arith.addi %15, %120 : vector<128x1xi32>
    %c0_i32_47 = arith.constant 0 : i32
    %122 = vector.broadcast %c0_i32_47 : i32 to vector<128x1xi32>
    %123 = arith.cmpi sge, %121, %122 : vector<128x1xi32>
    %124 = arith.andi %119, %123 : vector<128x1xi1>
    %c-1_i32_48 = arith.constant -1 : i32
    %125 = vector.broadcast %c-1_i32_48 : i32 to vector<128x1xi32>
    %126 = arith.addi %15, %125 : vector<128x1xi32>
    %c7_i32_49 = arith.constant 7 : i32
    %127 = vector.broadcast %c7_i32_49 : i32 to vector<128x1xi32>
    %128 = arith.cmpi sle, %126, %127 : vector<128x1xi32>
    %129 = arith.andi %124, %128 : vector<128x1xi1>
    %c1_i32_50 = arith.constant 1 : i32
    %130 = vector.broadcast %c1_i32_50 : i32 to vector<128x1xi32>
    %131 = arith.addi %13, %130 : vector<128x1xi32>
    %c0_i32_51 = arith.constant 0 : i32
    %132 = vector.broadcast %c0_i32_51 : i32 to vector<128x1xi32>
    %133 = arith.cmpi sge, %131, %132 : vector<128x1xi32>
    %c1_i32_52 = arith.constant 1 : i32
    %134 = vector.broadcast %c1_i32_52 : i32 to vector<128x1xi32>
    %135 = arith.addi %13, %134 : vector<128x1xi32>
    %c7_i32_53 = arith.constant 7 : i32
    %136 = vector.broadcast %c7_i32_53 : i32 to vector<128x1xi32>
    %137 = arith.cmpi sle, %135, %136 : vector<128x1xi32>
    %138 = arith.andi %133, %137 : vector<128x1xi1>
    %c0_i32_54 = arith.constant 0 : i32
    %139 = vector.broadcast %c0_i32_54 : i32 to vector<128x1xi32>
    %140 = arith.addi %15, %139 : vector<128x1xi32>
    %c0_i32_55 = arith.constant 0 : i32
    %141 = vector.broadcast %c0_i32_55 : i32 to vector<128x1xi32>
    %142 = arith.cmpi sge, %140, %141 : vector<128x1xi32>
    %143 = arith.andi %138, %142 : vector<128x1xi1>
    %c0_i32_56 = arith.constant 0 : i32
    %144 = vector.broadcast %c0_i32_56 : i32 to vector<128x1xi32>
    %145 = arith.addi %15, %144 : vector<128x1xi32>
    %c7_i32_57 = arith.constant 7 : i32
    %146 = vector.broadcast %c7_i32_57 : i32 to vector<128x1xi32>
    %147 = arith.cmpi sle, %145, %146 : vector<128x1xi32>
    %148 = arith.andi %143, %147 : vector<128x1xi1>
    %c1_i32_58 = arith.constant 1 : i32
    %149 = vector.broadcast %c1_i32_58 : i32 to vector<128x1xi32>
    %150 = arith.addi %13, %149 : vector<128x1xi32>
    %c0_i32_59 = arith.constant 0 : i32
    %151 = vector.broadcast %c0_i32_59 : i32 to vector<128x1xi32>
    %152 = arith.cmpi sge, %150, %151 : vector<128x1xi32>
    %c1_i32_60 = arith.constant 1 : i32
    %153 = vector.broadcast %c1_i32_60 : i32 to vector<128x1xi32>
    %154 = arith.addi %13, %153 : vector<128x1xi32>
    %c7_i32_61 = arith.constant 7 : i32
    %155 = vector.broadcast %c7_i32_61 : i32 to vector<128x1xi32>
    %156 = arith.cmpi sle, %154, %155 : vector<128x1xi32>
    %157 = arith.andi %152, %156 : vector<128x1xi1>
    %c1_i32_62 = arith.constant 1 : i32
    %158 = vector.broadcast %c1_i32_62 : i32 to vector<128x1xi32>
    %159 = arith.addi %15, %158 : vector<128x1xi32>
    %c0_i32_63 = arith.constant 0 : i32
    %160 = vector.broadcast %c0_i32_63 : i32 to vector<128x1xi32>
    %161 = arith.cmpi sge, %159, %160 : vector<128x1xi32>
    %162 = arith.andi %157, %161 : vector<128x1xi1>
    %c1_i32_64 = arith.constant 1 : i32
    %163 = vector.broadcast %c1_i32_64 : i32 to vector<128x1xi32>
    %164 = arith.addi %15, %163 : vector<128x1xi32>
    %c7_i32_65 = arith.constant 7 : i32
    %165 = vector.broadcast %c7_i32_65 : i32 to vector<128x1xi32>
    %166 = arith.cmpi sle, %164, %165 : vector<128x1xi32>
    %167 = arith.andi %162, %166 : vector<128x1xi1>
    %c0_66 = arith.constant 0 : index
    %c0_67 = arith.constant 0 : index
    %168 = vector.load %arg0[%c0_66, %c0_67] : memref<128x128xf32, #tpu.memory_space<vmem>>, vector<128x128xf32>
    %c16 = arith.constant 16 : index
    %c0_68 = arith.constant 0 : index
    %169 = vector.load %arg15[%c16, %c0_68] : memref<160x128xf32, #tpu.memory_space<vmem>>, vector<128x128xf32>
    tpu.vector_store %arg15[%c16, %c0_68], %168 {strides = array<i32>} : memref<160x128xf32, #tpu.memory_space<vmem>>, vector<128x128xf32>,
    %cst_69 = arith.constant 0.000000e+00 : f32
    %170 = vector.broadcast %cst_69 : f32 to vector<128x128xf32>
    %c7 = arith.constant 7 : index
    %c0_70 = arith.constant 0 : index
    %171 = vector.load %arg15[%c7, %c0_70] : memref<160x128xf32, #tpu.memory_space<vmem>>, vector<128x128xf32>
    %172 = vector.extract_strided_slice %171 {offsets = [0, 0], sizes = [128, 16], strides = [1, 1]} : vector<128x128xf32> to vector<128x16xf32>
    %cst_71 = arith.constant 0.000000e+00 : f32
    %173 = vector.shape_cast %34 : vector<128x1xi1> to vector<128x1xi1>
    %174 = vector.broadcast %173 : vector<128x1xi1> to vector<128x16xi1>
    %175 = vector.broadcast %cst_71 : f32 to vector<128x16xf32>
    %176 = arith.select %174, %172, %175 : vector<128x16xi1>, vector<128x16xf32>
    %177 = arith.truncf %176 : vector<128x16xf32> to vector<128x16xbf16>
    %c0_72 = arith.constant 0 : index
    %c0_73 = arith.constant 0 : index
    %c0_74 = arith.constant 0 : index
    %178 = vector.load %arg2[%c0_72, %c0_73, %c0_74] : memref<9x16x128xbf16, #tpu.memory_space<vmem>>, vector<1x16x128xbf16>
    %179 = vector.shape_cast %178 : vector<1x16x128xbf16> to vector<16x128xbf16>
    %cst_75 = arith.constant dense<0.000000e+00> : vector<128x128xf32>
    %180 = tpu.matmul %177, %179, %cst_75 {dimension_numbers = #tpu.dot_dimension_numbers<[1], [0], [0], [1], [0, 0, 1, 1], [], []>} : vector<128x16xbf16>, vector<16x128xbf16>, vector<128x128xf32> -> vector<128x128xf32>
    %181 = arith.addf %170, %180 : vector<128x128xf32>
    %c8 = arith.constant 8 : index
    %c0_76 = arith.constant 0 : index
    %182 = vector.load %arg15[%c8, %c0_76] : memref<160x128xf32, #tpu.memory_space<vmem>>, vector<128x128xf32>
    %183 = vector.extract_strided_slice %182 {offsets = [0, 0], sizes = [128, 16], strides = [1, 1]} : vector<128x128xf32> to vector<128x16xf32>
    %cst_77 = arith.constant 0.000000e+00 : f32
    %184 = vector.shape_cast %53 : vector<128x1xi1> to vector<128x1xi1>
    %185 = vector.broadcast %184 : vector<128x1xi1> to vector<128x16xi1>
    %186 = vector.broadcast %cst_77 : f32 to vector<128x16xf32>
    %187 = arith.select %185, %183, %186 : vector<128x16xi1>, vector<128x16xf32>
    %188 = arith.truncf %187 : vector<128x16xf32> to vector<128x16xbf16>
    %c1 = arith.constant 1 : index
    %c0_78 = arith.constant 0 : index
    %c0_79 = arith.constant 0 : index
    %189 = vector.load %arg2[%c1, %c0_78, %c0_79] : memref<9x16x128xbf16, #tpu.memory_space<vmem>>, vector<1x16x128xbf16>
    %190 = vector.shape_cast %189 : vector<1x16x128xbf16> to vector<16x128xbf16>
    %cst_80 = arith.constant dense<0.000000e+00> : vector<128x128xf32>
    %191 = tpu.matmul %188, %190, %cst_80 {dimension_numbers = #tpu.dot_dimension_numbers<[1], [0], [0], [1], [0, 0, 1, 1], [], []>} : vector<128x16xbf16>, vector<16x128xbf16>, vector<128x128xf32> -> vector<128x128xf32>
    %192 = arith.addf %181, %191 : vector<128x128xf32>
    %c9 = arith.constant 9 : index
    %c0_81 = arith.constant 0 : index
    %193 = vector.load %arg15[%c9, %c0_81] : memref<160x128xf32, #tpu.memory_space<vmem>>, vector<128x128xf32>
    %194 = vector.extract_strided_slice %193 {offsets = [0, 0], sizes = [128, 16], strides = [1, 1]} : vector<128x128xf32> to vector<128x16xf32>
    %cst_82 = arith.constant 0.000000e+00 : f32
    %195 = vector.shape_cast %72 : vector<128x1xi1> to vector<128x1xi1>
    %196 = vector.broadcast %195 : vector<128x1xi1> to vector<128x16xi1>
    %197 = vector.broadcast %cst_82 : f32 to vector<128x16xf32>
    %198 = arith.select %196, %194, %197 : vector<128x16xi1>, vector<128x16xf32>
    %199 = arith.truncf %198 : vector<128x16xf32> to vector<128x16xbf16>
    %c2 = arith.constant 2 : index
    %c0_83 = arith.constant 0 : index
    %c0_84 = arith.constant 0 : index
    %200 = vector.load %arg2[%c2, %c0_83, %c0_84] : memref<9x16x128xbf16, #tpu.memory_space<vmem>>, vector<1x16x128xbf16>
    %201 = vector.shape_cast %200 : vector<1x16x128xbf16> to vector<16x128xbf16>
    %cst_85 = arith.constant dense<0.000000e+00> : vector<128x128xf32>
    %202 = tpu.matmul %199, %201, %cst_85 {dimension_numbers = #tpu.dot_dimension_numbers<[1], [0], [0], [1], [0, 0, 1, 1], [], []>} : vector<128x16xbf16>, vector<16x128xbf16>, vector<128x128xf32> -> vector<128x128xf32>
    %203 = arith.addf %192, %202 : vector<128x128xf32>
    %c15 = arith.constant 15 : index
    %c0_86 = arith.constant 0 : index
    %204 = vector.load %arg15[%c15, %c0_86] : memref<160x128xf32, #tpu.memory_space<vmem>>, vector<128x128xf32>
    %205 = vector.extract_strided_slice %204 {offsets = [0, 0], sizes = [128, 16], strides = [1, 1]} : vector<128x128xf32> to vector<128x16xf32>
    %cst_87 = arith.constant 0.000000e+00 : f32
    %206 = vector.shape_cast %91 : vector<128x1xi1> to vector<128x1xi1>
    %207 = vector.broadcast %206 : vector<128x1xi1> to vector<128x16xi1>
    %208 = vector.broadcast %cst_87 : f32 to vector<128x16xf32>
    %209 = arith.select %207, %205, %208 : vector<128x16xi1>, vector<128x16xf32>
    %210 = arith.truncf %209 : vector<128x16xf32> to vector<128x16xbf16>
    %c3 = arith.constant 3 : index
    %c0_88 = arith.constant 0 : index
    %c0_89 = arith.constant 0 : index
    %211 = vector.load %arg2[%c3, %c0_88, %c0_89] : memref<9x16x128xbf16, #tpu.memory_space<vmem>>, vector<1x16x128xbf16>
    %212 = vector.shape_cast %211 : vector<1x16x128xbf16> to vector<16x128xbf16>
    %cst_90 = arith.constant dense<0.000000e+00> : vector<128x128xf32>
    %213 = tpu.matmul %210, %212, %cst_90 {dimension_numbers = #tpu.dot_dimension_numbers<[1], [0], [0], [1], [0, 0, 1, 1], [], []>} : vector<128x16xbf16>, vector<16x128xbf16>, vector<128x128xf32> -> vector<128x128xf32>
    %214 = arith.addf %203, %213 : vector<128x128xf32>
    %215 = vector.extract_strided_slice %168 {offsets = [0, 0], sizes = [128, 16], strides = [1, 1]} : vector<128x128xf32> to vector<128x16xf32>
    %216 = arith.truncf %215 : vector<128x16xf32> to vector<128x16xbf16>
    %c4 = arith.constant 4 : index
    %c0_91 = arith.constant 0 : index
    %c0_92 = arith.constant 0 : index
    %217 = vector.load %arg2[%c4, %c0_91, %c0_92] : memref<9x16x128xbf16, #tpu.memory_space<vmem>>, vector<1x16x128xbf16>
    %218 = vector.shape_cast %217 : vector<1x16x128xbf16> to vector<16x128xbf16>
    %cst_93 = arith.constant dense<0.000000e+00> : vector<128x128xf32>
    %219 = tpu.matmul %216, %218, %cst_93 {dimension_numbers = #tpu.dot_dimension_numbers<[1], [0], [0], [1], [0, 0, 1, 1], [], []>} : vector<128x16xbf16>, vector<16x128xbf16>, vector<128x128xf32> -> vector<128x128xf32>
    %220 = arith.addf %214, %219 : vector<128x128xf32>
    %c17 = arith.constant 17 : index
    %c0_94 = arith.constant 0 : index
    %221 = vector.load %arg15[%c17, %c0_94] : memref<160x128xf32, #tpu.memory_space<vmem>>, vector<128x128xf32>
    %222 = vector.extract_strided_slice %221 {offsets = [0, 0], sizes = [128, 16], strides = [1, 1]} : vector<128x128xf32> to vector<128x16xf32>
    %cst_95 = arith.constant 0.000000e+00 : f32
    %223 = vector.shape_cast %110 : vector<128x1xi1> to vector<128x1xi1>
    %224 = vector.broadcast %223 : vector<128x1xi1> to vector<128x16xi1>
    %225 = vector.broadcast %cst_95 : f32 to vector<128x16xf32>
    %226 = arith.select %224, %222, %225 : vector<128x16xi1>, vector<128x16xf32>
    %227 = arith.truncf %226 : vector<128x16xf32> to vector<128x16xbf16>
    %c5 = arith.constant 5 : index
    %c0_96 = arith.constant 0 : index
    %c0_97 = arith.constant 0 : index
    %228 = vector.load %arg2[%c5, %c0_96, %c0_97] : memref<9x16x128xbf16, #tpu.memory_space<vmem>>, vector<1x16x128xbf16>
    %229 = vector.shape_cast %228 : vector<1x16x128xbf16> to vector<16x128xbf16>
    %cst_98 = arith.constant dense<0.000000e+00> : vector<128x128xf32>
    %230 = tpu.matmul %227, %229, %cst_98 {dimension_numbers = #tpu.dot_dimension_numbers<[1], [0], [0], [1], [0, 0, 1, 1], [], []>} : vector<128x16xbf16>, vector<16x128xbf16>, vector<128x128xf32> -> vector<128x128xf32>
    %231 = arith.addf %220, %230 : vector<128x128xf32>
    %c23 = arith.constant 23 : index
    %c0_99 = arith.constant 0 : index
    %232 = vector.load %arg15[%c23, %c0_99] : memref<160x128xf32, #tpu.memory_space<vmem>>, vector<128x128xf32>
    %233 = vector.extract_strided_slice %232 {offsets = [0, 0], sizes = [128, 16], strides = [1, 1]} : vector<128x128xf32> to vector<128x16xf32>
    %cst_100 = arith.constant 0.000000e+00 : f32
    %234 = vector.shape_cast %129 : vector<128x1xi1> to vector<128x1xi1>
    %235 = vector.broadcast %234 : vector<128x1xi1> to vector<128x16xi1>
    %236 = vector.broadcast %cst_100 : f32 to vector<128x16xf32>
    %237 = arith.select %235, %233, %236 : vector<128x16xi1>, vector<128x16xf32>
    %238 = arith.truncf %237 : vector<128x16xf32> to vector<128x16xbf16>
    %c6 = arith.constant 6 : index
    %c0_101 = arith.constant 0 : index
    %c0_102 = arith.constant 0 : index
    %239 = vector.load %arg2[%c6, %c0_101, %c0_102] : memref<9x16x128xbf16, #tpu.memory_space<vmem>>, vector<1x16x128xbf16>
    %240 = vector.shape_cast %239 : vector<1x16x128xbf16> to vector<16x128xbf16>
    %cst_103 = arith.constant dense<0.000000e+00> : vector<128x128xf32>
    %241 = tpu.matmul %238, %240, %cst_103 {dimension_numbers = #tpu.dot_dimension_numbers<[1], [0], [0], [1], [0, 0, 1, 1], [], []>} : vector<128x16xbf16>, vector<16x128xbf16>, vector<128x128xf32> -> vector<128x128xf32>
    %242 = arith.addf %231, %241 : vector<128x128xf32>
    %c24 = arith.constant 24 : index
    %c0_104 = arith.constant 0 : index
    %243 = vector.load %arg15[%c24, %c0_104] : memref<160x128xf32, #tpu.memory_space<vmem>>, vector<128x128xf32>
    %244 = vector.extract_strided_slice %243 {offsets = [0, 0], sizes = [128, 16], strides = [1, 1]} : vector<128x128xf32> to vector<128x16xf32>
    %cst_105 = arith.constant 0.000000e+00 : f32
    %245 = vector.shape_cast %148 : vector<128x1xi1> to vector<128x1xi1>
    %246 = vector.broadcast %245 : vector<128x1xi1> to vector<128x16xi1>
    %247 = vector.broadcast %cst_105 : f32 to vector<128x16xf32>
    %248 = arith.select %246, %244, %247 : vector<128x16xi1>, vector<128x16xf32>
    %249 = arith.truncf %248 : vector<128x16xf32> to vector<128x16xbf16>
    %c7_106 = arith.constant 7 : index
    %c0_107 = arith.constant 0 : index
    %c0_108 = arith.constant 0 : index
    %250 = vector.load %arg2[%c7_106, %c0_107, %c0_108] : memref<9x16x128xbf16, #tpu.memory_space<vmem>>, vector<1x16x128xbf16>
    %251 = vector.shape_cast %250 : vector<1x16x128xbf16> to vector<16x128xbf16>
    %cst_109 = arith.constant dense<0.000000e+00> : vector<128x128xf32>
    %252 = tpu.matmul %249, %251, %cst_109 {dimension_numbers = #tpu.dot_dimension_numbers<[1], [0], [0], [1], [0, 0, 1, 1], [], []>} : vector<128x16xbf16>, vector<16x128xbf16>, vector<128x128xf32> -> vector<128x128xf32>
    %253 = arith.addf %242, %252 : vector<128x128xf32>
    %c25 = arith.constant 25 : index
    %c0_110 = arith.constant 0 : index
    %254 = vector.load %arg15[%c25, %c0_110] : memref<160x128xf32, #tpu.memory_space<vmem>>, vector<128x128xf32>
    %255 = vector.extract_strided_slice %254 {offsets = [0, 0], sizes = [128, 16], strides = [1, 1]} : vector<128x128xf32> to vector<128x16xf32>
    %cst_111 = arith.constant 0.000000e+00 : f32
    %256 = vector.shape_cast %167 : vector<128x1xi1> to vector<128x1xi1>
    %257 = vector.broadcast %256 : vector<128x1xi1> to vector<128x16xi1>
    %258 = vector.broadcast %cst_111 : f32 to vector<128x16xf32>
    %259 = arith.select %257, %255, %258 : vector<128x16xi1>, vector<128x16xf32>
    %260 = arith.truncf %259 : vector<128x16xf32> to vector<128x16xbf16>
    %c8_112 = arith.constant 8 : index
    %c0_113 = arith.constant 0 : index
    %c0_114 = arith.constant 0 : index
    %261 = vector.load %arg2[%c8_112, %c0_113, %c0_114] : memref<9x16x128xbf16, #tpu.memory_space<vmem>>, vector<1x16x128xbf16>
    %262 = vector.shape_cast %261 : vector<1x16x128xbf16> to vector<16x128xbf16>
    %cst_115 = arith.constant dense<0.000000e+00> : vector<128x128xf32>
    %263 = tpu.matmul %260, %262, %cst_115 {dimension_numbers = #tpu.dot_dimension_numbers<[1], [0], [0], [1], [0, 0, 1, 1], [], []>} : vector<128x16xbf16>, vector<16x128xbf16>, vector<128x128xf32> -> vector<128x128xf32>
    %264 = arith.addf %253, %263 : vector<128x128xf32>
    %c0_116 = arith.constant 0 : index
    %c0_117 = arith.constant 0 : index
    %265 = vector.load %arg3[%c0_116, %c0_117] : memref<1x128xf32, #tpu.memory_space<vmem>>, vector<1x128xf32>
    %266 = vector.broadcast %265 : vector<1x128xf32> to vector<128x128xf32>
    %267 = arith.addf %264, %266 : vector<128x128xf32>
    %cst_118 = arith.constant 0.000000e+00 : f32
    %268 = vector.broadcast %cst_118 : f32 to vector<128x128xf32>
    %269 = arith.maximumf %267, %268 : vector<128x128xf32>
    %c16_119 = arith.constant 16 : index
    %c0_120 = arith.constant 0 : index
    %270 = vector.load %arg15[%c16_119, %c0_120] : memref<160x128xf32, #tpu.memory_space<vmem>>, vector<128x128xf32>
    tpu.vector_store %arg15[%c16_119, %c0_120], %269 {strides = array<i32>} : memref<160x128xf32, #tpu.memory_space<vmem>>, vector<128x128xf32>,
    %cst_121 = arith.constant 0.000000e+00 : f32
    %271 = vector.broadcast %cst_121 : f32 to vector<128x128xf32>
    %c7_122 = arith.constant 7 : index
    %c0_123 = arith.constant 0 : index
    %272 = vector.load %arg15[%c7_122, %c0_123] : memref<160x128xf32, #tpu.memory_space<vmem>>, vector<128x128xf32>
    %273 = vector.extract_strided_slice %272 {offsets = [0, 0], sizes = [128, 32], strides = [1, 1]} : vector<128x128xf32> to vector<128x32xf32>
    %cst_124 = arith.constant 0.000000e+00 : f32
    %274 = vector.shape_cast %34 : vector<128x1xi1> to vector<128x1xi1>
    %275 = vector.broadcast %274 : vector<128x1xi1> to vector<128x32xi1>
    %276 = vector.broadcast %cst_124 : f32 to vector<128x32xf32>
    %277 = arith.select %275, %273, %276 : vector<128x32xi1>, vector<128x32xf32>
    %278 = arith.truncf %277 : vector<128x32xf32> to vector<128x32xbf16>
    %c0_125 = arith.constant 0 : index
    %c0_126 = arith.constant 0 : index
    %c0_127 = arith.constant 0 : index
    %279 = vector.load %arg4[%c0_125, %c0_126, %c0_127] : memref<9x32x128xbf16, #tpu.memory_space<vmem>>, vector<1x32x128xbf16>
    %280 = vector.shape_cast %279 : vector<1x32x128xbf16> to vector<32x128xbf16>
    %cst_128 = arith.constant dense<0.000000e+00> : vector<128x128xf32>
    %281 = tpu.matmul %278, %280, %cst_128 {dimension_numbers = #tpu.dot_dimension_numbers<[1], [0], [0], [1], [0, 0, 1, 1], [], []>} : vector<128x32xbf16>, vector<32x128xbf16>, vector<128x128xf32> -> vector<128x128xf32>
    %282 = arith.addf %271, %281 : vector<128x128xf32>
    %c8_129 = arith.constant 8 : index
    %c0_130 = arith.constant 0 : index
    %283 = vector.load %arg15[%c8_129, %c0_130] : memref<160x128xf32, #tpu.memory_space<vmem>>, vector<128x128xf32>
    %284 = vector.extract_strided_slice %283 {offsets = [0, 0], sizes = [128, 32], strides = [1, 1]} : vector<128x128xf32> to vector<128x32xf32>
    %cst_131 = arith.constant 0.000000e+00 : f32
    %285 = vector.shape_cast %53 : vector<128x1xi1> to vector<128x1xi1>
    %286 = vector.broadcast %285 : vector<128x1xi1> to vector<128x32xi1>
    %287 = vector.broadcast %cst_131 : f32 to vector<128x32xf32>
    %288 = arith.select %286, %284, %287 : vector<128x32xi1>, vector<128x32xf32>
    %289 = arith.truncf %288 : vector<128x32xf32> to vector<128x32xbf16>
    %c1_132 = arith.constant 1 : index
    %c0_133 = arith.constant 0 : index
    %c0_134 = arith.constant 0 : index
    %290 = vector.load %arg4[%c1_132, %c0_133, %c0_134] : memref<9x32x128xbf16, #tpu.memory_space<vmem>>, vector<1x32x128xbf16>
    %291 = vector.shape_cast %290 : vector<1x32x128xbf16> to vector<32x128xbf16>
    %cst_135 = arith.constant dense<0.000000e+00> : vector<128x128xf32>
    %292 = tpu.matmul %289, %291, %cst_135 {dimension_numbers = #tpu.dot_dimension_numbers<[1], [0], [0], [1], [0, 0, 1, 1], [], []>} : vector<128x32xbf16>, vector<32x128xbf16>, vector<128x128xf32> -> vector<128x128xf32>
    %293 = arith.addf %282, %292 : vector<128x128xf32>
    %c9_136 = arith.constant 9 : index
    %c0_137 = arith.constant 0 : index
    %294 = vector.load %arg15[%c9_136, %c0_137] : memref<160x128xf32, #tpu.memory_space<vmem>>, vector<128x128xf32>
    %295 = vector.extract_strided_slice %294 {offsets = [0, 0], sizes = [128, 32], strides = [1, 1]} : vector<128x128xf32> to vector<128x32xf32>
    %cst_138 = arith.constant 0.000000e+00 : f32
    %296 = vector.shape_cast %72 : vector<128x1xi1> to vector<128x1xi1>
    %297 = vector.broadcast %296 : vector<128x1xi1> to vector<128x32xi1>
    %298 = vector.broadcast %cst_138 : f32 to vector<128x32xf32>
    %299 = arith.select %297, %295, %298 : vector<128x32xi1>, vector<128x32xf32>
    %300 = arith.truncf %299 : vector<128x32xf32> to vector<128x32xbf16>
    %c2_139 = arith.constant 2 : index
    %c0_140 = arith.constant 0 : index
    %c0_141 = arith.constant 0 : index
    %301 = vector.load %arg4[%c2_139, %c0_140, %c0_141] : memref<9x32x128xbf16, #tpu.memory_space<vmem>>, vector<1x32x128xbf16>
    %302 = vector.shape_cast %301 : vector<1x32x128xbf16> to vector<32x128xbf16>
    %cst_142 = arith.constant dense<0.000000e+00> : vector<128x128xf32>
    %303 = tpu.matmul %300, %302, %cst_142 {dimension_numbers = #tpu.dot_dimension_numbers<[1], [0], [0], [1], [0, 0, 1, 1], [], []>} : vector<128x32xbf16>, vector<32x128xbf16>, vector<128x128xf32> -> vector<128x128xf32>
    %304 = arith.addf %293, %303 : vector<128x128xf32>
    %c15_143 = arith.constant 15 : index
    %c0_144 = arith.constant 0 : index
    %305 = vector.load %arg15[%c15_143, %c0_144] : memref<160x128xf32, #tpu.memory_space<vmem>>, vector<128x128xf32>
    %306 = vector.extract_strided_slice %305 {offsets = [0, 0], sizes = [128, 32], strides = [1, 1]} : vector<128x128xf32> to vector<128x32xf32>
    %cst_145 = arith.constant 0.000000e+00 : f32
    %307 = vector.shape_cast %91 : vector<128x1xi1> to vector<128x1xi1>
    %308 = vector.broadcast %307 : vector<128x1xi1> to vector<128x32xi1>
    %309 = vector.broadcast %cst_145 : f32 to vector<128x32xf32>
    %310 = arith.select %308, %306, %309 : vector<128x32xi1>, vector<128x32xf32>
    %311 = arith.truncf %310 : vector<128x32xf32> to vector<128x32xbf16>
    %c3_146 = arith.constant 3 : index
    %c0_147 = arith.constant 0 : index
    %c0_148 = arith.constant 0 : index
    %312 = vector.load %arg4[%c3_146, %c0_147, %c0_148] : memref<9x32x128xbf16, #tpu.memory_space<vmem>>, vector<1x32x128xbf16>
    %313 = vector.shape_cast %312 : vector<1x32x128xbf16> to vector<32x128xbf16>
    %cst_149 = arith.constant dense<0.000000e+00> : vector<128x128xf32>
    %314 = tpu.matmul %311, %313, %cst_149 {dimension_numbers = #tpu.dot_dimension_numbers<[1], [0], [0], [1], [0, 0, 1, 1], [], []>} : vector<128x32xbf16>, vector<32x128xbf16>, vector<128x128xf32> -> vector<128x128xf32>
    %315 = arith.addf %304, %314 : vector<128x128xf32>
    %316 = vector.extract_strided_slice %269 {offsets = [0, 0], sizes = [128, 32], strides = [1, 1]} : vector<128x128xf32> to vector<128x32xf32>
    %317 = arith.truncf %316 : vector<128x32xf32> to vector<128x32xbf16>
    %c4_150 = arith.constant 4 : index
    %c0_151 = arith.constant 0 : index
    %c0_152 = arith.constant 0 : index
    %318 = vector.load %arg4[%c4_150, %c0_151, %c0_152] : memref<9x32x128xbf16, #tpu.memory_space<vmem>>, vector<1x32x128xbf16>
    %319 = vector.shape_cast %318 : vector<1x32x128xbf16> to vector<32x128xbf16>
    %cst_153 = arith.constant dense<0.000000e+00> : vector<128x128xf32>
    %320 = tpu.matmul %317, %319, %cst_153 {dimension_numbers = #tpu.dot_dimension_numbers<[1], [0], [0], [1], [0, 0, 1, 1], [], []>} : vector<128x32xbf16>, vector<32x128xbf16>, vector<128x128xf32> -> vector<128x128xf32>
    %321 = arith.addf %315, %320 : vector<128x128xf32>
    %c17_154 = arith.constant 17 : index
    %c0_155 = arith.constant 0 : index
    %322 = vector.load %arg15[%c17_154, %c0_155] : memref<160x128xf32, #tpu.memory_space<vmem>>, vector<128x128xf32>
    %323 = vector.extract_strided_slice %322 {offsets = [0, 0], sizes = [128, 32], strides = [1, 1]} : vector<128x128xf32> to vector<128x32xf32>
    %cst_156 = arith.constant 0.000000e+00 : f32
    %324 = vector.shape_cast %110 : vector<128x1xi1> to vector<128x1xi1>
    %325 = vector.broadcast %324 : vector<128x1xi1> to vector<128x32xi1>
    %326 = vector.broadcast %cst_156 : f32 to vector<128x32xf32>
    %327 = arith.select %325, %323, %326 : vector<128x32xi1>, vector<128x32xf32>
    %328 = arith.truncf %327 : vector<128x32xf32> to vector<128x32xbf16>
    %c5_157 = arith.constant 5 : index
    %c0_158 = arith.constant 0 : index
    %c0_159 = arith.constant 0 : index
    %329 = vector.load %arg4[%c5_157, %c0_158, %c0_159] : memref<9x32x128xbf16, #tpu.memory_space<vmem>>, vector<1x32x128xbf16>
    %330 = vector.shape_cast %329 : vector<1x32x128xbf16> to vector<32x128xbf16>
    %cst_160 = arith.constant dense<0.000000e+00> : vector<128x128xf32>
    %331 = tpu.matmul %328, %330, %cst_160 {dimension_numbers = #tpu.dot_dimension_numbers<[1], [0], [0], [1], [0, 0, 1, 1], [], []>} : vector<128x32xbf16>, vector<32x128xbf16>, vector<128x128xf32> -> vector<128x128xf32>
    %332 = arith.addf %321, %331 : vector<128x128xf32>
    %c23_161 = arith.constant 23 : index
    %c0_162 = arith.constant 0 : index
    %333 = vector.load %arg15[%c23_161, %c0_162] : memref<160x128xf32, #tpu.memory_space<vmem>>, vector<128x128xf32>
    %334 = vector.extract_strided_slice %333 {offsets = [0, 0], sizes = [128, 32], strides = [1, 1]} : vector<128x128xf32> to vector<128x32xf32>
    %cst_163 = arith.constant 0.000000e+00 : f32
    %335 = vector.shape_cast %129 : vector<128x1xi1> to vector<128x1xi1>
    %336 = vector.broadcast %335 : vector<128x1xi1> to vector<128x32xi1>
    %337 = vector.broadcast %cst_163 : f32 to vector<128x32xf32>
    %338 = arith.select %336, %334, %337 : vector<128x32xi1>, vector<128x32xf32>
    %339 = arith.truncf %338 : vector<128x32xf32> to vector<128x32xbf16>
    %c6_164 = arith.constant 6 : index
    %c0_165 = arith.constant 0 : index
    %c0_166 = arith.constant 0 : index
    %340 = vector.load %arg4[%c6_164, %c0_165, %c0_166] : memref<9x32x128xbf16, #tpu.memory_space<vmem>>, vector<1x32x128xbf16>
    %341 = vector.shape_cast %340 : vector<1x32x128xbf16> to vector<32x128xbf16>
    %cst_167 = arith.constant dense<0.000000e+00> : vector<128x128xf32>
    %342 = tpu.matmul %339, %341, %cst_167 {dimension_numbers = #tpu.dot_dimension_numbers<[1], [0], [0], [1], [0, 0, 1, 1], [], []>} : vector<128x32xbf16>, vector<32x128xbf16>, vector<128x128xf32> -> vector<128x128xf32>
    %343 = arith.addf %332, %342 : vector<128x128xf32>
    %c24_168 = arith.constant 24 : index
    %c0_169 = arith.constant 0 : index
    %344 = vector.load %arg15[%c24_168, %c0_169] : memref<160x128xf32, #tpu.memory_space<vmem>>, vector<128x128xf32>
    %345 = vector.extract_strided_slice %344 {offsets = [0, 0], sizes = [128, 32], strides = [1, 1]} : vector<128x128xf32> to vector<128x32xf32>
    %cst_170 = arith.constant 0.000000e+00 : f32
    %346 = vector.shape_cast %148 : vector<128x1xi1> to vector<128x1xi1>
    %347 = vector.broadcast %346 : vector<128x1xi1> to vector<128x32xi1>
    %348 = vector.broadcast %cst_170 : f32 to vector<128x32xf32>
    %349 = arith.select %347, %345, %348 : vector<128x32xi1>, vector<128x32xf32>
    %350 = arith.truncf %349 : vector<128x32xf32> to vector<128x32xbf16>
    %c7_171 = arith.constant 7 : index
    %c0_172 = arith.constant 0 : index
    %c0_173 = arith.constant 0 : index
    %351 = vector.load %arg4[%c7_171, %c0_172, %c0_173] : memref<9x32x128xbf16, #tpu.memory_space<vmem>>, vector<1x32x128xbf16>
    %352 = vector.shape_cast %351 : vector<1x32x128xbf16> to vector<32x128xbf16>
    %cst_174 = arith.constant dense<0.000000e+00> : vector<128x128xf32>
    %353 = tpu.matmul %350, %352, %cst_174 {dimension_numbers = #tpu.dot_dimension_numbers<[1], [0], [0], [1], [0, 0, 1, 1], [], []>} : vector<128x32xbf16>, vector<32x128xbf16>, vector<128x128xf32> -> vector<128x128xf32>
    %354 = arith.addf %343, %353 : vector<128x128xf32>
    %c25_175 = arith.constant 25 : index
    %c0_176 = arith.constant 0 : index
    %355 = vector.load %arg15[%c25_175, %c0_176] : memref<160x128xf32, #tpu.memory_space<vmem>>, vector<128x128xf32>
    %356 = vector.extract_strided_slice %355 {offsets = [0, 0], sizes = [128, 32], strides = [1, 1]} : vector<128x128xf32> to vector<128x32xf32>
    %cst_177 = arith.constant 0.000000e+00 : f32
    %357 = vector.shape_cast %167 : vector<128x1xi1> to vector<128x1xi1>
    %358 = vector.broadcast %357 : vector<128x1xi1> to vector<128x32xi1>
    %359 = vector.broadcast %cst_177 : f32 to vector<128x32xf32>
    %360 = arith.select %358, %356, %359 : vector<128x32xi1>, vector<128x32xf32>
    %361 = arith.truncf %360 : vector<128x32xf32> to vector<128x32xbf16>
    %c8_178 = arith.constant 8 : index
    %c0_179 = arith.constant 0 : index
    %c0_180 = arith.constant 0 : index
    %362 = vector.load %arg4[%c8_178, %c0_179, %c0_180] : memref<9x32x128xbf16, #tpu.memory_space<vmem>>, vector<1x32x128xbf16>
    %363 = vector.shape_cast %362 : vector<1x32x128xbf16> to vector<32x128xbf16>
    %cst_181 = arith.constant dense<0.000000e+00> : vector<128x128xf32>
    %364 = tpu.matmul %361, %363, %cst_181 {dimension_numbers = #tpu.dot_dimension_numbers<[1], [0], [0], [1], [0, 0, 1, 1], [], []>} : vector<128x32xbf16>, vector<32x128xbf16>, vector<128x128xf32> -> vector<128x128xf32>
    %365 = arith.addf %354, %364 : vector<128x128xf32>
    %c0_182 = arith.constant 0 : index
    %c0_183 = arith.constant 0 : index
    %366 = vector.load %arg5[%c0_182, %c0_183] : memref<1x128xf32, #tpu.memory_space<vmem>>, vector<1x128xf32>
    %367 = vector.broadcast %366 : vector<1x128xf32> to vector<128x128xf32>
    %368 = arith.addf %365, %367 : vector<128x128xf32>
    %cst_184 = arith.constant 0.000000e+00 : f32
    %369 = vector.broadcast %cst_184 : f32 to vector<128x128xf32>
    %370 = arith.maximumf %368, %369 : vector<128x128xf32>
    %c16_185 = arith.constant 16 : index
    %c0_186 = arith.constant 0 : index
    %371 = vector.load %arg15[%c16_185, %c0_186] : memref<160x128xf32, #tpu.memory_space<vmem>>, vector<128x128xf32>
    tpu.vector_store %arg15[%c16_185, %c0_186], %370 {strides = array<i32>} : memref<160x128xf32, #tpu.memory_space<vmem>>, vector<128x128xf32>,
    %cst_187 = arith.constant 0.000000e+00 : f32
    %372 = vector.broadcast %cst_187 : f32 to vector<128x128xf32>
    %c7_188 = arith.constant 7 : index
    %c0_189 = arith.constant 0 : index
    %373 = vector.load %arg15[%c7_188, %c0_189] : memref<160x128xf32, #tpu.memory_space<vmem>>, vector<128x128xf32>
    %374 = vector.extract_strided_slice %373 {offsets = [0, 0], sizes = [128, 48], strides = [1, 1]} : vector<128x128xf32> to vector<128x48xf32>
    %cst_190 = arith.constant 0.000000e+00 : f32
    %375 = vector.shape_cast %34 : vector<128x1xi1> to vector<128x1xi1>
    %376 = vector.broadcast %375 : vector<128x1xi1> to vector<128x48xi1>
    %377 = vector.broadcast %cst_190 : f32 to vector<128x48xf32>
    %378 = arith.select %376, %374, %377 : vector<128x48xi1>, vector<128x48xf32>
    %379 = arith.truncf %378 : vector<128x48xf32> to vector<128x48xbf16>
    %c0_191 = arith.constant 0 : index
    %c0_192 = arith.constant 0 : index
    %c0_193 = arith.constant 0 : index
    %380 = vector.load %arg6[%c0_191, %c0_192, %c0_193] : memref<9x48x128xbf16, #tpu.memory_space<vmem>>, vector<1x48x128xbf16>
    %381 = vector.shape_cast %380 : vector<1x48x128xbf16> to vector<48x128xbf16>
    %cst_194 = arith.constant dense<0.000000e+00> : vector<128x128xf32>
    %382 = tpu.matmul %379, %381, %cst_194 {dimension_numbers = #tpu.dot_dimension_numbers<[1], [0], [0], [1], [0, 0, 1, 1], [], []>} : vector<128x48xbf16>, vector<48x128xbf16>, vector<128x128xf32> -> vector<128x128xf32>
    %383 = arith.addf %372, %382 : vector<128x128xf32>
    %c8_195 = arith.constant 8 : index
    %c0_196 = arith.constant 0 : index
    %384 = vector.load %arg15[%c8_195, %c0_196] : memref<160x128xf32, #tpu.memory_space<vmem>>, vector<128x128xf32>
    %385 = vector.extract_strided_slice %384 {offsets = [0, 0], sizes = [128, 48], strides = [1, 1]} : vector<128x128xf32> to vector<128x48xf32>
    %cst_197 = arith.constant 0.000000e+00 : f32
    %386 = vector.shape_cast %53 : vector<128x1xi1> to vector<128x1xi1>
    %387 = vector.broadcast %386 : vector<128x1xi1> to vector<128x48xi1>
    %388 = vector.broadcast %cst_197 : f32 to vector<128x48xf32>
    %389 = arith.select %387, %385, %388 : vector<128x48xi1>, vector<128x48xf32>
    %390 = arith.truncf %389 : vector<128x48xf32> to vector<128x48xbf16>
    %c1_198 = arith.constant 1 : index
    %c0_199 = arith.constant 0 : index
    %c0_200 = arith.constant 0 : index
    %391 = vector.load %arg6[%c1_198, %c0_199, %c0_200] : memref<9x48x128xbf16, #tpu.memory_space<vmem>>, vector<1x48x128xbf16>
    %392 = vector.shape_cast %391 : vector<1x48x128xbf16> to vector<48x128xbf16>
    %cst_201 = arith.constant dense<0.000000e+00> : vector<128x128xf32>
    %393 = tpu.matmul %390, %392, %cst_201 {dimension_numbers = #tpu.dot_dimension_numbers<[1], [0], [0], [1], [0, 0, 1, 1], [], []>} : vector<128x48xbf16>, vector<48x128xbf16>, vector<128x128xf32> -> vector<128x128xf32>
    %394 = arith.addf %383, %393 : vector<128x128xf32>
    %c9_202 = arith.constant 9 : index
    %c0_203 = arith.constant 0 : index
    %395 = vector.load %arg15[%c9_202, %c0_203] : memref<160x128xf32, #tpu.memory_space<vmem>>, vector<128x128xf32>
    %396 = vector.extract_strided_slice %395 {offsets = [0, 0], sizes = [128, 48], strides = [1, 1]} : vector<128x128xf32> to vector<128x48xf32>
    %cst_204 = arith.constant 0.000000e+00 : f32
    %397 = vector.shape_cast %72 : vector<128x1xi1> to vector<128x1xi1>
    %398 = vector.broadcast %397 : vector<128x1xi1> to vector<128x48xi1>
    %399 = vector.broadcast %cst_204 : f32 to vector<128x48xf32>
    %400 = arith.select %398, %396, %399 : vector<128x48xi1>, vector<128x48xf32>
    %401 = arith.truncf %400 : vector<128x48xf32> to vector<128x48xbf16>
    %c2_205 = arith.constant 2 : index
    %c0_206 = arith.constant 0 : index
    %c0_207 = arith.constant 0 : index
    %402 = vector.load %arg6[%c2_205, %c0_206, %c0_207] : memref<9x48x128xbf16, #tpu.memory_space<vmem>>, vector<1x48x128xbf16>
    %403 = vector.shape_cast %402 : vector<1x48x128xbf16> to vector<48x128xbf16>
    %cst_208 = arith.constant dense<0.000000e+00> : vector<128x128xf32>
    %404 = tpu.matmul %401, %403, %cst_208 {dimension_numbers = #tpu.dot_dimension_numbers<[1], [0], [0], [1], [0, 0, 1, 1], [], []>} : vector<128x48xbf16>, vector<48x128xbf16>, vector<128x128xf32> -> vector<128x128xf32>
    %405 = arith.addf %394, %404 : vector<128x128xf32>
    %c15_209 = arith.constant 15 : index
    %c0_210 = arith.constant 0 : index
    %406 = vector.load %arg15[%c15_209, %c0_210] : memref<160x128xf32, #tpu.memory_space<vmem>>, vector<128x128xf32>
    %407 = vector.extract_strided_slice %406 {offsets = [0, 0], sizes = [128, 48], strides = [1, 1]} : vector<128x128xf32> to vector<128x48xf32>
    %cst_211 = arith.constant 0.000000e+00 : f32
    %408 = vector.shape_cast %91 : vector<128x1xi1> to vector<128x1xi1>
    %409 = vector.broadcast %408 : vector<128x1xi1> to vector<128x48xi1>
    %410 = vector.broadcast %cst_211 : f32 to vector<128x48xf32>
    %411 = arith.select %409, %407, %410 : vector<128x48xi1>, vector<128x48xf32>
    %412 = arith.truncf %411 : vector<128x48xf32> to vector<128x48xbf16>
    %c3_212 = arith.constant 3 : index
    %c0_213 = arith.constant 0 : index
    %c0_214 = arith.constant 0 : index
    %413 = vector.load %arg6[%c3_212, %c0_213, %c0_214] : memref<9x48x128xbf16, #tpu.memory_space<vmem>>, vector<1x48x128xbf16>
    %414 = vector.shape_cast %413 : vector<1x48x128xbf16> to vector<48x128xbf16>
    %cst_215 = arith.constant dense<0.000000e+00> : vector<128x128xf32>
    %415 = tpu.matmul %412, %414, %cst_215 {dimension_numbers = #tpu.dot_dimension_numbers<[1], [0], [0], [1], [0, 0, 1, 1], [], []>} : vector<128x48xbf16>, vector<48x128xbf16>, vector<128x128xf32> -> vector<128x128xf32>
    %416 = arith.addf %405, %415 : vector<128x128xf32>
    %417 = vector.extract_strided_slice %370 {offsets = [0, 0], sizes = [128, 48], strides = [1, 1]} : vector<128x128xf32> to vector<128x48xf32>
    %418 = arith.truncf %417 : vector<128x48xf32> to vector<128x48xbf16>
    %c4_216 = arith.constant 4 : index
    %c0_217 = arith.constant 0 : index
    %c0_218 = arith.constant 0 : index
    %419 = vector.load %arg6[%c4_216, %c0_217, %c0_218] : memref<9x48x128xbf16, #tpu.memory_space<vmem>>, vector<1x48x128xbf16>
    %420 = vector.shape_cast %419 : vector<1x48x128xbf16> to vector<48x128xbf16>
    %cst_219 = arith.constant dense<0.000000e+00> : vector<128x128xf32>
    %421 = tpu.matmul %418, %420, %cst_219 {dimension_numbers = #tpu.dot_dimension_numbers<[1], [0], [0], [1], [0, 0, 1, 1], [], []>} : vector<128x48xbf16>, vector<48x128xbf16>, vector<128x128xf32> -> vector<128x128xf32>
    %422 = arith.addf %416, %421 : vector<128x128xf32>
    %c17_220 = arith.constant 17 : index
    %c0_221 = arith.constant 0 : index
    %423 = vector.load %arg15[%c17_220, %c0_221] : memref<160x128xf32, #tpu.memory_space<vmem>>, vector<128x128xf32>
    %424 = vector.extract_strided_slice %423 {offsets = [0, 0], sizes = [128, 48], strides = [1, 1]} : vector<128x128xf32> to vector<128x48xf32>
    %cst_222 = arith.constant 0.000000e+00 : f32
    %425 = vector.shape_cast %110 : vector<128x1xi1> to vector<128x1xi1>
    %426 = vector.broadcast %425 : vector<128x1xi1> to vector<128x48xi1>
    %427 = vector.broadcast %cst_222 : f32 to vector<128x48xf32>
    %428 = arith.select %426, %424, %427 : vector<128x48xi1>, vector<128x48xf32>
    %429 = arith.truncf %428 : vector<128x48xf32> to vector<128x48xbf16>
    %c5_223 = arith.constant 5 : index
    %c0_224 = arith.constant 0 : index
    %c0_225 = arith.constant 0 : index
    %430 = vector.load %arg6[%c5_223, %c0_224, %c0_225] : memref<9x48x128xbf16, #tpu.memory_space<vmem>>, vector<1x48x128xbf16>
    %431 = vector.shape_cast %430 : vector<1x48x128xbf16> to vector<48x128xbf16>
    %cst_226 = arith.constant dense<0.000000e+00> : vector<128x128xf32>
    %432 = tpu.matmul %429, %431, %cst_226 {dimension_numbers = #tpu.dot_dimension_numbers<[1], [0], [0], [1], [0, 0, 1, 1], [], []>} : vector<128x48xbf16>, vector<48x128xbf16>, vector<128x128xf32> -> vector<128x128xf32>
    %433 = arith.addf %422, %432 : vector<128x128xf32>
    %c23_227 = arith.constant 23 : index
    %c0_228 = arith.constant 0 : index
    %434 = vector.load %arg15[%c23_227, %c0_228] : memref<160x128xf32, #tpu.memory_space<vmem>>, vector<128x128xf32>
    %435 = vector.extract_strided_slice %434 {offsets = [0, 0], sizes = [128, 48], strides = [1, 1]} : vector<128x128xf32> to vector<128x48xf32>
    %cst_229 = arith.constant 0.000000e+00 : f32
    %436 = vector.shape_cast %129 : vector<128x1xi1> to vector<128x1xi1>
    %437 = vector.broadcast %436 : vector<128x1xi1> to vector<128x48xi1>
    %438 = vector.broadcast %cst_229 : f32 to vector<128x48xf32>
    %439 = arith.select %437, %435, %438 : vector<128x48xi1>, vector<128x48xf32>
    %440 = arith.truncf %439 : vector<128x48xf32> to vector<128x48xbf16>
    %c6_230 = arith.constant 6 : index
    %c0_231 = arith.constant 0 : index
    %c0_232 = arith.constant 0 : index
    %441 = vector.load %arg6[%c6_230, %c0_231, %c0_232] : memref<9x48x128xbf16, #tpu.memory_space<vmem>>, vector<1x48x128xbf16>
    %442 = vector.shape_cast %441 : vector<1x48x128xbf16> to vector<48x128xbf16>
    %cst_233 = arith.constant dense<0.000000e+00> : vector<128x128xf32>
    %443 = tpu.matmul %440, %442, %cst_233 {dimension_numbers = #tpu.dot_dimension_numbers<[1], [0], [0], [1], [0, 0, 1, 1], [], []>} : vector<128x48xbf16>, vector<48x128xbf16>, vector<128x128xf32> -> vector<128x128xf32>
    %444 = arith.addf %433, %443 : vector<128x128xf32>
    %c24_234 = arith.constant 24 : index
    %c0_235 = arith.constant 0 : index
    %445 = vector.load %arg15[%c24_234, %c0_235] : memref<160x128xf32, #tpu.memory_space<vmem>>, vector<128x128xf32>
    %446 = vector.extract_strided_slice %445 {offsets = [0, 0], sizes = [128, 48], strides = [1, 1]} : vector<128x128xf32> to vector<128x48xf32>
    %cst_236 = arith.constant 0.000000e+00 : f32
    %447 = vector.shape_cast %148 : vector<128x1xi1> to vector<128x1xi1>
    %448 = vector.broadcast %447 : vector<128x1xi1> to vector<128x48xi1>
    %449 = vector.broadcast %cst_236 : f32 to vector<128x48xf32>
    %450 = arith.select %448, %446, %449 : vector<128x48xi1>, vector<128x48xf32>
    %451 = arith.truncf %450 : vector<128x48xf32> to vector<128x48xbf16>
    %c7_237 = arith.constant 7 : index
    %c0_238 = arith.constant 0 : index
    %c0_239 = arith.constant 0 : index
    %452 = vector.load %arg6[%c7_237, %c0_238, %c0_239] : memref<9x48x128xbf16, #tpu.memory_space<vmem>>, vector<1x48x128xbf16>
    %453 = vector.shape_cast %452 : vector<1x48x128xbf16> to vector<48x128xbf16>
    %cst_240 = arith.constant dense<0.000000e+00> : vector<128x128xf32>
    %454 = tpu.matmul %451, %453, %cst_240 {dimension_numbers = #tpu.dot_dimension_numbers<[1], [0], [0], [1], [0, 0, 1, 1], [], []>} : vector<128x48xbf16>, vector<48x128xbf16>, vector<128x128xf32> -> vector<128x128xf32>
    %455 = arith.addf %444, %454 : vector<128x128xf32>
    %c25_241 = arith.constant 25 : index
    %c0_242 = arith.constant 0 : index
    %456 = vector.load %arg15[%c25_241, %c0_242] : memref<160x128xf32, #tpu.memory_space<vmem>>, vector<128x128xf32>
    %457 = vector.extract_strided_slice %456 {offsets = [0, 0], sizes = [128, 48], strides = [1, 1]} : vector<128x128xf32> to vector<128x48xf32>
    %cst_243 = arith.constant 0.000000e+00 : f32
    %458 = vector.shape_cast %167 : vector<128x1xi1> to vector<128x1xi1>
    %459 = vector.broadcast %458 : vector<128x1xi1> to vector<128x48xi1>
    %460 = vector.broadcast %cst_243 : f32 to vector<128x48xf32>
    %461 = arith.select %459, %457, %460 : vector<128x48xi1>, vector<128x48xf32>
    %462 = arith.truncf %461 : vector<128x48xf32> to vector<128x48xbf16>
    %c8_244 = arith.constant 8 : index
    %c0_245 = arith.constant 0 : index
    %c0_246 = arith.constant 0 : index
    %463 = vector.load %arg6[%c8_244, %c0_245, %c0_246] : memref<9x48x128xbf16, #tpu.memory_space<vmem>>, vector<1x48x128xbf16>
    %464 = vector.shape_cast %463 : vector<1x48x128xbf16> to vector<48x128xbf16>
    %cst_247 = arith.constant dense<0.000000e+00> : vector<128x128xf32>
    %465 = tpu.matmul %462, %464, %cst_247 {dimension_numbers = #tpu.dot_dimension_numbers<[1], [0], [0], [1], [0, 0, 1, 1], [], []>} : vector<128x48xbf16>, vector<48x128xbf16>, vector<128x128xf32> -> vector<128x128xf32>
    %466 = arith.addf %455, %465 : vector<128x128xf32>
    %c0_248 = arith.constant 0 : index
    %c0_249 = arith.constant 0 : index
    %467 = vector.load %arg7[%c0_248, %c0_249] : memref<1x128xf32, #tpu.memory_space<vmem>>, vector<1x128xf32>
    %468 = vector.broadcast %467 : vector<1x128xf32> to vector<128x128xf32>
    %469 = arith.addf %466, %468 : vector<128x128xf32>
    %cst_250 = arith.constant 0.000000e+00 : f32
    %470 = vector.broadcast %cst_250 : f32 to vector<128x128xf32>
    %471 = arith.maximumf %469, %470 : vector<128x128xf32>
    %c16_251 = arith.constant 16 : index
    %c0_252 = arith.constant 0 : index
    %472 = vector.load %arg15[%c16_251, %c0_252] : memref<160x128xf32, #tpu.memory_space<vmem>>, vector<128x128xf32>
    tpu.vector_store %arg15[%c16_251, %c0_252], %471 {strides = array<i32>} : memref<160x128xf32, #tpu.memory_space<vmem>>, vector<128x128xf32>,
    %c17_253 = arith.constant 17 : index
    %c0_254 = arith.constant 0 : index
    %473 = vector.load %arg15[%c17_253, %c0_254] : memref<160x128xf32, #tpu.memory_space<vmem>>, vector<128x128xf32>
    %474 = arith.maximumf %471, %473 : vector<128x128xf32>
    %c24_255 = arith.constant 24 : index
    %c0_256 = arith.constant 0 : index
    %475 = vector.load %arg15[%c24_255, %c0_256] : memref<160x128xf32, #tpu.memory_space<vmem>>, vector<128x128xf32>
    %c25_257 = arith.constant 25 : index
    %c0_258 = arith.constant 0 : index
    %476 = vector.load %arg15[%c25_257, %c0_258] : memref<160x128xf32, #tpu.memory_space<vmem>>, vector<128x128xf32>
    %477 = arith.maximumf %475, %476 : vector<128x128xf32>
    %478 = arith.maximumf %474, %477 : vector<128x128xf32>
    %c16_259 = arith.constant 16 : index
    %c0_260 = arith.constant 0 : index
    %479 = vector.load %arg15[%c16_259, %c0_260] : memref<160x128xf32, #tpu.memory_space<vmem>>, vector<128x128xf32>
    tpu.vector_store %arg15[%c16_259, %c0_260], %478 {strides = array<i32>} : memref<160x128xf32, #tpu.memory_space<vmem>>, vector<128x128xf32>,
    %c16_261 = arith.constant 16 : index
    %c0_262 = arith.constant 0 : index
    %480 = vector.load %arg15[%c16_261, %c0_262] : memref<160x128xf32, #tpu.memory_space<vmem>>, vector<1x128xf32>
    %c0_263 = arith.constant 0 : index
    %c0_264 = arith.constant 0 : index
    %481 = vector.load %arg16[%c0_263, %c0_264] : memref<2x2176xf32, #tpu.memory_space<vmem>>, vector<1x128xf32>
    tpu.vector_store %arg16[%c0_263, %c0_264], %480 {strides = array<i32>} : memref<2x2176xf32, #tpu.memory_space<vmem>>, vector<1x128xf32>,
    %c18 = arith.constant 18 : index
    %c0_265 = arith.constant 0 : index
    %482 = vector.load %arg15[%c18, %c0_265] : memref<160x128xf32, #tpu.memory_space<vmem>>, vector<1x128xf32>
    %c0_266 = arith.constant 0 : index
    %c128 = arith.constant 128 : index
    %483 = vector.load %arg16[%c0_266, %c128] : memref<2x2176xf32, #tpu.memory_space<vmem>>, vector<1x128xf32>
    tpu.vector_store %arg16[%c0_266, %c128], %482 {strides = array<i32>} : memref<2x2176xf32, #tpu.memory_space<vmem>>, vector<1x128xf32>,
    %c20 = arith.constant 20 : index
    %c0_267 = arith.constant 0 : index
    %484 = vector.load %arg15[%c20, %c0_267] : memref<160x128xf32, #tpu.memory_space<vmem>>, vector<1x128xf32>
    %c0_268 = arith.constant 0 : index
    %c256 = arith.constant 256 : index
    %485 = vector.load %arg16[%c0_268, %c256] : memref<2x2176xf32, #tpu.memory_space<vmem>>, vector<1x128xf32>
    tpu.vector_store %arg16[%c0_268, %c256], %484 {strides = array<i32>} : memref<2x2176xf32, #tpu.memory_space<vmem>>, vector<1x128xf32>,
    %c22 = arith.constant 22 : index
    %c0_269 = arith.constant 0 : index
    %486 = vector.load %arg15[%c22, %c0_269] : memref<160x128xf32, #tpu.memory_space<vmem>>, vector<1x128xf32>
    %c0_270 = arith.constant 0 : index
    %c384 = arith.constant 384 : index
    %487 = vector.load %arg16[%c0_270, %c384] : memref<2x2176xf32, #tpu.memory_space<vmem>>, vector<1x128xf32>
    tpu.vector_store %arg16[%c0_270, %c384], %486 {strides = array<i32>} : memref<2x2176xf32, #tpu.memory_space<vmem>>, vector<1x128xf32>,
    %c32 = arith.constant 32 : index
    %c0_271 = arith.constant 0 : index
    %488 = vector.load %arg15[%c32, %c0_271] : memref<160x128xf32, #tpu.memory_space<vmem>>, vector<1x128xf32>
    %c0_272 = arith.constant 0 : index
    %c512 = arith.constant 512 : index
    %489 = vector.load %arg16[%c0_272, %c512] : memref<2x2176xf32, #tpu.memory_space<vmem>>, vector<1x128xf32>
    tpu.vector_store %arg16[%c0_272, %c512], %488 {strides = array<i32>} : memref<2x2176xf32, #tpu.memory_space<vmem>>, vector<1x128xf32>,
    %c34 = arith.constant 34 : index
    %c0_273 = arith.constant 0 : index
    %490 = vector.load %arg15[%c34, %c0_273] : memref<160x128xf32, #tpu.memory_space<vmem>>, vector<1x128xf32>
    %c0_274 = arith.constant 0 : index
    %c640 = arith.constant 640 : index
    %491 = vector.load %arg16[%c0_274, %c640] : memref<2x2176xf32, #tpu.memory_space<vmem>>, vector<1x128xf32>
    tpu.vector_store %arg16[%c0_274, %c640], %490 {strides = array<i32>} : memref<2x2176xf32, #tpu.memory_space<vmem>>, vector<1x128xf32>,
    %c36 = arith.constant 36 : index
    %c0_275 = arith.constant 0 : index
    %492 = vector.load %arg15[%c36, %c0_275] : memref<160x128xf32, #tpu.memory_space<vmem>>, vector<1x128xf32>
    %c0_276 = arith.constant 0 : index
    %c768 = arith.constant 768 : index
    %493 = vector.load %arg16[%c0_276, %c768] : memref<2x2176xf32, #tpu.memory_space<vmem>>, vector<1x128xf32>
    tpu.vector_store %arg16[%c0_276, %c768], %492 {strides = array<i32>} : memref<2x2176xf32, #tpu.memory_space<vmem>>, vector<1x128xf32>,
    %c38 = arith.constant 38 : index
    %c0_277 = arith.constant 0 : index
    %494 = vector.load %arg15[%c38, %c0_277] : memref<160x128xf32, #tpu.memory_space<vmem>>, vector<1x128xf32>
    %c0_278 = arith.constant 0 : index
    %c896 = arith.constant 896 : index
    %495 = vector.load %arg16[%c0_278, %c896] : memref<2x2176xf32, #tpu.memory_space<vmem>>, vector<1x128xf32>
    tpu.vector_store %arg16[%c0_278, %c896], %494 {strides = array<i32>} : memref<2x2176xf32, #tpu.memory_space<vmem>>, vector<1x128xf32>,
    %c48 = arith.constant 48 : index
    %c0_279 = arith.constant 0 : index
    %496 = vector.load %arg15[%c48, %c0_279] : memref<160x128xf32, #tpu.memory_space<vmem>>, vector<1x128xf32>
    %c0_280 = arith.constant 0 : index
    %c1024 = arith.constant 1024 : index
    %497 = vector.load %arg16[%c0_280, %c1024] : memref<2x2176xf32, #tpu.memory_space<vmem>>, vector<1x128xf32>
    tpu.vector_store %arg16[%c0_280, %c1024], %496 {strides = array<i32>} : memref<2x2176xf32, #tpu.memory_space<vmem>>, vector<1x128xf32>,
    %c50 = arith.constant 50 : index
    %c0_281 = arith.constant 0 : index
    %498 = vector.load %arg15[%c50, %c0_281] : memref<160x128xf32, #tpu.memory_space<vmem>>, vector<1x128xf32>
    %c0_282 = arith.constant 0 : index
    %c1152 = arith.constant 1152 : index
    %499 = vector.load %arg16[%c0_282, %c1152] : memref<2x2176xf32, #tpu.memory_space<vmem>>, vector<1x128xf32>
    tpu.vector_store %arg16[%c0_282, %c1152], %498 {strides = array<i32>} : memref<2x2176xf32, #tpu.memory_space<vmem>>, vector<1x128xf32>,
    %c52 = arith.constant 52 : index
    %c0_283 = arith.constant 0 : index
    %500 = vector.load %arg15[%c52, %c0_283] : memref<160x128xf32, #tpu.memory_space<vmem>>, vector<1x128xf32>
    %c0_284 = arith.constant 0 : index
    %c1280 = arith.constant 1280 : index
    %501 = vector.load %arg16[%c0_284, %c1280] : memref<2x2176xf32, #tpu.memory_space<vmem>>, vector<1x128xf32>
    tpu.vector_store %arg16[%c0_284, %c1280], %500 {strides = array<i32>} : memref<2x2176xf32, #tpu.memory_space<vmem>>, vector<1x128xf32>,
    %c54 = arith.constant 54 : index
    %c0_285 = arith.constant 0 : index
    %502 = vector.load %arg15[%c54, %c0_285] : memref<160x128xf32, #tpu.memory_space<vmem>>, vector<1x128xf32>
    %c0_286 = arith.constant 0 : index
    %c1408 = arith.constant 1408 : index
    %503 = vector.load %arg16[%c0_286, %c1408] : memref<2x2176xf32, #tpu.memory_space<vmem>>, vector<1x128xf32>
    tpu.vector_store %arg16[%c0_286, %c1408], %502 {strides = array<i32>} : memref<2x2176xf32, #tpu.memory_space<vmem>>, vector<1x128xf32>,
    %c64 = arith.constant 64 : index
    %c0_287 = arith.constant 0 : index
    %504 = vector.load %arg15[%c64, %c0_287] : memref<160x128xf32, #tpu.memory_space<vmem>>, vector<1x128xf32>
    %c0_288 = arith.constant 0 : index
    %c1536 = arith.constant 1536 : index
    %505 = vector.load %arg16[%c0_288, %c1536] : memref<2x2176xf32, #tpu.memory_space<vmem>>, vector<1x128xf32>
    tpu.vector_store %arg16[%c0_288, %c1536], %504 {strides = array<i32>} : memref<2x2176xf32, #tpu.memory_space<vmem>>, vector<1x128xf32>,
    %c66 = arith.constant 66 : index
    %c0_289 = arith.constant 0 : index
    %506 = vector.load %arg15[%c66, %c0_289] : memref<160x128xf32, #tpu.memory_space<vmem>>, vector<1x128xf32>
    %c0_290 = arith.constant 0 : index
    %c1664 = arith.constant 1664 : index
    %507 = vector.load %arg16[%c0_290, %c1664] : memref<2x2176xf32, #tpu.memory_space<vmem>>, vector<1x128xf32>
    tpu.vector_store %arg16[%c0_290, %c1664], %506 {strides = array<i32>} : memref<2x2176xf32, #tpu.memory_space<vmem>>, vector<1x128xf32>,
    %c68 = arith.constant 68 : index
    %c0_291 = arith.constant 0 : index
    %508 = vector.load %arg15[%c68, %c0_291] : memref<160x128xf32, #tpu.memory_space<vmem>>, vector<1x128xf32>
    %c0_292 = arith.constant 0 : index
    %c1792 = arith.constant 1792 : index
    %509 = vector.load %arg16[%c0_292, %c1792] : memref<2x2176xf32, #tpu.memory_space<vmem>>, vector<1x128xf32>
    tpu.vector_store %arg16[%c0_292, %c1792], %508 {strides = array<i32>} : memref<2x2176xf32, #tpu.memory_space<vmem>>, vector<1x128xf32>,
    %c70 = arith.constant 70 : index
    %c0_293 = arith.constant 0 : index
    %510 = vector.load %arg15[%c70, %c0_293] : memref<160x128xf32, #tpu.memory_space<vmem>>, vector<1x128xf32>
    %c0_294 = arith.constant 0 : index
    %c1920 = arith.constant 1920 : index
    %511 = vector.load %arg16[%c0_294, %c1920] : memref<2x2176xf32, #tpu.memory_space<vmem>>, vector<1x128xf32>
    tpu.vector_store %arg16[%c0_294, %c1920], %510 {strides = array<i32>} : memref<2x2176xf32, #tpu.memory_space<vmem>>, vector<1x128xf32>,
    %c0_295 = arith.constant 0 : index
    %c0_296 = arith.constant 0 : index
    %512 = vector.load %arg1[%c0_295, %c0_296] : memref<2x128xf32, #tpu.memory_space<vmem>>, vector<1x128xf32>
    %c0_297 = arith.constant 0 : index
    %c2048 = arith.constant 2048 : index
    %513 = vector.load %arg16[%c0_297, %c2048] : memref<2x2176xf32, #tpu.memory_space<vmem>>, vector<1x128xf32>
    tpu.vector_store %arg16[%c0_297, %c2048], %512 {strides = array<i32>} : memref<2x2176xf32, #tpu.memory_space<vmem>>, vector<1x128xf32>,
    %c80 = arith.constant 80 : index
    %c0_298 = arith.constant 0 : index
    %514 = vector.load %arg15[%c80, %c0_298] : memref<160x128xf32, #tpu.memory_space<vmem>>, vector<1x128xf32>
    %c1_299 = arith.constant 1 : index
    %c0_300 = arith.constant 0 : index
    %515 = vector.load %arg16[%c1_299, %c0_300] : memref<2x2176xf32, #tpu.memory_space<vmem>>, vector<1x128xf32>
    tpu.vector_store %arg16[%c1_299, %c0_300], %514 {strides = array<i32>} : memref<2x2176xf32, #tpu.memory_space<vmem>>, vector<1x128xf32>,
    %c82 = arith.constant 82 : index
    %c0_301 = arith.constant 0 : index
    %516 = vector.load %arg15[%c82, %c0_301] : memref<160x128xf32, #tpu.memory_space<vmem>>, vector<1x128xf32>
    %c1_302 = arith.constant 1 : index
    %c128_303 = arith.constant 128 : index
    %517 = vector.load %arg16[%c1_302, %c128_303] : memref<2x2176xf32, #tpu.memory_space<vmem>>, vector<1x128xf32>
    tpu.vector_store %arg16[%c1_302, %c128_303], %516 {strides = array<i32>} : memref<2x2176xf32, #tpu.memory_space<vmem>>, vector<1x128xf32>,
    %c84 = arith.constant 84 : index
    %c0_304 = arith.constant 0 : index
    %518 = vector.load %arg15[%c84, %c0_304] : memref<160x128xf32, #tpu.memory_space<vmem>>, vector<1x128xf32>
    %c1_305 = arith.constant 1 : index
    %c256_306 = arith.constant 256 : index
    %519 = vector.load %arg16[%c1_305, %c256_306] : memref<2x2176xf32, #tpu.memory_space<vmem>>, vector<1x128xf32>
    tpu.vector_store %arg16[%c1_305, %c256_306], %518 {strides = array<i32>} : memref<2x2176xf32, #tpu.memory_space<vmem>>, vector<1x128xf32>,
    %c86 = arith.constant 86 : index
    %c0_307 = arith.constant 0 : index
    %520 = vector.load %arg15[%c86, %c0_307] : memref<160x128xf32, #tpu.memory_space<vmem>>, vector<1x128xf32>
    %c1_308 = arith.constant 1 : index
    %c384_309 = arith.constant 384 : index
    %521 = vector.load %arg16[%c1_308, %c384_309] : memref<2x2176xf32, #tpu.memory_space<vmem>>, vector<1x128xf32>
    tpu.vector_store %arg16[%c1_308, %c384_309], %520 {strides = array<i32>} : memref<2x2176xf32, #tpu.memory_space<vmem>>, vector<1x128xf32>,
    %c96 = arith.constant 96 : index
    %c0_310 = arith.constant 0 : index
    %522 = vector.load %arg15[%c96, %c0_310] : memref<160x128xf32, #tpu.memory_space<vmem>>, vector<1x128xf32>
    %c1_311 = arith.constant 1 : index
    %c512_312 = arith.constant 512 : index
    %523 = vector.load %arg16[%c1_311, %c512_312] : memref<2x2176xf32, #tpu.memory_space<vmem>>, vector<1x128xf32>
    tpu.vector_store %arg16[%c1_311, %c512_312], %522 {strides = array<i32>} : memref<2x2176xf32, #tpu.memory_space<vmem>>, vector<1x128xf32>,
    %c98 = arith.constant 98 : index
    %c0_313 = arith.constant 0 : index
    %524 = vector.load %arg15[%c98, %c0_313] : memref<160x128xf32, #tpu.memory_space<vmem>>, vector<1x128xf32>
    %c1_314 = arith.constant 1 : index
    %c640_315 = arith.constant 640 : index
    %525 = vector.load %arg16[%c1_314, %c640_315] : memref<2x2176xf32, #tpu.memory_space<vmem>>, vector<1x128xf32>
    tpu.vector_store %arg16[%c1_314, %c640_315], %524 {strides = array<i32>} : memref<2x2176xf32, #tpu.memory_space<vmem>>, vector<1x128xf32>,
    %c100 = arith.constant 100 : index
    %c0_316 = arith.constant 0 : index
    %526 = vector.load %arg15[%c100, %c0_316] : memref<160x128xf32, #tpu.memory_space<vmem>>, vector<1x128xf32>
    %c1_317 = arith.constant 1 : index
    %c768_318 = arith.constant 768 : index
    %527 = vector.load %arg16[%c1_317, %c768_318] : memref<2x2176xf32, #tpu.memory_space<vmem>>, vector<1x128xf32>
    tpu.vector_store %arg16[%c1_317, %c768_318], %526 {strides = array<i32>} : memref<2x2176xf32, #tpu.memory_space<vmem>>, vector<1x128xf32>,
    %c102 = arith.constant 102 : index
    %c0_319 = arith.constant 0 : index
    %528 = vector.load %arg15[%c102, %c0_319] : memref<160x128xf32, #tpu.memory_space<vmem>>, vector<1x128xf32>
    %c1_320 = arith.constant 1 : index
    %c896_321 = arith.constant 896 : index
    %529 = vector.load %arg16[%c1_320, %c896_321] : memref<2x2176xf32, #tpu.memory_space<vmem>>, vector<1x128xf32>
    tpu.vector_store %arg16[%c1_320, %c896_321], %528 {strides = array<i32>} : memref<2x2176xf32, #tpu.memory_space<vmem>>, vector<1x128xf32>,
    %c112 = arith.constant 112 : index
    %c0_322 = arith.constant 0 : index
    %530 = vector.load %arg15[%c112, %c0_322] : memref<160x128xf32, #tpu.memory_space<vmem>>, vector<1x128xf32>
    %c1_323 = arith.constant 1 : index
    %c1024_324 = arith.constant 1024 : index
    %531 = vector.load %arg16[%c1_323, %c1024_324] : memref<2x2176xf32, #tpu.memory_space<vmem>>, vector<1x128xf32>
    tpu.vector_store %arg16[%c1_323, %c1024_324], %530 {strides = array<i32>} : memref<2x2176xf32, #tpu.memory_space<vmem>>, vector<1x128xf32>,
    %c114 = arith.constant 114 : index
    %c0_325 = arith.constant 0 : index
    %532 = vector.load %arg15[%c114, %c0_325] : memref<160x128xf32, #tpu.memory_space<vmem>>, vector<1x128xf32>
    %c1_326 = arith.constant 1 : index
    %c1152_327 = arith.constant 1152 : index
    %533 = vector.load %arg16[%c1_326, %c1152_327] : memref<2x2176xf32, #tpu.memory_space<vmem>>, vector<1x128xf32>
    tpu.vector_store %arg16[%c1_326, %c1152_327], %532 {strides = array<i32>} : memref<2x2176xf32, #tpu.memory_space<vmem>>, vector<1x128xf32>,
    %c116 = arith.constant 116 : index
    %c0_328 = arith.constant 0 : index
    %534 = vector.load %arg15[%c116, %c0_328] : memref<160x128xf32, #tpu.memory_space<vmem>>, vector<1x128xf32>
    %c1_329 = arith.constant 1 : index
    %c1280_330 = arith.constant 1280 : index
    %535 = vector.load %arg16[%c1_329, %c1280_330] : memref<2x2176xf32, #tpu.memory_space<vmem>>, vector<1x128xf32>
    tpu.vector_store %arg16[%c1_329, %c1280_330], %534 {strides = array<i32>} : memref<2x2176xf32, #tpu.memory_space<vmem>>, vector<1x128xf32>,
    %c118 = arith.constant 118 : index
    %c0_331 = arith.constant 0 : index
    %536 = vector.load %arg15[%c118, %c0_331] : memref<160x128xf32, #tpu.memory_space<vmem>>, vector<1x128xf32>
    %c1_332 = arith.constant 1 : index
    %c1408_333 = arith.constant 1408 : index
    %537 = vector.load %arg16[%c1_332, %c1408_333] : memref<2x2176xf32, #tpu.memory_space<vmem>>, vector<1x128xf32>
    tpu.vector_store %arg16[%c1_332, %c1408_333], %536 {strides = array<i32>} : memref<2x2176xf32, #tpu.memory_space<vmem>>, vector<1x128xf32>,
    %c128_334 = arith.constant 128 : index
    %c0_335 = arith.constant 0 : index
    %538 = vector.load %arg15[%c128_334, %c0_335] : memref<160x128xf32, #tpu.memory_space<vmem>>, vector<1x128xf32>
    %c1_336 = arith.constant 1 : index
    %c1536_337 = arith.constant 1536 : index
    %539 = vector.load %arg16[%c1_336, %c1536_337] : memref<2x2176xf32, #tpu.memory_space<vmem>>, vector<1x128xf32>
    tpu.vector_store %arg16[%c1_336, %c1536_337], %538 {strides = array<i32>} : memref<2x2176xf32, #tpu.memory_space<vmem>>, vector<1x128xf32>,
    %c130 = arith.constant 130 : index
    %c0_338 = arith.constant 0 : index
    %540 = vector.load %arg15[%c130, %c0_338] : memref<160x128xf32, #tpu.memory_space<vmem>>, vector<1x128xf32>
    %c1_339 = arith.constant 1 : index
    %c1664_340 = arith.constant 1664 : index
    %541 = vector.load %arg16[%c1_339, %c1664_340] : memref<2x2176xf32, #tpu.memory_space<vmem>>, vector<1x128xf32>
    tpu.vector_store %arg16[%c1_339, %c1664_340], %540 {strides = array<i32>} : memref<2x2176xf32, #tpu.memory_space<vmem>>, vector<1x128xf32>,
    %c132 = arith.constant 132 : index
    %c0_341 = arith.constant 0 : index
    %542 = vector.load %arg15[%c132, %c0_341] : memref<160x128xf32, #tpu.memory_space<vmem>>, vector<1x128xf32>
    %c1_342 = arith.constant 1 : index
    %c1792_343 = arith.constant 1792 : index
    %543 = vector.load %arg16[%c1_342, %c1792_343] : memref<2x2176xf32, #tpu.memory_space<vmem>>, vector<1x128xf32>
    tpu.vector_store %arg16[%c1_342, %c1792_343], %542 {strides = array<i32>} : memref<2x2176xf32, #tpu.memory_space<vmem>>, vector<1x128xf32>,
    %c134 = arith.constant 134 : index
    %c0_344 = arith.constant 0 : index
    %544 = vector.load %arg15[%c134, %c0_344] : memref<160x128xf32, #tpu.memory_space<vmem>>, vector<1x128xf32>
    %c1_345 = arith.constant 1 : index
    %c1920_346 = arith.constant 1920 : index
    %545 = vector.load %arg16[%c1_345, %c1920_346] : memref<2x2176xf32, #tpu.memory_space<vmem>>, vector<1x128xf32>
    tpu.vector_store %arg16[%c1_345, %c1920_346], %544 {strides = array<i32>} : memref<2x2176xf32, #tpu.memory_space<vmem>>, vector<1x128xf32>,
    %c1_347 = arith.constant 1 : index
    %c0_348 = arith.constant 0 : index
    %546 = vector.load %arg1[%c1_347, %c0_348] : memref<2x128xf32, #tpu.memory_space<vmem>>, vector<1x128xf32>
    %c1_349 = arith.constant 1 : index
    %c2048_350 = arith.constant 2048 : index
    %547 = vector.load %arg16[%c1_349, %c2048_350] : memref<2x2176xf32, #tpu.memory_space<vmem>>, vector<1x128xf32>
    tpu.vector_store %arg16[%c1_349, %c2048_350], %546 {strides = array<i32>} : memref<2x2176xf32, #tpu.memory_space<vmem>>, vector<1x128xf32>,
    %c0_351 = arith.constant 0 : index
    %c0_352 = arith.constant 0 : index
    %548 = vector.load %arg16[%c0_351, %c0_352] : memref<2x2176xf32, #tpu.memory_space<vmem>>, vector<2x2176xf32>
    %549 = arith.truncf %548 : vector<2x2176xf32> to vector<2x2176xbf16>
    %c0_i32_353 = arith.constant 0 : i32
    %550 = tpu.memref_slice %arg20[%c0_i32_353] : memref<3x!tpu.dma_semaphore, #tpu.memory_space<semaphore_mem>> -> memref<1x!tpu.dma_semaphore, #tpu.memory_space<semaphore_mem>>
    %551 = tpu.memref_squeeze %550 : memref<1x!tpu.dma_semaphore, #tpu.memory_space<semaphore_mem>> -> memref<!tpu.dma_semaphore, #tpu.memory_space<semaphore_mem>>
    tpu.wait_dma2 semaphore(%551 : memref<!tpu.dma_semaphore, #tpu.memory_space<semaphore_mem>>) src(%arg8 : memref<2176x256xbf16, #tpu.memory_space<any>>) dst(%arg17 : memref<2176x256xbf16, #tpu.memory_space<vmem>>)
    %c0_354 = arith.constant 0 : index
    %c0_355 = arith.constant 0 : index
    %552 = vector.load %arg17[%c0_354, %c0_355] : memref<2176x256xbf16, #tpu.memory_space<vmem>>, vector<2176x256xbf16>
    %cst_356 = arith.constant dense<0.000000e+00> : vector<2x256xf32>
    %553 = tpu.matmul %549, %552, %cst_356 {dimension_numbers = #tpu.dot_dimension_numbers<[1], [0], [0], [1], [0, 0, 1, 1], [], []>} : vector<2x2176xbf16>, vector<2176x256xbf16>, vector<2x256xf32> -> vector<2x256xf32>
    %c0_357 = arith.constant 0 : index
    %c0_358 = arith.constant 0 : index
    %554 = vector.load %arg9[%c0_357, %c0_358] : memref<1x256xf32, #tpu.memory_space<vmem>>, vector<1x256xf32>
    %555 = vector.broadcast %554 : vector<1x256xf32> to vector<2x256xf32>
    %556 = arith.addf %553, %555 : vector<2x256xf32>
    %cst_359 = arith.constant 0.000000e+00 : f32
    %557 = vector.broadcast %cst_359 : f32 to vector<2x256xf32>
    %558 = arith.maximumf %556, %557 : vector<2x256xf32>
    %c1_i32_360 = arith.constant 1 : i32
    %559 = tpu.memref_slice %arg20[%c1_i32_360] : memref<3x!tpu.dma_semaphore, #tpu.memory_space<semaphore_mem>> -> memref<1x!tpu.dma_semaphore, #tpu.memory_space<semaphore_mem>>
    %560 = tpu.memref_squeeze %559 : memref<1x!tpu.dma_semaphore, #tpu.memory_space<semaphore_mem>> -> memref<!tpu.dma_semaphore, #tpu.memory_space<semaphore_mem>>
    tpu.wait_dma2 semaphore(%560 : memref<!tpu.dma_semaphore, #tpu.memory_space<semaphore_mem>>) src(%arg10 : memref<256x128xbf16, #tpu.memory_space<any>>) dst(%arg18 : memref<256x128xbf16, #tpu.memory_space<vmem>>)
    %561 = arith.truncf %558 : vector<2x256xf32> to vector<2x256xbf16>
    %c0_361 = arith.constant 0 : index
    %c0_362 = arith.constant 0 : index
    %562 = vector.load %arg18[%c0_361, %c0_362] : memref<256x128xbf16, #tpu.memory_space<vmem>>, vector<256x128xbf16>
    %cst_363 = arith.constant dense<0.000000e+00> : vector<2x128xf32>
    %563 = tpu.matmul %561, %562, %cst_363 {dimension_numbers = #tpu.dot_dimension_numbers<[1], [0], [0], [1], [0, 0, 1, 1], [], []>} : vector<2x256xbf16>, vector<256x128xbf16>, vector<2x128xf32> -> vector<2x128xf32>
    %c0_364 = arith.constant 0 : index
    %c0_365 = arith.constant 0 : index
    %564 = vector.load %arg11[%c0_364, %c0_365] : memref<1x128xf32, #tpu.memory_space<vmem>>, vector<1x128xf32>
    %565 = vector.broadcast %564 : vector<1x128xf32> to vector<2x128xf32>
    %566 = arith.addf %563, %565 : vector<2x128xf32>
    %cst_366 = arith.constant 0.000000e+00 : f32
    %567 = vector.broadcast %cst_366 : f32 to vector<2x128xf32>
    %568 = arith.maximumf %566, %567 : vector<2x128xf32>
    %c2_i32_367 = arith.constant 2 : i32
    %569 = tpu.memref_slice %arg20[%c2_i32_367] : memref<3x!tpu.dma_semaphore, #tpu.memory_space<semaphore_mem>> -> memref<1x!tpu.dma_semaphore, #tpu.memory_space<semaphore_mem>>
    %570 = tpu.memref_squeeze %569 : memref<1x!tpu.dma_semaphore, #tpu.memory_space<semaphore_mem>> -> memref<!tpu.dma_semaphore, #tpu.memory_space<semaphore_mem>>
    tpu.wait_dma2 semaphore(%570 : memref<!tpu.dma_semaphore, #tpu.memory_space<semaphore_mem>>) src(%arg12 : memref<128x128xf32, #tpu.memory_space<any>>) dst(%arg19 : memref<128x128xf32, #tpu.memory_space<vmem>>)
    %c0_368 = arith.constant 0 : index
    %c0_369 = arith.constant 0 : index
    %571 = vector.load %arg19[%c0_368, %c0_369] : memref<128x128xf32, #tpu.memory_space<vmem>>, vector<128x128xf32>
    %cst_370 = arith.constant dense<0.000000e+00> : vector<2x128xf32>
    %572 = tpu.matmul %568, %571, %cst_370 {dimension_numbers = #tpu.dot_dimension_numbers<[1], [0], [0], [1], [0, 0, 1, 1], [], []>} : vector<2x128xf32>, vector<128x128xf32>, vector<2x128xf32> -> vector<2x128xf32>
    %c0_371 = arith.constant 0 : index
    %c0_372 = arith.constant 0 : index
    %573 = vector.load %arg13[%c0_371, %c0_372] : memref<1x128xf32, #tpu.memory_space<vmem>>, vector<1x128xf32>
    %574 = vector.broadcast %573 : vector<1x128xf32> to vector<2x128xf32>
    %575 = arith.addf %572, %574 : vector<2x128xf32>
    %cst_373 = arith.constant 0.000000e+00 : f32
    %576 = vector.broadcast %cst_373 : f32 to vector<2x128xf32>
    %577 = arith.subf %576, %575 : vector<2x128xf32>
    %578 = math.exp %577 : vector<2x128xf32>
    %cst_374 = arith.constant 1.000000e+00 : f32
    %579 = vector.broadcast %cst_374 : f32 to vector<2x128xf32>
    %580 = arith.addf %579, %578 : vector<2x128xf32>
    %cst_375 = arith.constant 1.000000e+00 : f32
    %581 = vector.broadcast %cst_375 : f32 to vector<2x128xf32>
    %582 = arith.divf %581, %580 : vector<2x128xf32>
    %c0_376 = arith.constant 0 : index
    %c0_377 = arith.constant 0 : index
    %583 = vector.load %arg14[%c0_376, %c0_377] : memref<2x128xf32, #tpu.memory_space<vmem>>, vector<2x128xf32>
    tpu.vector_store %arg14[%c0_376, %c0_377], %582 {strides = array<i32>} : memref<2x128xf32, #tpu.memory_space<vmem>>, vector<2x128xf32>,
    return
  }
}

</mosaic_0001>

<bundles_post_ra>
// kernel: cnn_forward.1
= control target key start
LH: loop header
LB: loop body
LE: loop exit
PB: predicated region body
PF: predicated region fallthrough
CT: control target
= control target key end

     0   :  { %19 = vsyncpa [#allocation9], 0  ;;  %s13638_s0 = inlined_call_operand.vmem [shape: f32[128,128], index: 0, kind: input, shape index: {}]   ;;  %s13639_s1 = inlined_call_operand.vmem [shape: f32[2,128], index: 1, kind: input, shape index: {}]   ;;  %s13640_s2 = inlined_call_operand.hbm [shape: bf16[9,16,128], index: 2, kind: input, shape index: {}]   ;;  %s13641_s3 = inlined_call_operand.hbm [shape: f32[1,128], index: 3, kind: input, shape index: {}]   ;;  %s13642_s4 = inlined_call_operand.hbm [shape: bf16[9,32,128], index: 4, kind: input, shape index: {}]   ;;  %s13643_s5 = inlined_call_operand.hbm [shape: f32[1,128], index: 5, kind: input, shape index: {}]   ;;  %s13644_s6 = inlined_call_operand.hbm [shape: bf16[9,48,128], index: 6, kind: input, shape index: {}]   ;;  %s13645_s7 = inlined_call_operand.hbm [shape: f32[1,128], index: 7, kind: input, shape index: {}]   ;;  %s13646_s8 = inlined_call_operand.hbm [shape: bf16[2176,256], index: 8, kind: input, shape index: {}]   ;;  %s13647_s9 = inlined_call_operand.hbm [shape: f32[1,256], index: 9, kind: input, shape index: {}]   ;;  %s13648_s10 = inlined_call_operand.hbm [shape: bf16[256,128], index: 10, kind: input, shape index: {}]   ;;  %s13649_s11 = inlined_call_operand.hbm [shape: f32[1,128], index: 11, kind: input, shape index: {}]   ;;  %s13650_s12 = inlined_call_operand.hbm [shape: f32[128,128], index: 12, kind: input, shape index: {}]   ;;  %s13651_s13 = inlined_call_operand.hbm [shape: f32[1,128], index: 13, kind: input, shape index: {}]   ;;  %s13652_s14 = inlined_call_operand.vmem [shape: f32[2,128], index: 14, kind: output, shape index: {}]  }
   0x1   :  { %20 = vsyncpa [#allocation11], 0 }
   0x2   :  { %21 = vsyncpa [#allocation14], 0 }
   0x3   :  { %22 = vsyncpa [#allocation17], 0  ;;  %s46_s15 = sshll.u32 %s13641_s3, 4  ;;  %s47_s15 = int_to_ptr.hbm [resolvable:$true] %s46_s15 }
   0x4   :  { %23 = vsyncpa [#allocation20], 0  ;;  %s9875_s16 = smov [#allocation10]   ;;  %s70_s20 = sshll.u32 %s13643_s5, 4  ;;  %s71_s20 = int_to_ptr.hbm [resolvable:$true] %s70_s20 }
   0x5   :  { %s48_s17 = sshll.u32 %s9875_s16, 4  ;;  %s9876_s21 = smov [#allocation13]   ;;  %s49_s17 = int_to_ptr.vmem [resolvable:$true] %s48_s17 }
   0x6   :  { %51 = dma.hbm_to_vmem [thread:$0]  %s47_s15, 16, %s49_s17, [#allocation11]  }
   0x7   :  { %s72_s22 = sshll.u32 %s9876_s21, 4  ;;  %s94_s25 = sshll.u32 %s13645_s7, 4  ;;  %s73_s22 = int_to_ptr.vmem [resolvable:$true] %s72_s22  ;;  %s95_s25 = int_to_ptr.hbm [resolvable:$true] %s94_s25 }
   0x8   :  { %75 = dma.hbm_to_vmem [thread:$0]  %s71_s20, 16, %s73_s22, [#allocation14]  }
   0x9   :  { %s116_s27 = sshll.u32 %s13649_s11, 4  ;;  %s9877_s28 = smov [#allocation16]   ;;  %s117_s27 = int_to_ptr.hbm [resolvable:$true] %s116_s27 }
   0xa   :  { %s96_s29 = sshll.u32 %s9877_s28, 4  ;;  %s9878_s5 = smov [#allocation19]   ;;  %s97_s29 = int_to_ptr.vmem [resolvable:$true] %s96_s29 }
   0xb   :  { %99 = dma.hbm_to_vmem [thread:$0]  %s95_s25, 16, %s97_s29, [#allocation17]  }
   0xc   :  { %s118_s30 = sshll.u32 %s9878_s5, 4  ;;  %s32_s17 = sshll.u32 %s13640_s2, 4  ;;  %s119_s30 = int_to_ptr.vmem [resolvable:$true] %s118_s30  ;;  %s33_s17 = int_to_ptr.hbm [resolvable:$true] %s32_s17 }
   0xd   :  { %121 = dma.hbm_to_vmem [thread:$0]  %s117_s27, 16, %s119_s30, [#allocation20]  }
   0xe   :  { %s9879_s7 = smov [#allocation8]   ;;  %s56_s11 = sshll.u32 %s13642_s4, 4  ;;  %s57_s11 = int_to_ptr.hbm [resolvable:$true] %s56_s11 }
   0xf   :  { %s34_s18 = sshll.u32 %s9879_s7, 4  ;;  %s9880_s21 = smov 64   ;;  %s35_s18 = int_to_ptr.vmem [resolvable:$true] %s34_s18 }
  0x10   :  { %s9881_s22 = smov 4   ;;  %s9882_s23 = smov [#allocation12]  }
  0x11   :  { %40 = dma.hbm_to_vmem [thread:$0]  %s33_s17, 1152, %s35_s18, [#allocation9], %s9880_s21, %s9880_s21, %s9881_s22  }
  0x12   :  { %s58_s24 = sshll.u32 %s9882_s23, 4  ;;  %s80_s2 = sshll.u32 %s13644_s6, 4  ;;  %s59_s24 = int_to_ptr.vmem [resolvable:$true] %s58_s24  ;;  %s81_s2 = int_to_ptr.hbm [resolvable:$true] %s80_s2 }
  0x13   :  { %64 = dma.hbm_to_vmem [thread:$0]  %s57_s11, 2304, %s59_s24, [#allocation11], %s9880_s21, %s9880_s21, %s9881_s22  }
  0x14   :  { %s105_s28 = sshll.u32 %s13647_s9, 4  ;;  %s9883_s29 = smov [#allocation15]   ;;  %s106_s28 = int_to_ptr.hbm [resolvable:$true] %s105_s28 }
  0x15   :  { %s82_s5 = sshll.u32 %s9883_s29, 4  ;;  %s9884_s4 = smov [#allocation18]   ;;  %s83_s5 = int_to_ptr.vmem [resolvable:$true] %s82_s5 }
  0x16   :  { %88 = dma.hbm_to_vmem [thread:$0]  %s81_s2, 3456, %s83_s5, [#allocation14], %s9880_s21, %s9880_s21, %s9881_s22  }
  0x17   :  { %s107_s30 = sshll.u32 %s9884_s4, 4  ;;  %s127_s17 = sshll.u32 %s13651_s13, 4  ;;  %s108_s30 = int_to_ptr.vmem [resolvable:$true] %s107_s30  ;;  %s128_s17 = int_to_ptr.hbm [resolvable:$true] %s127_s17 }
  0x18   :  { %110 = dma.hbm_to_vmem [thread:$0]  %s106_s28, 32, %s108_s30, [#allocation17]  }
  0x19   :  { %s9885_s6 = smov [#allocation21]  }
  0x1a   :  { %s129_s7 = sshll.u32 %s9885_s6, 4  ;;  %s130_s7 = int_to_ptr.vmem [resolvable:$true] %s129_s7 }
  0x1b   :  { %132 = dma.hbm_to_vmem [thread:$0]  %s128_s17, 16, %s130_s7, [#allocation20]  }
  0x1c   :  { %9859 = dma.done.wait [#allocation9], 1152  }
  0x1d   :  { %9860 = vsyncadd [#allocation9], 4294966144 }
  0x1e   :  { %9861 = dma.done.wait [#allocation11], 2320  }
  0x1f   :  { %9862 = vsyncadd [#allocation11], 4294964976 }
  0x20   :  { %9863 = dma.done.wait [#allocation14], 3472  }
  0x21   :  { %9864 = vsyncadd [#allocation14], 4294963824 }
  0x22   :  { %9865 = dma.done.wait [#allocation17], 48  }
  0x23   :  { %9866 = vsyncadd [#allocation17], 4294967248 }
  0x24   :  { %9867 = dma.done.wait [#allocation20], 32  }
  0x25   :  { %9868 = vsyncadd [#allocation20], 4294967264  ;;  %v215_v0 = vlaneseq  ;;  %v13679_v1 = vmov 0.0   ;;  %v9197_v12 = vld [vmem:[#allocation8 + $0x8] sm:$0xff]  ;;  %v10017_v13 = vld [vmem:[%s13638_s0] sm:$0xff]  ;;  %v14269_v33 = vmov 0 }
  0x26   :  { %212 = vst [vmem:[#allocation2 + $0x8] sm:$0xff] %v13679_v1  ;;  %v853_v14 = vld [vmem:[%s13638_s0 + $0x68] sm:$0xff]  ;;  %v854_v21 = vld [vmem:[%s13638_s0 + $0x70] sm:$0xff]  ;;  %1059 = vmatpush.bf16.msra.mxu0 %v9197_v12  ;;  %9538 = vmatpush.bf16.msra.mxu1 %v9197_v12  ;;  %v9198_v23 = vld [vmem:[#allocation8 + $0x10] sm:$0xff]  ;;  %v14272_v35 = vmov 0  ;;  %vm13656_vm9 = vcmask 130048  }
  0x27   :  { %213 = vst [vmem:[#allocation2 + $0x90] sm:$0xff] %v13679_v1  ;;  %v9994_v2 = vshrl.u32 %v215_v0, 7  ;;  %v9200_v22 = vld [vmem:[#allocation8 + $0x20] sm:$0xff]  ;;  %v9199_v24 = vld [vmem:[#allocation8 + $0x18] sm:$0xff]  ;;  %1292 = vmatpush.bf16.msra.mxu2 %v9198_v23  ;;  %v10059_v32 = vld [vmem:[%s13638_s0 + $0x18] sm:$0xff]  ;;  %v14275_v37 = vmov 0 }
  0x28   :  { %211 = vst [vmem:[#allocation2] sm:$0xff] %v13679_v1  ;;  %v10044_v28 = vld [vmem:[%s13638_s0 + $0x8] sm:$0xff]  ;;  %v10054_v31 = vld [vmem:[%s13638_s0 + $0x10] sm:$0xff]  ;;  %1462 = vmatpush.bf16.msra.mxu3 %v9199_v24  ;;  %v10093_v40 = vld [vmem:[%s13638_s0 + $0x20] sm:$0xff]  ;;  %v14278_v42 = vmov 0  ;;  %v14281_v48 = vmov 0 }
  0x29   :  { %v9998_v3 = vadd.s32 8, %v9994_v2  ;;  %v232_v4 = vshra.s32 %v9994_v2, 3  ;;  %214 = vst [vmem:[#allocation2 + $0x98] sm:$0xff] %v13679_v1  ;;  %v10003_v5 = vadd.s32 112, %v9994_v2  ;;  %v10006_v6 = vadd.s32 120, %v9994_v2  ;;  %v9196_v34 = vld [vmem:[#allocation8] sm:$0xff] }
  0x2a   :  { %v264_v7 = vand.u32 7, %v9994_v2  ;;  %856 = vst [vmem:[#allocation2 + $0x10] sm:$0xff] %v10017_v13  ;;  %1568 = vmatpush.bf16.msrb.mxu0 %v9200_v22  ;;  %1138 = vmatpush.bf16.msrb.mxu1 %v9196_v34  ;;  %v10085_v38 = vadd.s32 16, %v9994_v2  ;;  %v10088_v39 = vadd.s32 24, %v9994_v2  ;;  %v14291_v12 = vmov 0  ;;  %s177_s23 = sshll.u32 %s13646_s8, 4  ;;  %s178_s23 = int_to_ptr.hbm [resolvable:$true] %s177_s23 }
  0x2b   :  { %v233_v8 = vshra.s32 %v9998_v3, 3  ;;  %v10010_v9 = vand.u32 7, %v232_v4  ;;  %v246_v10 = vshra.s32 %v10003_v5, 3  ;;  %v247_v11 = vshra.s32 %v10006_v6, 3  ;;  %869 = vst [vmem:[#allocation2 + $0x78] sm:$0xff] %v853_v14  ;;  %v10159_v4 = vld [vmem:[%s13638_s0 + $0x28] sm:$0xff] }
  0x2c   :  { %v265_v15 = vand.u32 7, %v9998_v3  ;;  %v10023_v16 = vadd.s32 1, %v264_v7  ;;  %870 = vst [vmem:[#allocation2 + $0x80] sm:$0xff] %v854_v21  ;;  %v10102_v45 = vadd.s32 4294967295, %v264_v7  ;;  %v234_v51 = vshra.s32 %v10085_v38, 3  ;;  %s9887_s24 = smov [#allocation4]  }
  0x2d   :  { %v10025_v17 = vand.u32 7, %v233_v8  ;;  %v280_v18 = vadd.s32 4294967295, %v10010_v9  ;;  %v10029_v19 = vand.u32 7, %v246_v10  ;;  %v10031_v20 = vand.u32 7, %v247_v11  ;;  %857 = vst [vmem:[#allocation2 + $0x18] sm:$0xff] %v10044_v28  ;;  %s179_s25 = sshll.u32 %s9887_s24, 4  ;;  %s180_s25 = int_to_ptr.vmem [resolvable:$true] %s179_s25 }
  0x2e   :  { %14265 = vst [vmem:[#allocation38_spill] sm:$0xff] %v10023_v16  ;;  %v10036_v25 = vadd.s32 1, %v265_v15  ;;  %vm13663_vm0 = vcmp.le.s32.totalorder %v10023_v16, 7  ;;  %v10118_v50 = vadd.s32 4294967295, %v265_v15  ;;  %v235_v52 = vshra.s32 %v10088_v39, 3  ;;  %v10481_v16 = vld [vmem:[%s13638_s0 + $0x48] sm:$0xff] }
  0x2f   :  { %v281_v26 = vadd.s32 4294967295, %v10025_v17  ;;  %vm296_vm1 = vcmp.ge.s32.totalorder %v280_v18, 0  ;;  %vm312_vm2 = vcmp.le.s32.totalorder %v280_v18, 7  ;;  %v294_v27 = vadd.s32 4294967295, %v10029_v19  ;;  %858 = vst [vmem:[#allocation2 + $0x20] sm:$0xff] %v10054_v31  ;;  %s191_s26 = sshll.u32 %s13648_s10, 4  ;;  %s192_s26 = int_to_ptr.hbm [resolvable:$true] %s191_s26 }
  0x30   :  { %14266 = vst [vmem:[#allocation39_spill] sm:$0xff] %v10036_v25  ;;  %vm10046_vm3 = vmand %vm296_vm1, %vm312_vm2  ;;  %v295_v30 = vadd.s32 4294967295, %v10031_v20  ;;  %vm13653_vm14 = vcmp.le.s32.totalorder %v10036_v25, 7  ;;  %vm568_vm2 = vcmp.ge.s32.totalorder %v10010_v9, 0  ;;  %v266_v54 = vand.u32 7, %v10085_v38  ;;  %s9888_s8 = smov [#allocation5]  }
  0x31   :  { %vm297_vm4 = vcmp.ge.s32.totalorder %v281_v26, 0  ;;  %vm313_vm5 = vcmp.le.s32.totalorder %v281_v26, 7  ;;  %vm310_vm6 = vcmp.ge.s32.totalorder %v294_v27, 0  ;;  %vm10065_vm7 = vmand %vm10046_vm3, %vm13663_vm0  ;;  %vm326_vm11 = vcmp.le.s32.totalorder %v294_v27, 7  ;;  %859 = vst [vmem:[#allocation2 + $0x28] sm:$0xff] %v10059_v32  ;;  %v1180_v44 = vld [vmem:[#allocation2 + $0x9] sm:$0xff] }
  0x32   :  { %v14270_v33 = vsel %vm10065_vm7, 4294967295, %v14269_v33  ;;  %vm10070_vm8 = vmand %vm297_vm4, %vm313_vm5  ;;  %vm311_vm10 = vcmp.ge.s32.totalorder %v295_v30, 0  ;;  %vm327_vm12 = vcmp.le.s32.totalorder %v295_v30, 7  ;;  %860 = vst [vmem:[#allocation2 + $0x30] sm:$0xff] %v10093_v40  ;;  %v1228_v49 = vsel %vm10065_vm7, %v1180_v44, 0.0  ;;  %v1350_v61 = vld [vmem:[#allocation2 + $0xf] sm:$0xff] }
  0x33   :  { %14271 = vst [vmem:[#allocation40_spill] sm:$0xff] %v14270_v33  ;;  %v14273_v35 = vsel %vm10070_vm8, 4294967295, %v14272_v35  ;;  %v995_v36 = vsel %vm10070_vm8, %v10017_v13, 0.0  ;;  %vm10078_vm13 = vmand %vm310_vm6, %vm326_vm11  ;;  %vm584_vm4 = vcmp.le.s32.totalorder %v10010_v9, 7  ;;  %vm13654_vm5 = vcmp.ge.s32.totalorder %v10102_v45, 0  ;;  %v872_v26 = vld [vmem:[#allocation2 + $0x7] sm:$0xff] }
  0x34   :  { %14274 = vst [vmem:[#allocation41_spill] sm:$0xff] %v14273_v35  ;;  %v14276_v37 = vsel %vm10078_vm13, 4294967295, %v14275_v37  ;;  %v1010_v41 = vpack.c.bf16 %v995_v36, %v13679_v1  ;;  %vm10096_vm15 = vmand %vm311_vm10, %vm327_vm12  ;;  %v1008_v43 = vsel %vm10078_vm13, %v853_v14, 0.0  ;;  %v10125_v53 = vld [vmem:[#allocation2 + $0x11] sm:$0xff]  ;;  %vm569_vm6 = vcmp.ge.s32.totalorder %v10025_v17, 0  ;;  %s193_s27 = sshll.u32 %s9888_s8, 4  ;;  %s194_s27 = int_to_ptr.vmem [resolvable:$true] %s193_s27 }
  0x35   :  { %14277 = vst [vmem:[#allocation42_spill] sm:$0xff] %v14276_v37  ;;  %v14279_v42 = vsel %vm10096_vm15, 4294967295, %v14278_v42  ;;  %v1009_v46 = vsel %vm10096_vm15, %v854_v21, 0.0  ;;  %vm10112_vm1 = vmand %vm10070_vm8, %vm13653_vm14  ;;  %vm585_vm10 = vcmp.le.s32.totalorder %v10025_v17, 7  ;;  %v10134_v56 = vand.u32 7, %v234_v51  ;;  %v10152_v63 = vld [vmem:[#allocation2 + $0x17] sm:$0xff] }
  0x36   :  { %14280 = vst [vmem:[#allocation43_spill] sm:$0xff] %v14279_v42  ;;  %7613 = vmatmul.msk.bf16.vlgmr.msra.gmra.mxu0 %vm13656_vm9, %v1010_v41  ;;  %v1017_v47 = vpack.c.bf16 %v1009_v46, %v1008_v43  ;;  %v14282_v48 = vsel %vm10112_vm1, 4294967295, %v14281_v48  ;;  %v1229_v55 = vsel %vm10112_vm1, %v10125_v53, 0.0  ;;  %v10136_v57 = vand.u32 7, %v235_v52  ;;  %vm10144_vm12 = vmand %vm568_vm2, %vm584_vm4  ;;  %v10233_v41 = vld [vmem:[#allocation2 + $0x19] sm:$0xff]  ;;  %s205_s5 = sshll.u32 %s13650_s12, 4  ;;  %s206_s5 = int_to_ptr.hbm [resolvable:$true] %s205_s5 }
  0x37   :  { %14283 = vst [vmem:[#allocation44_spill] sm:$0xff] %v14282_v48  ;;  %v267_v58 = vand.u32 7, %v10088_v39  ;;  %v1244_v59 = vpack.c.bf16 %v1229_v55, %v1228_v49  ;;  %vm13655_vm11 = vcmp.ge.s32.totalorder %v10118_v50, 0  ;;  %vm10148_vm14 = vmand %vm569_vm6, %vm585_vm10  ;;  %v282_v0 = vadd.s32 4294967295, %v10134_v56  ;;  %v10231_v39 = vld [vmem:[%s13638_s0 + $0x30] sm:$0xff]  ;;  %s9889_s10 = smov [#allocation6]  }
  0x38   :  { %7620 = vmatmul.msk.bf16.vlgmr.msra.gmra.mxu1 %vm13656_vm9, %v1017_v47  ;;  %v283_v3 = vadd.s32 4294967295, %v10136_v57  ;;  %vm10166_vm2 = vmand %vm10144_vm12, %vm13654_vm5  ;;  %v14288_v7 = vmov 0  ;;  %v10170_v8 = vadd.s32 1, %v266_v54  ;;  %v10173_v10 = vadd.s32 32, %v9994_v2  ;;  %861 = vst [vmem:[#allocation2 + $0x38] sm:$0xff] %v10159_v4  ;;  %v2137_v49 = vld [vmem:[#allocation2 + $0x21] sm:$0xff] }
  0x39   :  { %7637 = vmatmul.msk.bf16.vlgmr.msra.gmra.mxu2 %vm13656_vm9, %v1244_v59  ;;  %v14289_v7 = vsel %vm10166_vm2, 4294967295, %v14288_v7  ;;  %v10176_v11 = vadd.s32 40, %v9994_v2  ;;  %vm10183_vm4 = vmand %vm10148_vm14, %vm13655_vm11  ;;  %v1398_v14 = vsel %vm10166_vm2, %v1350_v61, 0.0  ;;  %vm298_vm6 = vcmp.ge.s32.totalorder %v282_v0, 0  ;;  %14308 = vst [vmem:[#allocation51_spill] sm:$0xff] %v10231_v39  ;;  %s207_s4 = sshll.u32 %s9889_s10, 4  ;;  %s208_s4 = int_to_ptr.vmem [resolvable:$true] %s207_s4 }
  0x3a   :  { %14290 = vst [vmem:[#allocation45_spill] sm:$0xff] %v14289_v7  ;;  %v14292_v12 = vsel %vm10183_vm4, 4294967295, %v14291_v12  ;;  %vm314_vm10 = vcmp.le.s32.totalorder %v282_v0, 7  ;;  %v10189_v15 = vadd.s32 1, %v267_v58  ;;  %vm10195_vm5 = vmand %vm10144_vm12, %vm13663_vm0  ;;  %v14294_v18 = vmov 0 }
  0x3b   :  { %14293 = vst [vmem:[#allocation46_spill] sm:$0xff] %v14292_v12  ;;  %v14295_v18 = vsel %vm10195_vm5, 4294967295, %v14294_v18  ;;  %v1399_v21 = vsel %vm10183_vm4, %v10152_v63, 0.0  ;;  %vm299_vm11 = vcmp.ge.s32.totalorder %v283_v3, 0  ;;  %vm315_vm9 = vcmp.le.s32.totalorder %v283_v3, 7  ;;  %vm10210_vm7 = vmand %vm298_vm6, %vm314_vm10  ;;  %v10422_v12 = vld [vmem:[#allocation2 + $0x29] sm:$0xff] }
  0x3c   :  { %14296 = vst [vmem:[#allocation47_spill] sm:$0xff] %v14295_v18  ;;  %vm14297_vm1 = vcmp.le.s32.totalorder %v10036_v25, 7  ;;  %v14298_v22 = vmov 0  ;;  %v1414_v23 = vpack.c.bf16 %v1399_v21, %v1398_v14  ;;  %v14301_v24 = vmov 0  ;;  %vm10217_vm0 = vmand %vm299_vm11, %vm315_vm9  ;;  %182 = dma.hbm_to_vmem [thread:$0]  %s178_s23, 34816, %s180_s25, [#allocation7] }
  0x3d   :  { %vm10206_vm2 = vmand %vm10148_vm14, %vm14297_vm1  ;;  %v14302_v24 = vsel %vm10210_vm7, 4294967295, %v14301_v24  ;;  %v236_v27 = vshra.s32 %v10173_v10, 3  ;;  %v237_v30 = vshra.s32 %v10176_v11, 3  ;;  %vm14304_vm12 = vcmask 130048   ;;  %862 = vst [vmem:[#allocation2 + $0x40] sm:$0xff] %v10231_v39 }
  0x3e   :  { %v14299_v22 = vsel %vm10206_vm2, 4294967295, %v14298_v22  ;;  %14303 = vst [vmem:[#allocation49_spill] sm:$0xff] %v14302_v24  ;;  %7649 = vmatmul.msk.bf16.vlgmr.msra.gmra.mxu3 %vm14304_vm12, %v1414_v23  ;;  %v14305_v34 = vmov 0  ;;  %v996_v36 = vsel %vm10210_vm7, %v10044_v28, 0.0  ;;  %vm13664_vm14 = vcmp.le.s32.totalorder %v10170_v8, 7  ;;  %v10303_v23 = vld [vmem:[#allocation2 + $0x1f] sm:$0xff] }
  0x3f   :  { %14300 = vst [vmem:[#allocation48_spill] sm:$0xff] %v14299_v22  ;;  %v14306_v34 = vsel %vm10217_vm0, 4294967295, %v14305_v34  ;;  %vm13669_vm1 = vcmp.le.s32.totalorder %v10189_v15, 7  ;;  %v10226_v38 = vadd.s32 4294967295, %v266_v54  ;;  %v997_v43 = vsel %vm10217_vm0, %v10054_v31, 0.0  ;;  %v10424_v48 = vld [vmem:[#allocation2 + $0x31] sm:$0xff] }
  0x40   :  { %14307 = vst [vmem:[#allocation50_spill] sm:$0xff] %v14306_v34  ;;  %vm14309_vm9 = vcmp.ge.s32.totalorder %v10102_v45, 0  ;;  %v10242_v44 = vadd.s32 4294967295, %v267_v58  ;;  %v10244_v46 = vand.u32 7, %v236_v27  ;;  %v10246_v47 = vand.u32 7, %v237_v30 }
  0x41   :  { %vm376_vm11 = vmand %vm10046_vm3, %vm14309_vm9  ;;  %v1011_v51 = vpack.c.bf16 %v997_v43, %v996_v36  ;;  %vm14310_vm6 = vcmp.ge.s32.totalorder %v10118_v50, 0  ;;  %v14311_v52 = vmov 0  ;;  %vm586_vm12 = vcmp.le.s32.totalorder %v10134_v56, 7  ;;  %14364 = vst [vmem:[#allocation72_spill] sm:$0xff] %v10422_v12  ;;  %196 = dma.hbm_to_vmem [thread:$0]  %s192_s26, 2048, %s194_s27, [#allocation7 + $0x1] }
  0x42   :  { %vm10253_vm10 = vmand %vm10070_vm8, %vm14310_vm6  ;;  %v10257_v29 = vsel %vm376_vm11, %v872_v26, 0.0  ;;  %v14315_v55 = vmov 0  ;;  %vm571_vm6 = vcmp.ge.s32.totalorder %v10136_v57, 0  ;;  %vm587_vm11 = vcmp.le.s32.totalorder %v10136_v57, 7  ;;  %v10305_v26 = vld [vmem:[#allocation2 + $0x27] sm:$0xff]  ;;  %14365 = vst [vmem:[#allocation73_spill] sm:$0xff] %v10424_v48 }
  0x43   :  { %v14312_v52 = vsel %vm10253_vm10, 4294967295, %v14311_v52  ;;  %14314 = vst [vmem:[#allocation53_spill] sm:$0xff] %v10257_v29  ;;  %v921_v54 = vsel %vm10253_vm10, %v1350_v61, 0.0  ;;  %vm10267_vm9 = vmand %vm10210_vm7, %vm13664_vm14  ;;  %v284_v58 = vadd.s32 4294967295, %v10244_v46  ;;  %v14318_v60 = vmov 0 }
  0x44   :  { %14313 = vst [vmem:[#allocation52_spill] sm:$0xff] %v14312_v52  ;;  %v14316_v55 = vsel %vm10267_vm9, 4294967295, %v14315_v55  ;;  %v936_v59 = vpack.c.bf16 %v921_v54, %v10257_v29  ;;  %vm10279_vm3 = vmand %vm10217_vm0, %vm13669_vm1  ;;  %v1230_v61 = vsel %vm10267_vm9, %v10233_v41, 0.0  ;;  %vm13674_vm14 = vcmp.ge.s32.totalorder %v10226_v38, 0  ;;  %210 = dma.hbm_to_vmem [thread:$0]  %s206_s5, 2048, %s208_s4, [#allocation7 + $0x2] }
  0x45   :  { %14317 = vst [vmem:[#allocation54_spill] sm:$0xff] %v14316_v55  ;;  %v14319_v60 = vsel %vm10279_vm3, 4294967295, %v14318_v60  ;;  %v285_v62 = vadd.s32 4294967295, %v10246_v47  ;;  %vm14321_vm4 = vcmask 130048   ;;  %v1231_v0 = vsel %vm10279_vm3, %v2137_v49, 0.0  ;;  %vm10299_vm9 = vmand %vm571_vm6, %vm587_vm11 }
  0x46   :  { %14320 = vst [vmem:[#allocation55_spill] sm:$0xff] %v14319_v60  ;;  %7614 = vmatmul.msk.bf16.gmra.mxu0 %vm14321_vm4, %v1011_v51  ;;  %vm13675_vm10 = vcmp.ge.s32.totalorder %v10242_v44, 0  ;;  %vm14322_vm1 = vcmp.ge.s32.totalorder %v10134_v56, 0  ;;  %v14323_v3 = vmov 0  ;;  %v268_v14 = vand.u32 7, %v10173_v10 }
  0x47   :  { %vm10294_vm8 = vmand %vm14322_vm1, %vm586_vm12  ;;  %v14325_v21 = vmov 0  ;;  %v269_v27 = vand.u32 7, %v10176_v11  ;;  %v1245_v30 = vpack.c.bf16 %v1231_v0, %v1230_v61  ;;  %v14327_v36 = vmov 0  ;;  %v10323_v11 = vld [vmem:[%s13638_s0 + $0x38] sm:$0xff]  ;;  %865 = vst [vmem:[#allocation2 + $0x58] sm:$0xff] %v10481_v16 }
  0x48   :  { %v14324_v3 = vsel %vm10294_vm8, 4294967295, %v14323_v3  ;;  %v14326_v21 = vsel %vm10299_vm9, 4294967295, %v14325_v21  ;;  %7625 = vmatmul.msk.bf16.vlgmr.msrb.gmra.mxu1 %vm14321_vm4, %v936_v59  ;;  %vm10313_vm1 = vmand %vm10294_vm8, %vm13674_vm14  ;;  %vm300_vm12 = vcmp.ge.s32.totalorder %v284_v58, 0  ;;  %vm316_vm6 = vcmp.le.s32.totalorder %v284_v58, 7  ;;  %14330 = vst [vmem:[#allocation57_spill] sm:$0xff] %v10323_v11 }
  0x49   :  { %v14328_v36 = vsel %vm10313_vm1, 4294967295, %v14327_v36  ;;  %v10318_v10 = vadd.s32 48, %v9994_v2  ;;  %vm10329_vm11 = vmand %vm10299_vm9, %vm13675_vm10  ;;  %v14331_v43 = vmov 0  ;;  %vm301_vm4 = vcmp.ge.s32.totalorder %v285_v62, 0  ;;  %863 = vst [vmem:[#allocation2 + $0x48] sm:$0xff] %v10323_v11 }
  0x4a   :  { %14329 = vst [vmem:[#allocation56_spill] sm:$0xff] %v14328_v36  ;;  %v14332_v43 = vsel %vm10329_vm11, 4294967295, %v14331_v43  ;;  %vm317_vm14 = vcmp.le.s32.totalorder %v285_v62, 7  ;;  %v10334_v49 = vadd.s32 56, %v9994_v2  ;;  %v1400_v51 = vsel %vm10313_vm1, %v10303_v23, 0.0  ;;  %vm10345_vm10 = vmand %vm300_vm12, %vm316_vm6 }
  0x4b   :  { %14333 = vst [vmem:[#allocation58_spill] sm:$0xff] %v14332_v43  ;;  %v1401_v54 = vsel %vm10329_vm11, %v10305_v26, 0.0  ;;  %v10343_v58 = vadd.s32 1, %v268_v14  ;;  %v14335_v59 = vmov 0  ;;  %v10349_v61 = vadd.s32 1, %v269_v27  ;;  %vm10352_vm9 = vmand %vm301_vm4, %vm317_vm14 }
  0x4c   :  { %v14336_v59 = vsel %vm10345_vm10, 4294967295, %v14335_v59  ;;  %vm14339_vm3 = vcmask 130048   ;;  %v14340_v62 = vmov 0  ;;  %v238_v0 = vshra.s32 %v10318_v10, 3 }
  0x4d   :  { %14334 = vst [vmem:[#allocation59_spill] sm:$0xff] %v10343_v58  ;;  %7638 = vmatmul.msk.bf16.gmra.mxu2 %vm14339_vm3, %v1245_v30  ;;  %v14341_v62 = vsel %vm10352_vm9, 4294967295, %v14340_v62  ;;  %v1415_v1 = vpack.c.bf16 %v1401_v54, %v1400_v51  ;;  %vm14343_vm1 = vcmp.ge.s32.totalorder %v10226_v38, 0  ;;  %v14344_v43 = vmov 0 }
  0x4e   :  { %14337 = vst [vmem:[#allocation60_spill] sm:$0xff] %v14336_v59  ;;  %vm10361_vm11 = vmand %vm10210_vm7, %vm14343_vm1  ;;  %v239_v60 = vshra.s32 %v10334_v49, 3  ;;  %vm14347_vm12 = vcmp.ge.s32.totalorder %v10242_v44, 0  ;;  %v14348_v30 = vmov 0  ;;  %v10375_v51 = vadd.s32 4294967295, %v268_v14 }
  0x4f   :  { %14338 = vst [vmem:[#allocation61_spill] sm:$0xff] %v10349_v61  ;;  %v14345_v43 = vsel %vm10361_vm11, 4294967295, %v14344_v43  ;;  %vm10370_vm14 = vmand %vm10217_vm0, %vm14347_vm12  ;;  %v998_v54 = vsel %vm10345_vm10, %v10059_v32, 0.0  ;;  %v999_v36 = vsel %vm10352_vm9, %v10093_v40, 0.0  ;;  %v10384_v55 = vadd.s32 4294967295, %v269_v27  ;;  %7650 = vmatmul.msk.bf16.gmra.mxu3 %vm14339_vm3, %v1415_v1  ;;  %v10412_v1 = vld [vmem:[%s13638_s0 + $0x40] sm:$0xff] }
  0x50   :  { %14342 = vst [vmem:[#allocation62_spill] sm:$0xff] %v14341_v62  ;;  %v14349_v30 = vsel %vm10370_vm14, 4294967295, %v14348_v30  ;;  %v10389_v14 = vand.u32 7, %v238_v0  ;;  %v922_v34 = vsel %vm10361_vm11, %v10152_v63, 0.0  ;;  %v923_v24 = vsel %vm10370_vm14, %v10303_v23, 0.0 }
  0x51   :  { %14346 = vst [vmem:[#allocation63_spill] sm:$0xff] %v14345_v43  ;;  %vm14354_vm1 = vcmp.le.s32.totalorder %v10343_v58, 7  ;;  %v14355_v27 = vmov 0  ;;  %vm589_vm4 = vcmp.le.s32.totalorder %v10246_v47, 7  ;;  %v10407_v0 = vand.u32 7, %v239_v60 }
  0x52   :  { %14350 = vst [vmem:[#allocation64_spill] sm:$0xff] %v14349_v30  ;;  %vm10402_vm6 = vmand %vm10345_vm10, %vm14354_vm1  ;;  %v1012_v43 = vpack.c.bf16 %v999_v36, %v998_v54  ;;  %vm14360_vm3 = vcmp.le.s32.totalorder %v10349_v61, 7  ;;  %v14361_v30 = vmov 0  ;;  %vm13729_vm1 = vcmp.ge.s32.totalorder %v10375_v51, 0 }
  0x53   :  { %14351 = vst [vmem:[#allocation65_spill] sm:$0xff] %v10375_v51  ;;  %v14356_v27 = vsel %vm10402_vm6, 4294967295, %v14355_v27  ;;  %vm10418_vm12 = vmand %vm10352_vm9, %vm14360_vm3  ;;  %vm14366_vm14 = vcmp.le.s32.totalorder %v10244_v46, 7  ;;  %vm14367_vm11 = vcmp.ge.s32.totalorder %v10244_v46, 0  ;;  %v14368_v60 = vmov 0 }
  0x54   :  { %14352 = vst [vmem:[#allocation66_spill] sm:$0xff] %v10384_v55  ;;  %v14362_v30 = vsel %vm10418_vm12, 4294967295, %v14361_v30  ;;  %vm10432_vm0 = vmand %vm14367_vm11, %vm14366_vm14  ;;  %v937_v36 = vpack.c.bf16 %v923_v24, %v922_v34  ;;  %vm13731_vm3 = vcmp.ge.s32.totalorder %v10384_v55, 0  ;;  %vm14371_vm7 = vcmp.ge.s32.totalorder %v10246_v47, 0 }
  0x55   :  { %14353 = vst [vmem:[#allocation67_spill] sm:$0xff] %v10389_v14  ;;  %v14369_v60 = vsel %vm10432_vm0, 4294967295, %v14368_v60  ;;  %vm10439_vm8 = vmand %vm14371_vm7, %vm589_vm4  ;;  %v14372_v54 = vmov 0  ;;  %v286_v7 = vadd.s32 4294967295, %v10389_v14  ;;  %v1232_v33 = vsel %vm10402_vm6, %v10422_v12, 0.0 }
  0x56   :  { %14357 = vst [vmem:[#allocation68_spill] sm:$0xff] %v14356_v27  ;;  %v14373_v54 = vsel %vm10439_vm8, 4294967295, %v14372_v54  ;;  %v1233_v29 = vsel %vm10418_vm12, %v10424_v48, 0.0  ;;  %v287_v24 = vadd.s32 4294967295, %v10407_v0  ;;  %vm14375_vm11 = vcmask 130048   ;;  %vm10456_vm7 = vmand %vm10432_vm0, %vm13729_vm1  ;;  %v10469_v27 = vld [vmem:[#allocation2 + $0x2f] sm:$0xff] }
  0x57   :  { %14358 = vst [vmem:[#allocation69_spill] sm:$0xff] %v10407_v0  ;;  %7615 = vmatmul.msk.bf16.gmra.mxu0 %vm14375_vm11, %v1012_v43  ;;  %v14376_v34 = vmov 0  ;;  %v270_v52 = vand.u32 7, %v10318_v10  ;;  %vm10465_vm14 = vmand %vm10439_vm8, %vm13731_vm3  ;;  %v10471_v43 = vld [vmem:[#allocation2 + $0x37] sm:$0xff]  ;;  %v271_v35 = vand.u32 7, %v10334_v49  ;;  %v1246_v25 = vpack.c.bf16 %v1233_v29, %v1232_v33 }
  0x58   :  { %14359 = vst [vmem:[#allocation70_spill] sm:$0xff] %v10412_v1  ;;  %v14377_v34 = vsel %vm10456_vm7, 4294967295, %v14376_v34  ;;  %vm14383_vm4 = vmmov %vm14375_vm11  ;;  %vm302_vm11 = vcmp.ge.s32.totalorder %v286_v7, 0  ;;  %vm318_vm1 = vcmp.le.s32.totalorder %v286_v7, 7  ;;  %v10476_v10 = vadd.s32 64, %v9994_v2 }
  0x59   :  { %14363 = vst [vmem:[#allocation71_spill] sm:$0xff] %v14362_v30  ;;  %v14379_v30 = vmov 0  ;;  %7626 = vmatmul.msk.bf16.gmra.mxu1 %vm14383_vm4, %v937_v36  ;;  %vm303_vm3 = vcmp.ge.s32.totalorder %v287_v24, 0  ;;  %vm319_vm12 = vcmp.le.s32.totalorder %v287_v24, 7  ;;  %v10484_v48 = vadd.s32 72, %v9994_v2  ;;  %vm10495_vm4 = vmand %vm302_vm11, %vm318_vm1 }
  0x5a   :  { %864 = vst [vmem:[#allocation2 + $0x50] sm:$0xff] %v10412_v1  ;;  %v14380_v30 = vsel %vm10465_vm14, 4294967295, %v14379_v30  ;;  %v1402_v33 = vsel %vm10456_vm7, %v10469_v27, 0.0  ;;  %v1403_v7 = vsel %vm10465_vm14, %v10471_v43, 0.0  ;;  %v10493_v29 = vadd.s32 1, %v270_v52  ;;  %vm10502_vm8 = vmand %vm303_vm3, %vm319_vm12 }
  0x5b   :  { %14370 = vst [vmem:[#allocation74_spill] sm:$0xff] %v14369_v60  ;;  %v14385_v49 = vmov 0  ;;  %v10499_v36 = vadd.s32 1, %v271_v35  ;;  %vm14389_vm6 = vcmask 130048   ;;  %v14390_v24 = vmov 0 }
  0x5c   :  { %14374 = vst [vmem:[#allocation75_spill] sm:$0xff] %v14373_v54  ;;  %v14386_v49 = vsel %vm10495_vm4, 4294967295, %v14385_v49  ;;  %v14391_v24 = vsel %vm10502_vm8, 4294967295, %v14390_v24  ;;  %v1416_v54 = vpack.c.bf16 %v1403_v7, %v1402_v33  ;;  %vm14393_vm7 = vcmp.ge.s32.totalorder %v10375_v51, 0 }
  0x5d   :  { %14378 = vst [vmem:[#allocation76_spill] sm:$0xff] %v14377_v34  ;;  %7639 = vmatmul.msk.bf16.gmra.mxu2 %vm14389_vm6, %v1246_v25  ;;  %v240_v34 = vshra.s32 %v10476_v10, 3  ;;  %vm10511_vm14 = vmand %vm10345_vm10, %vm14393_vm7  ;;  %v241_v61 = vshra.s32 %v10484_v48, 3  ;;  %vm14397_vm1 = vcmp.ge.s32.totalorder %v10384_v55, 0  ;;  %v14398_v25 = vmov 0  ;;  %v10574_v55 = vld [vmem:[#allocation2 + $0x41] sm:$0xff] }
  0x5e   :  { %14381 = vst [vmem:[#allocation77_spill] sm:$0xff] %v14380_v30  ;;  %v14394_v30 = vmov 0  ;;  %vm10520_vm6 = vmand %vm10352_vm9, %vm14397_vm1  ;;  %v10525_v33 = vadd.s32 4294967295, %v270_v52  ;;  %v1000_v7 = vsel %vm10495_vm4, %v10159_v4, 0.0  ;;  %v1001_v59 = vsel %vm10502_vm8, %v10231_v39, 0.0 }
  0x5f   :  { %14382 = vst [vmem:[#allocation78_spill] sm:$0xff] %v10471_v43  ;;  %v14395_v30 = vsel %vm10511_vm14, 4294967295, %v14394_v30  ;;  %v14399_v25 = vsel %vm10520_vm6, 4294967295, %v14398_v25  ;;  %v10534_v60 = vadd.s32 4294967295, %v271_v35  ;;  %v10539_v52 = vand.u32 7, %v240_v34 }
  0x60   :  { %14384 = vst [vmem:[#allocation79_spill] sm:$0xff] %v10493_v29  ;;  %vm14404_vm12 = vcmask 130048   ;;  %v924_v62 = vsel %vm10511_vm14, %v10305_v26, 0.0  ;;  %v925_v58 = vsel %vm10520_vm6, %v10469_v27, 0.0  ;;  %vm14405_vm3 = vcmp.le.s32.totalorder %v10493_v29, 7  ;;  %v10572_v29 = vld [vmem:[#allocation2 + $0x39] sm:$0xff] }
  0x61   :  { %14387 = vst [vmem:[#allocation80_spill] sm:$0xff] %v14386_v49  ;;  %7651 = vmatmul.msk.bf16.gmra.mxu3 %vm14404_vm12, %v1416_v54  ;;  %vm10552_vm7 = vmand %vm10495_vm4, %vm14405_vm3  ;;  %v14406_v35 = vmov 0  ;;  %vm591_vm11 = vcmp.le.s32.totalorder %v10407_v0, 7  ;;  %v10557_v34 = vand.u32 7, %v241_v61  ;;  %v10562_v54 = vld [vmem:[%s13638_s0 + $0x50] sm:$0xff]  ;;  %vm14410_vm12 = vcmp.le.s32.totalorder %v10499_v36, 7 }
  0x62   :  { %14388 = vst [vmem:[#allocation81_spill] sm:$0xff] %v10499_v36  ;;  %v14407_v35 = vsel %vm10552_vm7, 4294967295, %v14406_v35  ;;  %vm10568_vm1 = vmand %vm10502_vm8, %vm14410_vm12  ;;  %vm13784_vm3 = vcmp.ge.s32.totalorder %v10525_v33, 0  ;;  %vm14416_vm6 = vcmp.le.s32.totalorder %v10389_v14, 7  ;;  %vm14417_vm14 = vcmp.ge.s32.totalorder %v10389_v14, 0 }
  0x63   :  { %14392 = vst [vmem:[#allocation82_spill] sm:$0xff] %v14391_v24  ;;  %vm10582_vm9 = vmand %vm14417_vm14, %vm14416_vm6  ;;  %v938_v61 = vpack.c.bf16 %v925_v58, %v924_v62  ;;  %vm13786_vm12 = vcmp.ge.s32.totalorder %v10534_v60, 0  ;;  %vm14421_vm10 = vcmp.ge.s32.totalorder %v10407_v0, 0  ;;  %v288_v36 = vadd.s32 4294967295, %v10539_v52 }
  0x64   :  { %14396 = vst [vmem:[#allocation83_spill] sm:$0xff] %v14395_v30  ;;  %v1013_v30 = vpack.c.bf16 %v1001_v59, %v1000_v7  ;;  %v14418_v59 = vmov 0  ;;  %vm10589_vm0 = vmand %vm14421_vm10, %vm591_vm11  ;;  %v14422_v7 = vmov 0  ;;  %v1234_v39 = vsel %vm10552_vm7, %v10572_v29, 0.0 }
  0x65   :  { %14400 = vst [vmem:[#allocation84_spill] sm:$0xff] %v14399_v25  ;;  %v14411_v25 = vmov 0  ;;  %v14419_v59 = vsel %vm10582_vm9, 4294967295, %v14418_v59  ;;  %v14423_v7 = vsel %vm10589_vm0, 4294967295, %v14422_v7  ;;  %v1235_v14 = vsel %vm10568_vm1, %v10574_v55, 0.0  ;;  %vm10606_vm10 = vmand %vm10582_vm9, %vm13784_vm3 }
  0x66   :  { %14401 = vst [vmem:[#allocation85_spill] sm:$0xff] %v10525_v33  ;;  %v14412_v25 = vsel %vm10568_vm1, 4294967295, %v14411_v25  ;;  %v289_v58 = vadd.s32 4294967295, %v10557_v34  ;;  %vm14425_vm14 = vcmask 130048   ;;  %v14426_v62 = vmov 0  ;;  %vm10615_vm6 = vmand %vm10589_vm0, %vm13786_vm12 }
  0x67   :  { %14402 = vst [vmem:[#allocation86_spill] sm:$0xff] %v10534_v60  ;;  %7616 = vmatmul.msk.bf16.gmra.mxu0 %vm14425_vm14, %v1013_v30  ;;  %v14427_v62 = vsel %vm10606_vm10, 4294967295, %v14426_v62  ;;  %v272_v0 = vand.u32 7, %v10476_v10  ;;  %v10621_v30 = vld [vmem:[#allocation2 + $0x47] sm:$0xff]  ;;  %vm14433_vm11 = vmmov %vm14425_vm14  ;;  %vm304_vm14 = vcmp.ge.s32.totalorder %v288_v36, 0  ;;  %vm320_vm3 = vcmp.le.s32.totalorder %v288_v36, 7 }
  0x68   :  { %14403 = vst [vmem:[#allocation87_spill] sm:$0xff] %v10539_v52  ;;  %v10626_v10 = vadd.s32 80, %v9994_v2  ;;  %vm305_vm12 = vcmp.ge.s32.totalorder %v289_v58, 0  ;;  %vm321_vm1 = vcmp.le.s32.totalorder %v289_v58, 7  ;;  %v14435_v36 = vmov 0 }
  0x69   :  { %14408 = vst [vmem:[#allocation88_spill] sm:$0xff] %v14407_v35  ;;  %v10619_v35 = vld [vmem:[#allocation2 + $0x3f] sm:$0xff]  ;;  %7627 = vmatmul.msk.bf16.gmra.mxu1 %vm14433_vm11, %v938_v61  ;;  %vm10645_vm11 = vmand %vm304_vm14, %vm320_vm3  ;;  %vm14439_vm7 = vcmask 130048   ;;  %v14440_v58 = vmov 0  ;;  %vm14447_vm3 = vcmp.ge.s32.totalorder %v10534_v60, 0  ;;  %vm593_vm14 = vcmp.le.s32.totalorder %v10557_v34, 7 }
  0x6a   :  { %14409 = vst [vmem:[#allocation89_spill] sm:$0xff] %v10557_v34  ;;  %v14436_v36 = vsel %vm10645_vm11, 4294967295, %v14435_v36  ;;  %vm10652_vm0 = vmand %vm305_vm12, %vm321_vm1  ;;  %vm14453_vm1 = vcmask 130048  }
  0x6b   :  { %14413 = vst [vmem:[#allocation90_spill] sm:$0xff] %v14412_v25  ;;  %v14429_v25 = vmov 0  ;;  %v14441_v58 = vsel %vm10652_vm0, 4294967295, %v14440_v58  ;;  %v1003_v49 = vsel %vm10652_vm0, %v10412_v1, 0.0 }
  0x6c   :  { %14414 = vst [vmem:[#allocation91_spill] sm:$0xff] %v10572_v29  ;;  %v14430_v25 = vsel %vm10615_vm6, 4294967295, %v14429_v25  ;;  %v10634_v29 = vadd.s32 88, %v9994_v2 }
  0x6d   :  { %14415 = vst [vmem:[#allocation92_spill] sm:$0xff] %v10574_v55  ;;  %v273_v55 = vand.u32 7, %v10484_v48  ;;  %v1404_v48 = vsel %vm10606_vm10, %v10619_v35, 0.0  ;;  %vm14443_vm10 = vcmp.ge.s32.totalorder %v10525_v33, 0  ;;  %v10724_v33 = vld [vmem:[#allocation2 + $0x51] sm:$0xff] }
  0x6e   :  { %866 = vst [vmem:[#allocation2 + $0x60] sm:$0xff] %v10562_v54  ;;  %v243_v12 = vshra.s32 %v10634_v29, 3 }
  0x6f   :  { %14420 = vst [vmem:[#allocation93_spill] sm:$0xff] %v14419_v59  ;;  %v1247_v59 = vpack.c.bf16 %v1235_v14, %v1234_v39  ;;  %v1405_v39 = vsel %vm10615_vm6, %v10621_v30, 0.0  ;;  %v10643_v14 = vadd.s32 1, %v272_v0  ;;  %v10649_v61 = vadd.s32 1, %v273_v55  ;;  %vm10661_vm6 = vmand %vm10495_vm4, %vm14443_vm10 }
  0x70   :  { %14424 = vst [vmem:[#allocation94_spill] sm:$0xff] %v14423_v7  ;;  %v10631_v7 = vld [vmem:[%s13638_s0 + $0x58] sm:$0xff]  ;;  %v1417_v51 = vpack.c.bf16 %v1405_v39, %v1404_v48  ;;  %v10675_v48 = vadd.s32 4294967295, %v272_v0  ;;  %v1002_v39 = vsel %vm10645_vm11, %v10323_v11, 0.0  ;;  %v10684_v60 = vadd.s32 4294967295, %v273_v55 }
  0x71   :  { %14428 = vst [vmem:[#allocation95_spill] sm:$0xff] %v14427_v62  ;;  %7640 = vmatmul.msk.bf16.gmra.mxu2 %vm14439_vm7, %v1247_v59  ;;  %v242_v62 = vshra.s32 %v10626_v10, 3  ;;  %vm10670_vm7 = vmand %vm10502_vm8, %vm14447_vm3  ;;  %v14448_v59 = vmov 0  ;;  %v926_v24 = vsel %vm10661_vm6, %v10471_v43, 0.0  ;;  %vm14454_vm12 = vcmp.le.s32.totalorder %v10643_v14, 7  ;;  %v9201_v43 = vld [vmem:[#allocation8 + $0x28] sm:$0xff] }
  0x72   :  { %14431 = vst [vmem:[#allocation96_spill] sm:$0xff] %v14430_v25  ;;  %v14444_v25 = vmov 0  ;;  %v14449_v59 = vsel %vm10670_vm7, 4294967295, %v14448_v59  ;;  %7652 = vmatmul.msk.bf16.gmra.mxu3 %vm14453_vm1, %v1417_v51  ;;  %v927_v1 = vsel %vm10670_vm7, %v10619_v35, 0.0  ;;  %vm10702_vm10 = vmand %vm10645_vm11, %vm14454_vm12  ;;  %v14455_v55 = vmov 0  ;;  %v10712_v51 = vld [vmem:[%s13638_s0 + $0x60] sm:$0xff]  ;;  %1738 = vmatpush.bf16.msra.mxu1 %v9201_v43 }
  0x73   :  { %14432 = vst [vmem:[#allocation97_spill] sm:$0xff] %v10619_v35  ;;  %v14445_v25 = vsel %vm10661_vm6, 4294967295, %v14444_v25  ;;  %v10689_v0 = vand.u32 7, %v242_v62  ;;  %v14456_v55 = vsel %vm10702_vm10, 4294967295, %v14455_v55  ;;  %v10707_v62 = vand.u32 7, %v243_v12 }
  0x74   :  { %867 = vst [vmem:[#allocation2 + $0x68] sm:$0xff] %v10631_v7  ;;  %vm14459_vm1 = vcmp.le.s32.totalorder %v10649_v61, 7  ;;  %vm13837_vm12 = vcmp.ge.s32.totalorder %v10675_v48, 0  ;;  %vm14465_vm7 = vcmp.le.s32.totalorder %v10539_v52, 7  ;;  %vm14466_vm6 = vcmp.ge.s32.totalorder %v10539_v52, 0 }
  0x75   :  { %14434 = vst [vmem:[#allocation98_spill] sm:$0xff] %v10643_v14  ;;  %vm10718_vm3 = vmand %vm10652_vm0, %vm14459_vm1  ;;  %v10722_v14 = vld [vmem:[#allocation2 + $0x49] sm:$0xff]  ;;  %v14467_v12 = vmov 0  ;;  %vm13847_vm1 = vcmp.ge.s32.totalorder %v10684_v60, 0  ;;  %vm14470_vm4 = vcmp.ge.s32.totalorder %v10557_v34, 0  ;;  %v274_v34 = vand.u32 7, %v10626_v10 }
  0x76   :  { %14437 = vst [vmem:[#allocation99_spill] sm:$0xff] %v14436_v36  ;;  %vm10732_vm8 = vmand %vm14466_vm6, %vm14465_vm7  ;;  %v1236_v35 = vsel %vm10702_vm10, %v10722_v14, 0.0  ;;  %v1237_v52 = vsel %vm10718_vm3, %v10724_v33, 0.0  ;;  %vm14474_vm6 = vcmask 130048   ;;  %v10776_v10 = vadd.s32 96, %v9994_v2 }
  0x77   :  { %14438 = vst [vmem:[#allocation100_spill] sm:$0xff] %v10649_v61  ;;  %v14468_v12 = vsel %vm10732_vm8, 4294967295, %v14467_v12  ;;  %vm10739_vm9 = vmand %vm14470_vm4, %vm593_vm14  ;;  %v290_v61 = vadd.s32 4294967295, %v10689_v0  ;;  %v14496_v43 = vmov 0 }
  0x78   :  { %14442 = vst [vmem:[#allocation101_spill] sm:$0xff] %v14441_v58  ;;  %vm10756_vm4 = vmand %vm10732_vm8, %vm13837_vm12 }
  0x79   :  { %14446 = vst [vmem:[#allocation102_spill] sm:$0xff] %v14445_v25  ;;  %v1014_v25 = vpack.c.bf16 %v1003_v49, %v1002_v39  ;;  %v939_v49 = vpack.c.bf16 %v927_v1, %v926_v24  ;;  %v14471_v39 = vmov 0  ;;  %v291_v1 = vadd.s32 4294967295, %v10707_v62  ;;  %vm10766_vm7 = vmand %vm10739_vm9, %vm13847_vm1 }
  0x7a   :  { %14450 = vst [vmem:[#allocation103_spill] sm:$0xff] %v14449_v59  ;;  %v14460_v59 = vmov 0  ;;  %v14472_v39 = vsel %vm10739_vm9, 4294967295, %v14471_v39  ;;  %v14475_v24 = vmov 0  ;;  %vm14481_vm14 = vmmov %vm14474_vm6  ;;  %vm322_vm12 = vcmp.le.s32.totalorder %v290_v61, 7 }
  0x7b   :  { %14451 = vst [vmem:[#allocation104_spill] sm:$0xff] %v10684_v60  ;;  %v14461_v59 = vsel %vm10718_vm3, 4294967295, %v14460_v59  ;;  %7617 = vmatmul.msk.bf16.gmra.mxu0 %vm14474_vm6, %v1014_v25  ;;  %v14476_v24 = vsel %vm10756_vm4, 4294967295, %v14475_v24  ;;  %v10770_v25 = vld [vmem:[#allocation2 + $0x4f] sm:$0xff]  ;;  %7628 = vmatmul.msk.bf16.gmra.mxu1 %vm14481_vm14, %v939_v49  ;;  %vm306_vm6 = vcmp.ge.s32.totalorder %v290_v61, 0  ;;  %vm307_vm3 = vcmp.ge.s32.totalorder %v291_v1, 0 }
  0x7c   :  { %14452 = vst [vmem:[#allocation105_spill] sm:$0xff] %v10689_v0  ;;  %vm323_vm10 = vcmp.le.s32.totalorder %v291_v1, 7  ;;  %v1406_v11 = vsel %vm10756_vm4, %v10770_v25, 0.0  ;;  %vm10792_vm14 = vmand %vm306_vm6, %vm322_vm12  ;;  %v14484_v1 = vmov 0  ;;  %vm14487_vm1 = vcmask 130048  }
  0x7d   :  { %14457 = vst [vmem:[#allocation106_spill] sm:$0xff] %v14456_v55  ;;  %v275_v55 = vand.u32 7, %v10634_v29  ;;  %v9202_v29 = vld [vmem:[#allocation8 + $0x30] sm:$0xff]  ;;  %v14485_v1 = vsel %vm10792_vm14, 4294967295, %v14484_v1  ;;  %vm10797_vm9 = vmand %vm307_vm3, %vm323_vm10  ;;  %vm14495_vm12 = vcmp.ge.s32.totalorder %v10684_v60, 0  ;;  %vm595_vm6 = vcmp.le.s32.totalorder %v10707_v62, 7 }
  0x7e   :  { %14458 = vst [vmem:[#allocation107_spill] sm:$0xff] %v10707_v62  ;;  %1908 = vmatpush.bf16.msrb.mxu2 %v9202_v29  ;;  %vm10815_vm10 = vmand %vm10652_vm0, %vm14495_vm12  ;;  %v10827_v29 = vadd.s32 4294967295, %v274_v34  ;;  %vm594_vm12 = vcmp.le.s32.totalorder %v10689_v0, 7 }
  0x7f   :  { %14462 = vst [vmem:[#allocation108_spill] sm:$0xff] %v14461_v59  ;;  %v14478_v59 = vmov 0  ;;  %v10789_v49 = vadd.s32 1, %v275_v55  ;;  %v14497_v43 = vsel %vm10815_vm10, 4294967295, %v14496_v43 }
  0x80   :  { %14463 = vst [vmem:[#allocation109_spill] sm:$0xff] %v10722_v14  ;;  %v14479_v59 = vsel %vm10766_vm7, 4294967295, %v14478_v59  ;;  %v9203_v14 = vld [vmem:[#allocation8 + $0x38] sm:$0xff] }
  0x81   :  { %14464 = vst [vmem:[#allocation110_spill] sm:$0xff] %v10724_v33  ;;  %v10772_v33 = vld [vmem:[#allocation2 + $0x57] sm:$0xff]  ;;  %2078 = vmatpush.bf16.msrb.mxu3 %v9203_v14  ;;  %v14492_v14 = vmov 0 }
  0x82   :  { %868 = vst [vmem:[#allocation2 + $0x70] sm:$0xff] %v10712_v51 }
  0x83   :  { %14469 = vst [vmem:[#allocation111_spill] sm:$0xff] %v14468_v12  ;;  %v1248_v12 = vpack.c.bf16 %v1237_v52, %v1236_v35  ;;  %v1407_v52 = vsel %vm10766_vm7, %v10772_v33, 0.0  ;;  %v10787_v35 = vadd.s32 1, %v274_v34  ;;  %vm14491_vm7 = vcmp.ge.s32.totalorder %v10675_v48, 0 }
  0x84   :  { %14473 = vst [vmem:[#allocation112_spill] sm:$0xff] %v14472_v39  ;;  %v10779_v39 = vadd.s32 104, %v9994_v2  ;;  %v14488_v2 = vmov 0  ;;  %vm10806_vm4 = vmand %vm10645_vm11, %vm14491_vm7  ;;  %v929_v34 = vsel %vm10815_vm10, %v10770_v25, 0.0  ;;  %vm14510_vm10 = vcmp.ge.s32.totalorder %v10689_v0, 0 }
  0x85   :  { %14477 = vst [vmem:[#allocation113_spill] sm:$0xff] %v14476_v24  ;;  %7641 = vmatmul.msk.bf16.gmra.mxu2 %vm14487_vm1, %v1248_v12  ;;  %v14489_v2 = vsel %vm10797_vm9, 4294967295, %v14488_v2  ;;  %v1418_v24 = vpack.c.bf16 %v1407_v52, %v1406_v11  ;;  %v14493_v14 = vsel %vm10806_vm4, 4294967295, %v14492_v14  ;;  %vm13869_vm3 = vcmp.le.s32.totalorder %v10787_v35, 7  ;;  %vm10869_vm0 = vmand %vm14510_vm10, %vm594_vm12 }
  0x86   :  { %14480 = vst [vmem:[#allocation114_spill] sm:$0xff] %v14479_v59  ;;  %v244_v59 = vshra.s32 %v10776_v10, 3  ;;  %v245_v61 = vshra.s32 %v10779_v39, 3  ;;  %v1004_v11 = vsel %vm10792_vm14, %v10481_v16, 0.0  ;;  %v1005_v12 = vsel %vm10797_vm9, %v10562_v54, 0.0  ;;  %vm10847_vm7 = vmand %vm10792_vm14, %vm13869_vm3 }
  0x87   :  { %14482 = vst [vmem:[#allocation115_spill] sm:$0xff] %v10787_v35  ;;  %v10829_v52 = vadd.s32 4294967295, %v275_v55  ;;  %7653 = vmatmul.msk.bf16.gmra.mxu3 %vm14487_vm1, %v1418_v24  ;;  %v928_v36 = vsel %vm10806_vm4, %v10621_v30, 0.0  ;;  %v14500_v55 = vmov 0  ;;  %v1015_v24 = vpack.c.bf16 %v1005_v12, %v1004_v11  ;;  %v10864_v35 = vld [vmem:[#allocation2 + $0x61] sm:$0xff] }
  0x88   :  { %14483 = vst [vmem:[#allocation116_spill] sm:$0xff] %v10789_v49  ;;  %v10834_v58 = vand.u32 7, %v244_v59  ;;  %v14501_v55 = vsel %vm10847_vm7, 4294967295, %v14500_v55  ;;  %v10852_v59 = vand.u32 7, %v245_v61  ;;  %vm14504_vm1 = vcmp.le.s32.totalorder %v10789_v49, 7 }
  0x89   :  { %14486 = vst [vmem:[#allocation117_spill] sm:$0xff] %v14485_v1  ;;  %vm10858_vm4 = vmand %vm10797_vm9, %vm14504_vm1  ;;  %vm13888_vm3 = vcmp.ge.s32.totalorder %v10827_v29, 0  ;;  %v14511_v61 = vmov 0  ;;  %v940_v11 = vpack.c.bf16 %v929_v34, %v928_v36  ;;  %vm13890_vm11 = vcmp.ge.s32.totalorder %v10829_v52, 0 }
  0x8a   :  { %14490 = vst [vmem:[#allocation118_spill] sm:$0xff] %v14489_v2  ;;  %v14512_v61 = vsel %vm10869_vm0, 4294967295, %v14511_v61  ;;  %vm14514_vm1 = vcmp.ge.s32.totalorder %v10707_v62, 0  ;;  %v14515_v12 = vmov 0  ;;  %v292_v49 = vadd.s32 4294967295, %v10834_v58 }
  0x8b   :  { %14494 = vst [vmem:[#allocation119_spill] sm:$0xff] %v14493_v14  ;;  %v10862_v14 = vld [vmem:[#allocation2 + $0x59] sm:$0xff]  ;;  %vm10876_vm8 = vmand %vm14514_vm1, %vm595_vm6  ;;  %v1239_v0 = vsel %vm10858_vm4, %v10864_v35, 0.0  ;;  %v293_v36 = vadd.s32 4294967295, %v10852_v59  ;;  %vm14518_vm10 = vcmask 130048   ;;  %v14519_v34 = vmov 0 }
  0x8c   :  { %14498 = vst [vmem:[#allocation120_spill] sm:$0xff] %v14497_v43  ;;  %v14505_v43 = vmov 0  ;;  %v14516_v12 = vsel %vm10876_vm8, 4294967295, %v14515_v12  ;;  %v1238_v60 = vsel %vm10847_vm7, %v10862_v14, 0.0  ;;  %7618 = vmatmul.msk.bf16.gmra.mxu0 %vm14518_vm10, %v1015_v24  ;;  %vm10893_vm6 = vmand %vm10869_vm0, %vm13888_vm3  ;;  %v276_v62 = vand.u32 7, %v10776_v10  ;;  %v10908_v24 = vld [vmem:[#allocation2 + $0x67] sm:$0xff] }
  0x8d   :  { %14499 = vst [vmem:[#allocation121_spill] sm:$0xff] %v10834_v58  ;;  %v14506_v43 = vsel %vm10858_vm4, 4294967295, %v14505_v43  ;;  %v14520_v34 = vsel %vm10893_vm6, 4294967295, %v14519_v34  ;;  %vm10902_vm12 = vmand %vm10876_vm8, %vm13890_vm11  ;;  %vm324_vm3 = vcmp.le.s32.totalorder %v292_v49, 7  ;;  %v9204_v10 = vld [vmem:[#allocation8 + $0x40] sm:$0xff]  ;;  %vm309_vm11 = vcmp.ge.s32.totalorder %v293_v36, 0 }
  0x8e   :  { %14502 = vst [vmem:[#allocation122_spill] sm:$0xff] %v14501_v55  ;;  %v10906_v55 = vld [vmem:[#allocation2 + $0x5f] sm:$0xff]  ;;  %vm14525_vm1 = vmmov %vm14518_vm10  ;;  %vm308_vm10 = vcmp.ge.s32.totalorder %v292_v49, 0  ;;  %vm325_vm4 = vcmp.le.s32.totalorder %v293_v36, 7  ;;  %2248 = vmatpush.bf16.msra.mxu0 %v9204_v10  ;;  %vm14532_vm7 = vcmask 130048   ;;  %v14541_v10 = vmov 0 }
  0x8f   :  { %14503 = vst [vmem:[#allocation123_spill] sm:$0xff] %v10852_v59  ;;  %7629 = vmatmul.msk.bf16.gmra.mxu1 %vm14525_vm1, %v940_v11  ;;  %vm10926_vm1 = vmand %vm308_vm10, %vm324_vm3  ;;  %v14533_v11 = vmov 0  ;;  %vm14540_vm3 = vcmp.ge.s32.totalorder %v10829_v52, 0 }
  0x90   :  { %14507 = vst [vmem:[#allocation124_spill] sm:$0xff] %v14506_v43  ;;  %v14522_v43 = vmov 0  ;;  %vm10933_vm8 = vmand %vm309_vm11, %vm325_vm4 }
  0x91   :  { %14508 = vst [vmem:[#allocation125_spill] sm:$0xff] %v10862_v14  ;;  %v14523_v43 = vsel %vm10902_vm12, 4294967295, %v14522_v43  ;;  %v1408_v14 = vsel %vm10893_vm6, %v10906_v55, 0.0  ;;  %v14534_v11 = vsel %vm10933_vm8, 4294967295, %v14533_v11  ;;  %vm14536_vm6 = vcmp.ge.s32.totalorder %v10827_v29, 0  ;;  %vm10949_vm10 = vmand %vm10797_vm9, %vm14540_vm3 }
  0x92   :  { %14509 = vst [vmem:[#allocation126_spill] sm:$0xff] %v10864_v35  ;;  %v277_v35 = vand.u32 7, %v10779_v39  ;;  %v14528_v39 = vmov 0  ;;  %v14542_v10 = vsel %vm10949_vm10, 4294967295, %v14541_v10  ;;  %vm14544_vm3 = vcmask 130048  }
  0x93   :  { %14513 = vst [vmem:[#allocation127_spill] sm:$0xff] %v14512_v61  ;;  %v1249_v61 = vpack.c.bf16 %v1239_v0, %v1238_v60  ;;  %v1409_v60 = vsel %vm10902_vm12, %v10908_v24, 0.0  ;;  %v10924_v0 = vadd.s32 1, %v276_v62  ;;  %v14529_v39 = vsel %vm10926_vm1, 4294967295, %v14528_v39  ;;  %vm10941_vm12 = vmand %vm10792_vm14, %vm14536_vm6 }
  0x94   :  { %14517 = vst [vmem:[#allocation128_spill] sm:$0xff] %v14516_v12  ;;  %v10915_v12 = vld [vmem:[%s13638_s0 + $0x78] sm:$0xff]  ;;  %v10930_v49 = vadd.s32 1, %v277_v35  ;;  %v1419_v36 = vpack.c.bf16 %v1409_v60, %v1408_v14  ;;  %v1006_v14 = vsel %vm10926_vm1, %v10631_v7, 0.0  ;;  %v10961_v60 = vadd.s32 4294967295, %v276_v62 }
  0x95   :  { %14521 = vst [vmem:[#allocation129_spill] sm:$0xff] %v14520_v34  ;;  %7642 = vmatmul.msk.bf16.gmra.mxu2 %vm14532_vm7, %v1249_v61  ;;  %vm13919_vm11 = vcmp.le.s32.totalorder %v10924_v0, 7  ;;  %v1007_v61 = vsel %vm10933_vm8, %v10712_v51, 0.0  ;;  %v10963_v34 = vadd.s32 4294967295, %v277_v35  ;;  %vm580_vm7 = vcmp.ge.s32.totalorder %v10834_v58, 0 }
  0x96   :  { %14524 = vst [vmem:[#allocation130_spill] sm:$0xff] %v14523_v43  ;;  %v14537_v43 = vmov 0  ;;  %vm596_vm6 = vcmp.le.s32.totalorder %v10834_v58, 7  ;;  %v930_v2 = vsel %vm10941_vm12, %v10772_v33, 0.0  ;;  %v931_v1 = vsel %vm10949_vm10, %v10906_v55, 0.0  ;;  %vm10978_vm4 = vmand %vm10926_vm1, %vm13919_vm11 }
  0x97   :  { %14526 = vst [vmem:[#allocation131_spill] sm:$0xff] %v10915_v12  ;;  %v14538_v43 = vsel %vm10941_vm12, 4294967295, %v14537_v43  ;;  %7654 = vmatmul.msk.bf16.gmra.mxu3 %vm14544_vm3, %v1419_v36  ;;  %v14545_v62 = vmov 0  ;;  %vm581_vm9 = vcmp.ge.s32.totalorder %v10852_v59, 0  ;;  %vm597_vm3 = vcmp.le.s32.totalorder %v10852_v59, 7  ;;  %vm10997_vm10 = vmand %vm580_vm7, %vm596_vm6 }
  0x98   :  { %871 = vst [vmem:[#allocation2 + $0x88] sm:$0xff] %v10915_v12  ;;  %v14546_v62 = vsel %vm10978_vm4, 4294967295, %v14545_v62  ;;  %v1016_v35 = vpack.c.bf16 %v1007_v61, %v1006_v14  ;;  %vm14548_vm14 = vcmp.le.s32.totalorder %v10930_v49, 7  ;;  %v14549_v36 = vmov 0  ;;  %vm11002_vm2 = vmand %vm581_vm9, %vm597_vm3 }
  0x99   :  { %14527 = vst [vmem:[#allocation132_spill] sm:$0xff] %v10924_v0  ;;  %vm10988_vm12 = vmand %vm10933_vm8, %vm14548_vm14  ;;  %vm13942_vm11 = vcmp.ge.s32.totalorder %v10961_v60, 0  ;;  %v14554_v0 = vmov 0  ;;  %v941_v12 = vpack.c.bf16 %v931_v1, %v930_v2  ;;  %vm13947_vm0 = vcmp.ge.s32.totalorder %v10963_v34, 0 }
  0x9a   :  { %14530 = vst [vmem:[#allocation133_spill] sm:$0xff] %v14529_v39  ;;  %v14550_v36 = vsel %vm10988_vm12, 4294967295, %v14549_v36  ;;  %v14555_v0 = vsel %vm10997_vm10, 4294967295, %v14554_v0  ;;  %v14557_v14 = vmov 0  ;;  %vm14560_vm14 = vcmask 130048   ;;  %vm11017_vm7 = vmand %vm10997_vm10, %vm13942_vm11 }
  0x9b   :  { %14531 = vst [vmem:[#allocation134_spill] sm:$0xff] %v10930_v49  ;;  %v14558_v14 = vsel %vm11002_vm2, 4294967295, %v14557_v14  ;;  %v14561_v1 = vmov 0  ;;  %v278_v2 = vand.u32 7, %v10003_v5  ;;  %vm11026_vm9 = vmand %vm11002_vm2, %vm13947_vm0 }
  0x9c   :  { %14535 = vst [vmem:[#allocation135_spill] sm:$0xff] %v14534_v11  ;;  %7619 = vmatmul.msk.bf16.gmra.mxu0 %vm14560_vm14, %v1016_v35  ;;  %v14562_v1 = vsel %vm11017_vm7, 4294967295, %v14561_v1  ;;  %v11032_v35 = vld [vmem:[#allocation2 + $0x77] sm:$0xff]  ;;  %vm14567_vm6 = vmmov %vm14560_vm14 }
  0x9d   :  { %14539 = vst [vmem:[#allocation136_spill] sm:$0xff] %v14538_v43  ;;  %v10994_v43 = vld [vmem:[#allocation2 + $0x71] sm:$0xff]  ;;  %vm14568_vm3 = vmmov %vm14567_vm6 }
  0x9e   :  { %14543 = vst [vmem:[#allocation137_spill] sm:$0xff] %v14542_v10  ;;  %v10992_v10 = vld [vmem:[#allocation2 + $0x69] sm:$0xff]  ;;  %v1241_v49 = vsel %vm10988_vm12, %v10994_v43, 0.0  ;;  %vm11051_vm14 = vmand %vm10926_vm1, %vm13942_vm11  ;;  %vm582_vm11 = vcmp.ge.s32.totalorder %v10029_v19, 0  ;;  %vm598_vm12 = vcmp.le.s32.totalorder %v10029_v19, 7 }
  0x9f   :  { %14547 = vst [vmem:[#allocation138_spill] sm:$0xff] %v14546_v62  ;;  %v1240_v61 = vsel %vm10978_vm4, %v10992_v10, 0.0  ;;  %v14564_v62 = vmov 0  ;;  %7630 = vmatmul.msk.bf16.gmra.mxu1 %vm14567_vm6, %v941_v12  ;;  %vm11059_vm6 = vmand %vm10933_vm8, %vm13947_vm0  ;;  %v14572_v12 = vmov 0 }
  0xa0   :  { %14551 = vst [vmem:[#allocation139_spill] sm:$0xff] %v14550_v36  ;;  %v14565_v62 = vsel %vm11026_vm9, 4294967295, %v14564_v62  ;;  %v11030_v36 = vld [vmem:[#allocation2 + $0x6f] sm:$0xff]  ;;  %v14573_v12 = vsel %vm11059_vm6, 4294967295, %v14572_v12 }
  0xa1   :  { %14552 = vst [vmem:[#allocation140_spill] sm:$0xff] %v10992_v10  ;;  %v1410_v5 = vsel %vm11017_vm7, %v11030_v36, 0.0  ;;  %v11042_v10 = vadd.s32 1, %v278_v2  ;;  %vm14575_vm7 = vmmov %vm14568_vm3 }
  0xa2   :  { %14553 = vst [vmem:[#allocation141_spill] sm:$0xff] %v10994_v43  ;;  %v279_v43 = vand.u32 7, %v10006_v6  ;;  %v14569_v6 = vmov 0 }
  0xa3   :  { %14556 = vst [vmem:[#allocation142_spill] sm:$0xff] %v14555_v0  ;;  %v1250_v0 = vpack.c.bf16 %v1241_v49, %v1240_v61  ;;  %v14570_v6 = vsel %vm11051_vm14, 4294967295, %v14569_v6  ;;  %v933_v61 = vsel %vm11059_vm6, %v11030_v36, 0.0 }
  0xa4   :  { %14559 = vst [vmem:[#allocation143_spill] sm:$0xff] %v14558_v14  ;;  %v1411_v14 = vsel %vm11026_vm9, %v11032_v35, 0.0  ;;  %v11044_v59 = vadd.s32 1, %v279_v43  ;;  %vm13954_vm9 = vcmp.le.s32.totalorder %v11042_v10, 7  ;;  %v11067_v49 = vadd.s32 4294967295, %v279_v43 }
  0xa5   :  { %14563 = vst [vmem:[#allocation144_spill] sm:$0xff] %v14562_v1  ;;  %7643 = vmatmul.msk.bf16.gmra.mxu2 %vm14568_vm3, %v1250_v0  ;;  %v1420_v58 = vpack.c.bf16 %v1411_v14, %v1410_v5  ;;  %v11065_v0 = vadd.s32 4294967295, %v278_v2  ;;  %v932_v14 = vsel %vm11051_vm14, %v10908_v24, 0.0  ;;  %vm11082_vm0 = vmand %vm10078_vm13, %vm13954_vm9  ;;  %v14576_v43 = vmov 0  ;;  %v11098_v5 = vld [vmem:[#allocation2 + $0x79] sm:$0xff] }
  0xa6   :  { %14566 = vst [vmem:[#allocation145_spill] sm:$0xff] %v14565_v62  ;;  %v14577_v43 = vsel %vm11082_vm0, 4294967295, %v14576_v43  ;;  %vm583_vm3 = vcmp.ge.s32.totalorder %v10031_v20, 0  ;;  %vm14579_vm4 = vcmp.le.s32.totalorder %v11044_v59, 7  ;;  %v14580_v2 = vmov 0  ;;  %v11100_v62 = vld [vmem:[#allocation2 + $0x81] sm:$0xff]  ;;  %vm11103_vm14 = vmand %vm582_vm11, %vm598_vm12 }
  0xa7   :  { %14571 = vst [vmem:[#allocation146_spill] sm:$0xff] %v14570_v6  ;;  %7655 = vmatmul.msk.bf16.gmra.mxu3 %vm14575_vm7, %v1420_v58  ;;  %vm599_vm7 = vcmp.le.s32.totalorder %v10031_v20, 7  ;;  %v1520_v58 = vpack.c.bf16 %v10044_v28, %v10017_v13  ;;  %vm11094_vm6 = vmand %vm10096_vm15, %vm14579_vm4  ;;  %vm13978_vm9 = vcmp.ge.s32.totalorder %v11065_v0, 0  ;;  %v14584_v1 = vmov 0 }
  0xa8   :  { %14574 = vst [vmem:[#allocation147_spill] sm:$0xff] %v14573_v12  ;;  %v14581_v2 = vsel %vm11094_vm6, 4294967295, %v14580_v2  ;;  %v14585_v1 = vsel %vm11103_vm14, 4294967295, %v14584_v1  ;;  %v942_v12 = vpack.c.bf16 %v933_v61, %v932_v14  ;;  %vm13977_vm8 = vcmp.ge.s32.totalorder %v11067_v49, 0  ;;  %vm11108_vm1 = vmand %vm583_vm3, %vm599_vm7  ;;  %v11136_v61 = vld [vmem:[#allocation2 + $0x7f] sm:$0xff] }
  0xa9   :  { %14578 = vst [vmem:[#allocation148_spill] sm:$0xff] %v14577_v43  ;;  %v14586_v13 = vmov 0  ;;  %v680_v28 = vadd.s32 1, %v10010_v9  ;;  %v1242_v6 = vsel %vm11082_vm0, %v11098_v5, 0.0  ;;  %v1243_v11 = vsel %vm11094_vm6, %v11100_v62, 0.0  ;;  %vm11124_vm11 = vmand %vm11103_vm14, %vm13978_vm9 }
  0xaa   :  { %14582 = vst [vmem:[#allocation149_spill] sm:$0xff] %v14581_v2  ;;  %v14587_v13 = vsel %vm11108_vm1, 4294967295, %v14586_v13  ;;  %vm14589_vm12 = vcmask 130048   ;;  %v14590_v14 = vmov 0  ;;  %vm11132_vm4 = vmand %vm11108_vm1, %vm13977_vm8  ;;  %v14593_v9 = vmov 0  ;;  %v11138_v2 = vld [vmem:[#allocation2 + $0x87] sm:$0xff] }
  0xab   :  { %14583 = vst [vmem:[#allocation150_spill] sm:$0xff] %v11100_v62  ;;  %v14591_v14 = vsel %vm11124_vm11, 4294967295, %v14590_v14  ;;  %v14594_v9 = vsel %vm11132_vm4, 4294967295, %v14593_v9  ;;  %vm14596_vm3 = vmmov %vm14589_vm12  ;;  %v1251_v43 = vpack.c.bf16 %v1243_v11, %v1242_v6  ;;  %vm696_vm7 = vcmp.ge.s32.totalorder %v680_v28, 0 }
  0xac   :  { %14588 = vst [vmem:[#allocation151_spill] sm:$0xff] %v14587_v13  ;;  %7661 = vmatmul.msk.bf16.vlgmr.msrb.gmra.mxu0 %vm14589_vm12, %v1520_v58  ;;  %v681_v58 = vadd.s32 1, %v10025_v17  ;;  %vm712_vm12 = vcmp.le.s32.totalorder %v680_v28, 7  ;;  %v1412_v39 = vsel %vm11124_vm11, %v11136_v61, 0.0  ;;  %v1413_v62 = vsel %vm11132_vm4, %v11138_v2, 0.0  ;;  %vm14600_vm0 = vmmov %vm14596_vm3 }
  0xad   :  { %14592 = vst [vmem:[#allocation152_spill] sm:$0xff] %v14591_v14  ;;  %vm11148_vm6 = vmand %vm696_vm7, %vm712_vm12  ;;  %v14597_v13 = vmov 0  ;;  %v1421_v17 = vpack.c.bf16 %v1413_v62, %v1412_v39  ;;  %v14602_v11 = vmov 0  ;;  %vm14605_vm11 = vcmp.ge.s32.totalorder %v11067_v49, 0 }
  0xae   :  { %14595 = vst [vmem:[#allocation153_spill] sm:$0xff] %v14594_v9  ;;  %vm697_vm8 = vcmp.ge.s32.totalorder %v681_v58, 0  ;;  %vm713_vm9 = vcmp.le.s32.totalorder %v681_v58, 7  ;;  %v14598_v13 = vsel %vm11148_vm6, 4294967295, %v14597_v13  ;;  %vm11165_vm4 = vmand %vm10096_vm15, %vm14605_vm11  ;;  %v14606_v6 = vmov 0 }
  0xaf   :  { %7631 = vmatmul.msk.bf16.gmra.mxu1 %vm14596_vm3, %v942_v12  ;;  %14599 = vst [vmem:[#allocation154_spill] sm:$0xff] %v14598_v13  ;;  %vm14601_vm3 = vcmp.ge.s32.totalorder %v11065_v0, 0  ;;  %v14607_v6 = vsel %vm11165_vm4, 4294967295, %v14606_v6  ;;  %vm11169_vm7 = vmand %vm697_vm8, %vm713_vm9  ;;  %v14609_v12 = vmov 0  ;;  %v935_v62 = vsel %vm11165_vm4, %v11136_v61, 0.0 }
  0xb0   :  { %vm11157_vm1 = vmand %vm10078_vm13, %vm14601_vm3  ;;  %14608 = vst [vmem:[#allocation156_spill] sm:$0xff] %v14607_v6  ;;  %v14610_v12 = vsel %vm11169_vm7, 4294967295, %v14609_v12  ;;  %vm14612_vm12 = vcmp.ge.s32.totalorder %v10102_v45, 0  ;;  %v1521_v28 = vpack.c.bf16 %v10059_v32, %v10054_v31  ;;  %vm14616_vm8 = vcmp.ge.s32.totalorder %v10118_v50, 0  ;;  %v1966_v32 = vld [vmem:[#allocation2 + $0x18] sm:$0xff]  ;;  %v1967_v50 = vld [vmem:[#allocation2 + $0x20] sm:$0xff] }
  0xb1   :  { %v14603_v11 = vsel %vm11157_vm1, 4294967295, %v14602_v11  ;;  %14611 = vst [vmem:[#allocation157_spill] sm:$0xff] %v14610_v12  ;;  %v934_v39 = vsel %vm11157_vm1, %v11032_v35, 0.0  ;;  %vm11184_vm11 = vmand %vm11148_vm6, %vm14612_vm12  ;;  %v14617_v58 = vmov 0  ;;  %v682_v6 = vadd.s32 1, %v10134_v56 }
  0xb2   :  { %14604 = vst [vmem:[#allocation155_spill] sm:$0xff] %v14603_v11  ;;  %vm11194_vm9 = vmand %vm11169_vm7, %vm14616_vm8  ;;  %v943_v9 = vpack.c.bf16 %v935_v62, %v934_v39  ;;  %v1844_v14 = vsel %vm11184_vm11, %v10152_v63, 0.0  ;;  %v683_v39 = vadd.s32 1, %v10136_v57  ;;  %v2014_v62 = vsel %vm11148_vm6, %v1966_v32, 0.0 }
  0xb3   :  { %v14618_v58 = vsel %vm11194_vm9, 4294967295, %v14617_v58  ;;  %v1845_v31 = vsel %vm11194_vm9, %v10303_v23, 0.0  ;;  %vm14620_vm3 = vmmov %vm14600_vm0  ;;  %v2015_v63 = vsel %vm11169_vm7, %v1967_v50, 0.0  ;;  %vm698_vm12 = vcmp.ge.s32.totalorder %v682_v6, 0 }
  0xb4   :  { %14619 = vst [vmem:[#allocation159_spill] sm:$0xff] %v14618_v58  ;;  %v1860_v11 = vpack.c.bf16 %v1845_v31, %v1844_v14  ;;  %vm714_vm8 = vcmp.le.s32.totalorder %v682_v6, 7  ;;  %vm715_vm9 = vcmp.le.s32.totalorder %v683_v39, 7  ;;  %v2030_v56 = vpack.c.bf16 %v2015_v63, %v2014_v62 }
  0xb5   :  { %7644 = vmatmul.msk.bf16.gmra.mxu2 %vm14600_vm0, %v1251_v43  ;;  %v14613_v43 = vmov 0  ;;  %v11198_v45 = vpop.f32.mrf.mxu1  ;;  %v14623_v14 = vmov 0  ;;  %v1674_v6 = vsel %vm10195_vm5, %v10125_v53, 0.0  ;;  %vm14630_vm1 = vcmask 130048  }
  0xb6   :  { %v14614_v43 = vsel %vm11184_vm11, 4294967295, %v14613_v43  ;;  %vm14621_vm11 = vmmov %vm14600_vm0  ;;  %v1522_v31 = vpack.c.bf16 %v10159_v4, %v10093_v40  ;;  %v14636_v53 = vmov 0  ;;  %v684_v58 = vadd.s32 1, %v10244_v46 }
  0xb7   :  { %7656 = vmatmul.msk.bf16.gmra.mxu3 %vm14600_vm0, %v1421_v17  ;;  %14615 = vst [vmem:[#allocation158_spill] sm:$0xff] %v14614_v43  ;;  %v1061_v17 = vpop.f32.mrf.mxu0  ;;  %vm14646_vm13 = vcmp.le.s32.totalorder %v10189_v15, 7  ;;  %vm14647_vm14 = vnez %v14326_v21 }
  0xbc   :  { %7662 = vmatmul.msk.bf16.gmra.mxu0 %vm14620_vm3, %v1521_v28  ;;  %vm699_vm3 = vcmp.ge.s32.totalorder %v683_v39, 0  ;;  %v1294_v57 = vpop.f32.mrf.mxu2  ;;  %v14632_v28 = vmov 0 }
  0xbd   :  { %v11215_v23 = vpop.f32.mrf.mxu1  ;;  %vm11221_vm4 = vmand %vm699_vm3, %vm715_vm9  ;;  %vm14635_vm9 = vcmp.ge.s32.totalorder %v10242_v44, 0 }
  0xbe   :  { %14622 = vst [vmem:[#allocation160_spill] sm:$0xff] %v11215_v23  ;;  %vm11246_vm3 = vmand %vm11221_vm4, %vm14635_vm9  ;;  %vm700_vm9 = vcmp.ge.s32.totalorder %v684_v58, 0 }
  0xbf   :  { %7632 = vmatmul.msk.bf16.gmra.mxu1 %vm14600_vm0, %v943_v9  ;;  %v1063_v43 = vpop.f32.mrf.mxu0  ;;  %vm11217_vm0 = vmand %vm698_vm12, %vm714_vm8  ;;  %v14626_v9 = vmov 0  ;;  %vm14631_vm12 = vcmp.ge.s32.totalorder %v10226_v38, 0  ;;  %v14637_v53 = vsel %vm11246_vm3, 4294967295, %v14636_v53  ;;  %v1847_v62 = vsel %vm11246_vm3, %v10469_v27, 0.0 }
  0xc0   :  { %v14624_v14 = vsel %vm11217_vm0, 4294967295, %v14623_v14  ;;  %v14627_v9 = vsel %vm11221_vm4, 4294967295, %v14626_v9  ;;  %vm11236_vm8 = vmand %vm11217_vm0, %vm14631_vm12  ;;  %14638 = vst [vmem:[#allocation164_spill] sm:$0xff] %v14637_v53  ;;  %v2017_v27 = vsel %vm11221_vm4, %v10093_v40, 0.0  ;;  %vm14642_vm3 = vnez %v14324_v3  ;;  %v14674_v53 = vld [vmem:[#allocation67_spill] sm:$0xff] }
  0xc1   :  { %14625 = vst [vmem:[#allocation161_spill] sm:$0xff] %v14624_v14  ;;  %v14633_v28 = vsel %vm11236_vm8, 4294967295, %v14632_v28  ;;  %v1464_v38 = vpop.f32.mrf.mxu3  ;;  %v1846_v39 = vsel %vm11236_vm8, %v10305_v26, 0.0  ;;  %vm14639_vm12 = vmmov %vm14630_vm1  ;;  %v14648_v40 = vmov 0  ;;  %v14651_v3 = vmov 0 }
  0xc2   :  { %14628 = vst [vmem:[#allocation162_spill] sm:$0xff] %v14627_v9  ;;  %vm14640_vm8 = vmmov %vm14639_vm12 }
  0xc3   :  { %14634 = vst [vmem:[#allocation163_spill] sm:$0xff] %v14633_v28  ;;  %vm11280_vm4 = vmand %vm14647_vm14, %vm14646_vm13 }
  0xc4   :  { %v1296_v44 = vpop.f32.mrf.mxu2  ;;  %v14649_v40 = vsel %vm11280_vm4, 4294967295, %v14648_v40 }
  0xc5   :  { %7685 = vmatmul.msk.bf16.vlgmr.msrb.gmra.mxu2 %vm14621_vm11, %v1860_v11  ;;  %vm14629_vm11 = vnez %v14299_v22  ;;  %v1140_v50 = vpop.f32.mrf.mxu1  ;;  %14650 = vst [vmem:[#allocation166_spill] sm:$0xff] %v14649_v40 }
  0xc6   :  { %v1675_v11 = vsel %vm14629_vm11, %v10233_v41, 0.0  ;;  %v1141_v63 = vadd.f32 %v1140_v50, %v1061_v17 }
  0xc7   :  { %7697 = vmatmul.msk.bf16.vlgmr.msrb.gmra.mxu3 %vm14630_vm1, %v2030_v56  ;;  %v1066_v41 = vpop.f32.mrf.mxu0  ;;  %v1690_v32 = vpack.c.bf16 %v1675_v11, %v1674_v6  ;;  %v1968_v56 = vld [vmem:[#allocation2 + $0x28] sm:$0xff]  ;;  %v1861_v6 = vpack.c.bf16 %v1847_v62, %v1846_v39  ;;  %v685_v11 = vadd.s32 1, %v10246_v47  ;;  %v14659_v62 = vld [vmem:[#allocation65_spill] sm:$0xff] }
  0xc8   :  { %v1334_v18 = vadd.f32 %v1294_v57, %v1141_v63  ;;  %v2016_v26 = vsel %vm11217_vm0, %v1968_v56, 0.0  ;;  %v1628_v57 = vld [vmem:[#allocation2 + $0x21] sm:$0xff]  ;;  %v14658_v39 = vld [vmem:[#allocation72_spill] sm:$0xff]  ;;  %vm14660_vm13 = vcmp.ge.s32.totalorder %v14659_v62, 0  ;;  %v14661_v63 = vmov 0 }
  0xc9   :  { %vm701_vm11 = vcmp.ge.s32.totalorder %v685_v11, 0  ;;  %vm717_vm15 = vcmp.le.s32.totalorder %v685_v11, 7  ;;  %v2031_v47 = vpack.c.bf16 %v2017_v27, %v2016_v26  ;;  %v14666_v26 = vld [vmem:[#allocation66_spill] sm:$0xff]  ;;  %v14668_v27 = vmov 0 }
  0xca   :  { %v11260_v22 = vadd.f32 %v1464_v38, %v1334_v18  ;;  %v14643_v18 = vmov 0  ;;  %v14654_v38 = vmov 0 }
  0xcc   :  { %7663 = vmatmul.msk.bf16.gmra.mxu0 %vm14630_vm1, %v1522_v31  ;;  %vm716_vm1 = vcmp.le.s32.totalorder %v684_v58, 7  ;;  %v1466_v31 = vpop.f32.mrf.mxu3 }
  0xcd   :  { %v1142_v46 = vpop.f32.mrf.mxu1 }
  0xce   :  { %v1143_v58 = vadd.f32 %v1142_v46, %v1063_v43  ;;  %v1677_v43 = vsel %vm11280_vm4, %v14658_v39, 0.0  ;;  %v14671_v39 = vld [vmem:[#allocation78_spill] sm:$0xff] }
  0xcf   :  { %7673 = vmatmul.msk.bf16.vlgmr.msra.gmra.mxu1 %vm14639_vm12, %v1690_v32  ;;  %v1068_v17 = vpop.f32.mrf.mxu0  ;;  %vm14641_vm12 = vcmp.le.s32.totalorder %v10170_v8, 7 }
  0xd0   :  { %vm11272_vm5 = vmand %vm14642_vm3, %vm14641_vm12  ;;  %v1299_v32 = vpop.f32.mrf.mxu2  ;;  %v1335_v50 = vadd.f32 %v1296_v44, %v1143_v58  ;;  %vm14657_vm12 = vcmask 130048   ;;  %v14664_v44 = vld [vmem:[#allocation51_spill] sm:$0xff] }
  0xd1   :  { %v14644_v18 = vsel %vm11272_vm5, 4294967295, %v14643_v18  ;;  %vm11288_vm3 = vmand %vm701_vm11, %vm717_vm15  ;;  %v1676_v21 = vsel %vm11272_vm5, %v1628_v57, 0.0  ;;  %vm14667_vm15 = vcmp.ge.s32.totalorder %v14666_v26, 0 }
  0xd2   :  { %14645 = vst [vmem:[#allocation165_spill] sm:$0xff] %v14644_v18  ;;  %v14655_v38 = vsel %vm11288_vm3, 4294967295, %v14654_v38  ;;  %v11306_v56 = vadd.f32 %v1466_v31, %v1335_v50  ;;  %vm11314_vm11 = vmand %vm11288_vm3, %vm14667_vm15  ;;  %v14672_v50 = vld [vmem:[#allocation97_spill] sm:$0xff]  ;;  %v686_v18 = vadd.s32 1, %v14674_v53 }
  0xd3   :  { %14656 = vst [vmem:[#allocation168_spill] sm:$0xff] %v14655_v38  ;;  %v14669_v27 = vsel %vm11314_vm11, 4294967295, %v14668_v27  ;;  %v1849_v62 = vsel %vm11314_vm11, %v14672_v50, 0.0 }
  0xd4   :  { %14670 = vst [vmem:[#allocation65_spill] sm:$0xff] %v14669_v27  ;;  %v1469_v58 = vpop.f32.mrf.mxu3 }
  0xd5   :  { %7686 = vmatmul.msk.bf16.gmra.mxu2 %vm14640_vm8, %v1861_v6  ;;  %vm11284_vm8 = vmand %vm700_vm9, %vm716_vm1  ;;  %v14665_v6 = vld [vmem:[#allocation57_spill] sm:$0xff] }
  0xd6   :  { %v14652_v3 = vsel %vm11284_vm8, 4294967295, %v14651_v3  ;;  %vm11302_vm14 = vmand %vm11284_vm8, %vm14660_vm13  ;;  %v1523_v11 = vpack.c.bf16 %v14665_v6, %v14664_v44  ;;  %v1145_v57 = vpop.f32.mrf.mxu1  ;;  %vm718_vm13 = vcmp.le.s32.totalorder %v686_v18, 7 }
  0xd7   :  { %14653 = vst [vmem:[#allocation167_spill] sm:$0xff] %v14652_v3  ;;  %7698 = vmatmul.msk.bf16.gmra.mxu3 %vm14657_vm12, %v2031_v47  ;;  %v14662_v63 = vsel %vm11302_vm14, 4294967295, %v14661_v63  ;;  %v1071_v46 = vpop.f32.mrf.mxu0  ;;  %v1691_v47 = vpack.c.bf16 %v1677_v43, %v1676_v21  ;;  %v1848_v31 = vsel %vm11302_vm14, %v14671_v39, 0.0  ;;  %v1146_v28 = vadd.f32 %v1145_v57, %v1066_v41  ;;  %vm14673_vm9 = vmmov %vm14657_vm12  ;;  %v14676_v43 = vld [vmem:[#allocation69_spill] sm:$0xff] }
  0xd8   :  { %14663 = vst [vmem:[#allocation72_spill] sm:$0xff] %v14662_v63  ;;  %v1301_v26 = vpop.f32.mrf.mxu2  ;;  %vm14675_vm1 = vmmov %vm14673_vm9  ;;  %v1862_v21 = vpack.c.bf16 %v1849_v62, %v1848_v31  ;;  %v687_v42 = vadd.s32 1, %v14676_v43  ;;  %v2018_v39 = vsel %vm11284_vm8, %v10159_v4, 0.0  ;;  %v2019_v41 = vsel %vm11288_vm3, %v14664_v44, 0.0  ;;  %v14687_v44 = vld [vmem:[#allocation75_spill] sm:$0xff] }
  0xd9   :  { %v1336_v40 = vadd.f32 %v1299_v32, %v1146_v28  ;;  %vm702_vm12 = vcmp.ge.s32.totalorder %v686_v18, 0  ;;  %vm14677_vm15 = vmmov %vm14675_vm1  ;;  %v14678_v28 = vld [vmem:[#allocation59_spill] sm:$0xff]  ;;  %v14680_v32 = vld [vmem:[#allocation74_spill] sm:$0xff]  ;;  %vm14688_vm3 = vnez %v14687_v44  ;;  %v14689_v18 = vmov 0 }
  0xda   :  { %vm703_vm11 = vcmp.ge.s32.totalorder %v687_v42, 0  ;;  %vm719_vm5 = vcmp.le.s32.totalorder %v687_v42, 7  ;;  %v14692_v31 = vmov 0  ;;  %v14694_v62 = vmov 0  ;;  %v14706_v44 = vld [vmem:[#allocation86_spill] sm:$0xff] }
  0xdb   :  { %v11328_v37 = vadd.f32 %v1469_v58, %v1336_v40  ;;  %v14682_v40 = vmov 0  ;;  %v14685_v58 = vld [vmem:[#allocation61_spill] sm:$0xff] }
  0xdc   :  { %7664 = vmatmul.msk.bf16.gmra.mxu0 %vm14673_vm9, %v1523_v11  ;;  %v1471_v53 = vpop.f32.mrf.mxu3  ;;  %vm14679_vm9 = vcmp.le.s32.totalorder %v14678_v28, 7  ;;  %vm14686_vm4 = vcmp.le.s32.totalorder %v14685_v58, 7 }
  0xdd   :  { %vm11349_vm8 = vmand %vm14688_vm3, %vm14686_vm4 }
  0xde   :  { %v1147_v4 = vpop.f32.mrf.mxu1  ;;  %v14690_v18 = vsel %vm11349_vm8, 4294967295, %v14689_v18 }
  0xdf   :  { %7674 = vmatmul.msk.bf16.gmra.mxu1 %vm14675_vm1, %v1691_v47  ;;  %v1073_v11 = vpop.f32.mrf.mxu0  ;;  %vm14681_vm1 = vnez %v14680_v32  ;;  %v2032_v47 = vpack.c.bf16 %v2019_v41, %v2018_v39  ;;  %14691 = vst [vmem:[#allocation57_spill] sm:$0xff] %v14690_v18  ;;  %v1148_v57 = vadd.f32 %v1147_v4, %v1068_v17  ;;  %v14699_v39 = vld [vmem:[#allocation91_spill] sm:$0xff]  ;;  %v14700_v41 = vld [vmem:[#allocation85_spill] sm:$0xff]  ;;  %v14702_v32 = vmov 0 }
  0xe0   :  { %vm11341_vm14 = vmand %vm14681_vm1, %vm14679_vm9  ;;  %v1304_v50 = vpop.f32.mrf.mxu2  ;;  %vm14697_vm1 = vcmask 130048   ;;  %v1679_v17 = vsel %vm11349_vm8, %v14699_v39, 0.0  ;;  %vm14701_vm4 = vcmp.ge.s32.totalorder %v14700_v41, 0 }
  0xe1   :  { %v14683_v40 = vsel %vm11341_vm14, 4294967295, %v14682_v40  ;;  %vm11357_vm9 = vmand %vm703_vm11, %vm719_vm5  ;;  %v1337_v42 = vadd.f32 %v1301_v26, %v1148_v57  ;;  %v14705_v26 = vld [vmem:[#allocation70_spill] sm:$0xff]  ;;  %vm14707_vm5 = vcmp.ge.s32.totalorder %v14706_v44, 0  ;;  %v14708_v57 = vmov 0 }
  0xe2   :  { %14684 = vst [vmem:[#allocation51_spill] sm:$0xff] %v14683_v40  ;;  %v14695_v62 = vsel %vm11357_vm9, 4294967295, %v14694_v62  ;;  %vm11384_vm11 = vmand %vm11357_vm9, %vm14707_vm5  ;;  %v14712_v40 = vld [vmem:[#allocation87_spill] sm:$0xff] }
  0xe3   :  { %14696 = vst [vmem:[#allocation66_spill] sm:$0xff] %v14695_v62  ;;  %v11376_v4 = vadd.f32 %v1471_v53, %v1337_v42  ;;  %v14709_v57 = vsel %vm11384_vm11, 4294967295, %v14708_v57  ;;  %v1851_v42 = vsel %vm11384_vm11, %v10770_v25, 0.0  ;;  %v688_v18 = vadd.s32 1, %v14712_v40 }
  0xe4   :  { %14710 = vst [vmem:[#allocation97_spill] sm:$0xff] %v14709_v57  ;;  %v1474_v41 = vpop.f32.mrf.mxu3  ;;  %v2021_v25 = vsel %vm11357_vm9, %v14705_v26, 0.0  ;;  %v14719_v40 = vmov 0 }
  0xe5   :  { %7687 = vmatmul.msk.bf16.gmra.mxu2 %vm14677_vm15, %v1862_v21  ;;  %vm11353_vm15 = vmand %vm702_vm12, %vm718_vm13  ;;  %v14698_v21 = vld [vmem:[#allocation73_spill] sm:$0xff] }
  0xe6   :  { %v14693_v31 = vsel %vm11353_vm15, 4294967295, %v14692_v31  ;;  %v1678_v43 = vsel %vm11341_vm14, %v14698_v21, 0.0  ;;  %vm11372_vm3 = vmand %vm11353_vm15, %vm14701_vm4  ;;  %v1150_v63 = vpop.f32.mrf.mxu1  ;;  %vm720_vm4 = vcmp.le.s32.totalorder %v688_v18, 7 }
  0xe7   :  { %7699 = vmatmul.msk.bf16.gmra.mxu3 %vm14697_vm1, %v2032_v47  ;;  %v14703_v32 = vsel %vm11372_vm3, 4294967295, %v14702_v32  ;;  %v1524_v47 = vpack.c.bf16 %v10481_v16, %v14705_v26  ;;  %v1076_v21 = vpop.f32.mrf.mxu0  ;;  %v1692_v39 = vpack.c.bf16 %v1679_v17, %v1678_v43  ;;  %v1850_v53 = vsel %vm11372_vm3, %v10621_v30, 0.0  ;;  %vm14711_vm12 = vmmov %vm14697_vm1  ;;  %v14714_v17 = vld [vmem:[#allocation89_spill] sm:$0xff] }
  0xe8   :  { %14704 = vst [vmem:[#allocation78_spill] sm:$0xff] %v14703_v32  ;;  %v1151_v27 = vadd.f32 %v1150_v63, %v1071_v46  ;;  %v1306_v44 = vpop.f32.mrf.mxu2  ;;  %vm14713_vm13 = vmmov %vm14697_vm1  ;;  %v1863_v43 = vpack.c.bf16 %v1851_v42, %v1850_v53  ;;  %v689_v38 = vadd.s32 1, %v14714_v17  ;;  %v2020_v30 = vsel %vm11353_vm15, %v14665_v6, 0.0  ;;  %v14715_v46 = vld [vmem:[#allocation79_spill] sm:$0xff]  ;;  %v14723_v6 = vld [vmem:[#allocation81_spill] sm:$0xff] }
  0xe9   :  { %vm704_vm1 = vcmp.ge.s32.totalorder %v688_v18, 0  ;;  %vm14716_vm5 = vcmp.le.s32.totalorder %v14715_v46, 7  ;;  %vm14722_vm3 = vcmask 130048   ;;  %vm14724_vm8 = vcmp.le.s32.totalorder %v14723_v6, 7  ;;  %v14748_v32 = vld [vmem:[#allocation105_spill] sm:$0xff] }
  0xea   :  { %v1338_v23 = vadd.f32 %v1304_v50, %v1151_v27  ;;  %v14717_v27 = vld [vmem:[#allocation93_spill] sm:$0xff]  ;;  %vm705_vm11 = vcmp.ge.s32.totalorder %v689_v38, 0  ;;  %vm721_vm14 = vcmp.le.s32.totalorder %v689_v38, 7  ;;  %v14725_v50 = vld [vmem:[#allocation94_spill] sm:$0xff]  ;;  %v14727_v26 = vmov 0 }
  0xeb   :  { %vm14726_vm9 = vnez %v14725_v50  ;;  %v14733_v42 = vmov 0  ;;  %v14742_v50 = vld [vmem:[#allocation104_spill] sm:$0xff]  ;;  %v690_v57 = vadd.s32 1, %v14748_v32  ;;  %v14751_v32 = vld [vmem:[#allocation98_spill] sm:$0xff] }
  0xec   :  { %7665 = vmatmul.msk.bf16.gmra.mxu0 %vm14711_vm12, %v1524_v47  ;;  %v11398_v58 = vadd.f32 %v1474_v41, %v1338_v23  ;;  %vm14718_vm12 = vnez %v14717_v27  ;;  %v1476_v23 = vpop.f32.mrf.mxu3  ;;  %vm11419_vm15 = vmand %vm14726_vm9, %vm14724_vm8  ;;  %v2033_v47 = vpack.c.bf16 %v2021_v25, %v2020_v30  ;;  %v14730_v41 = vmov 0  ;;  %v14737_v27 = vld [vmem:[#allocation109_spill] sm:$0xff] }
  0xed   :  { %v14728_v26 = vsel %vm11419_vm15, 4294967295, %v14727_v26  ;;  %vm14738_vm8 = vcmp.ge.s32.totalorder %v10675_v48, 0  ;;  %v14739_v30 = vmov 0 }
  0xee   :  { %14729 = vst [vmem:[#allocation69_spill] sm:$0xff] %v14728_v26  ;;  %v1152_v18 = vpop.f32.mrf.mxu1 }
  0xef   :  { %7675 = vmatmul.msk.bf16.gmra.mxu1 %vm14713_vm13, %v1692_v39  ;;  %v1078_v63 = vpop.f32.mrf.mxu0  ;;  %vm11410_vm13 = vmand %vm14718_vm12, %vm14716_vm5  ;;  %v1153_v39 = vadd.f32 %v1152_v18, %v1073_v11  ;;  %v1681_v11 = vsel %vm11419_vm15, %v14737_v27, 0.0  ;;  %v14744_v18 = vmov 0 }
  0xf0   :  { %v14720_v40 = vsel %vm11410_vm13, 4294967295, %v14719_v40  ;;  %vm11423_vm5 = vmand %vm704_vm1, %vm720_vm4 }
  0xf1   :  { %14721 = vst [vmem:[#allocation67_spill] sm:$0xff] %v14720_v40  ;;  %v14731_v41 = vsel %vm11423_vm5, 4294967295, %v14730_v41  ;;  %vm11427_vm12 = vmand %vm705_vm11, %vm721_vm14  ;;  %v1339_v38 = vadd.f32 %v1306_v44, %v1153_v39  ;;  %v1525_v44 = vpack.c.bf16 %v10631_v7, %v10562_v54  ;;  %vm14743_vm14 = vcmp.ge.s32.totalorder %v14742_v50, 0 }
  0xf2   :  { %14732 = vst [vmem:[#allocation59_spill] sm:$0xff] %v14731_v41  ;;  %v14734_v42 = vsel %vm11427_vm12, 4294967295, %v14733_v42  ;;  %vm11442_vm9 = vmand %vm11423_vm5, %vm14738_vm8  ;;  %vm722_vm8 = vcmp.le.s32.totalorder %v690_v57, 7 }
  0xf3   :  { %14735 = vst [vmem:[#allocation74_spill] sm:$0xff] %v14734_v42  ;;  %v14740_v30 = vsel %vm11442_vm9, 4294967295, %v14739_v30  ;;  %v11446_v25 = vadd.f32 %v1476_v23, %v1339_v38  ;;  %vm11454_vm11 = vmand %vm11427_vm12, %vm14743_vm14  ;;  %v1852_v23 = vsel %vm11442_vm9, %v10772_v33, 0.0  ;;  %v2022_v33 = vsel %vm11423_vm5, %v10481_v16, 0.0  ;;  %v14759_v16 = vld [vmem:[#allocation100_spill] sm:$0xff] }
  0xf4   :  { %v1309_v53 = vpop.f32.mrf.mxu2  ;;  %14741 = vst [vmem:[#allocation75_spill] sm:$0xff] %v14740_v30  ;;  %v14745_v18 = vsel %vm11454_vm11, 4294967295, %v14744_v18  ;;  %v1853_v38 = vsel %vm11454_vm11, %v10906_v55, 0.0  ;;  %vm14747_vm1 = vmmov %vm14722_vm3  ;;  %v2023_v55 = vsel %vm11427_vm12, %v10562_v54, 0.0  ;;  %vm14752_vm14 = vcmp.le.s32.totalorder %v14751_v32, 7  ;;  %v14761_v54 = vld [vmem:[#allocation112_spill] sm:$0xff] }
  0xf5   :  { %7688 = vmatmul.msk.bf16.gmra.mxu2 %vm14722_vm3, %v1863_v43  ;;  %v14736_v43 = vld [vmem:[#allocation92_spill] sm:$0xff]  ;;  %14746 = vst [vmem:[#allocation73_spill] sm:$0xff] %v14745_v18  ;;  %v1479_v39 = vpop.f32.mrf.mxu3  ;;  %vm14749_vm4 = vmmov %vm14747_vm1  ;;  %vm14758_vm9 = vcmask 130048   ;;  %vm14760_vm15 = vcmp.le.s32.totalorder %v14759_v16, 7  ;;  %vm14762_vm12 = vnez %v14761_v54 }
  0xf6   :  { %v1680_v17 = vsel %vm11410_vm13, %v14736_v43, 0.0  ;;  %vm11491_vm5 = vmand %vm14762_vm12, %vm14760_vm15  ;;  %vm14774_vm15 = vcmp.ge.s32.totalorder %v10827_v29, 0 }
  0xf7   :  { %7700 = vmatmul.msk.bf16.gmra.mxu3 %vm14722_vm3, %v2033_v47  ;;  %v1693_v47 = vpack.c.bf16 %v1681_v11, %v1680_v17  ;;  %v1864_v17 = vpack.c.bf16 %v1853_v38, %v1852_v23  ;;  %v14750_v11 = vld [vmem:[#allocation107_spill] sm:$0xff]  ;;  %vm706_vm3 = vcmp.ge.s32.totalorder %v690_v57, 0  ;;  %v14766_v23 = vmov 0 }
  0xf8   :  { %v1081_v48 = vpop.f32.mrf.mxu0  ;;  %v1155_v43 = vpop.f32.mrf.mxu1  ;;  %v691_v26 = vadd.s32 1, %v14750_v11 }
  0xf9   :  { %v1156_v27 = vadd.f32 %v1155_v43, %v1076_v21 }
  0xfa   :  { %vm707_vm11 = vcmp.ge.s32.totalorder %v691_v26, 0  ;;  %vm723_vm13 = vcmp.le.s32.totalorder %v691_v26, 7 }
  0xfb   :  { %v1340_v40 = vadd.f32 %v1309_v53, %v1156_v27  ;;  %v14753_v53 = vld [vmem:[#allocation111_spill] sm:$0xff]  ;;  %v14769_v27 = vmov 0 }
  0xfc   :  { %7666 = vmatmul.msk.bf16.gmra.mxu0 %vm14747_vm1, %v1525_v44  ;;  %v1311_v50 = vpop.f32.mrf.mxu2  ;;  %vm14754_vm1 = vnez %v14753_v53  ;;  %v14755_v44 = vmov 0  ;;  %v14773_v53 = vld [vmem:[#allocation125_spill] sm:$0xff] }
  0xfd   :  { %v11468_v62 = vadd.f32 %v1479_v39, %v1340_v40  ;;  %v1481_v40 = vpop.f32.mrf.mxu3  ;;  %v2034_v39 = vpack.c.bf16 %v2023_v55, %v2022_v33  ;;  %v14775_v33 = vmov 0 }
  0xff   :  { %7676 = vmatmul.msk.bf16.gmra.mxu1 %vm14749_vm4, %v1693_v47  ;;  %vm11482_vm4 = vmand %vm14754_vm1, %vm14752_vm14  ;;  %v14763_v47 = vmov 0 }
 0x100   :  { %v11476_v21 = vpop.f32.mrf.mxu0  ;;  %v14756_v44 = vsel %vm11482_vm4, 4294967295, %v14755_v44  ;;  %v14764_v47 = vsel %vm11491_vm5, 4294967295, %v14763_v47  ;;  %v1157_v57 = vpop.f32.mrf.mxu1  ;;  %vm11495_vm14 = vmand %vm706_vm3, %vm722_vm8 }
 0x101   :  { %14757 = vst [vmem:[#allocation91_spill] sm:$0xff] %v14756_v44  ;;  %v1158_v43 = vadd.f32 %v1157_v57, %v1078_v63  ;;  %v14767_v23 = vsel %vm11495_vm14, 4294967295, %v14766_v23  ;;  %vm11499_vm1 = vmand %vm707_vm11, %vm723_vm13  ;;  %v1683_v63 = vsel %vm11491_vm5, %v14773_v53, 0.0  ;;  %vm14778_vm13 = vcmp.ge.s32.totalorder %v10829_v52, 0 }
 0x102   :  { %14765 = vst [vmem:[#allocation85_spill] sm:$0xff] %v14764_v47  ;;  %v14770_v27 = vsel %vm11499_vm1, 4294967295, %v14769_v27  ;;  %vm11514_vm12 = vmand %vm11495_vm14, %vm14774_vm15  ;;  %v14779_v57 = vmov 0 }
 0x103   :  { %14768 = vst [vmem:[#allocation70_spill] sm:$0xff] %v14767_v23  ;;  %v1341_v26 = vadd.f32 %v1311_v50, %v1158_v43  ;;  %v14776_v33 = vsel %vm11514_vm12, 4294967295, %v14775_v33  ;;  %v9557_v50 = vld [vmem:[#allocation2 + $0x78] sm:$0xff]  ;;  %vm11525_vm11 = vmand %vm11499_vm1, %vm14778_vm13 }
 0x104   :  { %14771 = vst [vmem:[#allocation86_spill] sm:$0xff] %v14770_v27  ;;  %v1526_v54 = vpack.c.bf16 %v9557_v50, %v10712_v51  ;;  %v14780_v57 = vsel %vm11525_vm11, 4294967295, %v14779_v57  ;;  %vm14782_vm3 = vmmov %vm14758_vm9  ;;  %v14784_v50 = vld [vmem:[#allocation121_spill] sm:$0xff] }
 0x105   :  { %7689 = vmatmul.msk.bf16.gmra.mxu2 %vm14758_vm9, %v1864_v17  ;;  %v14772_v17 = vld [vmem:[#allocation110_spill] sm:$0xff]  ;;  %14777 = vst [vmem:[#allocation87_spill] sm:$0xff] %v14776_v33  ;;  %v11518_v55 = vadd.f32 %v1481_v40, %v1341_v26  ;;  %v1854_v40 = vsel %vm11514_vm12, %v10908_v24, 0.0  ;;  %v1855_v26 = vsel %vm11525_vm11, %v11030_v36, 0.0  ;;  %v692_v30 = vadd.s32 1, %v14784_v50  ;;  %vm14785_vm8 = vmmov %vm14782_vm3 }
 0x106   :  { %v1682_v11 = vsel %vm11482_vm4, %v14772_v17, 0.0  ;;  %14781 = vst [vmem:[#allocation89_spill] sm:$0xff] %v14780_v57  ;;  %v2024_v24 = vsel %vm11495_vm14, %v10631_v7, 0.0  ;;  %v2025_v36 = vsel %vm11499_vm1, %v10712_v51, 0.0  ;;  %vm14796_vm12 = vcmask 130048   ;;  %v14797_v7 = vld [vmem:[#allocation116_spill] sm:$0xff] }
 0x107   :  { %7701 = vmatmul.msk.bf16.gmra.mxu3 %vm14758_vm9, %v2034_v39  ;;  %v1694_v39 = vpack.c.bf16 %v1683_v63, %v1682_v11  ;;  %v1865_v11 = vpack.c.bf16 %v1855_v26, %v1854_v40  ;;  %v14786_v63 = vld [vmem:[#allocation123_spill] sm:$0xff]  ;;  %vm708_vm9 = vcmp.ge.s32.totalorder %v692_v30, 0  ;;  %vm724_vm15 = vcmp.le.s32.totalorder %v692_v30, 7  ;;  %v14799_v51 = vld [vmem:[#allocation128_spill] sm:$0xff] }
 0x108   :  { %v1314_v38 = vpop.f32.mrf.mxu2  ;;  %v693_v44 = vadd.s32 1, %v14786_v63  ;;  %vm14798_vm5 = vcmp.le.s32.totalorder %v14797_v7, 7  ;;  %vm14800_vm1 = vnez %v14799_v51  ;;  %v14801_v30 = vmov 0 }
 0x109   :  { %v1086_v29 = vpop.f32.mrf.mxu0  ;;  %vm11566_vm14 = vmand %vm14800_vm1, %vm14798_vm5  ;;  %v14804_v40 = vmov 0  ;;  %vm14812_vm5 = vcmp.ge.s32.totalorder %v10961_v60, 0 }
 0x10a   :  { %v1484_v43 = vpop.f32.mrf.mxu3  ;;  %vm709_vm11 = vcmp.ge.s32.totalorder %v693_v44, 0  ;;  %vm725_vm4 = vcmp.le.s32.totalorder %v693_v44, 7  ;;  %v14802_v30 = vsel %vm11566_vm14, 4294967295, %v14801_v30  ;;  %v14810_v44 = vld [vmem:[#allocation126_spill] sm:$0xff] }
 0x10b   :  { %14803 = vst [vmem:[#allocation92_spill] sm:$0xff] %v14802_v30  ;;  %v1978_v30 = vld [vmem:[#allocation2 + $0x78] sm:$0xff] }
 0x10c   :  { %v1160_v17 = vpop.f32.mrf.mxu1  ;;  %7667 = vmatmul.msk.bf16.gmra.mxu0 %vm14782_vm3, %v1526_v54  ;;  %v14790_v54 = vld [vmem:[#allocation127_spill] sm:$0xff] }
 0x10d   :  { %v1161_v53 = vadd.f32 %v1160_v17, %v1081_v48  ;;  %vm14791_vm3 = vnez %v14790_v54  ;;  %v2035_v17 = vpack.c.bf16 %v2025_v36, %v2024_v24  ;;  %v14813_v24 = vmov 0  ;;  %v9558_v36 = vld [vmem:[#allocation2 + $0x80] sm:$0xff] }
 0x10e   :  { %v14816_v54 = vld [vmem:[#allocation131_spill] sm:$0xff] }
 0x10f   :  { %v1342_v18 = vadd.f32 %v1314_v38, %v1161_v53  ;;  %7677 = vmatmul.msk.bf16.gmra.mxu1 %vm14785_vm8, %v1694_v39  ;;  %v14788_v38 = vld [vmem:[#allocation115_spill] sm:$0xff]  ;;  %v14792_v39 = vmov 0  ;;  %v14807_v53 = vmov 0  ;;  %v1527_v51 = vpack.c.bf16 %v14816_v54, %v9558_v36 }
 0x110   :  { %v11536_v52 = vpop.f32.mrf.mxu2  ;;  %vm14789_vm13 = vcmp.le.s32.totalorder %v14788_v38, 7 }
 0x111   :  { %14783 = vst [vmem:[#allocation79_spill] sm:$0xff] %v11536_v52  ;;  %v11541_v47 = vadd.f32 %v1484_v43, %v1342_v18  ;;  %v11549_v48 = vpop.f32.mrf.mxu0  ;;  %vm11555_vm8 = vmand %vm14791_vm3, %vm14789_vm13  ;;  %v14824_v52 = vld [vmem:[#allocation38_spill] sm:$0xff] }
 0x112   :  { %14787 = vst [vmem:[#allocation93_spill] sm:$0xff] %v11549_v48  ;;  %v14793_v39 = vsel %vm11555_vm8, 4294967295, %v14792_v39  ;;  %v11559_v18 = vpop.f32.mrf.mxu3  ;;  %vm11572_vm13 = vmand %vm708_vm9, %vm724_vm15  ;;  %v1684_v50 = vsel %vm11555_vm8, %v14810_v44, 0.0  ;;  %v1979_v48 = vld [vmem:[#allocation2 + $0x80] sm:$0xff]  ;;  %vm14842_vm8 = vcmask 130048  }
 0x113   :  { %14794 = vst [vmem:[#allocation81_spill] sm:$0xff] %v14793_v39  ;;  %v14805_v40 = vsel %vm11572_vm13, 4294967295, %v14804_v40  ;;  %vm11576_vm3 = vmand %vm709_vm11, %vm725_vm4  ;;  %vm14817_vm4 = vcmp.ge.s32.totalorder %v10963_v34, 0 }
 0x114   :  { %14795 = vst [vmem:[#allocation94_spill] sm:$0xff] %v11559_v18  ;;  %v11570_v43 = vpop.f32.mrf.mxu1  ;;  %v14808_v53 = vsel %vm11576_vm3, 4294967295, %v14807_v53  ;;  %vm11591_vm1 = vmand %vm11572_vm13, %vm14812_vm5  ;;  %v694_v18 = vadd.s32 1, %v10029_v19  ;;  %v2026_v19 = vsel %vm11572_vm13, %v1978_v30, 0.0  ;;  %v14838_v30 = vmov 0 }
 0x115   :  { %7690 = vmatmul.msk.bf16.gmra.mxu2 %vm14796_vm12, %v1865_v11  ;;  %14806 = vst [vmem:[#allocation109_spill] sm:$0xff] %v14805_v40  ;;  %v14811_v11 = vld [vmem:[#allocation140_spill] sm:$0xff]  ;;  %v14814_v24 = vsel %vm11591_vm1, 4294967295, %v14813_v24  ;;  %vm11600_vm11 = vmand %vm11576_vm3, %vm14817_vm4  ;;  %v1856_v57 = vsel %vm11591_vm1, %v11032_v35, 0.0  ;;  %v9208_v35 = vld [vmem:[#allocation12 + $0x18] sm:$0xff] }
 0x116   :  { %14809 = vst [vmem:[#allocation104_spill] sm:$0xff] %v14808_v53  ;;  %v1685_v63 = vsel %vm11566_vm14, %v14811_v11, 0.0  ;;  %v1857_v36 = vsel %vm11600_vm11, %v11136_v61, 0.0  ;;  %vm14821_vm9 = vmmov %vm14796_vm12  ;;  %v14826_v61 = vmov 0  ;;  %2490 = vmatpush.bf16.msrb.mxu1 %v9208_v35  ;;  %v9559_v35 = vld [vmem:[#allocation2 + $0x19] sm:$0xff] }
 0x117   :  { %7702 = vmatmul.msk.bf16.gmra.mxu3 %vm14796_vm12, %v2035_v17  ;;  %14815 = vst [vmem:[#allocation105_spill] sm:$0xff] %v14814_v24  ;;  %v14818_v17 = vmov 0  ;;  %v1695_v11 = vpack.c.bf16 %v1685_v63, %v1684_v50  ;;  %vm14823_vm15 = vmmov %vm14821_vm9  ;;  %v1866_v63 = vpack.c.bf16 %v1857_v36, %v1856_v57  ;;  %v695_v24 = vadd.s32 1, %v10031_v20  ;;  %v14829_v57 = vld [vmem:[#allocation39_spill] sm:$0xff] }
 0x118   :  { %v1319_v26 = vpop.f32.mrf.mxu2  ;;  %v14819_v17 = vsel %vm11600_vm11, 4294967295, %v14818_v17  ;;  %vm14825_vm12 = vcmp.le.s32.totalorder %v14824_v52, 7  ;;  %vm14830_vm4 = vcmp.le.s32.totalorder %v14829_v57, 7  ;;  %v14831_v20 = vmov 0 }
 0x119   :  { %14820 = vst [vmem:[#allocation107_spill] sm:$0xff] %v14819_v17  ;;  %v1091_v44 = vpop.f32.mrf.mxu0  ;;  %vm11620_vm5 = vmand %vm11148_vm6, %vm14825_vm12  ;;  %vm726_vm12 = vcmp.le.s32.totalorder %v694_v18, 7  ;;  %vm727_vm14 = vcmp.le.s32.totalorder %v695_v24, 7 }
 0x11a   :  { %v1489_v60 = vpop.f32.mrf.mxu3  ;;  %v14827_v61 = vsel %vm11620_vm5, 4294967295, %v14826_v61 }
 0x11b   :  { %14828 = vst [vmem:[#allocation111_spill] sm:$0xff] %v14827_v61 }
 0x11c   :  { %v1165_v33 = vpop.f32.mrf.mxu1  ;;  %7668 = vmatmul.msk.bf16.gmra.mxu0 %vm14821_vm9, %v1527_v51  ;;  %vm11634_vm9 = vmand %vm11169_vm7, %vm14830_vm4  ;;  %vm711_vm4 = vcmp.ge.s32.totalorder %v695_v24, 0  ;;  %v14843_v51 = vld [vmem:[#allocation134_spill] sm:$0xff] }
 0x11d   :  { %v1166_v39 = vadd.f32 %v1165_v33, %v1086_v29  ;;  %v2027_v29 = vsel %vm11576_vm3, %v1979_v48, 0.0  ;;  %v14832_v20 = vsel %vm11634_vm9, 4294967295, %v14831_v20  ;;  %vm14844_vm7 = vcmp.le.s32.totalorder %v14843_v51, 7  ;;  %v9560_v24 = vld [vmem:[#allocation2 + $0x21] sm:$0xff] }
 0x11e   :  { %14833 = vst [vmem:[#allocation100_spill] sm:$0xff] %v14832_v20  ;;  %vm11655_vm6 = vmand %vm11002_vm2, %vm14844_vm7  ;;  %v2036_v36 = vpack.c.bf16 %v2027_v29, %v2026_v19  ;;  %v2185_v57 = vsel %vm11634_vm9, %v9560_v24, 0.0  ;;  %vm14855_vm2 = vcmask 130048   ;;  %v14856_v19 = vld [vmem:[#allocation141_spill] sm:$0xff]  ;;  %vm14857_vm7 = vcmp.ge.s32.totalorder %v11065_v0, 0 }
 0x11f   :  { %v1344_v50 = vadd.f32 %v1319_v26, %v1166_v39  ;;  %7678 = vmatmul.msk.bf16.gmra.mxu1 %vm14823_vm15, %v1695_v11  ;;  %vm710_vm15 = vcmp.ge.s32.totalorder %v694_v18, 0  ;;  %v14835_v39 = vld [vmem:[#allocation132_spill] sm:$0xff]  ;;  %v14846_v18 = vmov 0  ;;  %v14852_v26 = vmov 0 }
 0x120   :  { %v11611_v34 = vpop.f32.mrf.mxu2  ;;  %vm14836_vm1 = vcmp.le.s32.totalorder %v14835_v39, 7  ;;  %v14847_v18 = vsel %vm11655_vm6, 4294967295, %v14846_v18  ;;  %v1687_v61 = vsel %vm11655_vm6, %v11098_v5, 0.0  ;;  %vm14878_vm9 = vnez %v14585_v1 }
 0x121   :  { %14822 = vst [vmem:[#allocation98_spill] sm:$0xff] %v11611_v34  ;;  %v11624_v33 = vadd.f32 %v1489_v60, %v1344_v50  ;;  %v11638_v52 = vpop.f32.mrf.mxu0  ;;  %vm11644_vm11 = vmand %vm10997_vm10, %vm14836_vm1  ;;  %v14849_v50 = vmov 0 }
 0x122   :  { %14834 = vst [vmem:[#allocation112_spill] sm:$0xff] %v11638_v52  ;;  %v14839_v30 = vsel %vm11644_vm11, 4294967295, %v14838_v30  ;;  %v11648_v48 = vpop.f32.mrf.mxu3  ;;  %vm11661_vm10 = vmand %vm710_vm15, %vm726_vm12  ;;  %v1686_v29 = vsel %vm11644_vm11, %v14856_v19, 0.0  ;;  %v1811_v19 = vld [vmem:[#allocation2 + $0x8f] sm:$0xff] }
 0x123   :  { %14840 = vst [vmem:[#allocation110_spill] sm:$0xff] %v14839_v30  ;;  %v14850_v50 = vsel %vm11661_vm10, 4294967295, %v14849_v50  ;;  %vm11684_vm1 = vmand %vm11661_vm10, %vm14857_vm7  ;;  %v1696_v0 = vpack.c.bf16 %v1687_v61, %v1686_v29  ;;  %v9561_v61 = vld [vmem:[#allocation2 + $0x8] sm:$0xff] }
 0x124   :  { %14841 = vst [vmem:[#allocation125_spill] sm:$0xff] %v11648_v48  ;;  %v11659_v60 = vpop.f32.mrf.mxu1  ;;  %vm14865_vm12 = vmmov %vm14855_vm2 }
 0x125   :  { %7691 = vmatmul.msk.bf16.gmra.mxu2 %vm14842_vm8, %v1866_v63  ;;  %14848 = vst [vmem:[#allocation121_spill] sm:$0xff] %v14847_v18  ;;  %v2184_v63 = vsel %vm11620_vm5, %v9559_v35, 0.0  ;;  %vm11669_vm8 = vmand %vm711_vm4, %vm727_vm14  ;;  %v14858_v35 = vmov 0  ;;  %vm14861_vm14 = vcmp.ge.s32.totalorder %v11067_v49, 0 }
 0x126   :  { %14851 = vst [vmem:[#allocation123_spill] sm:$0xff] %v14850_v50  ;;  %v14853_v26 = vsel %vm11669_vm8, 4294967295, %v14852_v26  ;;  %v14859_v35 = vsel %vm11684_vm1, 4294967295, %v14858_v35  ;;  %v2200_v24 = vpack.c.bf16 %v2185_v57, %v2184_v63  ;;  %vm11692_vm15 = vmand %vm11669_vm8, %vm14861_vm14  ;;  %v1858_v63 = vsel %vm11684_vm1, %v11138_v2, 0.0 }
 0x127   :  { %14854 = vst [vmem:[#allocation115_spill] sm:$0xff] %v14853_v26  ;;  %7703 = vmatmul.msk.bf16.gmra.mxu3 %vm14855_vm2, %v2036_v36  ;;  %v14862_v36 = vmov 0  ;;  %v1859_v49 = vsel %vm11692_vm15, %v1811_v19, 0.0  ;;  %vm14866_vm4 = vmmov %vm14855_vm2  ;;  %v2029_v2 = vsel %vm11669_vm8, %v9561_v61, 0.0  ;;  %vm14867_vm2 = vcmp.le.s32.totalorder %v10170_v8, 7  ;;  %v2138_v8 = vld [vmem:[#allocation2 + $0x29] sm:$0xff] }
 0x128   :  { %v1324_v11 = vpop.f32.mrf.mxu2  ;;  %14860 = vst [vmem:[#allocation127_spill] sm:$0xff] %v14859_v35  ;;  %v14863_v36 = vsel %vm11692_vm15, 4294967295, %v14862_v36  ;;  %v1867_v48 = vpack.c.bf16 %v1859_v49, %v1858_v63  ;;  %vm11719_vm7 = vmand %vm11217_vm0, %vm14867_vm2  ;;  %vm14877_vm2 = vcmp.le.s32.totalorder %v11042_v10, 7  ;;  %v11755_v19 = vld [vmem:[#allocation2 + $0x89] sm:$0xff]  ;;  %v14889_v63 = vld [vmem:[#allocation150_spill] sm:$0xff] }
 0x129   :  { %14864 = vst [vmem:[#allocation116_spill] sm:$0xff] %v14863_v36  ;;  %v1570_v20 = vpop.f32.mrf.mxu0  ;;  %vm14871_vm14 = vmmov %vm14866_vm4  ;;  %v2186_v1 = vsel %vm11719_vm7, %v2138_v8, 0.0 }
 0x12a   :  { %v11697_v17 = vadd.f32 %v1570_v20, %v11260_v22  ;;  %v1494_v30 = vpop.f32.mrf.mxu3  ;;  %v2028_v22 = vsel %vm11661_vm10, %v14816_v54, 0.0  ;;  %v14874_v54 = vmov 0  ;;  %vm11739_vm15 = vmand %vm14878_vm9, %vm14877_vm2  ;;  %vm14888_vm9 = vcmask 130048  }
 0x12b   :  { %v1688_v49 = vsel %vm11739_vm15, %v14889_v63, 0.0  ;;  %vm14890_vm2 = vmmov %vm14888_vm9 }
 0x12c   :  { %v1170_v18 = vpop.f32.mrf.mxu1  ;;  %7709 = vmatmul.msk.bf16.vlgmr.msra.gmra.mxu0 %vm14865_vm12, %v2200_v24  ;;  %vm14872_vm12 = vcmp.le.s32.totalorder %v10189_v15, 7  ;;  %v2037_v15 = vpack.c.bf16 %v2029_v2, %v2028_v22  ;;  %v14885_v24 = vmov 0 }
 0x12d   :  { %v1171_v57 = vadd.f32 %v1170_v18, %v1091_v44  ;;  %v14868_v44 = vmov 0  ;;  %v14879_v18 = vmov 0 }
 0x12e   :  { %v14869_v44 = vsel %vm11719_vm7, 4294967295, %v14868_v44  ;;  %v14880_v18 = vsel %vm11739_vm15, 4294967295, %v14879_v18 }
 0x12f   :  { %v1346_v52 = vadd.f32 %v1324_v11, %v1171_v57  ;;  %7679 = vmatmul.msk.bf16.gmra.mxu1 %vm14866_vm4, %v1696_v0  ;;  %14870 = vst [vmem:[#allocation128_spill] sm:$0xff] %v14869_v44  ;;  %vm14873_vm4 = vnez %v14627_v9  ;;  %v14883_v11 = vld [vmem:[#allocation151_spill] sm:$0xff] }
 0x130   :  { %v11713_v29 = vpop.f32.mrf.mxu2  ;;  %vm11731_vm5 = vmand %vm14873_vm4, %vm14872_vm12  ;;  %14881 = vst [vmem:[#allocation140_spill] sm:$0xff] %v14880_v18  ;;  %vm14884_vm12 = vnez %v14883_v11 }
 0x131   :  { %v11706_v34 = vadd.f32 %v1494_v30, %v1346_v52  ;;  %v1572_v20 = vpop.f32.mrf.mxu0  ;;  %v14875_v54 = vsel %vm11731_vm5, 4294967295, %v14874_v54  ;;  %v2139_v30 = vld [vmem:[#allocation2 + $0x31] sm:$0xff] }
 0x132   :  { %v11724_v52 = vadd.f32 %v1572_v20, %v11306_v56  ;;  %14876 = vst [vmem:[#allocation126_spill] sm:$0xff] %v14875_v54  ;;  %v2187_v0 = vsel %vm11731_vm5, %v2139_v30, 0.0 }
 0x133   :  { %v2201_v22 = vpack.c.bf16 %v2187_v0, %v2186_v1  ;;  %v14899_v0 = vld [vmem:[#allocation168_spill] sm:$0xff] }
 0x134   :  { %v11743_v56 = vpop.f32.mrf.mxu1  ;;  %vm14900_vm5 = vnez %v14899_v0 }
 0x135   :  { %7692 = vmatmul.msk.bf16.gmra.mxu2 %vm14871_vm14, %v1867_v48  ;;  %v11745_v48 = vpop.f32.mrf.mxu3  ;;  %vm14882_vm14 = vcmp.le.s32.totalorder %v11044_v59, 7 }
 0x136   :  { %vm11751_vm1 = vmand %vm14884_vm12, %vm14882_vm14  ;;  %vm14892_vm12 = vcmp.le.s32.totalorder %v14678_v28, 7 }
 0x137   :  { %v14886_v24 = vsel %vm11751_vm1, 4294967295, %v14885_v24  ;;  %7704 = vmatmul.msk.bf16.gmra.mxu3 %vm14888_vm9, %v2037_v15  ;;  %v1689_v57 = vsel %vm11751_vm1, %v11755_v19, 0.0  ;;  %vm14891_vm14 = vmmov %vm14890_vm2  ;;  %vm14893_vm9 = vnez %v14652_v3  ;;  %v15041_v3 = vld [vmem:[#allocation125_spill] sm:$0xff] }
 0x138   :  { %14887 = vst [vmem:[#allocation131_spill] sm:$0xff] %v14886_v24  ;;  %v1697_v20 = vpack.c.bf16 %v1689_v57, %v1688_v49  ;;  %v1329_v11 = vpop.f32.mrf.mxu2  ;;  %vm11780_vm7 = vmand %vm14893_vm9, %vm14892_vm12  ;;  %v14901_v49 = vmov 0  ;;  %v2141_v57 = vld [vmem:[#allocation2 + $0x41] sm:$0xff]  ;;  %vm14904_vm12 = vcmp.le.s32.totalorder %v14715_v46, 7 }
 0x139   :  { %v1575_v61 = vpop.f32.mrf.mxu0 }
 0x13a   :  { %v11769_v2 = vadd.f32 %v1575_v61, %v11328_v37  ;;  %v14894_v37 = vmov 0 }
 0x13b   :  { %v14895_v37 = vsel %vm11780_vm7, 4294967295, %v14894_v37 }
 0x13c   :  { %v1175_v8 = vpop.f32.mrf.mxu1  ;;  %7710 = vmatmul.msk.bf16.gmra.mxu0 %vm14890_vm2, %v2201_v22  ;;  %14896 = vst [vmem:[#allocation38_spill] sm:$0xff] %v14895_v37 }
 0x13d   :  { %v1176_v30 = vadd.f32 %v1175_v8, %v11198_v45  ;;  %v1499_v15 = vpop.f32.mrf.mxu3  ;;  %v14897_v45 = vld [vmem:[#allocation61_spill] sm:$0xff]  ;;  %v14906_v8 = vmov 0 }
 0x13e   :  { %vm14898_vm2 = vcmp.le.s32.totalorder %v14897_v45, 7  ;;  %v2143_v45 = vld [vmem:[#allocation2 + $0x51] sm:$0xff] }
 0x13f   :  { %v1348_v44 = vadd.f32 %v1329_v11, %v1176_v30  ;;  %7680 = vmatmul.msk.bf16.gmra.mxu1 %vm14891_vm14, %v1697_v20  ;;  %vm11791_vm1 = vmand %vm14900_vm5, %vm14898_vm2  ;;  %vm14905_vm2 = vnez %v14693_v31  ;;  %v14910_v30 = vld [vmem:[#allocation66_spill] sm:$0xff] }
 0x140   :  { %v14902_v49 = vsel %vm11791_vm1, 4294967295, %v14901_v49  ;;  %v2189_v22 = vsel %vm11791_vm1, %v2141_v57, 0.0  ;;  %vm11807_vm15 = vmand %vm14905_vm2, %vm14904_vm12  ;;  %vm14911_vm1 = vnez %v14910_v30  ;;  %vm14916_vm12 = vnez %v14731_v41 }
 0x141   :  { %v11774_v54 = vadd.f32 %v1499_v15, %v1348_v44  ;;  %v1577_v36 = vpop.f32.mrf.mxu0  ;;  %14903 = vst [vmem:[#allocation39_spill] sm:$0xff] %v14902_v49  ;;  %v2140_v44 = vld [vmem:[#allocation2 + $0x39] sm:$0xff]  ;;  %v14907_v8 = vsel %vm11807_vm15, 4294967295, %v14906_v8  ;;  %v2142_v15 = vld [vmem:[#allocation2 + $0x49] sm:$0xff] }
 0x142   :  { %v11785_v1 = vadd.f32 %v1577_v36, %v11376_v4  ;;  %v2188_v28 = vsel %vm11780_vm7, %v2140_v44, 0.0  ;;  %14908 = vst [vmem:[#allocation132_spill] sm:$0xff] %v14907_v8  ;;  %vm14909_vm7 = vcmp.le.s32.totalorder %v14723_v6, 7  ;;  %v2190_v46 = vsel %vm11807_vm15, %v2142_v15, 0.0  ;;  %v9207_v6 = vld [vmem:[#allocation12 + $0x10] sm:$0xff]  ;;  %v9206_v8 = vld [vmem:[#allocation12 + $0x8] sm:$0xff] }
 0x143   :  { %v2202_v61 = vpack.c.bf16 %v2189_v22, %v2188_v28  ;;  %vm11818_vm11 = vmand %vm14911_vm1, %vm14909_vm7  ;;  %2491 = vmatpush.bf16.msrb.mxu1 %v9207_v6  ;;  %vm14915_vm7 = vcmp.le.s32.totalorder %v14751_v32, 7  ;;  %vm14920_vm15 = vcmp.le.s32.totalorder %v14759_v16, 7  ;;  %v2145_v15 = vld [vmem:[#allocation2 + $0x61] sm:$0xff]  ;;  %v2147_v6 = vld [vmem:[#allocation2 + $0x71] sm:$0xff]  ;;  %2575 = vmatpush.bf16.msra.mxu2 %v9206_v8 }
 0x144   :  { %v2191_v44 = vsel %vm11818_vm11, %v2143_v45, 0.0  ;;  %vm11834_vm6 = vmand %vm14916_vm12, %vm14915_vm7  ;;  %vm14926_vm7 = vnez %v14767_v23  ;;  %v9212_v8 = vld [vmem:[#allocation12 + $0x38] sm:$0xff]  ;;  %v9219_v23 = vld [vmem:[#allocation12 + $0x70] sm:$0xff] }
 0x145   :  { %v2203_v57 = vpack.c.bf16 %v2191_v44, %v2190_v46  ;;  %2851 = vmatpush.bf16.msrb.mxu0 %v9212_v8 }
 0x149   :  { %v1580_v20 = vpop.f32.mrf.mxu0 }
 0x14a   :  { %v11800_v4 = vadd.f32 %v1580_v20, %v11398_v58  ;;  %v14912_v58 = vmov 0 }
 0x14b   :  { %v14913_v58 = vsel %vm11818_vm11, 4294967295, %v14912_v58  ;;  %vm14921_vm11 = vnez %v14734_v42 }
 0x14c   :  { %7711 = vmatmul.msk.bf16.gmra.mxu0 %vm14891_vm14, %v2202_v61  ;;  %14914 = vst [vmem:[#allocation142_spill] sm:$0xff] %v14913_v58  ;;  %v14917_v61 = vmov 0  ;;  %vm11845_vm1 = vmand %vm14921_vm11, %vm14920_vm15  ;;  %vm14925_vm15 = vcmp.le.s32.totalorder %v14788_v38, 7 }
 0x14d   :  { %v14918_v61 = vsel %vm11834_vm6, 4294967295, %v14917_v61  ;;  %v2193_v45 = vsel %vm11845_vm1, %v2145_v15, 0.0  ;;  %vm11863_vm11 = vmand %vm14926_vm7, %vm14925_vm15  ;;  %v11881_v15 = vpop.f32.mrf.mxu2 }
 0x14e   :  { %14919 = vst [vmem:[#allocation134_spill] sm:$0xff] %v14918_v61 }
 0x151   :  { %v1582_v36 = vpop.f32.mrf.mxu0 }
 0x152   :  { %v11812_v11 = vadd.f32 %v1582_v36, %v11446_v25  ;;  %v2144_v36 = vld [vmem:[#allocation2 + $0x59] sm:$0xff] }
 0x153   :  { %v2192_v32 = vsel %vm11834_vm6, %v2144_v36, 0.0  ;;  %vm14930_vm6 = vcmp.le.s32.totalorder %v14797_v7, 7 }
 0x154   :  { %v2204_v46 = vpack.c.bf16 %v2193_v45, %v2192_v32 }
 0x159   :  { %v1585_v28 = vpop.f32.mrf.mxu0 }
 0x15a   :  { %v11827_v25 = vadd.f32 %v1585_v28, %v11468_v62  ;;  %v14922_v62 = vmov 0  ;;  %v14932_v28 = vmov 0 }
 0x15b   :  { %v14923_v62 = vsel %vm11845_vm1, 4294967295, %v14922_v62  ;;  %vm14931_vm1 = vnez %v14770_v27 }
 0x15c   :  { %7712 = vmatmul.msk.bf16.gmra.mxu0 %vm14891_vm14, %v2203_v57  ;;  %14924 = vst [vmem:[#allocation143_spill] sm:$0xff] %v14923_v62  ;;  %v14927_v57 = vmov 0  ;;  %vm11871_vm12 = vmand %vm14931_vm1, %vm14930_vm6 }
 0x15d   :  { %v14928_v57 = vsel %vm11863_vm11, 4294967295, %v14927_v57  ;;  %v14933_v28 = vsel %vm11871_vm12, 4294967295, %v14932_v28  ;;  %v2195_v36 = vsel %vm11871_vm12, %v2147_v6, 0.0  ;;  %vm14935_vm6 = vmmov %vm14891_vm14  ;;  %v1910_v6 = vpop.f32.mrf.mxu2 }
 0x15e   :  { %14929 = vst [vmem:[#allocation141_spill] sm:$0xff] %v14928_v57 }
 0x15f   :  { %14934 = vst [vmem:[#allocation151_spill] sm:$0xff] %v14933_v28 }
 0x161   :  { %v1587_v22 = vpop.f32.mrf.mxu0 }
 0x162   :  { %v11839_v20 = vadd.f32 %v1587_v22, %v11518_v55  ;;  %v11875_v22 = vpop.f32.mrf.mxu1 }
 0x165   :  { %v1912_v28 = vpop.f32.mrf.mxu2 }
 0x169   :  { %v1590_v44 = vpop.f32.mrf.mxu0 }
 0x16a   :  { %v11854_v55 = vadd.f32 %v1590_v44, %v11541_v47  ;;  %v2146_v47 = vld [vmem:[#allocation2 + $0x69] sm:$0xff]  ;;  %v1740_v44 = vpop.f32.mrf.mxu1 }
 0x16b   :  { %v2194_v38 = vsel %vm11863_vm11, %v2146_v47, 0.0  ;;  %v14937_v47 = vmov 0  ;;  %vm14940_vm11 = vcmp.le.s32.totalorder %v14843_v51, 7 }
 0x16c   :  { %7713 = vmatmul.msk.bf16.gmra.mxu0 %vm14891_vm14, %v2204_v46  ;;  %v2205_v32 = vpack.c.bf16 %v2195_v36, %v2194_v38  ;;  %v11886_v46 = vpop.f32.mrf.mxu3  ;;  %vm14936_vm14 = vcmp.le.s32.totalorder %v14835_v39, 7  ;;  %vm11903_vm12 = vmand %vm11576_vm3, %vm14940_vm11 }
 0x16d   :  { %vm11895_vm15 = vmand %vm11572_vm13, %vm14936_vm14  ;;  %v2197_v39 = vsel %vm11903_vm12, %v14889_v63, 0.0 }
 0x16e   :  { %v14938_v47 = vsel %vm11895_vm15, 4294967295, %v14937_v47  ;;  %v2196_v38 = vsel %vm11895_vm15, %v11098_v5, 0.0  ;;  %vm14944_vm11 = vmmov %vm14935_vm6  ;;  %v14946_v5 = vmov 0  ;;  %vm14949_vm15 = vcmp.le.s32.totalorder %v11044_v59, 7 }
 0x16f   :  { %14939 = vst [vmem:[#allocation150_spill] sm:$0xff] %v14938_v47  ;;  %v9210_v47 = vld [vmem:[#allocation12 + $0x28] sm:$0xff] }
 0x170   :  { %2705 = vmatpush.bf16.msra.mxu3 %v9210_v47 }
 0x171   :  { %v11857_v16 = vpop.f32.mrf.mxu0 }
 0x174   :  { %v2080_v36 = vpop.f32.mrf.mxu3 }
 0x179   :  { %v1595_v7 = vpop.f32.mrf.mxu0 }
 0x17a   :  { %v11884_v45 = vadd.f32 %v1595_v7, %v11624_v33  ;;  %v14941_v33 = vmov 0  ;;  %v2206_v7 = vpack.c.bf16 %v2197_v39, %v2196_v38  ;;  %v1915_v39 = vpop.f32.mrf.mxu2 }
 0x17b   :  { %v14942_v33 = vsel %vm11903_vm12, 4294967295, %v14941_v33  ;;  %vm11931_vm12 = vmand %vm11669_vm8, %vm14949_vm15 }
 0x17c   :  { %7714 = vmatmul.msk.bf16.gmra.mxu0 %vm14935_vm6, %v2205_v32  ;;  %14943 = vst [vmem:[#allocation61_spill] sm:$0xff] %v14942_v33  ;;  %v1742_v32 = vpop.f32.mrf.mxu1  ;;  %v2082_v62 = vpop.f32.mrf.mxu3  ;;  %vm14945_vm6 = vcmp.le.s32.totalorder %v11042_v10, 7  ;;  %v9205_v33 = vld [vmem:[#allocation12] sm:$0xff]  ;;  %vm14953_vm15 = vmmov %vm14944_vm11 }
 0x17d   :  { %vm11923_vm14 = vmand %vm11661_vm10, %vm14945_vm6  ;;  %2576 = vmatpush.bf16.msra.mxu2 %v9205_v33  ;;  %v1781_v50 = vadd.f32 %v1742_v32, %v11724_v52  ;;  %vm14228_vm6 = vcmask 261120  }
 0x17e   :  { %v14947_v5 = vsel %vm11923_vm14, 4294967295, %v14946_v5  ;;  %v2198_v10 = vsel %vm11923_vm14, %v11755_v19, 0.0  ;;  %v1780_v19 = vadd.f32 %v1740_v44, %v11697_v17 }
 0x17f   :  { %14948 = vst [vmem:[#allocation169_spill] sm:$0xff] %v14947_v5  ;;  %v9209_v5 = vld [vmem:[#allocation12 + $0x20] sm:$0xff]  ;;  %v1951_v44 = vadd.f32 %v1912_v28, %v1781_v50 }
 0x180   :  { %2706 = vmatpush.bf16.msra.mxu3 %v9209_v5 }
 0x181   :  { %v11889_v61 = vpop.f32.mrf.mxu0 }
 0x184   :  { %v1745_v63 = vpop.f32.mrf.mxu1  ;;  %v2085_v37 = vpop.f32.mrf.mxu3 }
 0x185   :  { %v1782_v5 = vadd.f32 %v1745_v63, %v11769_v2 }
 0x187   :  { %v1952_v28 = vadd.f32 %v1915_v39, %v1782_v5  ;;  %v14959_v39 = vld [vmem:[#allocation53_spill] sm:$0xff] }
 0x189   :  { %v1600_v57 = vpop.f32.mrf.mxu0 }
 0x18a   :  { %v11914_v51 = vadd.f32 %v1600_v57, %v11706_v34  ;;  %v14950_v34 = vmov 0  ;;  %v2151_v57 = vld [vmem:[#allocation2 + $0x91] sm:$0xff] }
 0x18b   :  { %v14951_v34 = vsel %vm11931_vm12, 4294967295, %v14950_v34  ;;  %v2199_v38 = vsel %vm11931_vm12, %v2151_v57, 0.0  ;;  %v9214_v57 = vld [vmem:[#allocation12 + $0x48] sm:$0xff] }
 0x18c   :  { %7715 = vmatmul.msk.bf16.gmra.mxu0 %vm14944_vm11, %v2206_v7  ;;  %14952 = vst [vmem:[#allocation170_spill] sm:$0xff] %v14951_v34  ;;  %v2207_v7 = vpack.c.bf16 %v2199_v38, %v2198_v10  ;;  %v1747_v26 = vpop.f32.mrf.mxu1  ;;  %v1917_v34 = vpop.f32.mrf.mxu2  ;;  %v9211_v10 = vld [vmem:[#allocation12 + $0x30] sm:$0xff]  ;;  %2965 = vmatpush.bf16.msra.mxu1 %v9214_v57  ;;  %v2121_v57 = vadd.f32 %v2082_v62, %v1951_v44  ;;  %v14957_v44 = vld [vmem:[#allocation52_spill] sm:$0xff] }
 0x18d   :  { %2852 = vmatpush.bf16.msrb.mxu0 %v9211_v10  ;;  %v1783_v2 = vadd.f32 %v1747_v26, %v11785_v1 }
 0x191   :  { %v11917_v58 = vpop.f32.mrf.mxu0 }
 0x194   :  { %v1750_v47 = vpop.f32.mrf.mxu1  ;;  %v1920_v35 = vpop.f32.mrf.mxu2 }
 0x199   :  { %v1605_v59 = vpop.f32.mrf.mxu0 }
 0x19a   :  { %v11941_v49 = vadd.f32 %v1605_v59, %v11774_v54  ;;  %v1950_v54 = vadd.f32 %v1910_v6, %v1780_v19  ;;  %v2087_v59 = vpop.f32.mrf.mxu3  ;;  %v14956_v19 = vmov 0.0  }
 0x19c   :  { %7716 = vmatmul.msk.bf16.gmra.mxu0 %vm14953_vm15, %v2207_v7  ;;  %v2120_v33 = vadd.f32 %v2080_v36, %v1950_v54  ;;  %v11948_v7 = vld [vmem:[#allocation10] ss:$0 sm:$0xff]  ;;  %v1752_v6 = vpop.f32.mrf.mxu1  ;;  %v14954_v36 = vld [vmem:[#allocation41_spill] sm:$0xff]  ;;  %vm14958_vm15 = vnez %v14957_v44 }
 0x19d   :  { %vm14955_vm11 = vnez %v14954_v36 }
 0x1a1   :  { %v11945_v38 = vpop.f32.mrf.mxu0 }
 0x1a2   :  { %v2090_v18 = vpop.f32.mrf.mxu3 }
 0x1a9   :  { %v2250_v8 = vpop.f32.mrf.mxu0 }
 0x1aa   :  { %v2290_v17 = vadd.f32 %v2250_v8, %v2120_v33  ;;  %v2122_v33 = vadd.f32 %v2085_v37, %v1952_v28  ;;  %v2092_v8 = vpop.f32.mrf.mxu3 }
 0x1ac   :  { %v2310_v24 = vadd.f32 %v11948_v7, %v2290_v17  ;;  %v1784_v17 = vadd.f32 %v1750_v47, %v11800_v4  ;;  %v14969_v47 = vld [vmem:[#allocation49_spill] sm:$0xff] }
 0x1ad   :  { %vm14970_vm14 = vnez %v14969_v47 }
 0x1ae   :  { %v11951_v53 = vmax.f32 %v2310_v24, 0.0  ;;  %v1922_v24 = vpop.f32.mrf.mxu2  ;;  %v1954_v47 = vadd.f32 %v1920_v35, %v1784_v17  ;;  %v14979_v35 = vld [vmem:[#allocation63_spill] sm:$0xff] }
 0x1b0   :  { %2342 = vst [vmem:[#allocation2 + $0x10] sm:$0xff] %v11951_v53  ;;  %v2419_v52 = vsel %vm14955_vm11, %v11951_v53, 0.0 }
 0x1b1   :  { %v2252_v32 = vpop.f32.mrf.mxu0  ;;  %v2434_v10 = vpack.c.bf16 %v2419_v52, %v14956_v19  ;;  %v14961_v19 = vld [vmem:[#allocation40_spill] sm:$0xff] }
 0x1b2   :  { %v2291_v50 = vadd.f32 %v2252_v32, %v2121_v57  ;;  %v1755_v32 = vpop.f32.mrf.mxu1 }
 0x1b3   :  { %7725 = vmatmul.msk.bf16.vlgmr.msrb.gmra.mxu1 %vm14228_vm6, %v2434_v10 }
 0x1b4   :  { %v2311_v62 = vadd.f32 %v11948_v7, %v2291_v50  ;;  %v1953_v50 = vadd.f32 %v1917_v34, %v1783_v2  ;;  %v14963_v34 = vld [vmem:[#allocation45_spill] sm:$0xff] }
 0x1b5   :  { %vm14964_vm11 = vnez %v14963_v34 }
 0x1b6   :  { %v11961_v54 = vmax.f32 %v2311_v62, 0.0  ;;  %v11972_v1 = vpop.f32.mrf.mxu2  ;;  %v2123_v62 = vadd.f32 %v2087_v59, %v1953_v50  ;;  %v14967_v59 = vld [vmem:[#allocation46_spill] sm:$0xff] }
 0x1b7   :  { %v2359_v63 = vld [vmem:[#allocation2 + $0xf] sm:$0xff]  ;;  %vm14968_vm12 = vnez %v14967_v59 }
 0x1b8   :  { %2343 = vst [vmem:[#allocation2 + $0x18] sm:$0xff] %v11961_v54  ;;  %v2375_v57 = vsel %vm14958_vm15, %v2359_v63, 0.0  ;;  %v2618_v37 = vld [vmem:[#allocation2 + $0x9] sm:$0xff]  ;;  %vm14962_vm15 = vnez %v14961_v19  ;;  %v2780_v2 = vsel %vm14964_vm11, %v2359_v63, 0.0  ;;  %v2095_v19 = vpop.f32.mrf.mxu3  ;;  %vm14975_vm11 = vcmask 261120  }
 0x1b9   :  { %v2255_v52 = vpop.f32.mrf.mxu0  ;;  %v2390_v5 = vpack.c.bf16 %v2375_v57, %v14959_v39  ;;  %v2634_v57 = vsel %vm14962_vm15, %v2618_v37, 0.0 }
 0x1ba   :  { %v2292_v10 = vadd.f32 %v2255_v52, %v2122_v33  ;;  %v14965_v33 = vld [vmem:[#allocation44_spill] sm:$0xff] }
 0x1bb   :  { %7741 = vmatmul.msk.bf16.vlgmr.msra.gmra.mxu2 %vm14228_vm6, %v2390_v5  ;;  %vm14966_vm6 = vnez %v14965_v33  ;;  %v2420_v5 = vsel %vm14970_vm14, %v11961_v54, 0.0  ;;  %vm14976_vm14 = vmmov %vm14975_vm11 }
 0x1bc   :  { %v2312_v26 = vadd.f32 %v11948_v7, %v2292_v10  ;;  %v14971_v10 = vld [vmem:[#allocation50_spill] sm:$0xff] }
 0x1bd   :  { %vm14972_vm15 = vnez %v14971_v10 }
 0x1be   :  { %v11974_v28 = vmax.f32 %v2312_v26, 0.0 }
 0x1bf   :  { %v11977_v44 = vld [vmem:[#allocation2 + $0x11] sm:$0xff] }
 0x1c0   :  { %14960 = vst [vmem:[#allocation171_spill] sm:$0xff] %v11974_v28  ;;  %v11981_v39 = vld [vmem:[#allocation2 + $0x17] sm:$0xff]  ;;  %v2635_v52 = vsel %vm14966_vm6, %v11977_v44, 0.0  ;;  %v2421_v50 = vsel %vm14972_vm15, %v11974_v28, 0.0  ;;  %vm14973_vm6 = vnez %v14598_v13  ;;  %vm14978_vm15 = vmmov %vm14975_vm11 }
 0x1c1   :  { %2344 = vst [vmem:[#allocation2 + $0x20] sm:$0xff] %v11974_v28  ;;  %v2781_v4 = vsel %vm14968_vm12, %v11981_v39, 0.0  ;;  %v2257_v26 = vpop.f32.mrf.mxu0  ;;  %v2650_v63 = vpack.c.bf16 %v2635_v52, %v2634_v57  ;;  %v2435_v34 = vpack.c.bf16 %v2421_v50, %v2420_v5  ;;  %v3332_v33 = vsel %vm14973_vm6, %v11961_v54, 0.0  ;;  %v1757_v57 = vpop.f32.mrf.mxu1 }
 0x1c2   :  { %v2796_v37 = vpack.c.bf16 %v2781_v4, %v2780_v2  ;;  %v2293_v36 = vadd.f32 %v2257_v26, %v2123_v62  ;;  %vm14974_vm12 = vnez %v14610_v12  ;;  %v1785_v52 = vadd.f32 %v1752_v6, %v11812_v11  ;;  %v1927_v50 = vpop.f32.mrf.mxu2 }
 0x1c3   :  { %v3333_v59 = vsel %vm14974_vm12, %v11974_v28, 0.0  ;;  %7757 = vmatmul.msk.bf16.vlgmr.msra.gmra.mxu3 %vm14975_vm11, %v2650_v63  ;;  %7726 = vmatmul.msk.bf16.gmra.mxu1 %vm14978_vm15, %v2435_v34  ;;  %v2124_v5 = vadd.f32 %v2090_v18, %v1954_v47  ;;  %v2097_v18 = vpop.f32.mrf.mxu3 }
 0x1c4   :  { %7773 = vmatmul.msk.bf16.vlgmr.msrb.gmra.mxu0 %vm14976_vm14, %v2796_v37  ;;  %v12006_v10 = vpack.c.bf16 %v3333_v59, %v3332_v33  ;;  %v2313_v2 = vadd.f32 %v11948_v7, %v2293_v36  ;;  %vm14980_vm14 = vnez %v14979_v35  ;;  %v14981_v36 = vld [vmem:[#allocation64_spill] sm:$0xff]  ;;  %v1955_v6 = vadd.f32 %v1922_v24, %v1785_v52 }
 0x1c5   :  { %v2376_v17 = vsel %vm14980_vm14, %v11981_v39, 0.0  ;;  %vm14982_vm11 = vnez %v14981_v36  ;;  %v1786_v35 = vadd.f32 %v1755_v32, %v11827_v25  ;;  %v14984_v36 = vld [vmem:[#allocation54_spill] sm:$0xff]  ;;  %v14986_v52 = vld [vmem:[#allocation56_spill] sm:$0xff] }
 0x1c6   :  { %14977 = vst [vmem:[#allocation172_spill] sm:$0xff] %v12006_v10  ;;  %v12010_v62 = vmax.f32 %v2313_v2, 0.0  ;;  %v2125_v26 = vadd.f32 %v2092_v8, %v1955_v6  ;;  %v14990_v25 = vld [vmem:[#allocation58_spill] sm:$0xff] }
 0x1c7   :  { %vm14991_vm12 = vnez %v14990_v25 }
 0x1c8   :  { %v12013_v4 = vld [vmem:[#allocation2 + $0x1f] sm:$0xff]  ;;  %2345 = vst [vmem:[#allocation2 + $0x28] sm:$0xff] %v12010_v62 }
 0x1c9   :  { %v2377_v34 = vsel %vm14982_vm11, %v12013_v4, 0.0  ;;  %v2260_v33 = vpop.f32.mrf.mxu0  ;;  %v12026_v63 = vld [vmem:[#allocation2 + $0x19] sm:$0xff]  ;;  %v1760_v37 = vpop.f32.mrf.mxu1  ;;  %vm14985_vm11 = vnez %v14984_v36 }
 0x1ca   :  { %v2391_v59 = vpack.c.bf16 %v2377_v34, %v2376_v17  ;;  %v2294_v11 = vadd.f32 %v2260_v33, %v2124_v5  ;;  %v2636_v5 = vsel %vm14985_vm11, %v12026_v63, 0.0  ;;  %v14988_v34 = vld [vmem:[#allocation55_spill] sm:$0xff]  ;;  %v14992_v33 = vld [vmem:[#allocation60_spill] sm:$0xff]  ;;  %v1930_v28 = vpop.f32.mrf.mxu2  ;;  %v1788_v14 = vadd.f32 %v1760_v37, %v11854_v55  ;;  %v15012_v55 = vld [vmem:[#allocation77_spill] sm:$0xff] }
 0x1cb   :  { %vm14989_vm14 = vnez %v14988_v34  ;;  %vm14993_vm6 = vnez %v14992_v33  ;;  %v3334_v34 = vsel %vm11217_vm0, %v12010_v62, 0.0 }
 0x1cc   :  { %7742 = vmatmul.msk.bf16.gmra.mxu2 %vm14978_vm15, %v2391_v59  ;;  %v2314_v47 = vadd.f32 %v11948_v7, %v2294_v11  ;;  %vm14987_vm15 = vnez %v14986_v52  ;;  %v2422_v59 = vsel %vm14993_vm6, %v12010_v62, 0.0  ;;  %v14994_v11 = vld [vmem:[#allocation62_spill] sm:$0xff] }
 0x1cd   :  { %v2782_v17 = vsel %vm14987_vm15, %v12013_v4, 0.0  ;;  %vm14995_vm11 = vnez %v14994_v11 }
 0x1ce   :  { %v12028_v2 = vmax.f32 %v2314_v47, 0.0 }
 0x1cf   :  { %v12031_v12 = vld [vmem:[#allocation2 + $0x21] sm:$0xff] }
 0x1d0   :  { %14983 = vst [vmem:[#allocation173_spill] sm:$0xff] %v12028_v2  ;;  %v12036_v24 = vld [vmem:[#allocation2 + $0x27] sm:$0xff]  ;;  %v2637_v8 = vsel %vm14989_vm14, %v12031_v12, 0.0  ;;  %v2423_v6 = vsel %vm14995_vm11, %v12028_v2, 0.0  ;;  %v3335_v25 = vsel %vm14873_vm4, %v12028_v2, 0.0  ;;  %vm15013_vm4 = vnez %v15012_v55 }
 0x1d1   :  { %2346 = vst [vmem:[#allocation2 + $0x30] sm:$0xff] %v12028_v2  ;;  %v2783_v32 = vsel %vm14991_vm12, %v12036_v24, 0.0  ;;  %v2262_v47 = vpop.f32.mrf.mxu0  ;;  %v2651_v52 = vpack.c.bf16 %v2637_v8, %v2636_v5  ;;  %v2436_v13 = vpack.c.bf16 %v2423_v6, %v2422_v59  ;;  %vm14996_vm12 = vcmask 261120  }
 0x1d2   :  { %v2797_v36 = vpack.c.bf16 %v2783_v32, %v2782_v17  ;;  %v2295_v10 = vadd.f32 %v2262_v47, %v2125_v26  ;;  %vm14997_vm6 = vmmov %vm14996_vm12  ;;  %v12062_v11 = vpack.c.bf16 %v3335_v25, %v3334_v34  ;;  %v1956_v5 = vadd.f32 %v11972_v1, %v1786_v35  ;;  %v2100_v26 = vpop.f32.mrf.mxu3  ;;  %v1762_v47 = vpop.f32.mrf.mxu1  ;;  %v15000_v1 = vld [vmem:[#allocation83_spill] sm:$0xff] }
 0x1d3   :  { %7758 = vmatmul.msk.bf16.gmra.mxu3 %vm14996_vm12, %v2651_v52  ;;  %vm14999_vm11 = vmmov %vm14997_vm6  ;;  %v1787_v32 = vadd.f32 %v1757_v57, %v11839_v20  ;;  %vm15001_vm12 = vnez %v15000_v1  ;;  %v1163_v20 = vadd.f32 %v11570_v43, %v11476_v21  ;;  %v1932_v25 = vpop.f32.mrf.mxu2  ;;  %v15006_v21 = vld [vmem:[#allocation68_spill] sm:$0xff] }
 0x1d4   :  { %7774 = vmatmul.msk.bf16.gmra.mxu0 %vm14997_vm6, %v2797_v36  ;;  %14998 = vst [vmem:[#allocation174_spill] sm:$0xff] %v12062_v11  ;;  %v2315_v17 = vadd.f32 %v11948_v7, %v2295_v10  ;;  %7727 = vmatmul.msk.bf16.gmra.mxu1 %vm14999_vm11, %v2436_v13  ;;  %v2126_v6 = vadd.f32 %v2095_v19, %v1956_v5  ;;  %v2378_v10 = vsel %vm15001_vm12, %v12036_v24, 0.0  ;;  %v15002_v13 = vld [vmem:[#allocation84_spill] sm:$0xff]  ;;  %v15004_v36 = vld [vmem:[#allocation79_spill] sm:$0xff] }
 0x1d5   :  { %vm15003_vm6 = vnez %v15002_v13  ;;  %v1957_v57 = vadd.f32 %v1927_v50, %v1787_v32  ;;  %v1343_v1 = vadd.f32 %v15004_v36, %v1163_v20  ;;  %v15008_v32 = vld [vmem:[#allocation76_spill] sm:$0xff]  ;;  %v15010_v36 = vld [vmem:[#allocation71_spill] sm:$0xff]  ;;  %v15016_v20 = vld [vmem:[#allocation82_spill] sm:$0xff] }
 0x1d6   :  { %v12067_v8 = vmax.f32 %v2315_v17, 0.0  ;;  %vm15011_vm12 = vnez %v15010_v36  ;;  %vm15017_vm0 = vnez %v15016_v20 }
 0x1d7   :  { %v2127_v13 = vadd.f32 %v2097_v18, %v1957_v57  ;;  %v9213_v57 = vld [vmem:[#allocation12 + $0x40] sm:$0xff] }
 0x1d8   :  { %v12070_v59 = vld [vmem:[#allocation2 + $0x2f] sm:$0xff]  ;;  %2347 = vst [vmem:[#allocation2 + $0x38] sm:$0xff] %v12067_v8  ;;  %2966 = vmatpush.bf16.msra.mxu1 %v9213_v57  ;;  %v3336_v55 = vsel %vm14893_vm9, %v12067_v8, 0.0 }
 0x1d9   :  { %v2379_v35 = vsel %vm15003_vm6, %v12070_v59, 0.0  ;;  %v2265_v52 = vpop.f32.mrf.mxu0  ;;  %v12085_v17 = vld [vmem:[#allocation2 + $0x29] sm:$0xff]  ;;  %vm15007_vm6 = vnez %v15006_v21 }
 0x1da   :  { %v2392_v34 = vpack.c.bf16 %v2379_v35, %v2378_v10  ;;  %v2296_v19 = vadd.f32 %v2265_v52, %v2126_v6  ;;  %v2638_v43 = vsel %vm15007_vm6, %v12085_v17, 0.0  ;;  %v2102_v35 = vpop.f32.mrf.mxu3  ;;  %v15014_v52 = vld [vmem:[#allocation80_spill] sm:$0xff]  ;;  %v1765_v2 = vpop.f32.mrf.mxu1 }
 0x1db   :  { %vm15015_vm6 = vnez %v15014_v52 }
 0x1dc   :  { %7743 = vmatmul.msk.bf16.gmra.mxu2 %vm14999_vm11, %v2392_v34  ;;  %v2316_v5 = vadd.f32 %v11948_v7, %v2296_v19  ;;  %vm15009_vm11 = vnez %v15008_v32  ;;  %v2424_v34 = vsel %vm15015_vm6, %v12067_v8, 0.0  ;;  %vm15019_vm6 = vcmask 261120  }
 0x1dd   :  { %v2784_v6 = vsel %vm15009_vm11, %v12070_v59, 0.0 }
 0x1de   :  { %v12088_v9 = vmax.f32 %v2316_v5, 0.0 }
 0x1df   :  { %v12091_v10 = vld [vmem:[#allocation2 + $0x31] sm:$0xff] }
 0x1e0   :  { %15005 = vst [vmem:[#allocation79_spill] sm:$0xff] %v12091_v10  ;;  %v12096_v50 = vld [vmem:[#allocation2 + $0x37] sm:$0xff]  ;;  %v2639_v18 = vsel %vm15011_vm12, %v12091_v10, 0.0  ;;  %v2425_v19 = vsel %vm15017_vm0, %v12088_v9, 0.0  ;;  %v3337_v52 = vsel %vm14900_vm5, %v12088_v9, 0.0  ;;  %vm15020_vm0 = vmmov %vm15019_vm6 }
 0x1e1   :  { %2348 = vst [vmem:[#allocation2 + $0x40] sm:$0xff] %v12088_v9  ;;  %v2785_v37 = vsel %vm15013_vm4, %v12096_v50, 0.0  ;;  %v2267_v5 = vpop.f32.mrf.mxu0  ;;  %v2652_v32 = vpack.c.bf16 %v2639_v18, %v2638_v43  ;;  %v2437_v33 = vpack.c.bf16 %v2425_v19, %v2424_v34  ;;  %v15018_v10 = vld [vmem:[#allocation94_spill] sm:$0xff]  ;;  %v12123_v43 = vpack.c.bf16 %v3337_v52, %v3336_v55  ;;  %vm15021_vm4 = vmmov %vm15020_vm0 }
 0x1e2   :  { %v2798_v21 = vpack.c.bf16 %v2785_v37, %v2784_v6  ;;  %v2297_v36 = vadd.f32 %v2267_v5, %v2127_v13  ;;  %v1513_v11 = vadd.f32 %v15018_v10, %v1343_v1  ;;  %v1958_v6 = vadd.f32 %v1930_v28, %v1788_v14  ;;  %v1935_v37 = vpop.f32.mrf.mxu2  ;;  %v15022_v14 = vld [vmem:[#allocation102_spill] sm:$0xff]  ;;  %v1767_v52 = vpop.f32.mrf.mxu1 }
 0x1e3   :  { %7759 = vmatmul.msk.bf16.gmra.mxu3 %vm15019_vm6, %v2652_v32  ;;  %v15026_v32 = vld [vmem:[#allocation93_spill] sm:$0xff] }
 0x1e4   :  { %7775 = vmatmul.msk.bf16.gmra.mxu0 %vm15020_vm0, %v2798_v21  ;;  %v2317_v13 = vadd.f32 %v11948_v7, %v2297_v36  ;;  %7728 = vmatmul.msk.bf16.gmra.mxu1 %vm15021_vm4, %v2437_v33  ;;  %v1619_v18 = vadd.f32 %v11857_v16, %v1513_v11  ;;  %v2128_v1 = vadd.f32 %v2100_v26, %v1958_v6  ;;  %v15024_v33 = vld [vmem:[#allocation103_spill] sm:$0xff]  ;;  %v2105_v36 = vpop.f32.mrf.mxu3 }
 0x1e5   :  { %vm15023_vm0 = vnez %v15022_v14  ;;  %vm15025_vm4 = vnez %v15024_v33 }
 0x1e6   :  { %v12128_v34 = vmax.f32 %v2317_v13, 0.0  ;;  %v1789_v19 = vadd.f32 %v1762_v47, %v1619_v18  ;;  %v2380_v28 = vsel %vm15023_vm0, %v12096_v50, 0.0  ;;  %v1168_v47 = vadd.f32 %v11659_v60, %v15026_v32  ;;  %v15027_v13 = vld [vmem:[#allocation98_spill] sm:$0xff]  ;;  %v15028_v60 = vld [vmem:[#allocation88_spill] sm:$0xff] }
 0x1e7   :  { %v15032_v32 = vld [vmem:[#allocation90_spill] sm:$0xff] }
 0x1e8   :  { %v12130_v57 = vld [vmem:[#allocation2 + $0x3f] sm:$0xff]  ;;  %2349 = vst [vmem:[#allocation2 + $0x48] sm:$0xff] %v12128_v34  ;;  %v1959_v55 = vadd.f32 %v1932_v25, %v1789_v19  ;;  %v1345_v18 = vadd.f32 %v15027_v13, %v1168_v47  ;;  %vm15033_vm0 = vnez %v15032_v32  ;;  %v3338_v32 = vsel %vm14905_vm2, %v12128_v34, 0.0 }
 0x1e9   :  { %v2381_v16 = vsel %vm15025_vm4, %v12130_v57, 0.0  ;;  %v2270_v11 = vpop.f32.mrf.mxu0  ;;  %v12145_v6 = vld [vmem:[#allocation2 + $0x39] sm:$0xff]  ;;  %vm15029_vm4 = vnez %v15028_v60  ;;  %v15036_v47 = vld [vmem:[#allocation99_spill] sm:$0xff] }
 0x1ea   :  { %v2393_v21 = vpack.c.bf16 %v2381_v16, %v2380_v28  ;;  %v2298_v26 = vadd.f32 %v2270_v11, %v2128_v1  ;;  %v2129_v33 = vadd.f32 %v2102_v35, %v1959_v55  ;;  %v1790_v28 = vadd.f32 %v1765_v2, %v11884_v45  ;;  %v15030_v1 = vld [vmem:[#allocation95_spill] sm:$0xff]  ;;  %v15034_v45 = vld [vmem:[#allocation96_spill] sm:$0xff]  ;;  %v15038_v55 = vld [vmem:[#allocation101_spill] sm:$0xff] }
 0x1eb   :  { %v2640_v25 = vsel %vm15029_vm4, %v12145_v6, 0.0  ;;  %vm15035_vm5 = vnez %v15034_v45  ;;  %vm15037_vm4 = vnez %v15036_v47  ;;  %vm15039_vm9 = vnez %v15038_v55 }
 0x1ec   :  { %7744 = vmatmul.msk.bf16.gmra.mxu2 %vm15019_vm6, %v2393_v21  ;;  %v2318_v5 = vadd.f32 %v11948_v7, %v2298_v26  ;;  %vm15031_vm6 = vnez %v15030_v1  ;;  %v1937_v21 = vpop.f32.mrf.mxu2  ;;  %v2426_v26 = vsel %vm15037_vm4, %v12128_v34, 0.0  ;;  %v1515_v47 = vadd.f32 %v15041_v3, %v1345_v18 }
 0x1ed   :  { %v2786_v11 = vsel %vm15031_vm6, %v12130_v57, 0.0  ;;  %vm15042_vm4 = vcmask 261120  }
 0x1ee   :  { %v12148_v10 = vmax.f32 %v2318_v5, 0.0 }
 0x1ef   :  { %v12151_v16 = vld [vmem:[#allocation2 + $0x41] sm:$0xff] }
 0x1f0   :  { %v12156_v19 = vld [vmem:[#allocation2 + $0x47] sm:$0xff]  ;;  %2350 = vst [vmem:[#allocation2 + $0x50] sm:$0xff] %v12148_v10  ;;  %v2641_v35 = vsel %vm15033_vm0, %v12151_v16, 0.0  ;;  %v2427_v5 = vsel %vm15039_vm9, %v12148_v10, 0.0  ;;  %vm15043_vm0 = vmmov %vm15042_vm4 }
 0x1f1   :  { %v2787_v2 = vsel %vm15035_vm5, %v12156_v19, 0.0  ;;  %v2272_v13 = vpop.f32.mrf.mxu0  ;;  %v2653_v1 = vpack.c.bf16 %v2641_v35, %v2640_v25  ;;  %v2438_v14 = vpack.c.bf16 %v2427_v5, %v2426_v26  ;;  %vm15040_vm5 = vnez %v14910_v30  ;;  %vm15044_vm9 = vmmov %vm15043_vm0 }
 0x1f2   :  { %v2799_v60 = vpack.c.bf16 %v2787_v2, %v2786_v11  ;;  %v2299_v0 = vadd.f32 %v2272_v13, %v2129_v33  ;;  %v3339_v45 = vsel %vm15040_vm5, %v12148_v10, 0.0  ;;  %v1960_v25 = vadd.f32 %v1935_v37, %v1790_v28  ;;  %v2107_v11 = vpop.f32.mrf.mxu3  ;;  %v1770_v2 = vpop.f32.mrf.mxu1  ;;  %v15045_v37 = vld [vmem:[#allocation119_spill] sm:$0xff] }
 0x1f3   :  { %7760 = vmatmul.msk.bf16.gmra.mxu3 %vm15042_vm4, %v2653_v1  ;;  %v12183_v55 = vpack.c.bf16 %v3339_v45, %v3338_v32  ;;  %v1621_v35 = vadd.f32 %v11889_v61, %v1515_v47  ;;  %v15049_v1 = vld [vmem:[#allocation112_spill] sm:$0xff] }
 0x1f4   :  { %7776 = vmatmul.msk.bf16.gmra.mxu0 %vm15043_vm0, %v2799_v60  ;;  %v2319_v33 = vadd.f32 %v11948_v7, %v2299_v0  ;;  %7729 = vmatmul.msk.bf16.gmra.mxu1 %vm15044_vm9, %v2438_v14  ;;  %v2130_v3 = vadd.f32 %v2105_v36, %v1960_v25  ;;  %vm15046_vm0 = vnez %v15045_v37  ;;  %v15047_v14 = vld [vmem:[#allocation120_spill] sm:$0xff]  ;;  %v1940_v32 = vpop.f32.mrf.mxu2 }
 0x1f5   :  { %v1791_v5 = vadd.f32 %v1767_v52, %v1621_v35  ;;  %v2382_v0 = vsel %vm15046_vm0, %v12156_v19, 0.0  ;;  %vm15048_vm9 = vnez %v15047_v14  ;;  %v1173_v52 = vadd.f32 %v11743_v56, %v15049_v1  ;;  %v15050_v56 = vld [vmem:[#allocation106_spill] sm:$0xff]  ;;  %v15058_v1 = vld [vmem:[#allocation117_spill] sm:$0xff] }
 0x1f6   :  { %v12188_v26 = vmax.f32 %v2319_v33, 0.0 }
 0x1f7   :  { %v12190_v13 = vld [vmem:[#allocation2 + $0x4f] sm:$0xff]  ;;  %v1961_v45 = vadd.f32 %v1937_v21, %v1791_v5  ;;  %v1347_v33 = vadd.f32 %v11713_v29, %v1173_v52 }
 0x1f8   :  { %2351 = vst [vmem:[#allocation2 + $0x58] sm:$0xff] %v12188_v26  ;;  %v2383_v61 = vsel %vm15048_vm9, %v12190_v13, 0.0  ;;  %v12205_v25 = vld [vmem:[#allocation2 + $0x49] sm:$0xff]  ;;  %vm15051_vm9 = vnez %v15050_v56 }
 0x1f9   :  { %v2275_v28 = vpop.f32.mrf.mxu0  ;;  %v2394_v60 = vpack.c.bf16 %v2383_v61, %v2382_v0  ;;  %v2131_v14 = vadd.f32 %v2107_v11, %v1961_v45  ;;  %v1792_v0 = vadd.f32 %v1770_v2, %v11914_v51  ;;  %v2642_v21 = vsel %vm15051_vm9, %v12205_v25, 0.0  ;;  %v15054_v29 = vld [vmem:[#allocation108_spill] sm:$0xff]  ;;  %v15056_v51 = vld [vmem:[#allocation114_spill] sm:$0xff] }
 0x1fa   :  { %v2300_v36 = vadd.f32 %v2275_v28, %v2130_v3  ;;  %v2110_v35 = vpop.f32.mrf.mxu3  ;;  %v15052_v3 = vld [vmem:[#allocation113_spill] sm:$0xff]  ;;  %vm15055_vm0 = vnez %v15054_v29  ;;  %vm15057_vm5 = vnez %v15056_v51  ;;  %vm15059_vm9 = vnez %v15058_v1 }
 0x1fb   :  { %v2428_v52 = vsel %vm15059_vm9, %v12188_v26, 0.0  ;;  %v1517_v1 = vadd.f32 %v11745_v48, %v1347_v33  ;;  %vm15064_vm9 = vcmask 261120  }
 0x1fc   :  { %7745 = vmatmul.msk.bf16.gmra.mxu2 %vm15042_vm4, %v2394_v60  ;;  %v2320_v47 = vadd.f32 %v11948_v7, %v2300_v36  ;;  %vm15053_vm4 = vnez %v15052_v3  ;;  %v1772_v60 = vpop.f32.mrf.mxu1  ;;  %v15060_v36 = vld [vmem:[#allocation118_spill] sm:$0xff] }
 0x1fd   :  { %v2788_v28 = vsel %vm15053_vm4, %v12190_v13, 0.0  ;;  %vm15061_vm2 = vnez %v15060_v36  ;;  %vm15065_vm4 = vmmov %vm15064_vm9 }
 0x1fe   :  { %v12208_v18 = vmax.f32 %v2320_v47, 0.0 }
 0x1ff   :  { %v12211_v61 = vld [vmem:[#allocation2 + $0x51] sm:$0xff] }
 0x200   :  { %v12216_v5 = vld [vmem:[#allocation2 + $0x57] sm:$0xff]  ;;  %2352 = vst [vmem:[#allocation2 + $0x60] sm:$0xff] %v12208_v18  ;;  %v2643_v11 = vsel %vm15055_vm0, %v12211_v61, 0.0  ;;  %v2429_v45 = vsel %vm15061_vm2, %v12208_v18, 0.0  ;;  %vm15062_vm0 = vnez %v14731_v41  ;;  %vm15066_vm2 = vmmov %vm15065_vm4 }
 0x201   :  { %v2789_v2 = vsel %vm15057_vm5, %v12216_v5, 0.0  ;;  %v2277_v47 = vpop.f32.mrf.mxu0  ;;  %v2654_v3 = vpack.c.bf16 %v2643_v11, %v2642_v21  ;;  %v2439_v37 = vpack.c.bf16 %v2429_v45, %v2428_v52  ;;  %v3340_v29 = vsel %vm15062_vm0, %v12188_v26, 0.0 }
 0x202   :  { %v2800_v56 = vpack.c.bf16 %v2789_v2, %v2788_v28  ;;  %v2301_v30 = vadd.f32 %v2277_v47, %v2131_v14  ;;  %vm15063_vm5 = vnez %v14734_v42  ;;  %v1962_v21 = vadd.f32 %v1940_v32, %v1792_v0  ;;  %v1942_v28 = vpop.f32.mrf.mxu2  ;;  %v2112_v33 = vpop.f32.mrf.mxu3  ;;  %v15067_v32 = vld [vmem:[#allocation136_spill] sm:$0xff]  ;;  %v9216_v47 = vld [vmem:[#allocation12 + $0x58] sm:$0xff] }
 0x203   :  { %v3341_v51 = vsel %vm15063_vm5, %v12208_v18, 0.0  ;;  %7761 = vmatmul.msk.bf16.gmra.mxu3 %vm15064_vm9, %v2654_v3  ;;  %v1623_v11 = vadd.f32 %v11917_v58, %v1517_v1  ;;  %vm15068_vm9 = vnez %v15067_v32  ;;  %3111 = vmatpush.bf16.msrb.mxu2 %v9216_v47 }
 0x204   :  { %7777 = vmatmul.msk.bf16.gmra.mxu0 %vm15065_vm4, %v2800_v56  ;;  %v12243_v36 = vpack.c.bf16 %v3341_v51, %v3340_v29  ;;  %v2321_v14 = vadd.f32 %v11948_v7, %v2301_v30  ;;  %7730 = vmatmul.msk.bf16.gmra.mxu1 %vm15066_vm2, %v2439_v37  ;;  %v2132_v48 = vadd.f32 %v2110_v35, %v1962_v21  ;;  %v2384_v30 = vsel %vm15068_vm9, %v12216_v5, 0.0  ;;  %v15069_v37 = vld [vmem:[#allocation137_spill] sm:$0xff]  ;;  %v1775_v35 = vpop.f32.mrf.mxu1 }
 0x205   :  { %v1793_v52 = vadd.f32 %v1772_v60, %v1623_v11  ;;  %vm15070_vm2 = vnez %v15069_v37  ;;  %v15071_v60 = vld [vmem:[#allocation160_spill] sm:$0xff] }
 0x206   :  { %v12248_v2 = vmax.f32 %v2321_v14, 0.0  ;;  %v1178_v29 = vadd.f32 %v11875_v22, %v15071_v60  ;;  %v9218_v21 = vld [vmem:[#allocation12 + $0x68] sm:$0xff]  ;;  %v1794_v22 = vadd.f32 %v1775_v35, %v11941_v49  ;;  %v15078_v49 = vld [vmem:[#allocation130_spill] sm:$0xff] }
 0x207   :  { %v12250_v45 = vld [vmem:[#allocation2 + $0x5f] sm:$0xff]  ;;  %v1963_v1 = vadd.f32 %v1942_v28, %v1793_v52  ;;  %3257 = vmatpush.bf16.msrb.mxu3 %v9218_v21  ;;  %vm15079_vm5 = vnez %v15078_v49  ;;  %v15080_v35 = vld [vmem:[#allocation133_spill] sm:$0xff] }
 0x208   :  { %2353 = vst [vmem:[#allocation2 + $0x68] sm:$0xff] %v12248_v2  ;;  %v2385_v58 = vsel %vm15070_vm2, %v12250_v45, 0.0  ;;  %v12265_v11 = vld [vmem:[#allocation2 + $0x59] sm:$0xff]  ;;  %v1349_v56 = vadd.f32 %v11881_v15, %v1178_v29  ;;  %v15076_v15 = vld [vmem:[#allocation124_spill] sm:$0xff]  ;;  %vm15081_vm0 = vnez %v15080_v35 }
 0x209   :  { %v2280_v0 = vpop.f32.mrf.mxu0  ;;  %v2395_v3 = vpack.c.bf16 %v2385_v58, %v2384_v30  ;;  %v2133_v58 = vadd.f32 %v2112_v33, %v1963_v1  ;;  %v15072_v28 = vld [vmem:[#allocation122_spill] sm:$0xff]  ;;  %vm15077_vm9 = vnez %v15076_v15  ;;  %v15082_v1 = vld [vmem:[#allocation135_spill] sm:$0xff]  ;;  %v3342_v15 = vsel %vm14926_vm7, %v12248_v2, 0.0 }
 0x20a   :  { %v2302_v51 = vadd.f32 %v2280_v0, %v2132_v48  ;;  %v1945_v37 = vpop.f32.mrf.mxu2  ;;  %v2115_v32 = vpop.f32.mrf.mxu3  ;;  %v1519_v35 = vadd.f32 %v11886_v46, %v1349_v56 }
 0x20c   :  { %7746 = vmatmul.msk.bf16.gmra.mxu2 %vm15065_vm4, %v2395_v3  ;;  %v2322_v14 = vadd.f32 %v11948_v7, %v2302_v51  ;;  %vm15073_vm4 = vnez %v15072_v28  ;;  %v15074_v3 = vld [vmem:[#allocation129_spill] sm:$0xff]  ;;  %v2430_v51 = vsel %vm15081_vm0, %v12248_v2, 0.0  ;;  %vm15084_vm0 = vcmask 261120  }
 0x20d   :  { %v2644_v52 = vsel %vm15073_vm4, %v12265_v11, 0.0  ;;  %vm15075_vm2 = vnez %v15074_v3  ;;  %vm15083_vm4 = vnez %v15082_v1  ;;  %v9215_v1 = vld [vmem:[#allocation12 + $0x50] sm:$0xff] }
 0x20e   :  { %v12268_v30 = vmax.f32 %v2322_v14, 0.0  ;;  %v2790_v60 = vsel %vm15075_vm2, %v12250_v45, 0.0  ;;  %3112 = vmatpush.bf16.msrb.mxu2 %v9215_v1 }
 0x20f   :  { %v12271_v48 = vld [vmem:[#allocation2 + $0x61] sm:$0xff] }
 0x210   :  { %v12276_v0 = vld [vmem:[#allocation2 + $0x67] sm:$0xff]  ;;  %2354 = vst [vmem:[#allocation2 + $0x70] sm:$0xff] %v12268_v30  ;;  %v2645_v33 = vsel %vm15077_vm9, %v12271_v48, 0.0  ;;  %v2431_v47 = vsel %vm15083_vm4, %v12268_v30, 0.0  ;;  %v3343_v49 = vsel %vm14931_vm1, %v12268_v30, 0.0  ;;  %vm15086_vm4 = vmmov %vm15084_vm0 }
 0x211   :  { %v2791_v29 = vsel %vm15079_vm5, %v12276_v0, 0.0  ;;  %v2282_v21 = vpop.f32.mrf.mxu0  ;;  %v2655_v14 = vpack.c.bf16 %v2645_v33, %v2644_v52  ;;  %v2440_v28 = vpack.c.bf16 %v2431_v47, %v2430_v51  ;;  %vm15085_vm5 = vmmov %vm15084_vm0  ;;  %v9220_v52 = vld [vmem:[#allocation12 + $0x78] sm:$0xff]  ;;  %v1964_v33 = vadd.f32 %v1945_v37, %v1794_v22 }
 0x212   :  { %v2801_v3 = vpack.c.bf16 %v2791_v29, %v2790_v60  ;;  %v2303_v42 = vadd.f32 %v2282_v21, %v2133_v58  ;;  %v12303_v60 = vpack.c.bf16 %v3343_v49, %v3342_v15  ;;  %v1777_v58 = vpop.f32.mrf.mxu1  ;;  %v1625_v51 = vadd.f32 %v11945_v38, %v1519_v35  ;;  %3403 = vmatpush.bf16.msra.mxu0 %v9220_v52  ;;  %v1947_v21 = vpop.f32.mrf.mxu2  ;;  %v15089_v38 = vld [vmem:[#allocation147_spill] sm:$0xff]  ;;  %v15091_v15 = vld [vmem:[#allocation138_spill] sm:$0xff] }
 0x213   :  { %7762 = vmatmul.msk.bf16.gmra.mxu3 %vm15084_vm0, %v2655_v14  ;;  %vm15090_vm0 = vnez %v15089_v38  ;;  %v2117_v14 = vpop.f32.mrf.mxu3 }
 0x214   :  { %7778 = vmatmul.msk.bf16.gmra.mxu0 %vm15085_vm5, %v2801_v3  ;;  %v2323_v29 = vadd.f32 %v11948_v7, %v2303_v42  ;;  %7731 = vmatmul.msk.bf16.gmra.mxu1 %vm15086_vm4, %v2440_v28  ;;  %v1795_v46 = vadd.f32 %v1777_v58, %v1625_v51  ;;  %v2134_v3 = vadd.f32 %v2115_v32, %v1964_v33  ;;  %v15087_v42 = vld [vmem:[#allocation146_spill] sm:$0xff]  ;;  %v9222_v32 = vld [vmem:[#allocation12 + $0x88] sm:$0xff] }
 0x215   :  { %vm15088_vm5 = vnez %v15087_v42  ;;  %3549 = vmatpush.bf16.msrb.mxu1 %v9222_v32 }
 0x216   :  { %v12308_v47 = vmax.f32 %v2323_v29, 0.0  ;;  %v2386_v37 = vsel %vm15088_vm5, %v12276_v0, 0.0  ;;  %v1965_v1 = vadd.f32 %v1947_v21, %v1795_v46  ;;  %v15093_v46 = vld [vmem:[#allocation144_spill] sm:$0xff]  ;;  %3404 = vmatpush.bf16.msra.mxu0 %v9219_v23 }
 0x217   :  { %v12310_v56 = vld [vmem:[#allocation2 + $0x6f] sm:$0xff] }
 0x218   :  { %2355 = vst [vmem:[#allocation2 + $0x78] sm:$0xff] %v12308_v47  ;;  %v2387_v22 = vsel %vm15090_vm0, %v12310_v56, 0.0  ;;  %v12323_v33 = vld [vmem:[#allocation2 + $0x69] sm:$0xff]  ;;  %v2135_v29 = vadd.f32 %v2117_v14, %v1965_v1  ;;  %vm15092_vm0 = vnez %v15091_v15  ;;  %v15099_v1 = vld [vmem:[#allocation42_spill] sm:$0xff] }
 0x219   :  { %v2285_v28 = vpop.f32.mrf.mxu0  ;;  %v2396_v49 = vpack.c.bf16 %v2387_v22, %v2386_v37  ;;  %v2646_v37 = vsel %vm15092_vm0, %v12323_v33, 0.0  ;;  %v15095_v22 = vld [vmem:[#allocation139_spill] sm:$0xff]  ;;  %vm15100_vm7 = vnez %v15099_v1 }
 0x21a   :  { %v2304_v35 = vadd.f32 %v2285_v28, %v2134_v3  ;;  %vm15096_vm5 = vnez %v15095_v22  ;;  %v2432_v32 = vsel %vm15100_vm7, %v12308_v47, 0.0  ;;  %v15101_v14 = vld [vmem:[#allocation43_spill] sm:$0xff]  ;;  %vm15104_vm7 = vcmask 261120  }
 0x21b   :  { %vm15102_vm0 = vnez %v15101_v14 }
 0x21c   :  { %7747 = vmatmul.msk.bf16.gmra.mxu2 %vm15086_vm4, %v2396_v49  ;;  %v2324_v52 = vadd.f32 %v11948_v7, %v2304_v35  ;;  %vm15094_vm4 = vnez %v15093_v46  ;;  %v15097_v49 = vld [vmem:[#allocation145_spill] sm:$0xff]  ;;  %v9217_v46 = vld [vmem:[#allocation12 + $0x60] sm:$0xff] }
 0x21d   :  { %v2792_v21 = vsel %vm15094_vm4, %v12310_v56, 0.0  ;;  %vm15098_vm1 = vnez %v15097_v49  ;;  %3258 = vmatpush.bf16.msrb.mxu3 %v9217_v46  ;;  %v3344_v49 = vsel %vm11572_vm13, %v12308_v47, 0.0  ;;  %vm15119_vm13 = vcmask 261120  }
 0x21e   :  { %v12325_v58 = vmax.f32 %v2324_v52, 0.0 }
 0x21f   :  { %v12327_v51 = vld [vmem:[#allocation2 + $0x71] sm:$0xff] }
 0x220   :  { %v12332_v3 = vld [vmem:[#allocation2 + $0x77] sm:$0xff]  ;;  %2356 = vst [vmem:[#allocation2 + $0x80] sm:$0xff] %v12325_v58  ;;  %v2647_v28 = vsel %vm15096_vm5, %v12327_v51, 0.0  ;;  %v2433_v52 = vsel %vm15102_vm0, %v12325_v58, 0.0  ;;  %v3345_v1 = vsel %vm11576_vm3, %v12325_v58, 0.0  ;;  %vm15120_vm5 = vmmov %vm15119_vm13 }
 0x221   :  { %v2793_v35 = vsel %vm15098_vm1, %v12332_v3, 0.0  ;;  %v2287_v15 = vpop.f32.mrf.mxu0  ;;  %v2656_v38 = vpack.c.bf16 %v2647_v28, %v2646_v37  ;;  %v2441_v27 = vpack.c.bf16 %v2433_v52, %v2432_v32  ;;  %vm15105_vm1 = vmmov %vm15104_vm7  ;;  %v12358_v14 = vpack.c.bf16 %v3345_v1, %v3344_v49  ;;  %v15111_v49 = vld [vmem:[#allocation148_spill] sm:$0xff]  ;;  %v15113_v1 = vld [vmem:[#allocation149_spill] sm:$0xff] }
 0x222   :  { %v2802_v42 = vpack.c.bf16 %v2793_v35, %v2792_v21  ;;  %v2305_v22 = vadd.f32 %v2287_v15, %v2135_v29  ;;  %vm15106_vm0 = vmmov %vm15105_vm1  ;;  %v15109_v21 = vld [vmem:[#allocation156_spill] sm:$0xff]  ;;  %vm15112_vm3 = vnez %v15111_v49  ;;  %v15121_v49 = vpack.c.bf16 %v11961_v54, %v11951_v53 }
 0x223   :  { %7763 = vmatmul.msk.bf16.gmra.mxu3 %vm15104_vm7, %v2656_v38  ;;  %v15107_v38 = vld [vmem:[#allocation155_spill] sm:$0xff]  ;;  %v15115_v52 = vld [vmem:[#allocation152_spill] sm:$0xff] }
 0x224   :  { %7779 = vmatmul.msk.bf16.gmra.mxu0 %vm15105_vm1, %v2802_v42  ;;  %v2325_v37 = vadd.f32 %v11948_v7, %v2305_v22  ;;  %7732 = vmatmul.msk.bf16.gmra.mxu1 %vm15106_vm0, %v2441_v27  ;;  %vm15108_vm7 = vnez %v15107_v38  ;;  %vm15110_vm1 = vnez %v15109_v21  ;;  %v15125_v38 = vld [vmem:[#allocation47_spill] sm:$0xff] }
 0x225   :  { %v2388_v42 = vsel %vm15108_vm7, %v12332_v3, 0.0  ;;  %vm15114_vm7 = vnez %v15113_v1  ;;  %v15123_v1 = vld [vmem:[#allocation48_spill] sm:$0xff] }
 0x226   :  { %v12362_v15 = vmax.f32 %v2325_v37, 0.0 }
 0x227   :  { %v12364_v29 = vld [vmem:[#allocation2 + $0x7f] sm:$0xff] }
 0x228   :  { %2357 = vst [vmem:[#allocation2 + $0x88] sm:$0xff] %v12362_v15  ;;  %v2389_v7 = vsel %vm15110_vm1, %v12364_v29, 0.0  ;;  %v12376_v23 = vld [vmem:[#allocation2 + $0x79] sm:$0xff]  ;;  %vm15116_vm1 = vnez %v15115_v52 }
 0x229   :  { %v2397_v22 = vpack.c.bf16 %v2389_v7, %v2388_v42  ;;  %v2648_v35 = vsel %vm15112_vm3, %v12376_v23, 0.0  ;;  %v2794_v37 = vsel %vm15116_vm1, %v12364_v29, 0.0  ;;  %v15117_v42 = vld [vmem:[#allocation153_spill] sm:$0xff]  ;;  %vm15122_vm3 = vmmov %vm15120_vm5  ;;  %vm15126_vm1 = vnez %v15125_v38 }
 0x22c   :  { %7748 = vmatmul.msk.bf16.gmra.mxu2 %vm15106_vm0, %v2397_v22  ;;  %vm15118_vm0 = vnez %v15117_v42  ;;  %v3040_v42 = vsel %vm15126_vm1, %v11977_v44, 0.0  ;;  %v15133_v44 = vld [vmem:[#allocation172_spill] sm:$0xff] }
 0x22f   :  { %v12378_v27 = vld [vmem:[#allocation2 + $0x81] sm:$0xff] }
 0x230   :  { %v12380_v28 = vld [vmem:[#allocation2 + $0x87] sm:$0xff]  ;;  %v2649_v32 = vsel %vm15114_vm7, %v12378_v27, 0.0  ;;  %v2493_v22 = vpop.f32.mrf.mxu1  ;;  %vm15124_vm7 = vnez %v15123_v1 }
 0x231   :  { %v2795_v7 = vsel %vm15118_vm0, %v12380_v28, 0.0  ;;  %v2657_v46 = vpack.c.bf16 %v2649_v32, %v2648_v35  ;;  %v3041_v52 = vsel %vm15124_vm7, %v12026_v63, 0.0  ;;  %vm15127_vm0 = vmmov %vm15122_vm3 }
 0x232   :  { %v2803_v21 = vpack.c.bf16 %v2795_v7, %v2794_v37  ;;  %v3056_v35 = vpack.c.bf16 %v3041_v52, %v3040_v42  ;;  %vm15134_vm1 = vmmov %vm15127_vm0  ;;  %v15135_v52 = vld [vmem:[#allocation171_spill] sm:$0xff] }
 0x233   :  { %7764 = vmatmul.msk.bf16.gmra.mxu3 %vm15119_vm13, %v2657_v46  ;;  %v15136_v42 = vpack.c.bf16 %v12010_v62, %v15135_v52 }
 0x234   :  { %7780 = vmatmul.msk.bf16.gmra.mxu0 %vm15120_vm5, %v2803_v21  ;;  %7789 = vmatmul.msk.bf16.vlgmr.msra.gmra.mxu1 %vm15122_vm3, %v15121_v49  ;;  %v15128_v21 = vld [vmem:[#allocation159_spill] sm:$0xff]  ;;  %v15130_v49 = vld [vmem:[#allocation158_spill] sm:$0xff]  ;;  %vm15132_vm5 = vmmov %vm15127_vm0 }
 0x235   :  { %vm15129_vm13 = vnez %v15128_v21  ;;  %vm15131_vm3 = vnez %v15130_v49 }
 0x236   :  { %v3187_v32 = vsel %vm15129_vm13, %v12013_v4, 0.0  ;;  %v3186_v37 = vsel %vm15131_vm3, %v11981_v39, 0.0 }
 0x237   :  { %v3202_v7 = vpack.c.bf16 %v3187_v32, %v3186_v37  ;;  %v15139_v37 = vld [vmem:[#allocation165_spill] sm:$0xff] }
 0x238   :  { %v2495_v41 = vpop.f32.mrf.mxu1 }
 0x23c   :  { %7805 = vmatmul.msk.bf16.vlgmr.msrb.gmra.mxu2 %vm15127_vm0, %v3056_v35 }
 0x23e   :  { %v2578_v46 = vpop.f32.mrf.mxu2 }
 0x23f   :  { %v2579_v53 = vadd.f32 %v2578_v46, %v2493_v22  ;;  %v15137_v22 = vld [vmem:[#allocation166_spill] sm:$0xff] }
 0x240   :  { %v2498_v1 = vpop.f32.mrf.mxu1  ;;  %vm15138_vm13 = vnez %v15137_v22 }
 0x241   :  { %v2854_v54 = vpop.f32.mrf.mxu0  ;;  %v3043_v46 = vsel %vm15138_vm13, %v12085_v17, 0.0 }
 0x243   :  { %7821 = vmatmul.msk.bf16.vlgmr.msrb.gmra.mxu3 %vm15132_vm5, %v3202_v7  ;;  %vm15140_vm5 = vnez %v15139_v37 }
 0x244   :  { %7837 = vmatmul.msk.bf16.vlgmr.msra.gmra.mxu0 %vm15134_vm1, %v15133_v44  ;;  %7790 = vmatmul.msk.bf16.gmra.mxu1 %vm15127_vm0, %v15136_v42  ;;  %v3042_v7 = vsel %vm15140_vm5, %v12031_v12, 0.0  ;;  %vm15141_vm1 = vmmov %vm15127_vm0  ;;  %v15142_v42 = vld [vmem:[#allocation164_spill] sm:$0xff] }
 0x245   :  { %v3057_v21 = vpack.c.bf16 %v3043_v46, %v3042_v7  ;;  %vm15143_vm0 = vnez %v15142_v42  ;;  %vm15146_vm5 = vmmov %vm15141_vm1 }
 0x246   :  { %v2580_v35 = vpop.f32.mrf.mxu2  ;;  %v2708_v4 = vpop.f32.mrf.mxu3  ;;  %v3189_v22 = vsel %vm15143_vm0, %v12070_v59, 0.0  ;;  %vm15150_vm0 = vmmov %vm15141_vm1 }
 0x247   :  { %v2581_v49 = vadd.f32 %v2580_v35, %v2495_v41  ;;  %v2748_v39 = vadd.f32 %v2708_v4, %v2579_v53  ;;  %v15144_v35 = vld [vmem:[#allocation163_spill] sm:$0xff] }
 0x248   :  { %v2500_v44 = vpop.f32.mrf.mxu1  ;;  %vm15145_vm13 = vnez %v15144_v35 }
 0x249   :  { %v2856_v32 = vpop.f32.mrf.mxu0  ;;  %v12426_v38 = vadd.f32 %v2854_v54, %v2748_v39  ;;  %v3188_v4 = vsel %vm15145_vm13, %v12036_v24, 0.0  ;;  %v15148_v54 = vld [vmem:[#allocation173_spill] sm:$0xff] }
 0x24a   :  { %v3203_v37 = vpack.c.bf16 %v3189_v22, %v3188_v4  ;;  %v15149_v39 = vpack.c.bf16 %v12067_v8, %v15148_v54  ;;  %v9221_v8 = vld [vmem:[#allocation12 + $0x80] sm:$0xff] }
 0x24b   :  { %3550 = vmatpush.bf16.msrb.mxu1 %v9221_v8 }
 0x24c   :  { %7806 = vmatmul.msk.bf16.gmra.mxu2 %vm15141_vm1, %v3057_v21  ;;  %v15147_v21 = vld [vmem:[#allocation174_spill] sm:$0xff] }
 0x24e   :  { %v2710_v52 = vpop.f32.mrf.mxu3 }
 0x24f   :  { %v2583_v62 = vpop.f32.mrf.mxu2  ;;  %v2749_v41 = vadd.f32 %v2710_v52, %v2581_v49  ;;  %v15151_v49 = vld [vmem:[#allocation57_spill] sm:$0xff]  ;;  %v15153_v52 = vld [vmem:[#allocation79_spill] sm:$0xff] }
 0x250   :  { %v2584_v40 = vadd.f32 %v2583_v62, %v2498_v1  ;;  %vm15152_vm3 = vnez %v15151_v49  ;;  %v15157_v49 = vld [vmem:[#allocation65_spill] sm:$0xff] }
 0x251   :  { %v2859_v53 = vpop.f32.mrf.mxu0  ;;  %v2503_v46 = vpop.f32.mrf.mxu1  ;;  %v12435_v7 = vadd.f32 %v2856_v32, %v2749_v41  ;;  %v3045_v24 = vsel %vm15152_vm3, %v12145_v6, 0.0  ;;  %v15154_v41 = vld [vmem:[#allocation51_spill] sm:$0xff] }
 0x253   :  { %7822 = vmatmul.msk.bf16.gmra.mxu3 %vm15146_vm5, %v3203_v37  ;;  %vm15155_vm5 = vnez %v15154_v41  ;;  %v15159_v41 = vld [vmem:[#allocation72_spill] sm:$0xff] }
 0x254   :  { %7838 = vmatmul.msk.bf16.gmra.mxu0 %vm15141_vm1, %v15147_v21  ;;  %7791 = vmatmul.msk.bf16.gmra.mxu1 %vm15150_vm0, %v15149_v39  ;;  %v3044_v37 = vsel %vm15155_vm5, %v15153_v52, 0.0  ;;  %vm15156_vm1 = vmmov %vm15150_vm0  ;;  %vm15158_vm0 = vnez %v15157_v49  ;;  %vm15160_vm5 = vnez %v15159_v41  ;;  %v15283_v41 = vld [vmem:[#allocation157_spill] sm:$0xff] }
 0x255   :  { %v3058_v4 = vpack.c.bf16 %v3045_v24, %v3044_v37  ;;  %v3190_v24 = vsel %vm15160_vm5, %v12096_v50, 0.0  ;;  %vm15161_vm3 = vmmov %vm15156_vm1 }
 0x256   :  { %v2713_v1 = vpop.f32.mrf.mxu3 }
 0x257   :  { %v2585_v59 = vpop.f32.mrf.mxu2  ;;  %v2750_v62 = vadd.f32 %v2713_v1, %v2584_v40 }
 0x258   :  { %v2586_v22 = vadd.f32 %v2585_v59, %v2500_v44  ;;  %v3191_v44 = vsel %vm15158_vm0, %v12130_v57, 0.0  ;;  %vm15163_vm0 = vmmov %vm15156_vm1 }
 0x259   :  { %v2861_v32 = vpop.f32.mrf.mxu0  ;;  %v2505_v21 = vpop.f32.mrf.mxu1  ;;  %v12450_v35 = vadd.f32 %v2859_v53, %v2750_v62  ;;  %v3204_v37 = vpack.c.bf16 %v3191_v44, %v3190_v24 }
 0x25c   :  { %7807 = vmatmul.msk.bf16.gmra.mxu2 %vm15156_vm1, %v3058_v4  ;;  %v15162_v4 = vpack.c.bf16 %v12128_v34, %v12088_v9 }
 0x25e   :  { %v2715_v39 = vpop.f32.mrf.mxu3 }
 0x25f   :  { %v2588_v54 = vpop.f32.mrf.mxu2  ;;  %v2751_v59 = vadd.f32 %v2715_v39, %v2586_v22  ;;  %v15164_v22 = vld [vmem:[#allocation69_spill] sm:$0xff]  ;;  %v15166_v39 = vld [vmem:[#allocation67_spill] sm:$0xff] }
 0x260   :  { %v2589_v40 = vadd.f32 %v2588_v54, %v2503_v46  ;;  %vm15165_vm13 = vnez %v15164_v22 }
 0x261   :  { %v2864_v1 = vpop.f32.mrf.mxu0  ;;  %v2508_v53 = vpop.f32.mrf.mxu1  ;;  %v12459_v62 = vadd.f32 %v2861_v32, %v2751_v59  ;;  %v3047_v50 = vsel %vm15165_vm13, %v12205_v25, 0.0 }
 0x263   :  { %7823 = vmatmul.msk.bf16.gmra.mxu3 %vm15156_vm1, %v3204_v37  ;;  %vm15167_vm1 = vnez %v15166_v39  ;;  %v15169_v37 = vld [vmem:[#allocation97_spill] sm:$0xff] }
 0x264   :  { %7839 = vmatmul.msk.bf16.gmra.mxu0 %vm15161_vm3, %v12123_v43  ;;  %7792 = vmatmul.msk.bf16.gmra.mxu1 %vm15163_vm0, %v15162_v4  ;;  %v3046_v44 = vsel %vm15167_vm1, %v12151_v16, 0.0  ;;  %vm15168_vm3 = vmmov %vm15163_vm0  ;;  %vm15170_vm0 = vnez %v15169_v37 }
 0x265   :  { %v3059_v59 = vpack.c.bf16 %v3047_v50, %v3046_v44  ;;  %v3193_v4 = vsel %vm15170_vm0, %v12190_v13, 0.0  ;;  %vm15173_vm1 = vmmov %vm15168_vm3 }
 0x266   :  { %v2718_v46 = vpop.f32.mrf.mxu3  ;;  %vm15176_vm0 = vmmov %vm15173_vm1 }
 0x267   :  { %v2590_v57 = vpop.f32.mrf.mxu2  ;;  %v2752_v54 = vadd.f32 %v2718_v46, %v2589_v40 }
 0x268   :  { %v2591_v8 = vadd.f32 %v2590_v57, %v2505_v21  ;;  %v15171_v57 = vld [vmem:[#allocation78_spill] sm:$0xff] }
 0x269   :  { %v2866_v32 = vpop.f32.mrf.mxu0  ;;  %v2510_v43 = vpop.f32.mrf.mxu1  ;;  %v12474_v24 = vadd.f32 %v2864_v1, %v2752_v54  ;;  %vm15172_vm13 = vnez %v15171_v57  ;;  %v15175_v1 = vpack.c.bf16 %v12188_v26, %v12148_v10 }
 0x26a   :  { %v3192_v46 = vsel %vm15172_vm13, %v12156_v19, 0.0 }
 0x26b   :  { %v3205_v39 = vpack.c.bf16 %v3193_v4, %v3192_v46 }
 0x26c   :  { %7808 = vmatmul.msk.bf16.gmra.mxu2 %vm15168_vm3, %v3059_v59  ;;  %vm15174_vm3 = vmmov %vm15173_vm1 }
 0x26e   :  { %v2720_v34 = vpop.f32.mrf.mxu3 }
 0x26f   :  { %v2593_v9 = vpop.f32.mrf.mxu2  ;;  %v2753_v21 = vadd.f32 %v2720_v34, %v2591_v8  ;;  %v15177_v8 = vld [vmem:[#allocation85_spill] sm:$0xff] }
 0x270   :  { %v2594_v22 = vadd.f32 %v2593_v9, %v2508_v53  ;;  %vm15178_vm5 = vnez %v15177_v8  ;;  %v15179_v9 = vld [vmem:[#allocation91_spill] sm:$0xff] }
 0x271   :  { %v2869_v40 = vpop.f32.mrf.mxu0  ;;  %v2513_v50 = vpop.f32.mrf.mxu1  ;;  %v12483_v44 = vadd.f32 %v2866_v32, %v2753_v21  ;;  %v3049_v19 = vsel %vm15178_vm5, %v12265_v11, 0.0  ;;  %v15182_v21 = vld [vmem:[#allocation73_spill] sm:$0xff] }
 0x273   :  { %7824 = vmatmul.msk.bf16.gmra.mxu3 %vm15173_vm1, %v3205_v39  ;;  %vm15180_vm1 = vnez %v15179_v9 }
 0x274   :  { %7840 = vmatmul.msk.bf16.gmra.mxu0 %vm15174_vm3, %v12183_v55  ;;  %7793 = vmatmul.msk.bf16.gmra.mxu1 %vm15176_vm0, %v15175_v1  ;;  %v3048_v39 = vsel %vm15180_vm1, %v12211_v61, 0.0  ;;  %vm15181_vm3 = vmmov %vm15176_vm0  ;;  %vm15183_vm0 = vnez %v15182_v21 }
 0x275   :  { %v3060_v34 = vpack.c.bf16 %v3049_v19, %v3048_v39  ;;  %v3195_v46 = vsel %vm15183_vm0, %v12250_v45, 0.0  ;;  %vm15186_vm1 = vmmov %vm15181_vm3 }
 0x276   :  { %v2723_v53 = vpop.f32.mrf.mxu3  ;;  %vm15189_vm0 = vmmov %vm15186_vm1 }
 0x277   :  { %v2595_v13 = vpop.f32.mrf.mxu2  ;;  %v2754_v59 = vadd.f32 %v2723_v53, %v2594_v22  ;;  %vm15199_vm13 = vmmov %vm15189_vm0 }
 0x278   :  { %v2596_v54 = vadd.f32 %v2595_v13, %v2510_v43  ;;  %v15184_v13 = vld [vmem:[#allocation75_spill] sm:$0xff] }
 0x279   :  { %v2871_v32 = vpop.f32.mrf.mxu0  ;;  %v12498_v55 = vpop.f32.mrf.mxu1  ;;  %v12500_v4 = vadd.f32 %v2869_v40, %v2754_v59  ;;  %vm15185_vm5 = vnez %v15184_v13  ;;  %v15188_v40 = vpack.c.bf16 %v12248_v2, %v12208_v18  ;;  %v15224_v13 = vld [vmem:[#allocation100_spill] sm:$0xff] }
 0x27a   :  { %v3194_v53 = vsel %vm15185_vm5, %v12216_v5, 0.0 }
 0x27b   :  { %v3206_v19 = vpack.c.bf16 %v3195_v46, %v3194_v53 }
 0x27c   :  { %7809 = vmatmul.msk.bf16.gmra.mxu2 %vm15181_vm3, %v3060_v34  ;;  %vm15187_vm3 = vmmov %vm15186_vm1  ;;  %v15192_v34 = vld [vmem:[#allocation81_spill] sm:$0xff] }
 0x27e   :  { %v2725_v26 = vpop.f32.mrf.mxu3 }
 0x27f   :  { %v2598_v10 = vpop.f32.mrf.mxu2  ;;  %v2755_v22 = vadd.f32 %v2725_v26, %v2596_v54  ;;  %v15190_v54 = vld [vmem:[#allocation92_spill] sm:$0xff] }
 0x280   :  { %v2599_v43 = vadd.f32 %v2598_v10, %v2513_v50  ;;  %vm15191_vm5 = vnez %v15190_v54  ;;  %v15218_v54 = vld [vmem:[#allocation127_spill] sm:$0xff] }
 0x281   :  { %v2874_v1 = vpop.f32.mrf.mxu0  ;;  %v2518_v39 = vpop.f32.mrf.mxu1  ;;  %v12509_v9 = vadd.f32 %v2871_v32, %v2755_v22  ;;  %v3051_v5 = vsel %vm15191_vm5, %v12323_v33, 0.0  ;;  %v15194_v22 = vld [vmem:[#allocation89_spill] sm:$0xff] }
 0x283   :  { %7825 = vmatmul.msk.bf16.gmra.mxu3 %vm15186_vm1, %v3206_v19  ;;  %vm15193_vm1 = vnez %v15192_v34 }
 0x284   :  { %7841 = vmatmul.msk.bf16.gmra.mxu0 %vm15187_vm3, %v12243_v36  ;;  %7794 = vmatmul.msk.bf16.gmra.mxu1 %vm15189_vm0, %v15188_v40  ;;  %v3050_v10 = vsel %vm15193_vm1, %v12271_v48, 0.0  ;;  %vm15195_vm3 = vnez %v15194_v22  ;;  %v15196_v40 = vld [vmem:[#allocation87_spill] sm:$0xff]  ;;  %vm15198_vm1 = vmmov %vm15189_vm0 }
 0x285   :  { %v3061_v36 = vpack.c.bf16 %v3051_v5, %v3050_v10  ;;  %vm15197_vm5 = vnez %v15196_v40 }
 0x286   :  { %v2728_v50 = vpop.f32.mrf.mxu3 }
 0x287   :  { %v12518_v45 = vpop.f32.mrf.mxu2  ;;  %v2756_v59 = vadd.f32 %v2728_v50, %v2599_v43  ;;  %v3197_v43 = vsel %vm15195_vm3, %v12310_v56, 0.0  ;;  %v3196_v50 = vsel %vm15197_vm5, %v12276_v0, 0.0 }
 0x288   :  { %v3207_v5 = vpack.c.bf16 %v3197_v43, %v3196_v50 }
 0x289   :  { %v12523_v32 = vpop.f32.mrf.mxu0  ;;  %v12528_v26 = vpop.f32.mrf.mxu1  ;;  %v12530_v18 = vadd.f32 %v2874_v1, %v2756_v59  ;;  %v15200_v1 = vpack.c.bf16 %v12308_v47, %v12268_v30 }
 0x28c   :  { %7810 = vmatmul.msk.bf16.gmra.mxu2 %vm15189_vm0, %v3061_v36 }
 0x28e   :  { %v12533_v46 = vpop.f32.mrf.mxu3 }
 0x28f   :  { %v2603_v2 = vpop.f32.mrf.mxu2 }
 0x290   :  { %v2604_v53 = vadd.f32 %v2603_v2, %v2518_v39  ;;  %v15201_v39 = vld [vmem:[#allocation121_spill] sm:$0xff]  ;;  %v15203_v2 = vld [vmem:[#allocation110_spill] sm:$0xff] }
 0x291   :  { %v2879_v19 = vpop.f32.mrf.mxu0  ;;  %v2523_v10 = vpop.f32.mrf.mxu1  ;;  %vm15202_vm3 = vnez %v15201_v39  ;;  %vm15204_vm5 = vnez %v15203_v2  ;;  %v15206_v39 = vld [vmem:[#allocation107_spill] sm:$0xff]  ;;  %v15208_v2 = vld [vmem:[#allocation105_spill] sm:$0xff] }
 0x292   :  { %v3053_v36 = vsel %vm15202_vm3, %v12376_v23, 0.0  ;;  %v3052_v43 = vsel %vm15204_vm5, %v12327_v51, 0.0 }
 0x293   :  { %7826 = vmatmul.msk.bf16.gmra.mxu3 %vm15198_vm1, %v3207_v5  ;;  %vm15207_vm1 = vnez %v15206_v39 }
 0x294   :  { %7842 = vmatmul.msk.bf16.gmra.mxu0 %vm15199_vm13, %v12303_v60  ;;  %7795 = vmatmul.msk.bf16.gmra.mxu1 %vm15189_vm0, %v15200_v1  ;;  %v3062_v60 = vpack.c.bf16 %v3053_v36, %v3052_v43  ;;  %vm15205_vm13 = vmmov %vm15189_vm0  ;;  %vm15209_vm0 = vnez %v15208_v2 }
 0x295   :  { %v3198_v40 = vsel %vm15209_vm0, %v12332_v3, 0.0  ;;  %vm15210_vm5 = vmmov %vm15205_vm13  ;;  %v15214_v3 = vld [vmem:[#allocation140_spill] sm:$0xff] }
 0x296   :  { %v2733_v56 = vpop.f32.mrf.mxu3  ;;  %vm15211_vm3 = vmmov %vm15210_vm5  ;;  %vm15215_vm0 = vnez %v15214_v3 }
 0x297   :  { %v12548_v59 = vpop.f32.mrf.mxu2  ;;  %v2758_v0 = vadd.f32 %v2733_v56, %v2604_v53  ;;  %v3199_v53 = vsel %vm15207_vm1, %v12364_v29, 0.0 }
 0x298   :  { %v3208_v22 = vpack.c.bf16 %v3199_v53, %v3198_v40  ;;  %v3054_v40 = vsel %vm15215_vm0, %v12378_v27, 0.0 }
 0x299   :  { %v12556_v50 = vpop.f32.mrf.mxu0  ;;  %v12558_v5 = vpop.f32.mrf.mxu1  ;;  %v12560_v30 = vadd.f32 %v2879_v19, %v2758_v0  ;;  %v12574_v19 = vld [vmem:[#allocation2 + $0x89] sm:$0xff]  ;;  %v15212_v0 = vpack.c.bf16 %v12362_v15, %v12325_v58 }
 0x29a   :  { %v3185_v58 = vld [vmem:[#allocation2 + $0x8f] sm:$0xff] }
 0x29c   :  { %7811 = vmatmul.msk.bf16.gmra.mxu2 %vm15205_vm13, %v3062_v60  ;;  %vm15213_vm13 = vmmov %vm15211_vm3  ;;  %v15216_v60 = vld [vmem:[#allocation131_spill] sm:$0xff] }
 0x29e   :  { %v12563_v1 = vpop.f32.mrf.mxu3 }
 0x29f   :  { %v2608_v47 = vpop.f32.mrf.mxu2 }
 0x2a0   :  { %v2609_v56 = vadd.f32 %v2608_v47, %v2523_v10 }
 0x2a1   :  { %v2528_v36 = vpop.f32.mrf.mxu1  ;;  %v2884_v43 = vpop.f32.mrf.mxu0 }
 0x2a3   :  { %7827 = vmatmul.msk.bf16.gmra.mxu3 %vm15210_vm5, %v3208_v22  ;;  %vm15217_vm5 = vnez %v15216_v60 }
 0x2a4   :  { %7843 = vmatmul.msk.bf16.gmra.mxu0 %vm15211_vm3, %v12358_v14  ;;  %7796 = vmatmul.msk.bf16.gmra.mxu1 %vm15213_vm13, %v15212_v0  ;;  %v3055_v22 = vsel %vm15217_vm5, %v12574_v19, 0.0  ;;  %v9228_v14 = vld [vmem:[#allocation15 + $0x28] sm:$0xff]  ;;  %vm15219_vm13 = vnez %v15218_v54 }
 0x2a5   :  { %v3063_v53 = vpack.c.bf16 %v3055_v22, %v3054_v40  ;;  %3801 = vmatpush.bf16.msra.mxu2 %v9228_v14  ;;  %v3200_v60 = vsel %vm15219_vm13, %v12380_v28, 0.0  ;;  %v9562_v22 = vld [vmem:[#allocation2 + $0x8] sm:$0xff] }
 0x2a6   :  { %v2738_v10 = vpop.f32.mrf.mxu3  ;;  %v3347_v14 = vsel %vm11669_vm8, %v9562_v22, 0.0  ;;  %v15226_v28 = vld [vmem:[#allocation111_spill] sm:$0xff] }
 0x2a7   :  { %v12580_v29 = vpop.f32.mrf.mxu2  ;;  %v2760_v47 = vadd.f32 %v2738_v10, %v2609_v56  ;;  %v15220_v56 = vld [vmem:[#allocation116_spill] sm:$0xff]  ;;  %vm15227_vm13 = vnez %v15226_v28  ;;  %v9232_v28 = vld [vmem:[#allocation15 + $0x48] sm:$0xff] }
 0x2a8   :  { %vm15221_vm5 = vnez %v15220_v56 }
 0x2a9   :  { %v12588_v2 = vpop.f32.mrf.mxu1  ;;  %v12590_v39 = vadd.f32 %v2884_v43, %v2760_v47  ;;  %v12593_v0 = vpop.f32.mrf.mxu0  ;;  %v3201_v10 = vsel %vm15221_vm5, %v3185_v58, 0.0  ;;  %v3346_v43 = vsel %vm11661_vm10, %v12362_v15, 0.0  ;;  %v3478_v58 = vsel %vm15227_vm13, %v12026_v63, 0.0  ;;  %v15231_v63 = vld [vmem:[#allocation126_spill] sm:$0xff] }
 0x2aa   :  { %v3209_v8 = vpack.c.bf16 %v3201_v10, %v3200_v60  ;;  %v3355_v57 = vpack.c.bf16 %v3347_v14, %v3346_v43  ;;  %vm15228_vm10 = vcmask 261120   ;;  %vm15232_vm13 = vnez %v15231_v63  ;;  %v9229_v63 = vld [vmem:[#allocation15 + $0x30] sm:$0xff] }
 0x2ab   :  { %vm15229_vm5 = vmmov %vm15228_vm10 }
 0x2ac   :  { %7812 = vmatmul.msk.bf16.gmra.mxu2 %vm15211_vm3, %v3063_v53  ;;  %vm15225_vm3 = vnez %v15224_v13  ;;  %vm15230_vm8 = vmmov %vm15229_vm5 }
 0x2ad   :  { %v3479_v21 = vsel %vm15225_vm3, %v12031_v12, 0.0 }
 0x2ae   :  { %v12595_v3 = vpop.f32.mrf.mxu3  ;;  %v3494_v15 = vpack.c.bf16 %v3479_v21, %v3478_v58 }
 0x2af   :  { %v2613_v34 = vpop.f32.mrf.mxu2 }
 0x2b0   :  { %v2614_v53 = vadd.f32 %v2613_v34, %v2528_v36 }
 0x2b1   :  { %v2968_v54 = vpop.f32.mrf.mxu1  ;;  %v2889_v12 = vpop.f32.mrf.mxu0 }
 0x2b2   :  { %v12614_v56 = vadd.f32 %v2968_v54, %v12426_v38  ;;  %v3481_v38 = vsel %vm15232_vm13, %v15153_v52, 0.0  ;;  %v9227_v52 = vld [vmem:[#allocation15 + $0x20] sm:$0xff] }
 0x2b3   :  { %7828 = vmatmul.msk.bf16.gmra.mxu3 %vm15228_vm10, %v3209_v8  ;;  %v15233_v8 = vld [vmem:[#allocation128_spill] sm:$0xff]  ;;  %3802 = vmatpush.bf16.msra.mxu2 %v9227_v52  ;;  %v15247_v52 = vld [vmem:[#allocation134_spill] sm:$0xff] }
 0x2b4   :  { %7844 = vmatmul.msk.bf16.gmra.mxu0 %vm15229_vm5, %v3355_v57  ;;  %7853 = vmatmul.msk.bf16.vlgmr.msrb.gmra.mxu1 %vm15230_vm8, %v3494_v15  ;;  %vm15234_vm10 = vnez %v15233_v8  ;;  %vm15235_vm8 = vmmov %vm15229_vm5 }
 0x2b5   :  { %v3480_v57 = vsel %vm15234_vm10, %v12085_v17, 0.0 }
 0x2b6   :  { %v2743_v34 = vpop.f32.mrf.mxu3  ;;  %v3495_v22 = vpack.c.bf16 %v3481_v38, %v3480_v57 }
 0x2b7   :  { %v2762_v36 = vadd.f32 %v2743_v34, %v2614_v53  ;;  %v15238_v34 = vld [vmem:[#allocation38_spill] sm:$0xff] }
 0x2b8   :  { %vm15239_vm13 = vnez %v15238_v34 }
 0x2b9   :  { %v2970_v60 = vpop.f32.mrf.mxu1  ;;  %v12619_v10 = vadd.f32 %v2889_v12, %v2762_v36  ;;  %v3482_v17 = vsel %vm15239_vm13, %v12145_v6, 0.0  ;;  %vm15244_vm13 = vmmov %vm15235_vm8 }
 0x2ba   :  { %v12622_v43 = vadd.f32 %v2970_v60, %v12435_v7  ;;  %v15236_v7 = vld [vmem:[#allocation39_spill] sm:$0xff]  ;;  %v15240_v60 = vld [vmem:[#allocation142_spill] sm:$0xff] }
 0x2bb   :  { %vm15237_vm5 = vnez %v15236_v7 }
 0x2bc   :  { %v3483_v58 = vsel %vm15237_vm5, %v12151_v16, 0.0  ;;  %vm15241_vm5 = vnez %v15240_v60 }
 0x2bd   :  { %v3496_v36 = vpack.c.bf16 %v3483_v58, %v3482_v17  ;;  %v3485_v16 = vsel %vm15241_vm5, %v12211_v61, 0.0  ;;  %vm15248_vm5 = vnez %v15247_v52 }
 0x2c1   :  { %v2973_v21 = vpop.f32.mrf.mxu1 }
 0x2c2   :  { %v12631_v54 = vadd.f32 %v2973_v21, %v12450_v35  ;;  %v15242_v21 = vld [vmem:[#allocation132_spill] sm:$0xff] }
 0x2c3   :  { %vm15243_vm10 = vnez %v15242_v21  ;;  %v9224_v21 = vld [vmem:[#allocation15 + $0x8] sm:$0xff] }
 0x2c4   :  { %7854 = vmatmul.msk.bf16.gmra.mxu1 %vm15235_vm8, %v3495_v22  ;;  %v3484_v6 = vsel %vm15243_vm10, %v12205_v25, 0.0  ;;  %vm15249_vm10 = vmmov %vm15244_vm13 }
 0x2c5   :  { %v3497_v57 = vpack.c.bf16 %v3485_v16, %v3484_v6  ;;  %v9226_v16 = vld [vmem:[#allocation15 + $0x18] sm:$0xff] }
 0x2c6   :  { %3803 = vmatpush.bf16.msra.mxu2 %v9226_v16 }
 0x2c9   :  { %v2975_v14 = vpop.f32.mrf.mxu1 }
 0x2ca   :  { %v12635_v53 = vadd.f32 %v2975_v14, %v12459_v62 }
 0x2d1   :  { %v2978_v15 = vpop.f32.mrf.mxu1 }
 0x2d2   :  { %v12644_v35 = vadd.f32 %v2978_v15, %v12474_v24  ;;  %v3486_v15 = vsel %vm15248_vm5, %v12265_v11, 0.0  ;;  %v15252_v11 = vld [vmem:[#allocation141_spill] sm:$0xff] }
 0x2d3   :  { %vm15253_vm5 = vnez %v15252_v11 }
 0x2d4   :  { %7855 = vmatmul.msk.bf16.gmra.mxu1 %vm15235_vm8, %v3496_v36  ;;  %v12675_v36 = vpop.f32.mrf.mxu2 }
 0x2d9   :  { %v2980_v12 = vpop.f32.mrf.mxu1 }
 0x2da   :  { %v12648_v62 = vadd.f32 %v2980_v12, %v12483_v44  ;;  %v15245_v44 = vld [vmem:[#allocation143_spill] sm:$0xff] }
 0x2db   :  { %vm15246_vm8 = vnez %v15245_v44 }
 0x2dc   :  { %v3487_v58 = vsel %vm15246_vm8, %v12271_v48, 0.0  ;;  %v12680_v48 = vpop.f32.mrf.mxu3 }
 0x2e1   :  { %v2983_v38 = vpop.f32.mrf.mxu1 }
 0x2e2   :  { %v12657_v24 = vadd.f32 %v2983_v38, %v12500_v4  ;;  %v3498_v4 = vpack.c.bf16 %v3487_v58, %v3486_v15  ;;  %v3114_v58 = vpop.f32.mrf.mxu2  ;;  %v15254_v15 = vld [vmem:[#allocation61_spill] sm:$0xff] }
 0x2e4   :  { %7856 = vmatmul.msk.bf16.gmra.mxu1 %vm15244_vm13, %v3497_v57 }
 0x2e9   :  { %v2985_v22 = vpop.f32.mrf.mxu1 }
 0x2ea   :  { %v12661_v14 = vadd.f32 %v2985_v22, %v12509_v9  ;;  %v15250_v9 = vld [vmem:[#allocation151_spill] sm:$0xff]  ;;  %v12689_v22 = vpop.f32.mrf.mxu0 }
 0x2eb   :  { %vm15251_vm13 = vnez %v15250_v9 }
 0x2ec   :  { %v3489_v12 = vsel %vm15251_vm13, %v12327_v51, 0.0  ;;  %v3260_v51 = vpop.f32.mrf.mxu3  ;;  %vm15255_vm13 = vnez %v15254_v15  ;;  %v3477_v15 = vld [vmem:[#allocation2 + $0x91] sm:$0xff] }
 0x2f1   :  { %v2988_v61 = vpop.f32.mrf.mxu1 }
 0x2f2   :  { %v12670_v25 = vadd.f32 %v2988_v61, %v12530_v18  ;;  %v3488_v18 = vsel %vm15253_vm5, %v12323_v33, 0.0  ;;  %v3406_v9 = vpop.f32.mrf.mxu0  ;;  %v15256_v33 = vld [vmem:[#allocation150_spill] sm:$0xff] }
 0x2f3   :  { %v3499_v57 = vpack.c.bf16 %v3489_v12, %v3488_v18  ;;  %vm15257_vm5 = vnez %v15256_v33  ;;  %v3116_v12 = vpop.f32.mrf.mxu2 }
 0x2f4   :  { %7857 = vmatmul.msk.bf16.gmra.mxu1 %vm15249_vm10, %v3498_v4  ;;  %v3491_v4 = vsel %vm15255_vm13, %v12378_v27, 0.0  ;;  %v3262_v18 = vpop.f32.mrf.mxu3 }
 0x2f9   :  { %v12673_v17 = vpop.f32.mrf.mxu1 }
 0x2fa   :  { %v3408_v44 = vpop.f32.mrf.mxu0 }
 0x2fb   :  { %v3119_v27 = vpop.f32.mrf.mxu2 }
 0x2fc   :  { %v3265_v60 = vpop.f32.mrf.mxu3 }
 0x301   :  { %v2993_v38 = vpop.f32.mrf.mxu1 }
 0x302   :  { %v12686_v6 = vadd.f32 %v2993_v38, %v12560_v30  ;;  %v3490_v30 = vsel %vm15257_vm5, %v12376_v23, 0.0  ;;  %v15258_v23 = vld [vmem:[#allocation169_spill] sm:$0xff]  ;;  %v3411_v8 = vpop.f32.mrf.mxu0 }
 0x303   :  { %v3500_v38 = vpack.c.bf16 %v3491_v4, %v3490_v30  ;;  %vm15259_vm5 = vnez %v15258_v23  ;;  %v9223_v4 = vld [vmem:[#allocation15] sm:$0xff]  ;;  %v9233_v23 = vld [vmem:[#allocation15 + $0x50] sm:$0xff] }
 0x304   :  { %7858 = vmatmul.msk.bf16.gmra.mxu1 %vm15249_vm10, %v3499_v57  ;;  %v9225_v57 = vld [vmem:[#allocation15 + $0x10] sm:$0xff]  ;;  %v3492_v33 = vsel %vm15259_vm5, %v12574_v19, 0.0  ;;  %v9231_v30 = vld [vmem:[#allocation15 + $0x40] sm:$0xff]  ;;  %v3121_v19 = vpop.f32.mrf.mxu2 }
 0x305   :  { %3892 = vmatpush.bf16.msra.mxu3 %v9225_v57  ;;  %4030 = vmatpush.bf16.msrb.mxu0 %v9231_v30  ;;  %v12717_v30 = vld [vmem:[#allocation13] ss:$0 sm:$0xff] }
 0x309   :  { %v12691_v61 = vpop.f32.mrf.mxu1  ;;  %3893 = vmatpush.bf16.msra.mxu3 %v9224_v21  ;;  %v9230_v21 = vld [vmem:[#allocation15 + $0x38] sm:$0xff] }
 0x30a   :  { %4031 = vmatpush.bf16.msrb.mxu0 %v9230_v21 }
 0x30d   :  { %3894 = vmatpush.bf16.msra.mxu3 %v9223_v4 }
 0x30e   :  { %4032 = vmatpush.bf16.msrb.mxu0 %v9229_v63  ;;  %v15262_v63 = vld [vmem:[#allocation41_spill] sm:$0xff] }
 0x311   :  { %v2998_v11 = vpop.f32.mrf.mxu1 }
 0x312   :  { %v12700_v16 = vadd.f32 %v2998_v11, %v12590_v39  ;;  %v15260_v39 = vld [vmem:[#allocation170_spill] sm:$0xff] }
 0x313   :  { %vm15261_vm13 = vnez %v15260_v39  ;;  %v9237_v39 = vld [vmem:[#allocation15 + $0x70] sm:$0xff] }
 0x314   :  { %7859 = vmatmul.msk.bf16.gmra.mxu1 %vm15249_vm10, %v3500_v38  ;;  %v3493_v11 = vsel %vm15261_vm13, %v3477_v15, 0.0  ;;  %v9234_v38 = vld [vmem:[#allocation15 + $0x58] sm:$0xff]  ;;  %v3267_v15 = vpop.f32.mrf.mxu3  ;;  %4306 = vmatpush.bf16.msrb.mxu2 %v9237_v39  ;;  %vm14260_vm13 = vcmask 392192  }
 0x315   :  { %v3501_v57 = vpack.c.bf16 %v3493_v11, %v3492_v33  ;;  %4184 = vmatpush.bf16.msra.mxu1 %v9234_v38  ;;  %v3413_v33 = vpop.f32.mrf.mxu0  ;;  %v3124_v11 = vpop.f32.mrf.mxu2 }
 0x319   :  { %v12703_v52 = vpop.f32.mrf.mxu1  ;;  %4185 = vmatpush.bf16.msra.mxu1 %v9233_v23  ;;  %v3155_v23 = vadd.f32 %v3116_v12, %v12622_v43  ;;  %v3156_v12 = vadd.f32 %v3119_v27, %v12631_v54  ;;  %v3157_v27 = vadd.f32 %v3121_v19, %v12635_v53  ;;  %v15269_v53 = vld [vmem:[#allocation40_spill] sm:$0xff] }
 0x31b   :  { %v3301_v47 = vadd.f32 %v3262_v18, %v3155_v23  ;;  %v15265_v23 = vld [vmem:[#allocation52_spill] sm:$0xff] }
 0x31d   :  { %4186 = vmatpush.bf16.msra.mxu1 %v9232_v28  ;;  %v3447_v28 = vadd.f32 %v3408_v44, %v3301_v47  ;;  %v3126_v18 = vpop.f32.mrf.mxu2  ;;  %v15281_v44 = vld [vmem:[#allocation154_spill] sm:$0xff] }
 0x321   :  { %v3003_v34 = vpop.f32.mrf.mxu1 }
 0x322   :  { %v12711_v7 = vadd.f32 %v3003_v34, %v12619_v10  ;;  %v3154_v10 = vadd.f32 %v3114_v58, %v12614_v56  ;;  %v12723_v56 = vpop.f32.mrf.mxu0 }
 0x324   :  { %7860 = vmatmul.msk.bf16.gmra.mxu1 %vm15249_vm10, %v3501_v57  ;;  %v3300_v34 = vadd.f32 %v3260_v51, %v3154_v10  ;;  %v3270_v57 = vpop.f32.mrf.mxu3  ;;  %vm15263_vm10 = vnez %v15262_v63  ;;  %v15264_v51 = vmov 0.0  }
 0x326   :  { %v3446_v4 = vadd.f32 %v3406_v9, %v3300_v34 }
 0x329   :  { %v12714_v13 = vpop.f32.mrf.mxu1 }
 0x32a   :  { %v3418_v63 = vpop.f32.mrf.mxu0 }
 0x32c   :  { %v3272_v10 = vpop.f32.mrf.mxu3 }
 0x331   :  { %v3552_v38 = vpop.f32.mrf.mxu1 }
 0x332   :  { %v3592_v21 = vadd.f32 %v3552_v38, %v3446_v4 }
 0x334   :  { %v3612_v40 = vadd.f32 %v12717_v30, %v3592_v21 }
 0x336   :  { %v12721_v37 = vmax.f32 %v3612_v40, 0.0  ;;  %v3302_v40 = vadd.f32 %v3265_v60, %v3156_v12 }
 0x338   :  { %3644 = vst [vmem:[#allocation2 + $0x10] sm:$0xff] %v12721_v37  ;;  %v3723_v9 = vsel %vm15263_vm10, %v12721_v37, 0.0  ;;  %v3448_v38 = vadd.f32 %v3411_v8, %v3302_v40  ;;  %vm15266_vm10 = vnez %v15265_v23 }
 0x339   :  { %v3554_v58 = vpop.f32.mrf.mxu1  ;;  %v3738_v43 = vpack.c.bf16 %v3723_v9, %v15264_v51  ;;  %v12743_v51 = vpop.f32.mrf.mxu2 }
 0x33a   :  { %v3593_v39 = vadd.f32 %v3554_v58, %v3447_v28  ;;  %v15267_v28 = vld [vmem:[#allocation53_spill] sm:$0xff]  ;;  %v3303_v58 = vadd.f32 %v3267_v15, %v3157_v27 }
 0x33b   :  { %7873 = vmatmul.msk.bf16.vlgmr.msra.gmra.mxu2 %vm14260_vm13, %v3738_v43  ;;  %v15271_v15 = vld [vmem:[#allocation45_spill] sm:$0xff] }
 0x33c   :  { %v3613_v34 = vadd.f32 %v12717_v30, %v3593_v39  ;;  %v12746_v39 = vpop.f32.mrf.mxu3  ;;  %v3449_v40 = vadd.f32 %v3413_v33, %v3303_v58  ;;  %vm15272_vm5 = vnez %v15271_v15  ;;  %v3158_v15 = vadd.f32 %v3124_v11, %v12644_v35 }
 0x33e   :  { %v12733_v4 = vmax.f32 %v3613_v34, 0.0 }
 0x33f   :  { %v3661_v47 = vld [vmem:[#allocation2 + $0xf] sm:$0xff] }
 0x340   :  { %3645 = vst [vmem:[#allocation2 + $0x18] sm:$0xff] %v12733_v4  ;;  %v3677_v54 = vsel %vm15266_vm10, %v3661_v47, 0.0  ;;  %v3936_v12 = vld [vmem:[#allocation2 + $0x9] sm:$0xff]  ;;  %vm15270_vm10 = vnez %v15269_v53 }
 0x341   :  { %v3557_v21 = vpop.f32.mrf.mxu1  ;;  %v3692_v60 = vpack.c.bf16 %v3677_v54, %v15267_v28  ;;  %v3952_v19 = vsel %vm15270_vm10, %v3936_v12, 0.0  ;;  %v15273_v54 = vld [vmem:[#allocation44_spill] sm:$0xff]  ;;  %v15277_v28 = vld [vmem:[#allocation49_spill] sm:$0xff]  ;;  %v3131_v35 = vpop.f32.mrf.mxu2 }
 0x342   :  { %v3594_v9 = vadd.f32 %v3557_v21, %v3448_v38  ;;  %v4106_v38 = vsel %vm15272_vm5, %v3661_v47, 0.0  ;;  %v15275_v21 = vld [vmem:[#allocation46_spill] sm:$0xff]  ;;  %vm15278_vm3 = vnez %v15277_v28  ;;  %vm15282_vm5 = vnez %v15281_v44 }
 0x343   :  { %7893 = vmatmul.msk.bf16.vlgmr.msra.gmra.mxu3 %vm14260_vm13, %v3692_v60  ;;  %vm15274_vm13 = vnez %v15273_v54  ;;  %vm15276_vm8 = vnez %v15275_v21  ;;  %v3724_v60 = vsel %vm15278_vm3, %v12733_v4, 0.0  ;;  %v4690_v21 = vsel %vm15282_vm5, %v12733_v4, 0.0 }
 0x344   :  { %v3614_v43 = vadd.f32 %v12717_v30, %v3594_v9  ;;  %v15279_v9 = vld [vmem:[#allocation50_spill] sm:$0xff]  ;;  %vm15285_vm3 = vcmask 392192  }
 0x345   :  { %vm15280_vm10 = vnez %v15279_v9 }
 0x346   :  { %v12748_v8 = vmax.f32 %v3614_v43, 0.0 }
 0x347   :  { %v12750_v34 = vld [vmem:[#allocation2 + $0x11] sm:$0xff] }
 0x348   :  { %15268 = vst [vmem:[#allocation82_spill] sm:$0xff] %v12748_v8  ;;  %v12754_v23 = vld [vmem:[#allocation2 + $0x17] sm:$0xff]  ;;  %v3953_v27 = vsel %vm15274_vm13, %v12750_v34, 0.0  ;;  %v3725_v58 = vsel %vm15280_vm10, %v12748_v8, 0.0  ;;  %vm15286_vm13 = vmmov %vm15285_vm3 }
 0x349   :  { %3646 = vst [vmem:[#allocation2 + $0x20] sm:$0xff] %v12748_v8  ;;  %v4107_v33 = vsel %vm15276_vm8, %v12754_v23, 0.0  ;;  %v3559_v43 = vpop.f32.mrf.mxu1  ;;  %v3968_v47 = vpack.c.bf16 %v3953_v27, %v3952_v19  ;;  %v3739_v53 = vpack.c.bf16 %v3725_v58, %v3724_v60  ;;  %vm15284_vm8 = vnez %v15283_v41  ;;  %vm15288_vm10 = vmmov %vm15285_vm3  ;;  %v15291_v58 = vld [vmem:[#allocation64_spill] sm:$0xff]  ;;  %v15295_v41 = vld [vmem:[#allocation54_spill] sm:$0xff] }
 0x34a   :  { %v4122_v12 = vpack.c.bf16 %v4107_v33, %v4106_v38  ;;  %v3595_v54 = vadd.f32 %v3559_v43, %v3449_v40  ;;  %v4691_v28 = vsel %vm15284_vm8, %v12748_v8, 0.0  ;;  %v3304_v19 = vadd.f32 %v3270_v57, %v3158_v15  ;;  %v3421_v38 = vpop.f32.mrf.mxu0  ;;  %v3277_v40 = vpop.f32.mrf.mxu3  ;;  %v15289_v57 = vld [vmem:[#allocation63_spill] sm:$0xff] }
 0x34b   :  { %7913 = vmatmul.msk.bf16.vlgmr.msrb.gmra.mxu0 %vm15285_vm3, %v3968_v47  ;;  %v12780_v9 = vpack.c.bf16 %v4691_v28, %v4690_v21  ;;  %7874 = vmatmul.msk.bf16.gmra.mxu2 %vm15288_vm10, %v3739_v53  ;;  %vm15290_vm5 = vnez %v15289_v57  ;;  %vm15292_vm8 = vnez %v15291_v58  ;;  %v9236_v47 = vld [vmem:[#allocation15 + $0x68] sm:$0xff] }
 0x34c   :  { %7933 = vmatmul.msk.bf16.vlgmr.msra.gmra.mxu1 %vm15286_vm13, %v4122_v12  ;;  %v3615_v27 = vadd.f32 %v12717_v30, %v3595_v54  ;;  %v3450_v33 = vadd.f32 %v12723_v56, %v3304_v19  ;;  %v3678_v60 = vsel %vm15290_vm5, %v12754_v23, 0.0  ;;  %v3159_v12 = vadd.f32 %v3126_v18, %v12648_v62  ;;  %4307 = vmatpush.bf16.msrb.mxu2 %v9236_v47 }
 0x34d   :  { %15287 = vst [vmem:[#allocation94_spill] sm:$0xff] %v12780_v9  ;;  %vm15296_vm13 = vnez %v15295_v41  ;;  %v15301_v41 = vld [vmem:[#allocation60_spill] sm:$0xff] }
 0x34e   :  { %v12784_v11 = vmax.f32 %v3615_v27, 0.0  ;;  %v3305_v21 = vadd.f32 %v3272_v10, %v3159_v12  ;;  %vm15302_vm5 = vnez %v15301_v41  ;;  %v15307_v41 = vld [vmem:[#allocation162_spill] sm:$0xff] }
 0x350   :  { %v12786_v44 = vld [vmem:[#allocation2 + $0x1f] sm:$0xff]  ;;  %3647 = vst [vmem:[#allocation2 + $0x28] sm:$0xff] %v12784_v11  ;;  %v3451_v57 = vadd.f32 %v3418_v63, %v3305_v21 }
 0x351   :  { %v3679_v43 = vsel %vm15292_vm8, %v12786_v44, 0.0  ;;  %v3562_v53 = vpop.f32.mrf.mxu1  ;;  %v12801_v28 = vld [vmem:[#allocation2 + $0x19] sm:$0xff] }
 0x352   :  { %v3693_v15 = vpack.c.bf16 %v3679_v43, %v3678_v60  ;;  %v3596_v54 = vadd.f32 %v3562_v53, %v3450_v33  ;;  %v3423_v19 = vpop.f32.mrf.mxu0  ;;  %v3954_v62 = vsel %vm15296_vm13, %v12801_v28, 0.0  ;;  %v4108_v33 = vsel %vm14987_vm15, %v12786_v44, 0.0  ;;  %v3134_v60 = vpop.f32.mrf.mxu2  ;;  %v15299_v63 = vld [vmem:[#allocation58_spill] sm:$0xff]  ;;  %vm15309_vm13 = vmmov %vm15285_vm3 }
 0x353   :  { %vm15300_vm10 = vnez %v15299_v63  ;;  %v3726_v53 = vsel %vm15302_vm5, %v12784_v11, 0.0  ;;  %v3160_v43 = vadd.f32 %v12743_v51, %v12657_v24  ;;  %v3280_v42 = vpop.f32.mrf.mxu3  ;;  %v15305_v63 = vld [vmem:[#allocation161_spill] sm:$0xff]  ;;  %vm15308_vm15 = vnez %v15307_v41 }
 0x354   :  { %7894 = vmatmul.msk.bf16.gmra.mxu3 %vm15285_vm3, %v3693_v15  ;;  %v3616_v56 = vadd.f32 %v12717_v30, %v3596_v54  ;;  %v15303_v15 = vld [vmem:[#allocation62_spill] sm:$0xff] }
 0x355   :  { %vm15304_vm8 = vnez %v15303_v15 }
 0x356   :  { %v12803_v27 = vmax.f32 %v3616_v56, 0.0 }
 0x357   :  { %v12805_v58 = vld [vmem:[#allocation2 + $0x21] sm:$0xff] }
 0x358   :  { %15293 = vst [vmem:[#allocation93_spill] sm:$0xff] %v12803_v27  ;;  %v12810_v18 = vld [vmem:[#allocation2 + $0x27] sm:$0xff]  ;;  %v3955_v47 = vsel %vm14989_vm14, %v12805_v58, 0.0  ;;  %v3727_v54 = vsel %vm15304_vm8, %v12803_v27, 0.0  ;;  %vm15306_vm14 = vnez %v15305_v63  ;;  %v4693_v9 = vsel %vm15308_vm15, %v12803_v27, 0.0 }
 0x359   :  { %15294 = vst [vmem:[#allocation98_spill] sm:$0xff] %v12805_v58  ;;  %v4109_v12 = vsel %vm15300_vm10, %v12810_v18, 0.0  ;;  %v3564_v21 = vpop.f32.mrf.mxu1  ;;  %v3969_v56 = vpack.c.bf16 %v3955_v47, %v3954_v62  ;;  %v3740_v49 = vpack.c.bf16 %v3727_v54, %v3726_v53  ;;  %v4692_v8 = vsel %vm15306_vm14, %v12784_v11, 0.0  ;;  %vm15310_vm10 = vmmov %vm15285_vm3 }
 0x35a   :  { %3648 = vst [vmem:[#allocation2 + $0x30] sm:$0xff] %v12803_v27  ;;  %v4123_v10 = vpack.c.bf16 %v4109_v12, %v4108_v33  ;;  %v3597_v58 = vadd.f32 %v3564_v21, %v3451_v57  ;;  %v12838_v62 = vpack.c.bf16 %v4693_v9, %v4692_v8  ;;  %v3306_v33 = vadd.f32 %v12746_v39, %v3160_v43  ;;  %v3426_v47 = vpop.f32.mrf.mxu0  ;;  %v15311_v8 = vld [vmem:[#allocation83_spill] sm:$0xff]  ;;  %v15313_v39 = vld [vmem:[#allocation84_spill] sm:$0xff]  ;;  %v3136_v21 = vpop.f32.mrf.mxu2  ;;  %vm15315_vm14 = vmmov %vm15285_vm3 }
 0x35b   :  { %7914 = vmatmul.msk.bf16.gmra.mxu0 %vm15285_vm3, %v3969_v56  ;;  %7875 = vmatmul.msk.bf16.gmra.mxu2 %vm15310_vm10, %v3740_v49  ;;  %vm15312_vm5 = vnez %v15311_v8  ;;  %vm15314_vm8 = vnez %v15313_v39  ;;  %v3161_v49 = vadd.f32 %v3131_v35, %v12661_v14  ;;  %v3282_v43 = vpop.f32.mrf.mxu3  ;;  %v15317_v14 = vld [vmem:[#allocation68_spill] sm:$0xff]  ;;  %vm15325_vm10 = vnez %v15016_v20 }
 0x35c   :  { %7934 = vmatmul.msk.bf16.gmra.mxu1 %vm15309_vm13, %v4123_v10  ;;  %v3617_v24 = vadd.f32 %v12717_v30, %v3597_v58  ;;  %v3452_v53 = vadd.f32 %v3421_v38, %v3306_v33  ;;  %v3680_v9 = vsel %vm15312_vm5, %v12810_v18, 0.0  ;;  %v2601_v33 = vadd.f32 %v12518_v45, %v12498_v55  ;;  %v15321_v55 = vld [vmem:[#allocation77_spill] sm:$0xff]  ;;  %vm15330_vm5 = vmmov %vm15315_vm14 }
 0x35d   :  { %v3307_v10 = vadd.f32 %v3277_v40, %v3161_v49  ;;  %vm15318_vm15 = vnez %v15317_v14  ;;  %vm15322_vm3 = vnez %v15321_v55  ;;  %v15326_v55 = vld [vmem:[#allocation167_spill] sm:$0xff] }
 0x35e   :  { %v12843_v51 = vmax.f32 %v3617_v24, 0.0 }
 0x35f   :  { %v3453_v24 = vadd.f32 %v3423_v19, %v3307_v10  ;;  %v15323_v19 = vld [vmem:[#allocation80_spill] sm:$0xff] }
 0x360   :  { %3649 = vst [vmem:[#allocation2 + $0x38] sm:$0xff] %v12843_v51  ;;  %vm15324_vm13 = vnez %v15323_v19  ;;  %v15328_v19 = vld [vmem:[#allocation168_spill] sm:$0xff] }
 0x361   :  { %v12845_v57 = vld [vmem:[#allocation2 + $0x2f] sm:$0xff]  ;;  %v3567_v15 = vpop.f32.mrf.mxu1  ;;  %v3728_v49 = vsel %vm15324_vm13, %v12843_v51, 0.0  ;;  %vm15337_vm13 = vmmov %vm15330_vm5 }
 0x362   :  { %v3681_v58 = vsel %vm15314_vm8, %v12845_v57, 0.0  ;;  %v3598_v56 = vadd.f32 %v3567_v15, %v3452_v53  ;;  %v12859_v63 = vld [vmem:[#allocation2 + $0x29] sm:$0xff]  ;;  %v3162_v53 = vadd.f32 %v3134_v60, %v12670_v25  ;;  %v3428_v39 = vpop.f32.mrf.mxu0  ;;  %vm15331_vm8 = vmmov %vm15330_vm5 }
 0x363   :  { %v3694_v54 = vpack.c.bf16 %v3681_v58, %v3680_v9  ;;  %v3956_v35 = vsel %vm15318_vm15, %v12859_v63, 0.0  ;;  %v4110_v9 = vsel %vm15009_vm11, %v12845_v57, 0.0  ;;  %vm15329_vm11 = vnez %v15328_v19 }
 0x364   :  { %v3618_v38 = vadd.f32 %v12717_v30, %v3598_v56 }
 0x365   :  { %7895 = vmatmul.msk.bf16.gmra.mxu3 %vm15315_vm14, %v3694_v54  ;;  %v2757_v54 = vadd.f32 %v12533_v46, %v2601_v33  ;;  %v3308_v46 = vadd.f32 %v3280_v42, %v3162_v53  ;;  %v3139_v33 = vpop.f32.mrf.mxu2  ;;  %vm15332_vm14 = vmmov %vm15330_vm5 }
 0x366   :  { %v12861_v41 = vmax.f32 %v3618_v38, 0.0 }
 0x367   :  { %v12865_v8 = vld [vmem:[#allocation2 + $0x31] sm:$0xff]  ;;  %v2903_v60 = vadd.f32 %v12523_v32, %v2757_v54  ;;  %v3454_v42 = vadd.f32 %v3426_v47, %v3308_v46 }
 0x368   :  { %15316 = vst [vmem:[#allocation125_spill] sm:$0xff] %v12865_v8  ;;  %v12870_v40 = vld [vmem:[#allocation2 + $0x37] sm:$0xff]  ;;  %v3957_v58 = vsel %vm15011_vm12, %v12865_v8, 0.0  ;;  %v3729_v15 = vsel %vm15325_vm10, %v12861_v41, 0.0  ;;  %vm15327_vm12 = vnez %v15326_v55  ;;  %v4695_v27 = vsel %vm15329_vm11, %v12861_v41, 0.0 }
 0x369   :  { %3650 = vst [vmem:[#allocation2 + $0x40] sm:$0xff] %v12861_v41  ;;  %v4111_v45 = vsel %vm15322_vm3, %v12870_v40, 0.0  ;;  %v3569_v56 = vpop.f32.mrf.mxu1  ;;  %v3970_v10 = vpack.c.bf16 %v3957_v58, %v3956_v35  ;;  %v3741_v14 = vpack.c.bf16 %v3729_v15, %v3728_v49  ;;  %v4694_v8 = vsel %vm15327_vm12, %v12843_v51, 0.0 }
 0x36a   :  { %v4124_v38 = vpack.c.bf16 %v4111_v45, %v4110_v9  ;;  %v3599_v12 = vadd.f32 %v3569_v56, %v3453_v24  ;;  %v12898_v20 = vpack.c.bf16 %v4695_v27, %v4694_v8  ;;  %v3285_v24 = vpop.f32.mrf.mxu3  ;;  %v3017_v9 = vadd.f32 %v12673_v17, %v2903_v60  ;;  %v15333_v27 = vld [vmem:[#allocation102_spill] sm:$0xff]  ;;  %v15335_v8 = vld [vmem:[#allocation103_spill] sm:$0xff] }
 0x36b   :  { %7915 = vmatmul.msk.bf16.gmra.mxu0 %vm15330_vm5, %v3970_v10  ;;  %7876 = vmatmul.msk.bf16.gmra.mxu2 %vm15332_vm14, %v3741_v14  ;;  %vm15334_vm15 = vnez %v15333_v27  ;;  %vm15336_vm3 = vnez %v15335_v8  ;;  %v3431_v10 = vpop.f32.mrf.mxu0  ;;  %v2606_v55 = vadd.f32 %v12548_v59, %v12528_v26  ;;  %v15341_v27 = vld [vmem:[#allocation90_spill] sm:$0xff]  ;;  %v15343_v59 = vld [vmem:[#allocation96_spill] sm:$0xff] }
 0x36c   :  { %7935 = vmatmul.msk.bf16.gmra.mxu1 %vm15331_vm8, %v4124_v38  ;;  %v3619_v25 = vadd.f32 %v12717_v30, %v3599_v12  ;;  %v3682_v12 = vsel %vm15334_vm15, %v12870_v40, 0.0  ;;  %v3163_v49 = vadd.f32 %v3136_v21, %v3017_v9  ;;  %v15338_v21 = vld [vmem:[#allocation88_spill] sm:$0xff]  ;;  %vm15342_vm12 = vnez %v15341_v27  ;;  %vm15352_vm15 = vmmov %vm15337_vm13 }
 0x36d   :  { %v3141_v47 = vpop.f32.mrf.mxu2  ;;  %vm15339_vm10 = vnez %v15338_v21  ;;  %vm15344_vm11 = vnez %v15343_v59  ;;  %v3164_v21 = vadd.f32 %v3139_v33, %v12686_v6  ;;  %v15350_v59 = vld [vmem:[#allocation66_spill] sm:$0xff] }
 0x36e   :  { %v12903_v35 = vmax.f32 %v3619_v25, 0.0  ;;  %v3309_v56 = vadd.f32 %v3282_v43, %v3163_v49  ;;  %vm15351_vm14 = vnez %v15350_v59  ;;  %v2611_v59 = vadd.f32 %v12580_v29, %v12558_v5  ;;  %v15366_v29 = vld [vmem:[#allocation114_spill] sm:$0xff] }
 0x370   :  { %v12906_v58 = vld [vmem:[#allocation2 + $0x3f] sm:$0xff]  ;;  %v4247_v45 = vpack.c.bf16 %v12903_v35, %v12861_v41  ;;  %3651 = vst [vmem:[#allocation2 + $0x48] sm:$0xff] %v12903_v35  ;;  %v3455_v19 = vadd.f32 %v3428_v39, %v3309_v56 }
 0x371   :  { %v3683_v32 = vsel %vm15336_vm3, %v12906_v58, 0.0  ;;  %v3572_v15 = vpop.f32.mrf.mxu1  ;;  %v12919_v14 = vld [vmem:[#allocation2 + $0x39] sm:$0xff]  ;;  %v4112_v9 = vsel %vm15031_vm6, %v12906_v58, 0.0  ;;  %vm15349_vm6 = vnez %v14693_v31  ;;  %vm15353_vm3 = vmmov %vm15337_vm13 }
 0x372   :  { %v3695_v54 = vpack.c.bf16 %v3683_v32, %v3682_v12  ;;  %v3600_v17 = vadd.f32 %v3572_v15, %v3454_v42  ;;  %v3958_v43 = vsel %vm15339_vm10, %v12919_v14, 0.0  ;;  %v3287_v42 = vpop.f32.mrf.mxu3  ;;  %v15345_v12 = vld [vmem:[#allocation99_spill] sm:$0xff]  ;;  %v15347_v32 = vld [vmem:[#allocation101_spill] sm:$0xff]  ;;  %v2759_v15 = vadd.f32 %v12563_v1, %v2606_v55 }
 0x373   :  { %vm15346_vm5 = vnez %v15345_v12  ;;  %vm15348_vm8 = vnez %v15347_v32  ;;  %v4696_v27 = vsel %vm15349_vm6, %v12903_v35, 0.0  ;;  %v3310_v55 = vadd.f32 %v3285_v24, %v3164_v21  ;;  %v3433_v33 = vpop.f32.mrf.mxu0 }
 0x374   :  { %v3620_v38 = vadd.f32 %v12717_v30, %v3600_v17  ;;  %v3730_v8 = vsel %vm15346_vm5, %v12903_v35, 0.0  ;;  %v2905_v6 = vadd.f32 %v12556_v50, %v2759_v15  ;;  %v15357_v50 = vld [vmem:[#allocation120_spill] sm:$0xff]  ;;  %v9235_v15 = vld [vmem:[#allocation15 + $0x60] sm:$0xff]  ;;  %v15484_v35 = vld [vmem:[#allocation97_spill] sm:$0xff] }
 0x375   :  { %7896 = vmatmul.msk.bf16.gmra.mxu3 %vm15337_vm13, %v3695_v54  ;;  %vm15354_vm13 = vmmov %vm15353_vm3  ;;  %v3456_v24 = vadd.f32 %v3431_v10, %v3310_v55  ;;  %4308 = vmatpush.bf16.msrb.mxu2 %v9235_v15 }
 0x376   :  { %v12921_v53 = vmax.f32 %v3620_v38, 0.0 }
 0x377   :  { %v12925_v46 = vld [vmem:[#allocation2 + $0x41] sm:$0xff] }
 0x378   :  { %v12930_v25 = vld [vmem:[#allocation2 + $0x47] sm:$0xff]  ;;  %3652 = vst [vmem:[#allocation2 + $0x50] sm:$0xff] %v12921_v53  ;;  %v3959_v26 = vsel %vm15342_vm12, %v12925_v46, 0.0  ;;  %v3731_v49 = vsel %vm15348_vm8, %v12921_v53, 0.0  ;;  %v4697_v12 = vsel %vm15351_vm14, %v12921_v53, 0.0  ;;  %vm15358_vm12 = vnez %v15357_v50 }
 0x379   :  { %v4113_v39 = vsel %vm15344_vm11, %v12930_v25, 0.0  ;;  %v3574_v54 = vpop.f32.mrf.mxu1  ;;  %v3971_v17 = vpack.c.bf16 %v3959_v26, %v3958_v43  ;;  %v3742_v38 = vpack.c.bf16 %v3731_v49, %v3730_v8  ;;  %v12958_v1 = vpack.c.bf16 %v4697_v12, %v4696_v27  ;;  %v3144_v26 = vpop.f32.mrf.mxu2  ;;  %v15355_v8 = vld [vmem:[#allocation119_spill] sm:$0xff]  ;;  %vm15359_vm11 = vmmov %vm15353_vm3 }
 0x37a   :  { %v4125_v56 = vpack.c.bf16 %v4113_v39, %v4112_v9  ;;  %v3601_v60 = vadd.f32 %v3574_v54, %v3455_v19  ;;  %v3019_v19 = vadd.f32 %v12691_v61, %v2905_v6  ;;  %vm15356_vm10 = vnez %v15355_v8  ;;  %v15364_v8 = vld [vmem:[#allocation108_spill] sm:$0xff] }
 0x37b   :  { %7916 = vmatmul.msk.bf16.gmra.mxu0 %vm15352_vm15, %v3971_v17  ;;  %7877 = vmatmul.msk.bf16.gmra.mxu2 %vm15354_vm13, %v3742_v38  ;;  %v3684_v32 = vsel %vm15356_vm10, %v12930_v25, 0.0  ;;  %vm15365_vm6 = vnez %v15364_v8  ;;  %vm15367_vm14 = vnez %v15366_v29  ;;  %v15372_v8 = vld [vmem:[#allocation59_spill] sm:$0xff] }
 0x37c   :  { %7936 = vmatmul.msk.bf16.gmra.mxu1 %vm15353_vm3, %v4125_v56  ;;  %v3621_v43 = vadd.f32 %v12717_v30, %v3601_v60  ;;  %v3165_v54 = vadd.f32 %v3141_v47, %v3019_v19  ;;  %v3290_v56 = vpop.f32.mrf.mxu3  ;;  %v15360_v47 = vld [vmem:[#allocation106_spill] sm:$0xff]  ;;  %vm15373_vm13 = vnez %v15372_v8 }
 0x37d   :  { %vm15361_vm5 = vnez %v15360_v47 }
 0x37e   :  { %v12963_v31 = vmax.f32 %v3621_v43, 0.0  ;;  %v3311_v21 = vadd.f32 %v3287_v42, %v3165_v54  ;;  %v15362_v42 = vld [vmem:[#allocation113_spill] sm:$0xff]  ;;  %v2761_v54 = vadd.f32 %v12595_v3, %v2611_v59 }
 0x37f   :  { %v12966_v9 = vld [vmem:[#allocation2 + $0x4f] sm:$0xff]  ;;  %vm15363_vm8 = vnez %v15362_v42 }
 0x380   :  { %3653 = vst [vmem:[#allocation2 + $0x58] sm:$0xff] %v12963_v31  ;;  %v3685_v49 = vsel %vm15358_vm12, %v12966_v9, 0.0  ;;  %v12979_v60 = vld [vmem:[#allocation2 + $0x49] sm:$0xff]  ;;  %v3457_v12 = vadd.f32 %v3433_v33, %v3311_v21  ;;  %v4114_v19 = vsel %vm15363_vm8, %v12966_v9, 0.0  ;;  %v4698_v29 = vsel %vm15373_vm13, %v12963_v31, 0.0  ;;  %vm15376_vm12 = vmmov %vm15359_vm11 }
 0x381   :  { %v3577_v61 = vpop.f32.mrf.mxu1  ;;  %v3696_v17 = vpack.c.bf16 %v3685_v49, %v3684_v32  ;;  %v3960_v43 = vsel %vm15361_vm5, %v12979_v60, 0.0  ;;  %v15368_v32 = vld [vmem:[#allocation117_spill] sm:$0xff]  ;;  %v15370_v49 = vld [vmem:[#allocation118_spill] sm:$0xff]  ;;  %v3146_v47 = vpop.f32.mrf.mxu2  ;;  %vm15377_vm5 = vmmov %vm15359_vm11 }
 0x382   :  { %v3602_v38 = vadd.f32 %v3577_v61, %v3456_v24  ;;  %v3436_v24 = vpop.f32.mrf.mxu0  ;;  %vm15369_vm15 = vnez %v15368_v32  ;;  %vm15371_vm3 = vnez %v15370_v49  ;;  %v15374_v32 = vld [vmem:[#allocation74_spill] sm:$0xff]  ;;  %v15380_v49 = vld [vmem:[#allocation137_spill] sm:$0xff] }
 0x383   :  { %v3732_v50 = vsel %vm15369_vm15, %v12963_v31, 0.0  ;;  %vm15375_vm10 = vnez %v15374_v32 }
 0x384   :  { %v3622_v10 = vadd.f32 %v12717_v30, %v3602_v38 }
 0x385   :  { %7897 = vmatmul.msk.bf16.gmra.mxu3 %vm15359_vm11, %v3696_v17 }
 0x386   :  { %v12981_v27 = vmax.f32 %v3622_v10, 0.0  ;;  %v3166_v10 = vadd.f32 %v3144_v26, %v12700_v16  ;;  %v2907_v26 = vadd.f32 %v12593_v0, %v2761_v54 }
 0x387   :  { %v12985_v55 = vld [vmem:[#allocation2 + $0x51] sm:$0xff] }
 0x388   :  { %v12990_v6 = vld [vmem:[#allocation2 + $0x57] sm:$0xff]  ;;  %3654 = vst [vmem:[#allocation2 + $0x60] sm:$0xff] %v12981_v27  ;;  %v3961_v5 = vsel %vm15365_vm6, %v12985_v55, 0.0  ;;  %v3733_v15 = vsel %vm15371_vm3, %v12981_v27, 0.0  ;;  %v4699_v39 = vsel %vm15375_vm10, %v12981_v27, 0.0  ;;  %v3312_v59 = vadd.f32 %v3290_v56, %v3166_v10  ;;  %v15378_v56 = vld [vmem:[#allocation136_spill] sm:$0xff] }
 0x389   :  { %v4115_v33 = vsel %vm15367_vm14, %v12990_v6, 0.0  ;;  %v3579_v61 = vpop.f32.mrf.mxu1  ;;  %v3972_v17 = vpack.c.bf16 %v3961_v5, %v3960_v43  ;;  %v3743_v21 = vpack.c.bf16 %v3733_v15, %v3732_v50  ;;  %v13018_v3 = vpack.c.bf16 %v4699_v39, %v4698_v29  ;;  %v3292_v43 = vpop.f32.mrf.mxu3  ;;  %vm15382_vm14 = vmmov %vm15377_vm5 }
 0x38a   :  { %v4126_v38 = vpack.c.bf16 %v4115_v33, %v4114_v19  ;;  %v3603_v42 = vadd.f32 %v3579_v61, %v3457_v12  ;;  %v3021_v19 = vadd.f32 %v12703_v52, %v2907_v26  ;;  %v3458_v39 = vadd.f32 %v3436_v24, %v3312_v59  ;;  %v3438_v52 = vpop.f32.mrf.mxu0  ;;  %v3149_v10 = vpop.f32.mrf.mxu2 }
 0x38b   :  { %7917 = vmatmul.msk.bf16.gmra.mxu0 %vm15376_vm12, %v3972_v17  ;;  %7878 = vmatmul.msk.bf16.gmra.mxu2 %vm15377_vm5, %v3743_v21  ;;  %vm15379_vm8 = vnez %v15378_v56  ;;  %vm15381_vm6 = vnez %v15380_v49  ;;  %v9240_v21 = vld [vmem:[#allocation15 + $0x88] sm:$0xff]  ;;  %v15389_v49 = vld [vmem:[#allocation133_spill] sm:$0xff]  ;;  %vm15397_vm12 = vmmov %vm15377_vm5 }
 0x38c   :  { %7937 = vmatmul.msk.bf16.gmra.mxu1 %vm15359_vm11, %v4126_v38  ;;  %v3623_v16 = vadd.f32 %v12717_v30, %v3603_v42  ;;  %v3686_v50 = vsel %vm15379_vm8, %v12990_v6, 0.0  ;;  %v3167_v15 = vadd.f32 %v3146_v47, %v3021_v19  ;;  %4460 = vmatpush.bf16.msrb.mxu3 %v9240_v21  ;;  %v2616_v47 = vadd.f32 %v12675_v36, %v12588_v2  ;;  %v15387_v2 = vld [vmem:[#allocation130_spill] sm:$0xff]  ;;  %vm15398_vm11 = vmmov %vm15377_vm5 }
 0x38d   :  { %vm15388_vm3 = vnez %v15387_v2  ;;  %vm15390_vm13 = vnez %v15389_v49  ;;  %v15393_v19 = vld [vmem:[#allocation70_spill] sm:$0xff] }
 0x38e   :  { %v13023_v12 = vmax.f32 %v3623_v16, 0.0  ;;  %v3313_v38 = vadd.f32 %v3292_v43, %v3167_v15  ;;  %v15383_v43 = vld [vmem:[#allocation122_spill] sm:$0xff]  ;;  %v15391_v15 = vld [vmem:[#allocation135_spill] sm:$0xff] }
 0x38f   :  { %v13026_v5 = vld [vmem:[#allocation2 + $0x5f] sm:$0xff]  ;;  %vm15384_vm15 = vnez %v15383_v43  ;;  %vm15392_vm10 = vnez %v15391_v15 }
 0x390   :  { %v4249_v33 = vpack.c.bf16 %v13023_v12, %v12981_v27  ;;  %3655 = vst [vmem:[#allocation2 + $0x68] sm:$0xff] %v13023_v12  ;;  %v3687_v0 = vsel %vm15381_vm6, %v13026_v5, 0.0  ;;  %v13039_v42 = vld [vmem:[#allocation2 + $0x59] sm:$0xff]  ;;  %v3459_v32 = vadd.f32 %v3438_v52, %v3313_v38 }
 0x391   :  { %v3582_v54 = vpop.f32.mrf.mxu1  ;;  %v3697_v61 = vpack.c.bf16 %v3687_v0, %v3686_v50  ;;  %v3295_v8 = vpop.f32.mrf.mxu3  ;;  %v3962_v16 = vsel %vm15384_vm15, %v13039_v42, 0.0  ;;  %v3734_v0 = vsel %vm15390_vm13, %v13023_v12, 0.0  ;;  %v15395_v2 = vld [vmem:[#allocation86_spill] sm:$0xff] }
 0x392   :  { %v3604_v17 = vadd.f32 %v3582_v54, %v3458_v39  ;;  %v4116_v39 = vsel %vm15075_vm2, %v13026_v5, 0.0  ;;  %vm15396_vm2 = vnez %v15395_v2 }
 0x394   :  { %v3624_v24 = vadd.f32 %v12717_v30, %v3604_v17 }
 0x395   :  { %7898 = vmatmul.msk.bf16.gmra.mxu3 %vm15382_vm14, %v3697_v61  ;;  %v2763_v61 = vadd.f32 %v12680_v48, %v2616_v47  ;;  %v9239_v48 = vld [vmem:[#allocation15 + $0x80] sm:$0xff]  ;;  %vm15403_vm14 = vmmov %vm15377_vm5 }
 0x396   :  { %v13041_v29 = vmax.f32 %v3624_v24, 0.0  ;;  %v3168_v24 = vadd.f32 %v3149_v10, %v12711_v7  ;;  %v9243_v47 = vld [vmem:[#allocation15 + $0xa0] sm:$0xff]  ;;  %v9246_v10 = vld [vmem:[#allocation15 + $0xb8] sm:$0xff]  ;;  %4461 = vmatpush.bf16.msrb.mxu3 %v9239_v48 }
 0x397   :  { %v13045_v59 = vld [vmem:[#allocation2 + $0x61] sm:$0xff]  ;;  %4614 = vmatpush.bf16.msra.mxu0 %v9243_v47  ;;  %4768 = vmatpush.bf16.msrb.mxu1 %v9246_v10  ;;  %v9242_v48 = vld [vmem:[#allocation15 + $0x98] sm:$0xff]  ;;  %v9245_v47 = vld [vmem:[#allocation15 + $0xb0] sm:$0xff] }
 0x398   :  { %v13050_v26 = vld [vmem:[#allocation2 + $0x67] sm:$0xff]  ;;  %3656 = vst [vmem:[#allocation2 + $0x70] sm:$0xff] %v13041_v29  ;;  %v3963_v50 = vsel %vm15077_vm9, %v13045_v59, 0.0  ;;  %v3735_v54 = vsel %vm15392_vm10, %v13041_v29, 0.0  ;;  %vm15394_vm9 = vnez %v15393_v19  ;;  %v4701_v49 = vsel %vm15396_vm2, %v13041_v29, 0.0 }
 0x399   :  { %v4117_v36 = vsel %vm15388_vm3, %v13050_v26, 0.0  ;;  %v3584_v52 = vpop.f32.mrf.mxu1  ;;  %v3973_v17 = vpack.c.bf16 %v3963_v50, %v3962_v16  ;;  %v3744_v21 = vpack.c.bf16 %v3735_v54, %v3734_v0  ;;  %v4700_v56 = vsel %vm15394_vm9, %v13023_v12, 0.0  ;;  %v3151_v0 = vpop.f32.mrf.mxu2  ;;  %v15508_v12 = vld [vmem:[#allocation89_spill] sm:$0xff] }
 0x39a   :  { %v4127_v38 = vpack.c.bf16 %v4117_v36, %v4116_v39  ;;  %v3605_v43 = vadd.f32 %v3584_v52, %v3459_v32  ;;  %v13078_v16 = vpack.c.bf16 %v4701_v49, %v4700_v56  ;;  %v3441_v39 = vpop.f32.mrf.mxu0  ;;  %v3314_v50 = vadd.f32 %v3295_v8, %v3168_v24  ;;  %v9238_v36 = vld [vmem:[#allocation15 + $0x78] sm:$0xff]  ;;  %v9249_v49 = vld [vmem:[#allocation15 + $0xd0] sm:$0xff] }
 0x39b   :  { %7918 = vmatmul.msk.bf16.gmra.mxu0 %vm15397_vm12, %v3973_v17  ;;  %7879 = vmatmul.msk.bf16.gmra.mxu2 %vm15377_vm5, %v3744_v21  ;;  %v2909_v32 = vadd.f32 %v12689_v22, %v2763_v61  ;;  %v3297_v17 = vpop.f32.mrf.mxu3  ;;  %v15399_v22 = vld [vmem:[#allocation146_spill] sm:$0xff]  ;;  %v15401_v21 = vld [vmem:[#allocation147_spill] sm:$0xff]  ;;  %v15417_v8 = vld [vmem:[#allocation104_spill] sm:$0xff] }
 0x39c   :  { %7938 = vmatmul.msk.bf16.gmra.mxu1 %vm15398_vm11, %v4127_v38  ;;  %v3625_v7 = vadd.f32 %v12717_v30, %v3605_v43  ;;  %v3460_v38 = vadd.f32 %v3441_v39, %v3314_v50  ;;  %vm15400_vm8 = vnez %v15399_v22  ;;  %vm15402_vm6 = vnez %v15401_v21  ;;  %4462 = vmatpush.bf16.msrb.mxu3 %v9238_v36  ;;  %v15404_v36 = vld [vmem:[#allocation138_spill] sm:$0xff]  ;;  %vm15419_vm12 = vmmov %vm15377_vm5 }
 0x39d   :  { %v3023_v54 = vadd.f32 %v12714_v13, %v2909_v32  ;;  %v3688_v61 = vsel %vm15400_vm8, %v13050_v26, 0.0  ;;  %4922 = vmatpush.bf16.msra.mxu2 %v9249_v49  ;;  %4615 = vmatpush.bf16.msra.mxu0 %v9242_v48  ;;  %vm15405_vm15 = vnez %v15404_v36  ;;  %v9241_v49 = vld [vmem:[#allocation15 + $0x90] sm:$0xff]  ;;  %v9244_v36 = vld [vmem:[#allocation15 + $0xa8] sm:$0xff]  ;;  %vm15418_vm2 = vnez %v15417_v8  ;;  %vm15420_vm11 = vmmov %vm15377_vm5 }
 0x39e   :  { %v13083_v15 = vmax.f32 %v3625_v7, 0.0  ;;  %4769 = vmatpush.bf16.msrb.mxu1 %v9245_v47  ;;  %v15421_v8 = vld [vmem:[#allocation155_spill] sm:$0xff] }
 0x39f   :  { %v13086_v52 = vld [vmem:[#allocation2 + $0x6f] sm:$0xff]  ;;  %v3169_v43 = vadd.f32 %v3151_v0, %v3023_v54  ;;  %vm15422_vm8 = vnez %v15421_v8 }
 0x3a0   :  { %3657 = vst [vmem:[#allocation2 + $0x78] sm:$0xff] %v13083_v15  ;;  %v3689_v24 = vsel %vm15402_vm6, %v13086_v52, 0.0  ;;  %v13099_v50 = vld [vmem:[#allocation2 + $0x69] sm:$0xff]  ;;  %v4118_v22 = vsel %vm15094_vm4, %v13086_v52, 0.0 }
 0x3a1   :  { %v3587_v19 = vpop.f32.mrf.mxu1  ;;  %v3698_v13 = vpack.c.bf16 %v3689_v24, %v3688_v61  ;;  %v3315_v2 = vadd.f32 %v3297_v17, %v3169_v43  ;;  %v3964_v54 = vsel %vm15405_vm15, %v13099_v50, 0.0  ;;  %v15407_v61 = vld [vmem:[#allocation139_spill] sm:$0xff]  ;;  %v15409_v24 = vld [vmem:[#allocation145_spill] sm:$0xff]  ;;  %4616 = vmatpush.bf16.msra.mxu0 %v9241_v49 }
 0x3a2   :  { %v3606_v56 = vadd.f32 %v3587_v19, %v3460_v38  ;;  %v3443_v7 = vpop.f32.mrf.mxu0  ;;  %vm15408_vm3 = vnez %v15407_v61  ;;  %vm15410_vm13 = vnez %v15409_v24  ;;  %v15411_v19 = vld [vmem:[#allocation42_spill] sm:$0xff]  ;;  %v15415_v61 = vld [vmem:[#allocation109_spill] sm:$0xff]  ;;  %4770 = vmatpush.bf16.msrb.mxu1 %v9244_v36 }
 0x3a3   :  { %v3461_v32 = vadd.f32 %v3443_v7, %v3315_v2  ;;  %vm15412_vm10 = vnez %v15411_v19  ;;  %vm15416_vm4 = vnez %v15415_v61  ;;  %v15428_v36 = vld [vmem:[#allocation149_spill] sm:$0xff]  ;;  %v15430_v61 = vld [vmem:[#allocation152_spill] sm:$0xff] }
 0x3a4   :  { %v3626_v39 = vadd.f32 %v12717_v30, %v3606_v56  ;;  %v15413_v56 = vld [vmem:[#allocation43_spill] sm:$0xff]  ;;  %v4702_v24 = vsel %vm15416_vm4, %v13083_v15, 0.0  ;;  %vm15435_vm4 = vmmov %vm15377_vm5 }
 0x3a5   :  { %7899 = vmatmul.msk.bf16.gmra.mxu3 %vm15403_vm14, %v3698_v13  ;;  %v3736_v13 = vsel %vm15412_vm10, %v13083_v15, 0.0  ;;  %vm15414_vm9 = vnez %v15413_v56  ;;  %vm15425_vm14 = vmmov %vm15377_vm5 }
 0x3a6   :  { %v13101_v10 = vmax.f32 %v3626_v39, 0.0 }
 0x3a7   :  { %v13103_v0 = vld [vmem:[#allocation2 + $0x71] sm:$0xff] }
 0x3a8   :  { %v13108_v17 = vld [vmem:[#allocation2 + $0x77] sm:$0xff]  ;;  %3658 = vst [vmem:[#allocation2 + $0x80] sm:$0xff] %v13101_v10  ;;  %v3965_v21 = vsel %vm15408_vm3, %v13103_v0, 0.0  ;;  %v3737_v2 = vsel %vm15414_vm9, %v13101_v10, 0.0  ;;  %v4703_v19 = vsel %vm15418_vm2, %v13101_v10, 0.0  ;;  %vm15429_vm3 = vnez %v15428_v36  ;;  %vm15434_vm9 = vmmov %vm15377_vm5  ;;  %v15439_v36 = vld [vmem:[#allocation47_spill] sm:$0xff] }
 0x3a9   :  { %v4119_v43 = vsel %vm15410_vm13, %v13108_v17, 0.0  ;;  %v3589_v48 = vpop.f32.mrf.mxu1  ;;  %v3974_v47 = vpack.c.bf16 %v3965_v21, %v3964_v54  ;;  %v3745_v7 = vpack.c.bf16 %v3737_v2, %v3736_v13  ;;  %v13134_v56 = vpack.c.bf16 %v4703_v19, %v4702_v24  ;;  %v15423_v13 = vld [vmem:[#allocation156_spill] sm:$0xff]  ;;  %v15432_v19 = vld [vmem:[#allocation153_spill] sm:$0xff]  ;;  %vm15437_vm2 = vmmov %vm15435_vm4 }
 0x3aa   :  { %v4128_v39 = vpack.c.bf16 %v4119_v43, %v4118_v22  ;;  %v3607_v38 = vadd.f32 %v3589_v48, %v3461_v32  ;;  %v3690_v43 = vsel %vm15422_vm8, %v13108_v17, 0.0  ;;  %vm15424_vm6 = vnez %v15423_v13  ;;  %vm15446_vm8 = vmmov %vm15437_vm2 }
 0x3ab   :  { %7919 = vmatmul.msk.bf16.gmra.mxu0 %vm15419_vm12, %v3974_v47  ;;  %7880 = vmatmul.msk.bf16.gmra.mxu2 %vm15377_vm5, %v3745_v7  ;;  %vm15431_vm13 = vnez %v15430_v61  ;;  %vm15433_vm10 = vnez %v15432_v19  ;;  %v15436_v13 = vpack.c.bf16 %v12733_v4, %v12721_v37  ;;  %vm15440_vm12 = vnez %v15439_v36 }
 0x3ac   :  { %7939 = vmatmul.msk.bf16.gmra.mxu1 %vm15420_vm11, %v4128_v39  ;;  %v3627_v54 = vadd.f32 %v12717_v30, %v3607_v38  ;;  %v15426_v39 = vld [vmem:[#allocation148_spill] sm:$0xff]  ;;  %v4382_v61 = vsel %vm15440_vm12, %v12750_v34, 0.0  ;;  %vm15441_vm11 = vmmov %vm15437_vm2  ;;  %v15447_v34 = vld [vmem:[#allocation94_spill] sm:$0xff] }
 0x3ad   :  { %vm15427_vm15 = vnez %v15426_v39  ;;  %vm15465_vm12 = vmmov %vm15437_vm2 }
 0x3ae   :  { %v13138_v32 = vmax.f32 %v3627_v54, 0.0 }
 0x3af   :  { %v13140_v22 = vld [vmem:[#allocation2 + $0x7f] sm:$0xff] }
 0x3b0   :  { %v4251_v21 = vpack.c.bf16 %v13138_v32, %v13101_v10  ;;  %3659 = vst [vmem:[#allocation2 + $0x88] sm:$0xff] %v13138_v32  ;;  %v3691_v30 = vsel %vm15424_vm6, %v13140_v22, 0.0  ;;  %v13152_v49 = vld [vmem:[#allocation2 + $0x79] sm:$0xff]  ;;  %v4120_v24 = vsel %vm15431_vm13, %v13140_v22, 0.0  ;;  %vm15448_vm6 = vmmov %vm15437_vm2 }
 0x3b1   :  { %v3699_v2 = vpack.c.bf16 %v3691_v30, %v3690_v43  ;;  %v3966_v7 = vsel %vm15427_vm15, %v13152_v49, 0.0  ;;  %vm15457_vm13 = vmmov %vm15437_vm2 }
 0x3b5   :  { %7900 = vmatmul.msk.bf16.gmra.mxu3 %vm15425_vm14, %v3699_v2  ;;  %v4383_v2 = vsel %vm15124_vm7, %v12801_v28, 0.0  ;;  %vm15451_vm14 = vmmov %vm15437_vm2 }
 0x3b7   :  { %v13154_v48 = vld [vmem:[#allocation2 + $0x81] sm:$0xff]  ;;  %v4535_v10 = vld [vmem:[#allocation2 + $0x8f] sm:$0xff] }
 0x3b8   :  { %v13156_v47 = vld [vmem:[#allocation2 + $0x87] sm:$0xff]  ;;  %v3967_v38 = vsel %vm15429_vm3, %v13154_v48, 0.0 }
 0x3b9   :  { %v4121_v54 = vsel %vm15433_vm10, %v13156_v47, 0.0  ;;  %v3975_v8 = vpack.c.bf16 %v3967_v38, %v3966_v7  ;;  %v4398_v7 = vpack.c.bf16 %v4383_v2, %v4382_v61  ;;  %v15449_v2 = vld [vmem:[#allocation82_spill] sm:$0xff] }
 0x3ba   :  { %v4129_v43 = vpack.c.bf16 %v4121_v54, %v4120_v24  ;;  %v15442_v24 = vld [vmem:[#allocation159_spill] sm:$0xff]  ;;  %v15452_v61 = vld [vmem:[#allocation166_spill] sm:$0xff] }
 0x3bb   :  { %7920 = vmatmul.msk.bf16.gmra.mxu0 %vm15434_vm9, %v3975_v8  ;;  %7953 = vmatmul.msk.bf16.vlgmr.msrb.gmra.mxu2 %vm15437_vm2, %v15436_v13  ;;  %vm15443_vm5 = vnez %v15442_v24  ;;  %vm15453_vm15 = vnez %v15452_v61  ;;  %v9248_v24 = vld [vmem:[#allocation15 + $0xc8] sm:$0xff] }
 0x3bc   :  { %7940 = vmatmul.msk.bf16.gmra.mxu1 %vm15435_vm4, %v4129_v43  ;;  %v4537_v19 = vsel %vm15443_vm5, %v12786_v44, 0.0  ;;  %v15444_v43 = vld [vmem:[#allocation158_spill] sm:$0xff]  ;;  %v15450_v44 = vpack.c.bf16 %v12784_v11, %v15449_v2  ;;  %4923 = vmatpush.bf16.msra.mxu2 %v9248_v24  ;;  %v15460_v61 = vld [vmem:[#allocation163_spill] sm:$0xff]  ;;  %vm15462_vm4 = vmmov %vm15437_vm2 }
 0x3bd   :  { %vm15445_vm7 = vnez %v15444_v43  ;;  %vm15461_vm9 = vnez %v15460_v61 }
 0x3be   :  { %v3805_v39 = vpop.f32.mrf.mxu2  ;;  %v4536_v28 = vsel %vm15445_vm7, %v12754_v23, 0.0  ;;  %vm15471_vm7 = vmmov %vm15437_vm2 }
 0x3bf   :  { %v4552_v30 = vpack.c.bf16 %v4537_v19, %v4536_v28 }
 0x3c5   :  { %7973 = vmatmul.msk.bf16.vlgmr.msrb.gmra.mxu3 %vm15441_vm11, %v4398_v7  ;;  %v4385_v7 = vsel %vm15453_vm15, %v12859_v63, 0.0  ;;  %vm15477_vm15 = vmmov %vm15437_vm2 }
 0x3c6   :  { %v3896_v38 = vpop.f32.mrf.mxu3  ;;  %v3807_v37 = vpop.f32.mrf.mxu2 }
 0x3c7   :  { %v3897_v4 = vadd.f32 %v3896_v38, %v3805_v39 }
 0x3c8   :  { %v4034_v54 = vpop.f32.mrf.mxu0 }
 0x3c9   :  { %v4188_v8 = vpop.f32.mrf.mxu1  ;;  %v4074_v13 = vadd.f32 %v4034_v54, %v3897_v4  ;;  %v15454_v54 = vld [vmem:[#allocation98_spill] sm:$0xff] }
 0x3cb   :  { %v13189_v36 = vadd.f32 %v4188_v8, %v4074_v13  ;;  %7993 = vmatmul.msk.bf16.vlgmr.msra.gmra.mxu0 %vm15446_vm8, %v4552_v30  ;;  %7954 = vmatmul.msk.bf16.gmra.mxu2 %vm15451_vm14, %v15450_v44  ;;  %v15455_v8 = vld [vmem:[#allocation165_spill] sm:$0xff]  ;;  %vm15476_vm14 = vmmov %vm15437_vm2 }
 0x3cc   :  { %8013 = vmatmul.msk.bf16.vlgmr.msrb.gmra.mxu1 %vm15448_vm6, %v15447_v34  ;;  %vm15456_vm3 = vnez %v15455_v8  ;;  %v15458_v34 = vld [vmem:[#allocation164_spill] sm:$0xff] }
 0x3cd   :  { %v4384_v43 = vsel %vm15456_vm3, %v15454_v54, 0.0  ;;  %vm15459_vm10 = vnez %v15458_v34  ;;  %v4538_v54 = vsel %vm15461_vm9, %v12810_v18, 0.0  ;;  %v15469_v34 = vld [vmem:[#allocation51_spill] sm:$0xff]  ;;  %vm15478_vm3 = vmmov %vm15437_vm2 }
 0x3ce   :  { %v3898_v39 = vpop.f32.mrf.mxu3  ;;  %v3810_v38 = vpop.f32.mrf.mxu2  ;;  %v4399_v13 = vpack.c.bf16 %v4385_v7, %v4384_v43  ;;  %v4539_v63 = vsel %vm15459_vm10, %v12845_v57, 0.0  ;;  %vm15470_vm5 = vnez %v15469_v34  ;;  %v15481_v34 = vld [vmem:[#allocation67_spill] sm:$0xff]  ;;  %vm15483_vm9 = vmmov %vm15437_vm2 }
 0x3cf   :  { %v3899_v23 = vadd.f32 %v3898_v39, %v3807_v37  ;;  %v4553_v7 = vpack.c.bf16 %v4539_v63, %v4538_v54  ;;  %vm15482_vm10 = vnez %v15481_v34 }
 0x3d0   :  { %v4036_v19 = vpop.f32.mrf.mxu0 }
 0x3d1   :  { %v4190_v4 = vpop.f32.mrf.mxu1  ;;  %v4075_v28 = vadd.f32 %v4036_v19, %v3899_v23  ;;  %v15463_v19 = vld [vmem:[#allocation93_spill] sm:$0xff] }
 0x3d2   :  { %v15464_v57 = vpack.c.bf16 %v12843_v51, %v15463_v19  ;;  %v15474_v19 = vld [vmem:[#allocation72_spill] sm:$0xff] }
 0x3d3   :  { %v13204_v11 = vadd.f32 %v4190_v4, %v4075_v28  ;;  %v15466_v4 = vld [vmem:[#allocation57_spill] sm:$0xff]  ;;  %vm15475_vm6 = vnez %v15474_v19 }
 0x3d4   :  { %vm15467_vm11 = vnez %v15466_v4 }
 0x3d5   :  { %7974 = vmatmul.msk.bf16.gmra.mxu3 %vm15457_vm13, %v4399_v13  ;;  %v4387_v8 = vsel %vm15467_vm11, %v12919_v14, 0.0  ;;  %vm15489_vm11 = vmmov %vm15478_vm3 }
 0x3d6   :  { %v3812_v2 = vpop.f32.mrf.mxu2 }
 0x3d7   :  { %v3901_v30 = vpop.f32.mrf.mxu3 }
 0x3d8   :  { %v3902_v37 = vadd.f32 %v3901_v30, %v3810_v38  ;;  %v4039_v44 = vpop.f32.mrf.mxu0  ;;  %v15468_v30 = vld [vmem:[#allocation125_spill] sm:$0xff] }
 0x3d9   :  { %v4193_v39 = vpop.f32.mrf.mxu1  ;;  %v4386_v63 = vsel %vm15470_vm5, %v15468_v30, 0.0  ;;  %vm15491_vm5 = vmmov %vm15478_vm3 }
 0x3da   :  { %v4076_v23 = vadd.f32 %v4039_v44, %v3902_v37 }
 0x3db   :  { %7994 = vmatmul.msk.bf16.gmra.mxu0 %vm15462_vm4, %v4553_v7  ;;  %7955 = vmatmul.msk.bf16.gmra.mxu2 %vm15465_vm12, %v15464_v57  ;;  %v4540_v57 = vsel %vm15475_vm6, %v12870_v40, 0.0  ;;  %vm15485_vm4 = vnez %v15484_v35  ;;  %vm15488_vm12 = vmmov %vm15478_vm3 }
 0x3dc   :  { %v13213_v24 = vadd.f32 %v4193_v39, %v4076_v23  ;;  %8014 = vmatmul.msk.bf16.gmra.mxu1 %vm15437_vm2, %v12838_v62  ;;  %v4400_v62 = vpack.c.bf16 %v4387_v8, %v4386_v63  ;;  %v15472_v39 = vld [vmem:[#allocation65_spill] sm:$0xff]  ;;  %v4388_v63 = vsel %vm15482_vm10, %v12925_v46, 0.0  ;;  %vm15496_vm6 = vmmov %vm15478_vm3 }
 0x3dd   :  { %vm15473_vm8 = vnez %v15472_v39  ;;  %vm15502_vm10 = vmmov %vm15478_vm3 }
 0x3de   :  { %v3815_v43 = vpop.f32.mrf.mxu2  ;;  %v4541_v61 = vsel %vm15473_vm8, %v12906_v58, 0.0 }
 0x3df   :  { %v3903_v38 = vpop.f32.mrf.mxu3  ;;  %v4554_v4 = vpack.c.bf16 %v4541_v61, %v4540_v57 }
 0x3e0   :  { %v3904_v18 = vadd.f32 %v3903_v38, %v3812_v2  ;;  %v4041_v28 = vpop.f32.mrf.mxu0 }
 0x3e1   :  { %v4195_v13 = vpop.f32.mrf.mxu1 }
 0x3e2   :  { %v4077_v37 = vadd.f32 %v4041_v28, %v3904_v18  ;;  %v15479_v18 = vld [vmem:[#allocation69_spill] sm:$0xff] }
 0x3e3   :  { %vm15480_vm13 = vnez %v15479_v18 }
 0x3e4   :  { %v13228_v44 = vadd.f32 %v4195_v13, %v4077_v37 }
 0x3e5   :  { %7975 = vmatmul.msk.bf16.gmra.mxu3 %vm15471_vm7, %v4400_v62 }
 0x3e6   :  { %v3817_v2 = vpop.f32.mrf.mxu2 }
 0x3e8   :  { %v3906_v51 = vpop.f32.mrf.mxu3  ;;  %v4044_v23 = vpop.f32.mrf.mxu0 }
 0x3e9   :  { %v3907_v54 = vadd.f32 %v3906_v51, %v3815_v43  ;;  %v4198_v7 = vpop.f32.mrf.mxu1  ;;  %v4389_v43 = vsel %vm15480_vm13, %v12979_v60, 0.0  ;;  %vm15501_vm13 = vmmov %vm15478_vm3 }
 0x3eb   :  { %v4078_v38 = vadd.f32 %v4044_v23, %v3907_v54  ;;  %7995 = vmatmul.msk.bf16.gmra.mxu0 %vm15476_vm14, %v4554_v4  ;;  %7956 = vmatmul.msk.bf16.gmra.mxu2 %vm15478_vm3, %v4247_v45  ;;  %v4543_v45 = vsel %vm15485_vm4, %v12966_v9, 0.0  ;;  %v15490_v9 = vpack.c.bf16 %v12963_v31, %v12921_v53  ;;  %v15497_v31 = vld [vmem:[#allocation73_spill] sm:$0xff] }
 0x3ec   :  { %8015 = vmatmul.msk.bf16.gmra.mxu1 %vm15477_vm15, %v12898_v20  ;;  %v4401_v20 = vpack.c.bf16 %v4389_v43, %v4388_v63  ;;  %vm15498_vm14 = vnez %v15497_v31 }
 0x3ed   :  { %v13237_v8 = vadd.f32 %v4198_v7, %v4078_v38  ;;  %v9247_v38 = vld [vmem:[#allocation15 + $0xc0] sm:$0xff] }
 0x3ee   :  { %v3820_v28 = vpop.f32.mrf.mxu2  ;;  %4924 = vmatpush.bf16.msra.mxu2 %v9247_v38 }
 0x3f0   :  { %v3908_v58 = vpop.f32.mrf.mxu3  ;;  %v4046_v13 = vpop.f32.mrf.mxu0 }
 0x3f1   :  { %v3909_v40 = vadd.f32 %v3908_v58, %v3817_v2  ;;  %v4200_v30 = vpop.f32.mrf.mxu1  ;;  %v15486_v2 = vld [vmem:[#allocation78_spill] sm:$0xff]  ;;  %v15492_v58 = vld [vmem:[#allocation85_spill] sm:$0xff] }
 0x3f2   :  { %vm15487_vm2 = vnez %v15486_v2  ;;  %vm15493_vm7 = vnez %v15492_v58 }
 0x3f3   :  { %v4079_v37 = vadd.f32 %v4046_v13, %v3909_v40  ;;  %v4542_v23 = vsel %vm15487_vm2, %v12930_v25, 0.0  ;;  %v4391_v25 = vsel %vm15493_vm7, %v13039_v42, 0.0  ;;  %v15494_v13 = vld [vmem:[#allocation91_spill] sm:$0xff]  ;;  %vm15507_vm2 = vmmov %vm15478_vm3 }
 0x3f4   :  { %v4555_v19 = vpack.c.bf16 %v4543_v45, %v4542_v23  ;;  %vm15495_vm8 = vnez %v15494_v13  ;;  %v15503_v23 = vld [vmem:[#allocation92_spill] sm:$0xff]  ;;  %vm15513_vm7 = vmmov %vm15507_vm2 }
 0x3f5   :  { %v13252_v62 = vadd.f32 %v4200_v30, %v4079_v37  ;;  %7976 = vmatmul.msk.bf16.gmra.mxu3 %vm15483_vm9, %v4401_v20  ;;  %v4545_v37 = vsel %vm15498_vm14, %v13026_v5, 0.0  ;;  %vm15504_vm9 = vnez %v15503_v23  ;;  %v4549_v23 = vsel %vm15207_vm1, %v13140_v22, 0.0  ;;  %vm15526_vm1 = vmmov %vm15507_vm2 }
 0x3f6   :  { %v3822_v39 = vpop.f32.mrf.mxu2 }
 0x3f8   :  { %v3911_v41 = vpop.f32.mrf.mxu3  ;;  %v4049_v61 = vpop.f32.mrf.mxu0 }
 0x3f9   :  { %v3912_v51 = vadd.f32 %v3911_v41, %v3820_v28  ;;  %v4203_v54 = vpop.f32.mrf.mxu1 }
 0x3fb   :  { %v4080_v7 = vadd.f32 %v4049_v61, %v3912_v51  ;;  %7996 = vmatmul.msk.bf16.gmra.mxu0 %vm15488_vm12, %v4555_v19  ;;  %7957 = vmatmul.msk.bf16.gmra.mxu2 %vm15491_vm5, %v15490_v9  ;;  %v15499_v51 = vld [vmem:[#allocation75_spill] sm:$0xff]  ;;  %vm15509_vm12 = vnez %v15508_v12  ;;  %vm15512_vm5 = vmmov %vm15507_vm2 }
 0x3fc   :  { %8016 = vmatmul.msk.bf16.gmra.mxu1 %vm15489_vm11, %v12958_v1  ;;  %v4390_v1 = vsel %vm15495_vm8, %v12985_v55, 0.0  ;;  %vm15500_vm15 = vnez %v15499_v51  ;;  %vm15515_vm8 = vmmov %vm15507_vm2 }
 0x3fd   :  { %v13261_v57 = vadd.f32 %v4203_v54, %v4080_v7  ;;  %v4402_v34 = vpack.c.bf16 %v4391_v25, %v4390_v1  ;;  %v4393_v7 = vsel %vm15504_vm9, %v13099_v50, 0.0  ;;  %v15510_v1 = vld [vmem:[#allocation87_spill] sm:$0xff] }
 0x3fe   :  { %v3825_v43 = vpop.f32.mrf.mxu2  ;;  %vm15511_vm11 = vnez %v15510_v1 }
 0x400   :  { %v3913_v4 = vpop.f32.mrf.mxu3  ;;  %v4051_v40 = vpop.f32.mrf.mxu0 }
 0x401   :  { %v3914_v18 = vadd.f32 %v3913_v4, %v3822_v39  ;;  %v4205_v28 = vpop.f32.mrf.mxu1  ;;  %v4544_v39 = vsel %vm15500_vm15, %v12990_v6, 0.0  ;;  %v15505_v4 = vld [vmem:[#allocation81_spill] sm:$0xff]  ;;  %vm15520_vm15 = vmmov %vm15507_vm2 }
 0x402   :  { %v4556_v54 = vpack.c.bf16 %v4545_v37, %v4544_v39  ;;  %vm15506_vm4 = vnez %v15505_v4  ;;  %v15518_v39 = vld [vmem:[#allocation110_spill] sm:$0xff] }
 0x403   :  { %v4081_v30 = vadd.f32 %v4051_v40, %v3914_v18  ;;  %v4392_v58 = vsel %vm15506_vm4, %v13045_v59, 0.0  ;;  %vm15519_vm14 = vnez %v15518_v39  ;;  %vm15530_vm4 = vmmov %vm15526_vm1 }
 0x405   :  { %v13276_v63 = vadd.f32 %v4205_v28, %v4081_v30  ;;  %7977 = vmatmul.msk.bf16.gmra.mxu3 %vm15496_vm6, %v4402_v34  ;;  %v4546_v30 = vsel %vm15511_vm11, %v13050_v26, 0.0 }
 0x406   :  { %v3827_v41 = vpop.f32.mrf.mxu2 }
 0x408   :  { %v3916_v53 = vpop.f32.mrf.mxu3  ;;  %v4054_v35 = vpop.f32.mrf.mxu0 }
 0x409   :  { %v3917_v20 = vadd.f32 %v3916_v53, %v3825_v43  ;;  %v4208_v45 = vpop.f32.mrf.mxu1 }
 0x40b   :  { %v4082_v61 = vadd.f32 %v4054_v35, %v3917_v20  ;;  %7997 = vmatmul.msk.bf16.gmra.mxu0 %vm15478_vm3, %v4556_v54  ;;  %7958 = vmatmul.msk.bf16.gmra.mxu2 %vm15502_vm10, %v4249_v33  ;;  %v4547_v33 = vsel %vm15509_vm12, %v13086_v52, 0.0  ;;  %v15514_v52 = vpack.c.bf16 %v13083_v15, %v13041_v29  ;;  %v15516_v20 = vld [vmem:[#allocation121_spill] sm:$0xff]  ;;  %vm15525_vm10 = vmmov %vm15507_vm2 }
 0x40c   :  { %8017 = vmatmul.msk.bf16.gmra.mxu1 %vm15501_vm13, %v13018_v3  ;;  %v4403_v3 = vpack.c.bf16 %v4393_v7, %v4392_v58  ;;  %v4557_v53 = vpack.c.bf16 %v4547_v33, %v4546_v30  ;;  %vm15517_vm6 = vnez %v15516_v20  ;;  %vm15524_vm13 = vmmov %vm15507_vm2  ;;  %v15528_v33 = vld [vmem:[#allocation131_spill] sm:$0xff]  ;;  %v15533_v20 = vld [vmem:[#allocation116_spill] sm:$0xff] }
 0x40d   :  { %v13285_v2 = vadd.f32 %v4208_v45, %v4082_v61  ;;  %v4394_v61 = vsel %vm15519_vm14, %v13103_v0, 0.0  ;;  %vm15529_vm9 = vnez %v15528_v33  ;;  %vm15545_vm14 = vmmov %vm15526_vm1 }
 0x40e   :  { %v3830_v19 = vpop.f32.mrf.mxu2 }
 0x410   :  { %v3918_v5 = vpop.f32.mrf.mxu3  ;;  %v4056_v38 = vpop.f32.mrf.mxu0 }
 0x411   :  { %v3919_v6 = vadd.f32 %v3918_v5, %v3827_v41  ;;  %v4210_v9 = vpop.f32.mrf.mxu1  ;;  %v4395_v41 = vsel %vm15517_vm6, %v13152_v49, 0.0  ;;  %vm15544_vm6 = vmmov %vm15526_vm1 }
 0x413   :  { %v4083_v25 = vadd.f32 %v4056_v38, %v3919_v6 }
 0x415   :  { %v13300_v18 = vadd.f32 %v4210_v9, %v4083_v25  ;;  %7978 = vmatmul.msk.bf16.gmra.mxu3 %vm15507_vm2, %v4403_v3  ;;  %v15522_v9 = vld [vmem:[#allocation105_spill] sm:$0xff]  ;;  %vm15534_vm2 = vnez %v15533_v20 }
 0x416   :  { %v3832_v40 = vpop.f32.mrf.mxu2  ;;  %vm15523_vm3 = vnez %v15522_v9 }
 0x417   :  { %v4548_v4 = vsel %vm15523_vm3, %v13108_v17, 0.0  ;;  %v4396_v17 = vsel %vm15215_vm0, %v13154_v48, 0.0 }
 0x418   :  { %v3921_v27 = vpop.f32.mrf.mxu3  ;;  %v4059_v28 = vpop.f32.mrf.mxu0  ;;  %v4558_v25 = vpack.c.bf16 %v4549_v23, %v4548_v4 }
 0x419   :  { %v3922_v43 = vadd.f32 %v3921_v27, %v3830_v19  ;;  %v4213_v13 = vpop.f32.mrf.mxu1  ;;  %v13338_v27 = vld [vmem:[#allocation2 + $0x89] sm:$0xff] }
 0x41b   :  { %v4084_v34 = vadd.f32 %v4059_v28, %v3922_v43  ;;  %7998 = vmatmul.msk.bf16.gmra.mxu0 %vm15512_vm5, %v4557_v53  ;;  %7959 = vmatmul.msk.bf16.gmra.mxu2 %vm15515_vm8, %v15514_v52  ;;  %v4397_v43 = vsel %vm15529_vm9, %v13338_v27, 0.0  ;;  %v15531_v52 = vld [vmem:[#allocation127_spill] sm:$0xff]  ;;  %vm15543_vm8 = vmmov %vm15526_vm1 }
 0x41c   :  { %8018 = vmatmul.msk.bf16.gmra.mxu1 %vm15513_vm7, %v13078_v16  ;;  %v4404_v16 = vpack.c.bf16 %v4395_v41, %v4394_v61  ;;  %v4405_v30 = vpack.c.bf16 %v4397_v43, %v4396_v17  ;;  %vm15532_vm0 = vnez %v15531_v52  ;;  %v4551_v41 = vsel %vm15534_vm2, %v4535_v10, 0.0  ;;  %v4828_v61 = vld [vmem:[#allocation2 + $0x19] sm:$0xff]  ;;  %vm15555_vm9 = vmmov %vm15530_vm4 }
 0x41d   :  { %v13309_v31 = vadd.f32 %v4213_v13, %v4084_v34  ;;  %vm15560_vm2 = vmmov %vm15544_vm6 }
 0x41e   :  { %v3835_v35 = vpop.f32.mrf.mxu2 }
 0x420   :  { %v3923_v37 = vpop.f32.mrf.mxu3  ;;  %v4061_v45 = vpop.f32.mrf.mxu0 }
 0x421   :  { %v3924_v26 = vadd.f32 %v3923_v37, %v3832_v40  ;;  %v4215_v51 = vpop.f32.mrf.mxu1  ;;  %v4550_v37 = vsel %vm15532_vm0, %v13156_v47, 0.0 }
 0x423   :  { %v4085_v54 = vadd.f32 %v4061_v45, %v3924_v26  ;;  %v15535_v26 = vld [vmem:[#allocation123_spill] sm:$0xff] }
 0x424   :  { %vm15536_vm12 = vnez %v15535_v26  ;;  %v13361_v45 = vld [vmem:[#allocation2 + $0x8] sm:$0xff] }
 0x425   :  { %v13324_v5 = vadd.f32 %v4215_v51, %v4085_v54  ;;  %7979 = vmatmul.msk.bf16.gmra.mxu3 %vm15520_vm15, %v4404_v16  ;;  %v15537_v51 = vld [vmem:[#allocation115_spill] sm:$0xff] }
 0x426   :  { %v3837_v6 = vpop.f32.mrf.mxu2  ;;  %vm15538_vm11 = vnez %v15537_v51 }
 0x427   :  { %v4705_v39 = vsel %vm15538_vm11, %v13361_v45, 0.0 }
 0x428   :  { %v3926_v29 = vpop.f32.mrf.mxu3  ;;  %v4064_v19 = vpop.f32.mrf.mxu0 }
 0x429   :  { %v3927_v7 = vadd.f32 %v3926_v29, %v3835_v35  ;;  %v4218_v38 = vpop.f32.mrf.mxu1  ;;  %v4704_v35 = vsel %vm15536_vm12, %v13138_v32, 0.0  ;;  %v15539_v29 = vld [vmem:[#allocation100_spill] sm:$0xff] }
 0x42a   :  { %vm15540_vm5 = vnez %v15539_v29 }
 0x42b   :  { %v4086_v58 = vadd.f32 %v4064_v19, %v3927_v7  ;;  %7999 = vmatmul.msk.bf16.gmra.mxu0 %vm15524_vm13, %v4558_v25  ;;  %7960 = vmatmul.msk.bf16.gmra.mxu2 %vm15526_vm1, %v4251_v21  ;;  %v4829_v21 = vld [vmem:[#allocation2 + $0x21] sm:$0xff]  ;;  %v4713_v19 = vpack.c.bf16 %v4705_v39, %v4704_v35  ;;  %vm15550_vm13 = vmmov %vm15526_vm1 }
 0x42c   :  { %8019 = vmatmul.msk.bf16.gmra.mxu1 %vm15525_vm10, %v13134_v56  ;;  %v4845_v15 = vsel %vm15540_vm5, %v4829_v21, 0.0  ;;  %v15548_v21 = vld [vmem:[#allocation128_spill] sm:$0xff]  ;;  %vm15565_vm5 = vmmov %vm15560_vm2 }
 0x42d   :  { %v13333_v3 = vadd.f32 %v4218_v38, %v4086_v58  ;;  %v15541_v38 = vld [vmem:[#allocation111_spill] sm:$0xff]  ;;  %vm15549_vm3 = vnez %v15548_v21 }
 0x42e   :  { %v3840_v28 = vpop.f32.mrf.mxu2  ;;  %vm15542_vm7 = vnez %v15541_v38 }
 0x42f   :  { %v4844_v32 = vsel %vm15542_vm7, %v4828_v61, 0.0 }
 0x430   :  { %v3928_v22 = vpop.f32.mrf.mxu3  ;;  %v4066_v13 = vpop.f32.mrf.mxu0  ;;  %v4860_v9 = vpack.c.bf16 %v4845_v15, %v4844_v32 }
 0x431   :  { %v3929_v40 = vadd.f32 %v3928_v22, %v3837_v6  ;;  %v4220_v56 = vpop.f32.mrf.mxu1  ;;  %v4559_v6 = vpack.c.bf16 %v4551_v41, %v4550_v37  ;;  %v15551_v41 = vld [vmem:[#allocation39_spill] sm:$0xff] }
 0x432   :  { %vm15552_vm10 = vnez %v15551_v41 }
 0x433   :  { %v4087_v1 = vadd.f32 %v4066_v13, %v3929_v40  ;;  %v4830_v13 = vld [vmem:[#allocation2 + $0x29] sm:$0xff]  ;;  %v4849_v26 = vsel %vm15552_vm10, %v12925_v46, 0.0 }
 0x435   :  { %v13350_v34 = vadd.f32 %v4220_v56, %v4087_v1  ;;  %7980 = vmatmul.msk.bf16.gmra.mxu3 %vm15530_vm4, %v4405_v30  ;;  %v15546_v1 = vld [vmem:[#allocation126_spill] sm:$0xff] }
 0x436   :  { %v3842_v16 = vpop.f32.mrf.mxu2  ;;  %vm15547_vm15 = vnez %v15546_v1 }
 0x438   :  { %v3931_v53 = vpop.f32.mrf.mxu3  ;;  %v4069_v47 = vpop.f32.mrf.mxu0 }
 0x439   :  { %v3932_v54 = vadd.f32 %v3931_v53, %v3840_v28  ;;  %v4223_v23 = vpop.f32.mrf.mxu1  ;;  %v4831_v28 = vld [vmem:[#allocation2 + $0x31] sm:$0xff]  ;;  %v4846_v53 = vsel %vm15549_vm3, %v4830_v13, 0.0  ;;  %v15573_v13 = vld [vmem:[#allocation150_spill] sm:$0xff]  ;;  %vm15575_vm3 = vmmov %vm15560_vm2 }
 0x43a   :  { %v4847_v30 = vsel %vm15547_vm15, %v4831_v28, 0.0  ;;  %vm15574_vm15 = vnez %v15573_v13 }
 0x43b   :  { %v4088_v7 = vadd.f32 %v4069_v47, %v3932_v54  ;;  %8000 = vmatmul.msk.bf16.gmra.mxu0 %vm15543_vm8, %v4559_v6  ;;  %8033 = vmatmul.msk.bf16.vlgmr.msra.gmra.mxu2 %vm15545_vm14, %v4860_v9  ;;  %v4861_v52 = vpack.c.bf16 %v4847_v30, %v4846_v53  ;;  %v15566_v9 = vld [vmem:[#allocation151_spill] sm:$0xff] }
 0x43c   :  { %8020 = vmatmul.msk.bf16.gmra.mxu1 %vm15544_vm6, %v4713_v19  ;;  %vm15567_vm7 = vnez %v15566_v9  ;;  %vm15570_vm6 = vmmov %vm15560_vm2 }
 0x43d   :  { %v13370_v4 = vadd.f32 %v4223_v23, %v4088_v7  ;;  %v15561_v7 = vld [vmem:[#allocation143_spill] sm:$0xff] }
 0x43e   :  { %v4310_v22 = vpop.f32.mrf.mxu2  ;;  %vm15562_vm12 = vnez %v15561_v7 }
 0x43f   :  { %v13376_v17 = vadd.f32 %v4310_v22, %v13189_v36  ;;  %v4853_v6 = vsel %vm15562_vm12, %v13045_v59, 0.0 }
 0x440   :  { %v3933_v58 = vpop.f32.mrf.mxu3  ;;  %v4071_v12 = vpop.f32.mrf.mxu0 }
 0x441   :  { %v3934_v25 = vadd.f32 %v3933_v58, %v3842_v16  ;;  %v4225_v43 = vpop.f32.mrf.mxu1  ;;  %v15556_v16 = vld [vmem:[#allocation142_spill] sm:$0xff]  ;;  %v4855_v58 = vsel %vm15567_vm7, %v13103_v0, 0.0 }
 0x442   :  { %vm15557_vm4 = vnez %v15556_v16 }
 0x443   :  { %v4089_v33 = vadd.f32 %v4071_v12, %v3934_v25  ;;  %v4851_v29 = vsel %vm15557_vm4, %v12985_v55, 0.0 }
 0x445   :  { %v13378_v40 = vadd.f32 %v4225_v43, %v4089_v33  ;;  %v15571_v43 = vld [vmem:[#allocation61_spill] sm:$0xff] }
 0x446   :  { %v4312_v56 = vpop.f32.mrf.mxu2  ;;  %vm15572_vm14 = vnez %v15571_v43 }
 0x447   :  { %v13383_v10 = vadd.f32 %v4312_v56, %v13204_v11  ;;  %v15553_v11 = vld [vmem:[#allocation38_spill] sm:$0xff]  ;;  %v4857_v0 = vsel %vm15572_vm14, %v13154_v48, 0.0 }
 0x448   :  { %vm15554_vm1 = vnez %v15553_v11  ;;  %v4618_v28 = vpop.f32.mrf.mxu0 }
 0x449   :  { %v4848_v51 = vsel %vm15554_vm1, %v12919_v14, 0.0  ;;  %v4772_v1 = vpop.f32.mrf.mxu1  ;;  %vm15580_vm1 = vmmov %vm15560_vm2 }
 0x44a   :  { %v4862_v39 = vpack.c.bf16 %v4849_v26, %v4848_v51 }
 0x44b   :  { %8034 = vmatmul.msk.bf16.gmra.mxu2 %vm15550_vm13, %v4861_v52  ;;  %v13456_v52 = vld [vmem:[#allocation2 + $0x91] sm:$0xff] }
 0x44e   :  { %v4315_v36 = vpop.f32.mrf.mxu2 }
 0x44f   :  { %v13389_v37 = vadd.f32 %v4315_v36, %v13213_v24 }
 0x450   :  { %v4620_v53 = vpop.f32.mrf.mxu0 }
 0x451   :  { %v4774_v41 = vpop.f32.mrf.mxu1 }
 0x456   :  { %v4317_v20 = vpop.f32.mrf.mxu2 }
 0x457   :  { %v13395_v35 = vadd.f32 %v4317_v20, %v13228_v44  ;;  %v15558_v44 = vld [vmem:[#allocation132_spill] sm:$0xff]  ;;  %v15578_v20 = vld [vmem:[#allocation170_spill] sm:$0xff] }
 0x458   :  { %vm15559_vm0 = vnez %v15558_v44  ;;  %vm15579_vm10 = vnez %v15578_v20 }
 0x459   :  { %v4850_v15 = vsel %vm15559_vm0, %v12979_v60, 0.0 }
 0x45a   :  { %v4863_v14 = vpack.c.bf16 %v4851_v29, %v4850_v15 }
 0x45b   :  { %8035 = vmatmul.msk.bf16.gmra.mxu2 %vm15555_vm9, %v4862_v39 }
 0x45e   :  { %v4320_v61 = vpop.f32.mrf.mxu2 }
 0x45f   :  { %v13402_v54 = vadd.f32 %v4320_v61, %v13237_v8 }
 0x466   :  { %v4322_v24 = vpop.f32.mrf.mxu2 }
 0x467   :  { %v13408_v46 = vadd.f32 %v4322_v24, %v13252_v62  ;;  %v15563_v62 = vld [vmem:[#allocation134_spill] sm:$0xff]  ;;  %v4777_v24 = vpop.f32.mrf.mxu1 }
 0x468   :  { %vm15564_vm11 = vnez %v15563_v62 }
 0x469   :  { %v4852_v19 = vsel %vm15564_vm11, %v13039_v42, 0.0 }
 0x46a   :  { %v4864_v60 = vpack.c.bf16 %v4853_v6, %v4852_v19  ;;  %v13476_v6 = vld [vmem:[#allocation16] ss:$0 sm:$0xff] }
 0x46b   :  { %8036 = vmatmul.msk.bf16.gmra.mxu2 %vm15560_vm2, %v4863_v14 }
 0x46e   :  { %v4325_v47 = vpop.f32.mrf.mxu2 }
 0x46f   :  { %v13415_v23 = vadd.f32 %v4325_v47, %v13261_v57  ;;  %v4779_v14 = vpop.f32.mrf.mxu1 }
 0x476   :  { %v4327_v8 = vpop.f32.mrf.mxu2 }
 0x477   :  { %v13421_v55 = vadd.f32 %v4327_v8, %v13276_v63  ;;  %v15568_v63 = vld [vmem:[#allocation141_spill] sm:$0xff] }
 0x478   :  { %vm15569_vm8 = vnez %v15568_v63 }
 0x479   :  { %v4854_v25 = vsel %vm15569_vm8, %v13099_v50, 0.0  ;;  %v4856_v50 = vsel %vm15574_vm15, %v13152_v49, 0.0  ;;  %v4859_v49 = vsel %vm15579_vm10, %v13456_v52, 0.0 }
 0x47a   :  { %v4865_v42 = vpack.c.bf16 %v4855_v58, %v4854_v25  ;;  %v4866_v56 = vpack.c.bf16 %v4857_v0, %v4856_v50 }
 0x47b   :  { %8037 = vmatmul.msk.bf16.gmra.mxu2 %vm15565_vm5, %v4864_v60 }
 0x47e   :  { %v4330_v38 = vpop.f32.mrf.mxu2 }
 0x47f   :  { %v13428_v32 = vadd.f32 %v4330_v38, %v13285_v2  ;;  %v4464_v2 = vpop.f32.mrf.mxu3 }
 0x486   :  { %v4332_v57 = vpop.f32.mrf.mxu2 }
 0x487   :  { %v13434_v59 = vadd.f32 %v4332_v57, %v13300_v18 }
 0x48b   :  { %8038 = vmatmul.msk.bf16.gmra.mxu2 %vm15570_vm6, %v4865_v42 }
 0x48e   :  { %v4335_v22 = vpop.f32.mrf.mxu2 }
 0x48f   :  { %v13441_v12 = vadd.f32 %v4335_v22, %v13309_v31  ;;  %v4466_v31 = vpop.f32.mrf.mxu3 }
 0x490   :  { %v4505_v7 = vadd.f32 %v4466_v31, %v13383_v10 }
 0x492   :  { %v4659_v60 = vadd.f32 %v4620_v53, %v4505_v7 }
 0x494   :  { %v4813_v57 = vadd.f32 %v4774_v41, %v4659_v60 }
 0x496   :  { %v4337_v33 = vpop.f32.mrf.mxu2 }
 0x497   :  { %v13447_v18 = vadd.f32 %v4337_v33, %v13324_v5  ;;  %v15576_v5 = vld [vmem:[#allocation169_spill] sm:$0xff]  ;;  %v4469_v11 = vpop.f32.mrf.mxu3 }
 0x498   :  { %vm15577_vm13 = vnez %v15576_v5  ;;  %v4506_v9 = vadd.f32 %v4469_v11, %v13389_v37 }
 0x499   :  { %v4858_v36 = vsel %vm15577_vm13, %v13338_v27, 0.0  ;;  %v4504_v27 = vadd.f32 %v4464_v2, %v13376_v17 }
 0x49a   :  { %v4867_v51 = vpack.c.bf16 %v4859_v49, %v4858_v36 }
 0x49b   :  { %8039 = vmatmul.msk.bf16.gmra.mxu2 %vm15575_vm3, %v4866_v56 }
 0x49e   :  { %v4340_v30 = vpop.f32.mrf.mxu2 }
 0x49f   :  { %v13454_v21 = vadd.f32 %v4340_v30, %v13333_v3  ;;  %v4623_v3 = vpop.f32.mrf.mxu0  ;;  %v4471_v16 = vpop.f32.mrf.mxu3 }
 0x4a0   :  { %v4660_v42 = vadd.f32 %v4623_v3, %v4506_v9  ;;  %v4507_v43 = vadd.f32 %v4471_v16, %v13395_v35 }
 0x4a2   :  { %v4814_v33 = vadd.f32 %v4777_v24, %v4660_v42 }
 0x4a6   :  { %v4342_v48 = vpop.f32.mrf.mxu2 }
 0x4a7   :  { %v13465_v26 = vadd.f32 %v4342_v48, %v13350_v34  ;;  %v4625_v29 = vpop.f32.mrf.mxu0  ;;  %v4658_v34 = vadd.f32 %v4618_v28, %v4504_v27  ;;  %v4474_v47 = vpop.f32.mrf.mxu3 }
 0x4a8   :  { %v4661_v56 = vadd.f32 %v4625_v29, %v4507_v43  ;;  %v4508_v53 = vadd.f32 %v4474_v47, %v13402_v54 }
 0x4a9   :  { %v4812_v8 = vadd.f32 %v4772_v1, %v4658_v34 }
 0x4aa   :  { %v4815_v30 = vadd.f32 %v4779_v14, %v4661_v56 }
 0x4ab   :  { %8040 = vmatmul.msk.bf16.gmra.mxu2 %vm15580_vm1, %v4867_v51 }
 0x4ae   :  { %v4345_v39 = vpop.f32.mrf.mxu2 }
 0x4af   :  { %v13469_v61 = vadd.f32 %v4345_v39, %v13370_v4  ;;  %v4628_v19 = vpop.f32.mrf.mxu0  ;;  %v4476_v58 = vpop.f32.mrf.mxu3 }
 0x4b0   :  { %v4662_v36 = vadd.f32 %v4628_v19, %v4508_v53  ;;  %v4509_v39 = vadd.f32 %v4476_v58, %v13408_v46 }
 0x4b6   :  { %v4347_v44 = vpop.f32.mrf.mxu2 }
 0x4b7   :  { %v13473_v15 = vadd.f32 %v4347_v44, %v13378_v40  ;;  %v4782_v40 = vpop.f32.mrf.mxu1  ;;  %v4630_v22 = vpop.f32.mrf.mxu0 }
 0x4b8   :  { %v4479_v50 = vpop.f32.mrf.mxu3  ;;  %v4816_v3 = vadd.f32 %v4782_v40, %v4662_v36  ;;  %v4663_v34 = vadd.f32 %v4630_v22, %v4509_v39 }
 0x4b9   :  { %v4510_v19 = vadd.f32 %v4479_v50, %v13415_v23 }
 0x4be   :  { %v4926_v62 = vpop.f32.mrf.mxu2 }
 0x4bf   :  { %v4966_v4 = vadd.f32 %v4926_v62, %v4812_v8  ;;  %v4784_v28 = vpop.f32.mrf.mxu1  ;;  %v4633_v31 = vpop.f32.mrf.mxu0 }
 0x4c0   :  { %v4481_v49 = vpop.f32.mrf.mxu3 }
 0x4c1   :  { %v4986_v38 = vadd.f32 %v13476_v6, %v4966_v4  ;;  %v4817_v4 = vadd.f32 %v4784_v28, %v4663_v34 }
 0x4c3   :  { %v5002_v17 = vmax.f32 %v4986_v38, 0.0 }
 0x4c5   :  { %5018 = vst [vmem:[#allocation2 + $0x10] sm:$0xff] %v5002_v17 }
 0x4c6   :  { %v4928_v63 = vpop.f32.mrf.mxu2 }
 0x4c7   :  { %v4967_v25 = vadd.f32 %v4928_v63, %v4813_v57  ;;  %v4787_v20 = vpop.f32.mrf.mxu1  ;;  %v4635_v27 = vpop.f32.mrf.mxu0  ;;  %v4664_v63 = vadd.f32 %v4633_v31, %v4510_v19 }
 0x4c8   :  { %v4484_v7 = vpop.f32.mrf.mxu3 }
 0x4c9   :  { %v4987_v10 = vadd.f32 %v13476_v6, %v4967_v25  ;;  %v4818_v22 = vadd.f32 %v4787_v20, %v4664_v63  ;;  %v4512_v53 = vadd.f32 %v4484_v7, %v13428_v32 }
 0x4cb   :  { %v5003_v2 = vmax.f32 %v4987_v10, 0.0 }
 0x4cd   :  { %5019 = vst [vmem:[#allocation2 + $0x18] sm:$0xff] %v5003_v2 }
 0x4ce   :  { %v4931_v0 = vpop.f32.mrf.mxu2 }
 0x4cf   :  { %v4968_v13 = vadd.f32 %v4931_v0, %v4814_v33  ;;  %v4789_v47 = vpop.f32.mrf.mxu1  ;;  %v4638_v57 = vpop.f32.mrf.mxu0 }
 0x4d0   :  { %v4486_v0 = vpop.f32.mrf.mxu3 }
 0x4d1   :  { %v4988_v37 = vadd.f32 %v13476_v6, %v4968_v13 }
 0x4d3   :  { %v5004_v1 = vmax.f32 %v4988_v37, 0.0 }
 0x4d4   :  { %v5034_v41 = vld [vmem:[#allocation2 + $0x11] sm:$0xff] }
 0x4d5   :  { %5020 = vst [vmem:[#allocation2 + $0x20] sm:$0xff] %v5004_v1  ;;  %v5050_v24 = vmax.f32 %v5002_v17, %v5034_v41 }
 0x4d6   :  { %v4933_v48 = vpop.f32.mrf.mxu2 }
 0x4d7   :  { %v4969_v5 = vadd.f32 %v4933_v48, %v4815_v30  ;;  %v4792_v33 = vpop.f32.mrf.mxu1  ;;  %v4640_v37 = vpop.f32.mrf.mxu0 }
 0x4d9   :  { %v4989_v35 = vadd.f32 %v13476_v6, %v4969_v5 }
 0x4db   :  { %v5005_v11 = vmax.f32 %v4989_v35, 0.0 }
 0x4dc   :  { %v5035_v51 = vld [vmem:[#allocation2 + $0x19] sm:$0xff] }
 0x4dd   :  { %v5083_v16 = vmax.f32 %v5003_v2, %v5035_v51  ;;  %5021 = vst [vmem:[#allocation2 + $0x28] sm:$0xff] %v5005_v11  ;;  %v4511_v2 = vadd.f32 %v4481_v49, %v13421_v55  ;;  %v4489_v49 = vpop.f32.mrf.mxu3  ;;  %v4666_v51 = vadd.f32 %v4638_v57, %v4512_v53 }
 0x4de   :  { %v4936_v29 = vpop.f32.mrf.mxu2 }
 0x4df   :  { %v5099_v54 = vmax.f32 %v5050_v24, %v5083_v16  ;;  %v4970_v44 = vadd.f32 %v4936_v29, %v4816_v3  ;;  %v4665_v56 = vadd.f32 %v4635_v27, %v4511_v2  ;;  %v4794_v36 = vpop.f32.mrf.mxu1  ;;  %v4643_v32 = vpop.f32.mrf.mxu0  ;;  %v4820_v29 = vadd.f32 %v4792_v33, %v4666_v51 }
 0x4e1   :  { %5115 = vst [vmem:[#allocation2 + $0x10] sm:$0xff] %v5099_v54  ;;  %v4990_v14 = vadd.f32 %v13476_v6, %v4970_v44  ;;  %v4819_v30 = vadd.f32 %v4789_v47, %v4665_v56  ;;  %v4513_v54 = vadd.f32 %v4486_v0, %v13434_v59 }
 0x4e3   :  { %v5006_v8 = vmax.f32 %v4990_v14, 0.0 }
 0x4e4   :  { %v5036_v62 = vld [vmem:[#allocation2 + $0x21] sm:$0xff] }
 0x4e5   :  { %5022 = vst [vmem:[#allocation2 + $0x30] sm:$0xff] %v5006_v8  ;;  %v5052_v46 = vmax.f32 %v5004_v1, %v5036_v62 }
 0x4e6   :  { %v4938_v60 = vpop.f32.mrf.mxu2 }
 0x4e7   :  { %v4971_v38 = vadd.f32 %v4938_v60, %v4817_v4  ;;  %v5100_v17 = vmax.f32 %v5083_v16, %v5052_v46  ;;  %v4797_v7 = vpop.f32.mrf.mxu1  ;;  %v4491_v4 = vpop.f32.mrf.mxu3 }
 0x4e8   :  { %v5131_v9 = vld [vmem:[#allocation2 + $0x10] sm:$0x1]  ;;  %v5133_v40 = vld [vmem:[#allocation2 + $0x12] sm:$0x1]  ;;  %v5135_v58 = vld [vmem:[#allocation2 + $0x14] sm:$0x1]  ;;  %v4645_v59 = vpop.f32.mrf.mxu0  ;;  %v4515_v0 = vadd.f32 %v4491_v4, %v13447_v18 }
 0x4e9   :  { %5132 = vst [vmem:[#allocation3] sm:$0x1] %v5131_v9  ;;  %v5137_v25 = vld [vmem:[#allocation2 + $0x16] sm:$0x1]  ;;  %v13489_v42 = vadd.f32 %v13476_v6, %v4971_v38  ;;  %v4514_v38 = vadd.f32 %v4489_v49, %v13441_v12  ;;  %v5163_v4 = vld [vmem:[%s13639_s1] sm:$0x3]  }
 0x4ea   :  { %5134 = vst [vmem:[#allocation3 + $0x2] sm:$0x1] %v5133_v40 }
 0x4eb   :  { %5136 = vst [vmem:[#allocation3 + $0x4] sm:$0x1] %v5135_v58  ;;  %v5007_v23 = vmax.f32 %v13489_v42, 0.0  ;;  %v4668_v42 = vadd.f32 %v4643_v32, %v4514_v38 }
 0x4ec   :  { %5138 = vst [vmem:[#allocation3 + $0x6] sm:$0x1] %v5137_v25  ;;  %v5037_v10 = vld [vmem:[#allocation2 + $0x29] sm:$0xff] }
 0x4ed   :  { %5023 = vst [vmem:[#allocation2 + $0x38] sm:$0xff] %v5007_v23  ;;  %v5053_v43 = vmax.f32 %v5005_v11, %v5037_v10 }
 0x4ee   :  { %v4941_v28 = vpop.f32.mrf.mxu2  ;;  %5116 = vst [vmem:[#allocation2 + $0x18] sm:$0xff] %v5100_v17 }
 0x4ef   :  { %v4972_v13 = vadd.f32 %v4941_v28, %v4818_v22  ;;  %v5101_v50 = vmax.f32 %v5052_v46, %v5053_v43  ;;  %v4799_v22 = vpop.f32.mrf.mxu1  ;;  %v4494_v33 = vpop.f32.mrf.mxu3  ;;  %5164 = vst [vmem:[#allocation3 + $0x20] sm:$0x3] %v5163_v4  }
 0x4f1   :  { %v4992_v55 = vadd.f32 %v13476_v6, %v4972_v13  ;;  %5117 = vst [vmem:[#allocation2 + $0x20] sm:$0xff] %v5101_v50 }
 0x4f3   :  { %v5008_v1 = vmax.f32 %v4992_v55, 0.0  ;;  %v4648_v55 = vpop.f32.mrf.mxu0 }
 0x4f4   :  { %v5038_v31 = vld [vmem:[#allocation2 + $0x31] sm:$0xff] }
 0x4f5   :  { %5024 = vst [vmem:[#allocation2 + $0x40] sm:$0xff] %v5008_v1  ;;  %v5054_v48 = vmax.f32 %v5006_v8, %v5038_v31  ;;  %v4667_v8 = vadd.f32 %v4640_v37, %v4513_v54  ;;  %v4669_v37 = vadd.f32 %v4645_v59, %v4515_v0 }
 0x4f6   :  { %v4943_v5 = vpop.f32.mrf.mxu2 }
 0x4f7   :  { %v4973_v20 = vadd.f32 %v4943_v5, %v4819_v30  ;;  %v5102_v35 = vmax.f32 %v5053_v43, %v5054_v48  ;;  %v4821_v60 = vadd.f32 %v4794_v36, %v4667_v8  ;;  %v4822_v43 = vadd.f32 %v4797_v7, %v4668_v42  ;;  %v4802_v5 = vpop.f32.mrf.mxu1  ;;  %v4496_v18 = vpop.f32.mrf.mxu3 }
 0x4f8   :  { %v5139_v41 = vld [vmem:[#allocation2 + $0x20] sm:$0x1]  ;;  %v5141_v11 = vld [vmem:[#allocation2 + $0x22] sm:$0x1]  ;;  %v5143_v39 = vld [vmem:[#allocation2 + $0x24] sm:$0x1]  ;;  %v4823_v53 = vadd.f32 %v4799_v22, %v4669_v37 }
 0x4f9   :  { %v4993_v3 = vadd.f32 %v13476_v6, %v4973_v20  ;;  %5118 = vst [vmem:[#allocation2 + $0x28] sm:$0xff] %v5102_v35  ;;  %v5145_v16 = vld [vmem:[#allocation2 + $0x26] sm:$0x1] }
 0x4fa   :  { %5140 = vst [vmem:[#allocation3 + $0x8] sm:$0x1] %v5139_v41 }
 0x4fb   :  { %v5009_v24 = vmax.f32 %v4993_v3, 0.0  ;;  %5142 = vst [vmem:[#allocation3 + $0xa] sm:$0x1] %v5141_v11 }
 0x4fc   :  { %v5039_v27 = vld [vmem:[#allocation2 + $0x39] sm:$0xff]  ;;  %5144 = vst [vmem:[#allocation3 + $0xc] sm:$0x1] %v5143_v39 }
 0x4fd   :  { %5025 = vst [vmem:[#allocation2 + $0x48] sm:$0xff] %v5009_v24  ;;  %v5087_v44 = vmax.f32 %v5007_v23, %v5039_v27 }
 0x4fe   :  { %v4946_v34 = vpop.f32.mrf.mxu2  ;;  %5146 = vst [vmem:[#allocation3 + $0xe] sm:$0x1] %v5145_v16 }
 0x4ff   :  { %v4974_v14 = vadd.f32 %v4946_v34, %v4820_v29  ;;  %v5103_v47 = vmax.f32 %v5054_v48, %v5087_v44  ;;  %v4516_v48 = vadd.f32 %v4494_v33, %v13454_v21  ;;  %v4517_v29 = vadd.f32 %v4496_v18, %v13465_v26  ;;  %v4499_v8 = vpop.f32.mrf.mxu3 }
 0x500   :  { %v4518_v38 = vadd.f32 %v4499_v8, %v13469_v61  ;;  %v5098_v8 = vmax.f32 %v13361_v45, %v13456_v52 }
 0x501   :  { %v4994_v62 = vadd.f32 %v13476_v6, %v4974_v14  ;;  %5119 = vst [vmem:[#allocation2 + $0x30] sm:$0xff] %v5103_v47  ;;  %v4670_v51 = vadd.f32 %v4648_v55, %v4516_v48  ;;  %v4804_v47 = vpop.f32.mrf.mxu1 }
 0x503   :  { %v5010_v19 = vmax.f32 %v4994_v62, 0.0  ;;  %v4824_v27 = vadd.f32 %v4802_v5, %v4670_v51 }
 0x504   :  { %v5040_v46 = vld [vmem:[#allocation2 + $0x41] sm:$0xff] }
 0x505   :  { %5026 = vst [vmem:[#allocation2 + $0x50] sm:$0xff] %v5010_v19  ;;  %v5056_v17 = vmax.f32 %v5008_v1, %v5040_v46 }
 0x506   :  { %v4948_v57 = vpop.f32.mrf.mxu2 }
 0x507   :  { %v4975_v9 = vadd.f32 %v4948_v57, %v4821_v60  ;;  %v5104_v40 = vmax.f32 %v5087_v44, %v5056_v17  ;;  %v4501_v22 = vpop.f32.mrf.mxu3 }
 0x508   :  { %v5147_v58 = vld [vmem:[#allocation2 + $0x30] sm:$0x1]  ;;  %v5149_v63 = vld [vmem:[#allocation2 + $0x32] sm:$0x1]  ;;  %v5151_v25 = vld [vmem:[#allocation2 + $0x34] sm:$0x1] }
 0x509   :  { %v4995_v23 = vadd.f32 %v13476_v6, %v4975_v9  ;;  %5148 = vst [vmem:[#allocation3 + $0x10] sm:$0x1] %v5147_v58  ;;  %v5153_v10 = vld [vmem:[#allocation2 + $0x36] sm:$0x1] }
 0x50a   :  { %5150 = vst [vmem:[#allocation3 + $0x12] sm:$0x1] %v5149_v63 }
 0x50b   :  { %v5011_v2 = vmax.f32 %v4995_v23, 0.0  ;;  %5152 = vst [vmem:[#allocation3 + $0x14] sm:$0x1] %v5151_v25 }
 0x50c   :  { %v5041_v12 = vld [vmem:[#allocation2 + $0x49] sm:$0xff]  ;;  %5154 = vst [vmem:[#allocation3 + $0x16] sm:$0x1] %v5153_v10  ;;  %v4807_v10 = vpop.f32.mrf.mxu1 }
 0x50d   :  { %5027 = vst [vmem:[#allocation2 + $0x58] sm:$0xff] %v5011_v2  ;;  %v5057_v28 = vmax.f32 %v5009_v24, %v5041_v12  ;;  %v4650_v24 = vpop.f32.mrf.mxu0  ;;  %v4519_v12 = vadd.f32 %v4501_v22, %v13473_v15 }
 0x50e   :  { %v4951_v13 = vpop.f32.mrf.mxu2  ;;  %5120 = vst [vmem:[#allocation2 + $0x38] sm:$0xff] %v5104_v40  ;;  %v4671_v7 = vadd.f32 %v4650_v24, %v4517_v29 }
 0x50f   :  { %v4976_v50 = vadd.f32 %v4951_v13, %v4822_v43  ;;  %v5105_v56 = vmax.f32 %v5056_v17, %v5057_v28 }
 0x510   :  { %v4825_v60 = vadd.f32 %v4804_v47, %v4671_v7 }
 0x511   :  { %v4996_v1 = vadd.f32 %v13476_v6, %v4976_v50  ;;  %5121 = vst [vmem:[#allocation2 + $0x40] sm:$0xff] %v5105_v56 }
 0x513   :  { %v5012_v31 = vmax.f32 %v4996_v1, 0.0 }
 0x514   :  { %v5042_v30 = vld [vmem:[#allocation2 + $0x51] sm:$0xff] }
 0x515   :  { %5028 = vst [vmem:[#allocation2 + $0x60] sm:$0xff] %v5012_v31  ;;  %v5058_v36 = vmax.f32 %v5010_v19, %v5042_v30  ;;  %v4653_v46 = vpop.f32.mrf.mxu0 }
 0x516   :  { %v4953_v20 = vpop.f32.mrf.mxu2  ;;  %v4672_v25 = vadd.f32 %v4653_v46, %v4518_v38 }
 0x517   :  { %v4977_v35 = vadd.f32 %v4953_v20, %v4823_v53  ;;  %v5106_v49 = vmax.f32 %v5057_v28, %v5058_v36 }
 0x518   :  { %v5155_v41 = vld [vmem:[#allocation2 + $0x40] sm:$0x1]  ;;  %v5157_v11 = vld [vmem:[#allocation2 + $0x42] sm:$0x1]  ;;  %v5159_v39 = vld [vmem:[#allocation2 + $0x44] sm:$0x1]  ;;  %v4826_v61 = vadd.f32 %v4807_v10, %v4672_v25 }
 0x519   :  { %v4997_v3 = vadd.f32 %v13476_v6, %v4977_v35  ;;  %5122 = vst [vmem:[#allocation2 + $0x48] sm:$0xff] %v5106_v49  ;;  %v5161_v32 = vld [vmem:[#allocation2 + $0x46] sm:$0x1] }
 0x51a   :  { %5156 = vst [vmem:[#allocation3 + $0x18] sm:$0x1] %v5155_v41 }
 0x51b   :  { %v5013_v16 = vmax.f32 %v4997_v3, 0.0  ;;  %5158 = vst [vmem:[#allocation3 + $0x1a] sm:$0x1] %v5157_v11 }
 0x51c   :  { %v5043_v21 = vld [vmem:[#allocation2 + $0x59] sm:$0xff]  ;;  %5160 = vst [vmem:[#allocation3 + $0x1c] sm:$0x1] %v5159_v39 }
 0x51d   :  { %5029 = vst [vmem:[#allocation2 + $0x68] sm:$0xff] %v5013_v16  ;;  %v5091_v54 = vmax.f32 %v5011_v2, %v5043_v21  ;;  %v4655_v0 = vpop.f32.mrf.mxu0 }
 0x51e   :  { %v4956_v44 = vpop.f32.mrf.mxu2  ;;  %5162 = vst [vmem:[#allocation3 + $0x1e] sm:$0x1] %v5161_v32  ;;  %v4673_v56 = vadd.f32 %v4655_v0, %v4519_v12 }
 0x51f   :  { %v4978_v34 = vadd.f32 %v4956_v44, %v4824_v27  ;;  %v5107_v14 = vmax.f32 %v5058_v36, %v5091_v54 }
 0x521   :  { %v4998_v62 = vadd.f32 %v13476_v6, %v4978_v34  ;;  %5123 = vst [vmem:[#allocation2 + $0x50] sm:$0xff] %v5107_v14 }
 0x523   :  { %v5014_v19 = vmax.f32 %v4998_v62, 0.0 }
 0x524   :  { %v5044_v26 = vld [vmem:[#allocation2 + $0x61] sm:$0xff] }
 0x525   :  { %5030 = vst [vmem:[#allocation2 + $0x70] sm:$0xff] %v5014_v19  ;;  %v5060_v17 = vmax.f32 %v5012_v31, %v5044_v26  ;;  %v4809_v31 = vpop.f32.mrf.mxu1 }
 0x526   :  { %v4958_v59 = vpop.f32.mrf.mxu2  ;;  %v4827_v53 = vadd.f32 %v4809_v31, %v4673_v56 }
 0x527   :  { %v4979_v57 = vadd.f32 %v4958_v59, %v4825_v60  ;;  %v5108_v9 = vmax.f32 %v5091_v54, %v5060_v17 }
 0x528   :  { %v5165_v40 = vld [vmem:[#allocation2 + $0x50] sm:$0x1]  ;;  %v5167_v58 = vld [vmem:[#allocation2 + $0x52] sm:$0x1]  ;;  %v5169_v63 = vld [vmem:[#allocation2 + $0x54] sm:$0x1] }
 0x529   :  { %v4999_v42 = vadd.f32 %v13476_v6, %v4979_v57  ;;  %5166 = vst [vmem:[#allocation3 + $0x1] sm:$0x1] %v5165_v40  ;;  %v5171_v23 = vld [vmem:[#allocation2 + $0x56] sm:$0x1] }
 0x52a   :  { %5168 = vst [vmem:[#allocation3 + $0x3] sm:$0x1] %v5167_v58 }
 0x52b   :  { %v5015_v2 = vmax.f32 %v4999_v42, 0.0  ;;  %5170 = vst [vmem:[#allocation3 + $0x5] sm:$0x1] %v5169_v63  ;;  %v5203_v42 = vld [vmem:[#allocation3 + $0x20] sm:$0x3] }
 0x52c   :  { %v5045_v33 = vld [vmem:[#allocation2 + $0x69] sm:$0xff]  ;;  %5172 = vst [vmem:[#allocation3 + $0x7] sm:$0x1] %v5171_v23 }
 0x52d   :  { %5031 = vst [vmem:[#allocation2 + $0x78] sm:$0xff] %v5015_v2  ;;  %v5061_v43 = vmax.f32 %v5013_v16, %v5045_v33 }
 0x52e   :  { %v4961_v28 = vpop.f32.mrf.mxu2  ;;  %5124 = vst [vmem:[#allocation2 + $0x58] sm:$0xff] %v5108_v9 }
 0x52f   :  { %v4980_v13 = vadd.f32 %v4961_v28, %v4826_v61  ;;  %v5109_v50 = vmax.f32 %v5060_v17, %v5061_v43 }
 0x531   :  { %v5000_v55 = vadd.f32 %v13476_v6, %v4980_v13  ;;  %5125 = vst [vmem:[#allocation2 + $0x60] sm:$0xff] %v5109_v50 }
 0x533   :  { %v5016_v37 = vmax.f32 %v5000_v55, 0.0  ;;  %v5199_v1 = vld [vmem:[#allocation3] sm:$0xff] }
 0x534   :  { %v5046_v30 = vld [vmem:[#allocation2 + $0x71] sm:$0xff]  ;;  %5209 = vst [vmem:[#allocation1] ss:$4 sm:$0xff] %v5199_v1 }
 0x535   :  { %5032 = vst [vmem:[#allocation2 + $0x80] sm:$0xff] %v5016_v37  ;;  %v5062_v48 = vmax.f32 %v5014_v19, %v5046_v30 }
 0x536   :  { %v4963_v15 = vpop.f32.mrf.mxu2 }
 0x537   :  { %v4981_v5 = vadd.f32 %v4963_v15, %v4827_v53  ;;  %v5110_v36 = vmax.f32 %v5061_v43, %v5062_v48 }
 0x538   :  { %v5173_v18 = vld [vmem:[#allocation2 + $0x60] sm:$0x1]  ;;  %v5175_v35 = vld [vmem:[#allocation2 + $0x62] sm:$0x1]  ;;  %v5177_v49 = vld [vmem:[#allocation2 + $0x64] sm:$0x1] }
 0x539   :  { %v5001_v20 = vadd.f32 %v13476_v6, %v4981_v5  ;;  %5126 = vst [vmem:[#allocation2 + $0x68] sm:$0xff] %v5110_v36  ;;  %v5179_v51 = vld [vmem:[#allocation2 + $0x66] sm:$0x1] }
 0x53a   :  { %5174 = vst [vmem:[#allocation3 + $0x9] sm:$0x1] %v5173_v18 }
 0x53b   :  { %v5212_v41 = vld.sshfl [vmem:[#allocation1] sm:$0xff pattern:$0x73625140]  ;;  %v5213_v11 = vld.sshfl [vmem:[#allocation1 + $0x8] sm:$0xff pattern:$0x73625140] }
 0x53c   :  { %v5047_v3 = vld [vmem:[#allocation2 + $0x79] sm:$0xff]  ;;  %v5214_v39 = vld.sshfl [vmem:[#allocation1 + $0x10] sm:$0xff pattern:$0x73625140]  ;;  %v13523_v24 = vpack.c.bf16 %v5212_v41, %v5212_v41  ;;  %v13525_v16 = vpack.c.bf16 %v5213_v11, %v5213_v11  ;;  %v5017_v32 = vmax.f32 %v5001_v20, 0.0 }
 0x53d   :  { %v5095_v21 = vmax.f32 %v5015_v2, %v5047_v3  ;;  %v5215_v27 = vld.sshfl [vmem:[#allocation1 + $0x18] sm:$0xff pattern:$0x73625140]  ;;  %v13527_v29 = vpack.c.bf16 %v5214_v39, %v5214_v39  ;;  %5176 = vst [vmem:[#allocation3 + $0xb] sm:$0x1] %v5175_v35 }
 0x53e   :  { %v13529_v6 = vpack.c.bf16 %v5215_v27, %v5215_v27  ;;  %5033 = vst [vmem:[#allocation2 + $0x88] sm:$0xff] %v5017_v32 }
 0x53f   :  { %v5111_v54 = vmax.f32 %v5062_v48, %v5095_v21  ;;  %5178 = vst [vmem:[#allocation3 + $0xd] sm:$0x1] %v5177_v49 }
 0x540   :  { %5180 = vst [vmem:[#allocation3 + $0xf] sm:$0x1] %v5179_v51 }
 0x541   :  { %5127 = vst [vmem:[#allocation2 + $0x70] sm:$0xff] %v5111_v54 }
 0x545   :  { %v5048_v44 = vld [vmem:[#allocation2 + $0x81] sm:$0xff]  ;;  %v5049_v34 = vld [vmem:[#allocation2 + $0x89] sm:$0xff] }
 0x546   :  { %v5064_v14 = vmax.f32 %v5016_v37, %v5048_v44  ;;  %v5065_v47 = vmax.f32 %v5017_v32, %v5049_v34 }
 0x547   :  { %v5200_v38 = vld [vmem:[#allocation3 + $0x8] sm:$0xff] }
 0x548   :  { %v5181_v7 = vld [vmem:[#allocation2 + $0x70] sm:$0x1]  ;;  %v5183_v62 = vld [vmem:[#allocation2 + $0x72] sm:$0x1]  ;;  %v5185_v4 = vld [vmem:[#allocation2 + $0x74] sm:$0x1]  ;;  %v5112_v19 = vmax.f32 %v5095_v21, %v5064_v14  ;;  %v5113_v46 = vmax.f32 %v5064_v14, %v5065_v47  ;;  %v5114_v60 = vmax.f32 %v5065_v47, %v5098_v8 }
 0x549   :  { %5182 = vst [vmem:[#allocation3 + $0x11] sm:$0x1] %v5181_v7  ;;  %v5187_v26 = vld [vmem:[#allocation2 + $0x76] sm:$0x1] }
 0x54a   :  { %5184 = vst [vmem:[#allocation3 + $0x13] sm:$0x1] %v5183_v62 }
 0x54b   :  { %5186 = vst [vmem:[#allocation3 + $0x15] sm:$0x1] %v5185_v4 }
 0x54c   :  { %5188 = vst [vmem:[#allocation3 + $0x17] sm:$0x1] %v5187_v26 }
 0x54d   :  { %5128 = vst [vmem:[#allocation2 + $0x78] sm:$0xff] %v5112_v19 }
 0x54e   :  { %5129 = vst [vmem:[#allocation2 + $0x80] sm:$0xff] %v5113_v46 }
 0x54f   :  { %5130 = vst [vmem:[#allocation2 + $0x88] sm:$0xff] %v5114_v60 }
 0x550   :  { %5211 = vst [vmem:[#allocation1 + $0x20] ss:$4 sm:$0xff] %v5200_v38 }
 0x553   :  { %v5201_v17 = vld [vmem:[#allocation3 + $0x10] sm:$0xff] }
 0x554   :  { %5220 = vst [vmem:[#allocation1] ss:$4 sm:$0xff] %v5201_v17 }
 0x555   :  { %v5189_v59 = vld [vmem:[#allocation2 + $0x80] sm:$0x1]  ;;  %v5191_v45 = vld [vmem:[#allocation2 + $0x82] sm:$0x1]  ;;  %v5193_v52 = vld [vmem:[#allocation2 + $0x84] sm:$0x1] }
 0x556   :  { %5190 = vst [vmem:[#allocation3 + $0x19] sm:$0x1] %v5189_v59  ;;  %v5195_v57 = vld [vmem:[#allocation2 + $0x86] sm:$0x1] }
 0x557   :  { %5192 = vst [vmem:[#allocation3 + $0x1b] sm:$0x1] %v5191_v45  ;;  %v5216_v9 = vld.sshfl [vmem:[#allocation1 + $0x20] sm:$0xff pattern:$0x73625140] }
 0x558   :  { %5194 = vst [vmem:[#allocation3 + $0x1d] sm:$0x1] %v5193_v52  ;;  %v5217_v40 = vld.sshfl [vmem:[#allocation1 + $0x28] sm:$0xff pattern:$0x73625140]  ;;  %v13533_v58 = vpack.c.bf16 %v5216_v9, %v5216_v9 }
 0x559   :  { %5196 = vst [vmem:[#allocation3 + $0x1f] sm:$0x1] %v5195_v57  ;;  %v5218_v63 = vld.sshfl [vmem:[#allocation1 + $0x30] sm:$0xff pattern:$0x73625140]  ;;  %v13535_v25 = vpack.c.bf16 %v5217_v40, %v5217_v40 }
 0x55a   :  { %v5219_v23 = vld.sshfl [vmem:[#allocation1 + $0x38] sm:$0xff pattern:$0x73625140]  ;;  %v13537_v10 = vpack.c.bf16 %v5218_v63, %v5218_v63 }
 0x55b   :  { %v5222_v22 = vld.sshfl [vmem:[#allocation1] sm:$0xff pattern:$0x73625140]  ;;  %v5223_v2 = vld.sshfl [vmem:[#allocation1 + $0x8] sm:$0xff pattern:$0x73625140]  ;;  %v13539_v33 = vpack.c.bf16 %v5219_v23, %v5219_v23 }
 0x55c   :  { %v5224_v61 = vld.sshfl [vmem:[#allocation1 + $0x10] sm:$0xff pattern:$0x73625140]  ;;  %v5225_v12 = vld.sshfl [vmem:[#allocation1 + $0x18] sm:$0xff pattern:$0x73625140]  ;;  %v13541_v43 = vpack.c.bf16 %v5222_v22, %v5222_v22  ;;  %v13543_v0 = vpack.c.bf16 %v5223_v2, %v5223_v2 }
 0x55d   :  { %5230 = vst [vmem:[#allocation1] ss:$4 sm:$0xff] %v5203_v42  ;;  %v13545_v28 = vpack.c.bf16 %v5224_v61, %v5224_v61  ;;  %v13547_v13 = vpack.c.bf16 %v5225_v12, %v5225_v12 }
 0x560   :  { %v5202_v50 = vld [vmem:[#allocation3 + $0x18] sm:$0xff] }
 0x561   :  { %5221 = vst [vmem:[#allocation1 + $0x20] ss:$4 sm:$0xff] %v5202_v50 }
 0x564   :  { %v5231_v56 = vld.sshfl [vmem:[#allocation1] sm:$0xff pattern:$0x73625140] }
 0x565   :  { %v13549_v55 = vpack.c.bf16 %v5231_v56, %v5231_v56 }
 0x568   :  { %v5226_v37 = vld.sshfl [vmem:[#allocation1 + $0x20] sm:$0xff pattern:$0x73625140]  ;;  %v5227_v1 = vld.sshfl [vmem:[#allocation1 + $0x28] sm:$0xff pattern:$0x73625140] }
 0x569   :  { %v5228_v31 = vld.sshfl [vmem:[#allocation1 + $0x30] sm:$0xff pattern:$0x73625140]  ;;  %v5229_v30 = vld.sshfl [vmem:[#allocation1 + $0x38] sm:$0xff pattern:$0x73625140]  ;;  %v13551_v53 = vpack.c.bf16 %v5226_v37, %v5226_v37  ;;  %v13553_v48 = vpack.c.bf16 %v5227_v1, %v5227_v1 }
 0x56a   :  { %v13555_v15 = vpack.c.bf16 %v5228_v31, %v5228_v31  ;;  %v13557_v5 = vpack.c.bf16 %v5229_v30, %v5229_v30 }
 0x56b   :  { %9869 = dma.done.wait [#allocation7], 34816 }
 0x56c   :  { %9870 = vsyncadd [#allocation7], 4294932480  ;;  %v8099_v36 = vld [vmem:[#allocation4 + $0x70] sm:$0xf]  ;;  %v9265_v18 = vld [vmem:[#allocation4 + $0x74] sm:$0xf0] }
 0x56d   :  { %v8091_v20 = vld [vmem:[#allocation4 + $0x60] sm:$0xf]  ;;  %v8100_v35 = vor.u32 %v9265_v18, %v8099_v36  ;;  %v9263_v49 = vld [vmem:[#allocation4 + $0x64] sm:$0xf0]  ;;  %v8083_v11 = vld [vmem:[#allocation4 + $0x50] sm:$0xf] }
 0x56e   :  { %v8092_v41 = vor.u32 %v9263_v49, %v8091_v20  ;;  %v9261_v51 = vld [vmem:[#allocation4 + $0x54] sm:$0xf0]  ;;  %v8075_v39 = vld [vmem:[#allocation4 + $0x40] sm:$0xf]  ;;  %v9259_v32 = vld [vmem:[#allocation4 + $0x44] sm:$0xf0] }
 0x56f   :  { %6908 = vmatpush.bf16.msra.mxu3 %v8100_v35  ;;  %v8084_v3 = vor.u32 %v9261_v51, %v8083_v11  ;;  %v8076_v21 = vor.u32 %v9259_v32, %v8075_v39  ;;  %v8067_v27 = vld [vmem:[#allocation4 + $0x30] sm:$0xf]  ;;  %v9257_v54 = vld [vmem:[#allocation4 + $0x34] sm:$0xf0]  ;;  %v8059_v34 = vld [vmem:[#allocation4 + $0x20] sm:$0xf] }
 0x570   :  { %v8068_v44 = vor.u32 %v9257_v54, %v8067_v27  ;;  %v9255_v14 = vld [vmem:[#allocation4 + $0x24] sm:$0xf0]  ;;  %v8051_v8 = vld [vmem:[#allocation4 + $0x10] sm:$0xf]  ;;  %v9253_v7 = vld [vmem:[#allocation4 + $0x14] sm:$0xf0] }
 0x571   :  { %v8060_v47 = vor.u32 %v9255_v14, %v8059_v34  ;;  %v8052_v62 = vor.u32 %v9253_v7, %v8051_v8  ;;  %v8043_v4 = vld [vmem:[#allocation4] sm:$0xf]  ;;  %v9251_v19 = vld [vmem:[#allocation4 + $0x4] sm:$0xf0]  ;;  %v8163_v46 = vld [vmem:[#allocation4 + $0xf0] sm:$0xf] }
 0x572   :  { %v9281_v26 = vld [vmem:[#allocation4 + $0xf4] sm:$0xf0]  ;;  %v8044_v60 = vor.u32 %v9251_v19, %v8043_v4  ;;  %v8155_v17 = vld [vmem:[#allocation4 + $0xe0] sm:$0xf]  ;;  %v9279_v59 = vld [vmem:[#allocation4 + $0xe4] sm:$0xf0] }
 0x573   :  { %6909 = vmatpush.bf16.msra.mxu3 %v8092_v41  ;;  %v8164_v38 = vor.u32 %v9281_v26, %v8163_v46  ;;  %v8156_v45 = vor.u32 %v9279_v59, %v8155_v17  ;;  %v8147_v52 = vld [vmem:[#allocation4 + $0xd0] sm:$0xf]  ;;  %v9277_v57 = vld [vmem:[#allocation4 + $0xd4] sm:$0xf0]  ;;  %v8139_v40 = vld [vmem:[#allocation4 + $0xc0] sm:$0xf] }
 0x574   :  { %v8148_v9 = vor.u32 %v9277_v57, %v8147_v52  ;;  %v9275_v63 = vld [vmem:[#allocation4 + $0xc4] sm:$0xf0]  ;;  %v8131_v23 = vld [vmem:[#allocation4 + $0xb0] sm:$0xf]  ;;  %v9273_v22 = vld [vmem:[#allocation4 + $0xb4] sm:$0xf0] }
 0x575   :  { %v8140_v42 = vor.u32 %v9275_v63, %v8139_v40  ;;  %v8132_v2 = vor.u32 %v9273_v22, %v8131_v23  ;;  %v8123_v61 = vld [vmem:[#allocation4 + $0xa0] sm:$0xf]  ;;  %v9271_v12 = vld [vmem:[#allocation4 + $0xa4] sm:$0xf0]  ;;  %v8115_v56 = vld [vmem:[#allocation4 + $0x90] sm:$0xf] }
 0x576   :  { %v8124_v50 = vor.u32 %v9271_v12, %v8123_v61  ;;  %v9269_v37 = vld [vmem:[#allocation4 + $0x94] sm:$0xf0]  ;;  %v8107_v31 = vld [vmem:[#allocation4 + $0x80] sm:$0xf]  ;;  %v9267_v30 = vld [vmem:[#allocation4 + $0x84] sm:$0xf0] }
 0x577   :  { %6910 = vmatpush.bf16.msra.mxu3 %v8084_v3  ;;  %v8116_v1 = vor.u32 %v9269_v37, %v8115_v56  ;;  %v8355_v36 = vld [vmem:[#allocation4 + $0x270] sm:$0xf]  ;;  %v9329_v18 = vld [vmem:[#allocation4 + $0x274] sm:$0xf0]  ;;  %v8108_v3 = vor.u32 %v9267_v30, %v8107_v31  ;;  %v8347_v32 = vld [vmem:[#allocation4 + $0x260] sm:$0xf] }
 0x578   :  { %v8419_v20 = vld [vmem:[#allocation4 + $0x2f0] sm:$0xf]  ;;  %v9297_v49 = vld [vmem:[#allocation4 + $0x174] sm:$0xf0]  ;;  %v8356_v41 = vor.u32 %v9329_v18, %v8355_v36  ;;  %v8411_v27 = vld [vmem:[#allocation4 + $0x2e0] sm:$0xf] }
 0x579   :  { %v8227_v35 = vld [vmem:[#allocation4 + $0x170] sm:$0xf]  ;;  %v9345_v11 = vld [vmem:[#allocation4 + $0x2f4] sm:$0xf0]  ;;  %v8219_v54 = vld [vmem:[#allocation4 + $0x160] sm:$0xf] }
 0x57a   :  { %v8420_v51 = vor.u32 %v9345_v11, %v8419_v20  ;;  %6960 = vmatpush.bf16.msrb.mxu0 %v8356_v41  ;;  %v8228_v39 = vor.u32 %v9297_v49, %v8227_v35  ;;  %v9343_v14 = vld [vmem:[#allocation4 + $0x2e4] sm:$0xf0]  ;;  %v8211_v8 = vld [vmem:[#allocation4 + $0x150] sm:$0xf]  ;;  %v9293_v7 = vld [vmem:[#allocation4 + $0x154] sm:$0xf0] }
 0x57b   :  { %6911 = vmatpush.bf16.msra.mxu3 %v8076_v21  ;;  %v9327_v21 = vld [vmem:[#allocation4 + $0x264] sm:$0xf0]  ;;  %v8339_v4 = vld [vmem:[#allocation4 + $0x250] sm:$0xf]  ;;  %v9325_v19 = vld [vmem:[#allocation4 + $0x254] sm:$0xf0] }
 0x57c   :  { %6973 = vmatpush.bf16.msra.mxu1 %v8420_v51  ;;  %v8348_v34 = vor.u32 %v9327_v21, %v8347_v32  ;;  %v8403_v46 = vld [vmem:[#allocation4 + $0x2d0] sm:$0xf]  ;;  %v8340_v26 = vor.u32 %v9325_v19, %v8339_v4  ;;  %v9361_v17 = vld [vmem:[#allocation4 + $0x374] sm:$0xf0]  ;;  %v8203_v52 = vld [vmem:[#allocation4 + $0x140] sm:$0xf] }
 0x57d   :  { %v9291_v57 = vld [vmem:[#allocation4 + $0x144] sm:$0xf0]  ;;  %v8331_v40 = vld [vmem:[#allocation4 + $0x240] sm:$0xf]  ;;  %v8195_v56 = vld [vmem:[#allocation4 + $0x130] sm:$0xf] }
 0x57e   :  { %6961 = vmatpush.bf16.msrb.mxu0 %v8348_v34  ;;  %v9323_v63 = vld [vmem:[#allocation4 + $0x244] sm:$0xf0]  ;;  %v9289_v37 = vld [vmem:[#allocation4 + $0x134] sm:$0xf0]  ;;  %v8323_v31 = vld [vmem:[#allocation4 + $0x230] sm:$0xf] }
 0x57f   :  { %6912 = vmatpush.bf16.msra.mxu3 %v8068_v44  ;;  %v9295_v44 = vld [vmem:[#allocation4 + $0x164] sm:$0xf0]  ;;  %v8332_v23 = vor.u32 %v9323_v63, %v8331_v40  ;;  %v9321_v30 = vld [vmem:[#allocation4 + $0x234] sm:$0xf0]  ;;  %v8387_v36 = vld [vmem:[#allocation4 + $0x2b0] sm:$0xf] }
 0x580   :  { %v9339_v22 = vld [vmem:[#allocation4 + $0x2c4] sm:$0xf0]  ;;  %v8324_v18 = vor.u32 %v9321_v30, %v8323_v31  ;;  %v9337_v20 = vld [vmem:[#allocation4 + $0x2b4] sm:$0xf0]  ;;  %v8467_v35 = vld [vmem:[#allocation4 + $0x350] sm:$0xf] }
 0x581   :  { %v9359_v61 = vld [vmem:[#allocation4 + $0x364] sm:$0xf0]  ;;  %v9357_v49 = vld [vmem:[#allocation4 + $0x354] sm:$0xf0]  ;;  %v8388_v41 = vor.u32 %v9337_v20, %v8387_v36  ;;  %v8187_v51 = vld [vmem:[#allocation4 + $0x120] sm:$0xf] }
 0x582   :  { %6962 = vmatpush.bf16.msrb.mxu0 %v8340_v26  ;;  %v8468_v11 = vor.u32 %v9357_v49, %v8467_v35  ;;  %v8315_v32 = vld [vmem:[#allocation4 + $0x220] sm:$0xf]  ;;  %v9319_v21 = vld [vmem:[#allocation4 + $0x224] sm:$0xf0]  ;;  %v8307_v19 = vld [vmem:[#allocation4 + $0x210] sm:$0xf] }
 0x583   :  { %6913 = vmatpush.bf16.msra.mxu3 %v8060_v47  ;;  %v8412_v47 = vor.u32 %v9343_v14, %v8411_v27  ;;  %v8379_v27 = vld [vmem:[#allocation4 + $0x2a0] sm:$0xf]  ;;  %v9355_v14 = vld [vmem:[#allocation4 + $0x344] sm:$0xf0]  ;;  %v8371_v26 = vld [vmem:[#allocation4 + $0x290] sm:$0xf] }
 0x584   :  { %v8459_v34 = vld [vmem:[#allocation4 + $0x340] sm:$0xf]  ;;  %v8291_v63 = vld [vmem:[#allocation4 + $0x1f0] sm:$0xf]  ;;  %v9393_v30 = vld [vmem:[#allocation4 + $0x474] sm:$0xf0] }
 0x585   :  { %6974 = vmatpush.bf16.msra.mxu1 %v8412_v47  ;;  %v8611_v31 = vld [vmem:[#allocation4 + $0x470] sm:$0xf]  ;;  %v9409_v20 = vld [vmem:[#allocation4 + $0x4f4] sm:$0xf0]  ;;  %v8283_v49 = vld [vmem:[#allocation4 + $0x1e0] sm:$0xf] }
 0x586   :  { %6963 = vmatpush.bf16.msrb.mxu0 %v8332_v23  ;;  %v8299_v23 = vld [vmem:[#allocation4 + $0x200] sm:$0xf]  ;;  %v8675_v36 = vld [vmem:[#allocation4 + $0x4f0] sm:$0xf] }
 0x587   :  { %6914 = vmatpush.bf16.msra.mxu3 %v8052_v62  ;;  %v8220_v62 = vor.u32 %v9295_v44, %v8219_v54  ;;  %v8316_v54 = vor.u32 %v9319_v21, %v8315_v32  ;;  %v9335_v44 = vld [vmem:[#allocation4 + $0x2a4] sm:$0xf0] }
 0x588   :  { %v8380_v47 = vor.u32 %v9335_v44, %v8379_v27  ;;  %v9391_v32 = vld [vmem:[#allocation4 + $0x464] sm:$0xf0]  ;;  %v8667_v44 = vld [vmem:[#allocation4 + $0x4e0] sm:$0xf] }
 0x589   :  { %v9311_v21 = vld [vmem:[#allocation4 + $0x1e4] sm:$0xf0] }
 0x58a   :  { %6964 = vmatpush.bf16.msrb.mxu0 %v8324_v18  ;;  %v8612_v18 = vor.u32 %v9393_v30, %v8611_v31  ;;  %v9305_v31 = vld [vmem:[#allocation4 + $0x1b4] sm:$0xf0] }
 0x58b   :  { %6915 = vmatpush.bf16.msra.mxu3 %v8044_v60  ;;  %v9341_v60 = vld [vmem:[#allocation4 + $0x2d4] sm:$0xf0] }
 0x58c   :  { %v8404_v59 = vor.u32 %v9341_v60, %v8403_v46  ;;  %v9317_v46 = vld [vmem:[#allocation4 + $0x214] sm:$0xf0] }
 0x58d   :  { %v8308_v60 = vor.u32 %v9317_v46, %v8307_v19  ;;  %v8595_v46 = vld [vmem:[#allocation4 + $0x450] sm:$0xf] }
 0x58e   :  { %6916 = vmatmul.bf16.vlgmr.msra.gmra.mxu3 %v13523_v24  ;;  %6975 = vmatpush.bf16.msra.mxu1 %v8404_v59  ;;  %v9353_v59 = vld [vmem:[#allocation4 + $0x334] sm:$0xf0] }
 0x58f   :  { %6921 = vmatpush.bf16.msrb.mxu3 %v8164_v38  ;;  %v8483_v38 = vld [vmem:[#allocation4 + $0x370] sm:$0xf]  ;;  %6965 = vmatpush.bf16.msrb.mxu0 %v8316_v54 }
 0x593   :  { %6922 = vmatpush.bf16.msrb.mxu3 %v8156_v45  ;;  %v8484_v45 = vor.u32 %v9361_v17, %v8483_v38  ;;  %v9333_v38 = vld [vmem:[#allocation4 + $0x294] sm:$0xf0]  ;;  %v8451_v17 = vld [vmem:[#allocation4 + $0x330] sm:$0xf]  ;;  %6966 = vmatpush.bf16.msrb.mxu0 %v8308_v60 }
 0x594   :  { %v8659_v60 = vld [vmem:[#allocation4 + $0x4d0] sm:$0xf] }
 0x595   :  { %6986 = vmatpush.bf16.msrb.mxu2 %v8484_v45  ;;  %v8372_v45 = vor.u32 %v9333_v38, %v8371_v26  ;;  %v9389_v26 = vld [vmem:[#allocation4 + $0x454] sm:$0xf0] }
 0x596   :  { %v8596_v38 = vor.u32 %v9389_v26, %v8595_v46  ;;  %v8563_v26 = vld [vmem:[#allocation4 + $0x410] sm:$0xf] }
 0x597   :  { %6923 = vmatpush.bf16.msrb.mxu3 %v8148_v9  ;;  %v8212_v9 = vor.u32 %v9293_v7, %v8211_v8  ;;  %v8460_v8 = vor.u32 %v9355_v14, %v8459_v34  ;;  %v8179_v7 = vld [vmem:[#allocation4 + $0x110] sm:$0xf]  ;;  %v9407_v34 = vld [vmem:[#allocation4 + $0x4e4] sm:$0xf0] }
 0x598   :  { %v8668_v14 = vor.u32 %v9407_v34, %v8667_v44  ;;  %v8635_v44 = vld [vmem:[#allocation4 + $0x4a0] sm:$0xf] }
 0x59b   :  { %6924 = vmatpush.bf16.msrb.mxu3 %v8140_v42  ;;  %v8395_v42 = vld [vmem:[#allocation4 + $0x2c0] sm:$0xf] }
 0x59c   :  { %v8396_v12 = vor.u32 %v9339_v22, %v8395_v42  ;;  %v9313_v42 = vld [vmem:[#allocation4 + $0x1f4] sm:$0xf0]  ;;  %v9315_v22 = vld [vmem:[#allocation4 + $0x204] sm:$0xf0] }
 0x59e   :  { %6976 = vmatpush.bf16.msra.mxu1 %v8396_v12  ;;  %v9331_v12 = vld [vmem:[#allocation4 + $0x284] sm:$0xf0] }
 0x59f   :  { %6925 = vmatpush.bf16.msrb.mxu3 %v8132_v2  ;;  %v8475_v2 = vld [vmem:[#allocation4 + $0x360] sm:$0xf] }
 0x5a2   :  { %6977 = vmatpush.bf16.msra.mxu1 %v8388_v41  ;;  %v8676_v41 = vor.u32 %v9409_v20, %v8675_v36  ;;  %v8579_v36 = vld [vmem:[#allocation4 + $0x430] sm:$0xf] }
 0x5a3   :  { %6926 = vmatpush.bf16.msrb.mxu3 %v8124_v50  ;;  %v8476_v50 = vor.u32 %v9359_v61, %v8475_v2  ;;  %v8363_v2 = vld [vmem:[#allocation4 + $0x280] sm:$0xf]  ;;  %v8300_v61 = vor.u32 %v9315_v22, %v8299_v23  ;;  %v9387_v23 = vld [vmem:[#allocation4 + $0x444] sm:$0xf0]  ;;  %v8643_v20 = vld [vmem:[#allocation4 + $0x4b0] sm:$0xf] }
 0x5a4   :  { %v8651_v22 = vld [vmem:[#allocation4 + $0x4c0] sm:$0xf] }
 0x5a5   :  { %6987 = vmatpush.bf16.msrb.mxu2 %v8476_v50  ;;  %v8443_v50 = vld [vmem:[#allocation4 + $0x320] sm:$0xf]  ;;  %6967 = vmatpush.bf16.msrb.mxu0 %v8300_v61  ;;  %v9403_v61 = vld [vmem:[#allocation4 + $0x4c4] sm:$0xf0] }
 0x5a6   :  { %6978 = vmatpush.bf16.msra.mxu1 %v8380_v47  ;;  %v8275_v47 = vld [vmem:[#allocation4 + $0x1d0] sm:$0xf] }
 0x5a7   :  { %6927 = vmatpush.bf16.msrb.mxu3 %v8116_v1  ;;  %v8204_v1 = vor.u32 %v9291_v57, %v8203_v52  ;;  %v8452_v52 = vor.u32 %v9353_v59, %v8451_v17  ;;  %v8171_v57 = vld [vmem:[#allocation4 + $0x100] sm:$0xf]  ;;  %v9405_v17 = vld [vmem:[#allocation4 + $0x4d4] sm:$0xf0]  ;;  %v8739_v59 = vld [vmem:[#allocation4 + $0x570] sm:$0xf] }
 0x5a8   :  { %6968 = vmatmul.bf16.vlgmr.msrb.gmra.mxu0 %v13533_v58 }
 0x5a9   :  { %6988 = vmatpush.bf16.msrb.mxu2 %v8468_v11  ;;  %v8435_v11 = vld [vmem:[#allocation4 + $0x310] sm:$0xf]  ;;  %7012 = vmatpush.bf16.msra.mxu0 %v8612_v18  ;;  %v9385_v18 = vld [vmem:[#allocation4 + $0x434] sm:$0xf0] }
 0x5aa   :  { %6979 = vmatpush.bf16.msra.mxu1 %v8372_v45  ;;  %v9425_v45 = vld [vmem:[#allocation4 + $0x574] sm:$0xf0] }
 0x5ab   :  { %6928 = vmatpush.bf16.msrb.mxu3 %v8108_v3  ;;  %v9287_v3 = vld [vmem:[#allocation4 + $0x124] sm:$0xf0] }
 0x5ac   :  { %v8188_v4 = vor.u32 %v9287_v3, %v8187_v51  ;;  %v8292_v51 = vor.u32 %v9313_v42, %v8291_v63  ;;  %v9349_v3 = vld [vmem:[#allocation4 + $0x314] sm:$0xf0]  ;;  %v8587_v42 = vld [vmem:[#allocation4 + $0x440] sm:$0xf] }
 0x5ad   :  { %6989 = vmatpush.bf16.msrb.mxu2 %v8460_v8  ;;  %v8436_v27 = vor.u32 %v9349_v3, %v8435_v11  ;;  %v9309_v8 = vld [vmem:[#allocation4 + $0x1d4] sm:$0xf0] }
 0x5ae   :  { %6929 = vmatmul.bf16.vlgmr.msrb.gmra.mxu3 %v13525_v16  ;;  %v8276_v63 = vor.u32 %v9309_v8, %v8275_v47  ;;  %v9421_v11 = vld [vmem:[#allocation4 + $0x554] sm:$0xf0]  ;;  %v8715_v47 = vld [vmem:[#allocation4 + $0x540] sm:$0xf]  ;;  %v9419_v8 = vld [vmem:[#allocation4 + $0x544] sm:$0xf0] }
 0x5af   :  { %6934 = vmatpush.bf16.msra.mxu3 %v8228_v39  ;;  %v8196_v39 = vor.u32 %v9289_v37, %v8195_v56  ;;  %v9351_v56 = vld [vmem:[#allocation4 + $0x324] sm:$0xf0]  ;;  %v8364_v37 = vor.u32 %v9331_v12, %v8363_v2  ;;  %v8588_v2 = vor.u32 %v9387_v23, %v8587_v42  ;;  %v8731_v12 = vld [vmem:[#allocation4 + $0x560] sm:$0xf]  ;;  %v8547_v23 = vld [vmem:[#allocation4 + $0x3f0] sm:$0xf] }
 0x5b1   :  { %6990 = vmatpush.bf16.msrb.mxu2 %v8452_v52  ;;  %6980 = vmatpush.bf16.msra.mxu1 %v8364_v37  ;;  %v8660_v52 = vor.u32 %v9405_v17, %v8659_v60  ;;  %v9381_v60 = vld [vmem:[#allocation4 + $0x414] sm:$0xf0] }
 0x5b2   :  { %v8564_v17 = vor.u32 %v9381_v60, %v8563_v26  ;;  %v8851_v26 = vld [vmem:[#allocation4 + $0x650] sm:$0xf]  ;;  %v9453_v60 = vld [vmem:[#allocation4 + $0x654] sm:$0xf0] }
 0x5b3   :  { %6935 = vmatpush.bf16.msra.mxu3 %v8220_v62  ;;  %v9285_v62 = vld [vmem:[#allocation4 + $0x114] sm:$0xf0] }
 0x5b4   :  { %v8180_v40 = vor.u32 %v9285_v62, %v8179_v7  ;;  %6981 = vmatmul.bf16.vlgmr.msra.gmra.mxu1 %v13535_v25  ;;  %v8427_v7 = vld [vmem:[#allocation4 + $0x300] sm:$0xf]  ;;  %v9347_v62 = vld [vmem:[#allocation4 + $0x304] sm:$0xf0] }
 0x5b5   :  { %7025 = vmatpush.bf16.msrb.mxu1 %v8676_v41  ;;  %v8428_v19 = vor.u32 %v9347_v62, %v8427_v7  ;;  %v8723_v41 = vld [vmem:[#allocation4 + $0x550] sm:$0xf]  ;;  %v8716_v62 = vor.u32 %v9419_v8, %v8715_v47  ;;  %v9471_v47 = vld [vmem:[#allocation4 + $0x6e4] sm:$0xf0] }
 0x5b6   :  { %v8724_v3 = vor.u32 %v9421_v11, %v8723_v41  ;;  %v8539_v11 = vld [vmem:[#allocation4 + $0x3e0] sm:$0xf] }
 0x5b7   :  { %6936 = vmatpush.bf16.msra.mxu3 %v8212_v9  ;;  %v9283_v9 = vld [vmem:[#allocation4 + $0x104] sm:$0xf0] }
 0x5b8   :  { %v8172_v35 = vor.u32 %v9283_v9, %v8171_v57  ;;  %v8740_v57 = vor.u32 %v9425_v45, %v8739_v59  ;;  %v8267_v9 = vld [vmem:[#allocation4 + $0x1c0] sm:$0xf]  ;;  %v9397_v59 = vld [vmem:[#allocation4 + $0x494] sm:$0xf0]  ;;  %v8707_v45 = vld [vmem:[#allocation4 + $0x530] sm:$0xf] }
 0x5b9   :  { %7026 = vmatpush.bf16.msrb.mxu1 %v8668_v14  ;;  %v9399_v14 = vld [vmem:[#allocation4 + $0x4a4] sm:$0xf0] }
 0x5ba   :  { %v8636_v7 = vor.u32 %v9399_v14, %v8635_v44  ;;  %v8923_v14 = vld [vmem:[#allocation4 + $0x6e0] sm:$0xf] }
 0x5bb   :  { %6937 = vmatpush.bf16.msra.mxu3 %v8204_v1  ;;  %v8444_v1 = vor.u32 %v9351_v56, %v8443_v50  ;;  %v9423_v50 = vld [vmem:[#allocation4 + $0x564] sm:$0xf0]  ;;  %v8652_v56 = vor.u32 %v9403_v61, %v8651_v22  ;;  %v9377_v22 = vld [vmem:[#allocation4 + $0x3f4] sm:$0xf0]  ;;  %v8924_v8 = vor.u32 %v9471_v47, %v8923_v14  ;;  %v8891_v14 = vld [vmem:[#allocation4 + $0x6a0] sm:$0xf] }
 0x5bc   :  { %v8732_v37 = vor.u32 %v9423_v50, %v8731_v12  ;;  %v9379_v61 = vld [vmem:[#allocation4 + $0x404] sm:$0xf0]  ;;  %v8619_v12 = vld [vmem:[#allocation4 + $0x480] sm:$0xf] }
 0x5bd   :  { %6991 = vmatpush.bf16.msrb.mxu2 %v8444_v1  ;;  %7027 = vmatpush.bf16.msrb.mxu1 %v8660_v52  ;;  %v8259_v1 = vld [vmem:[#allocation4 + $0x1b0] sm:$0xf]  ;;  %v9417_v52 = vld [vmem:[#allocation4 + $0x534] sm:$0xf0] }
 0x5bf   :  { %6938 = vmatpush.bf16.msra.mxu3 %v8196_v39  ;;  %v8603_v39 = vld [vmem:[#allocation4 + $0x460] sm:$0xf] }
 0x5c0   :  { %v8604_v54 = vor.u32 %v9391_v32, %v8603_v39  ;;  %v8251_v39 = vld [vmem:[#allocation4 + $0x1a0] sm:$0xf]  ;;  %v9303_v32 = vld [vmem:[#allocation4 + $0x1a4] sm:$0xf0] }
 0x5c1   :  { %6992 = vmatpush.bf16.msrb.mxu2 %v8436_v27  ;;  %7028 = vmatpush.bf16.msrb.mxu1 %v8652_v56  ;;  %v8571_v27 = vld [vmem:[#allocation4 + $0x420] sm:$0xf]  ;;  %v8252_v46 = vor.u32 %v9303_v32, %v8251_v39  ;;  %v9395_v56 = vld [vmem:[#allocation4 + $0x484] sm:$0xf0]  ;;  %v8548_v39 = vor.u32 %v9377_v22, %v8547_v23  ;;  %v9413_v32 = vld [vmem:[#allocation4 + $0x514] sm:$0xf0] }
 0x5c2   :  { %7013 = vmatpush.bf16.msra.mxu0 %v8604_v54  ;;  %v9383_v54 = vld [vmem:[#allocation4 + $0x424] sm:$0xf0]  ;;  %v8843_v22 = vld [vmem:[#allocation4 + $0x640] sm:$0xf] }
 0x5c3   :  { %6939 = vmatpush.bf16.msra.mxu3 %v8188_v4  ;;  %v8284_v4 = vor.u32 %v9311_v21, %v8283_v49  ;;  %v9401_v49 = vld [vmem:[#allocation4 + $0x4b4] sm:$0xf0]  ;;  %v8260_v21 = vor.u32 %v9305_v31, %v8259_v1  ;;  %v8572_v34 = vor.u32 %v9383_v54, %v8571_v27  ;;  %v9415_v1 = vld [vmem:[#allocation4 + $0x524] sm:$0xf0]  ;;  %v8620_v31 = vor.u32 %v9395_v56, %v8619_v12  ;;  %v8987_v56 = vld [vmem:[#allocation4 + $0x760] sm:$0xf] }
 0x5c4   :  { %v9455_v27 = vld [vmem:[#allocation4 + $0x664] sm:$0xf0] }
 0x5c5   :  { %6993 = vmatpush.bf16.msrb.mxu2 %v8428_v19  ;;  %v9301_v19 = vld [vmem:[#allocation4 + $0x194] sm:$0xf0]  ;;  %v9375_v54 = vld [vmem:[#allocation4 + $0x3e4] sm:$0xf0] }
 0x5c6   :  { %7014 = vmatpush.bf16.msra.mxu0 %v8596_v38  ;;  %v8627_v38 = vld [vmem:[#allocation4 + $0x490] sm:$0xf] }
 0x5c7   :  { %6940 = vmatpush.bf16.msra.mxu3 %v8180_v40  ;;  %v9307_v40 = vld [vmem:[#allocation4 + $0x1c4] sm:$0xf0] }
 0x5c8   :  { %6994 = vmatmul.bf16.vlgmr.msrb.gmra.mxu2 %v13537_v10  ;;  %v8268_v30 = vor.u32 %v9307_v40, %v8267_v9  ;;  %v8708_v9 = vor.u32 %v9417_v52, %v8707_v45  ;;  %v8235_v40 = vld [vmem:[#allocation4 + $0x180] sm:$0xf]  ;;  %v9469_v45 = vld [vmem:[#allocation4 + $0x6d4] sm:$0xf0]  ;;  %v8995_v52 = vld [vmem:[#allocation4 + $0x770] sm:$0xf] }
 0x5c9   :  { %7038 = vmatpush.bf16.msra.mxu2 %v8740_v57  ;;  %v8628_v57 = vor.u32 %v9397_v59, %v8627_v38  ;;  %v8915_v38 = vld [vmem:[#allocation4 + $0x6d0] sm:$0xf]  ;;  %v8852_v59 = vor.u32 %v9453_v60, %v8851_v26  ;;  %v9365_v26 = vld [vmem:[#allocation4 + $0x394] sm:$0xf0] }
 0x5ca   :  { %7015 = vmatpush.bf16.msra.mxu0 %v8588_v2  ;;  %v8555_v2 = vld [vmem:[#allocation4 + $0x400] sm:$0xf] }
 0x5cb   :  { %6941 = vmatpush.bf16.msra.mxu3 %v8172_v35  ;;  %v8580_v35 = vor.u32 %v9385_v18, %v8579_v36  ;;  %v8556_v50 = vor.u32 %v9379_v61, %v8555_v2  ;;  %v8867_v36 = vld [vmem:[#allocation4 + $0x670] sm:$0xf]  ;;  %v9457_v18 = vld [vmem:[#allocation4 + $0x674] sm:$0xf0]  ;;  %v9451_v2 = vld [vmem:[#allocation4 + $0x644] sm:$0xf0] }
 0x5cc   :  { %v8907_v61 = vld [vmem:[#allocation4 + $0x6c0] sm:$0xf]  ;;  %v8844_v12 = vor.u32 %v9451_v2, %v8843_v22  ;;  %v8803_v2 = vld [vmem:[#allocation4 + $0x5f0] sm:$0xf] }
 0x5cd   :  { %7039 = vmatpush.bf16.msra.mxu2 %v8732_v37  ;;  %v8699_v37 = vld [vmem:[#allocation4 + $0x520] sm:$0xf] }
 0x5ce   :  { %6942 = vmatmul.bf16.vlgmr.msra.gmra.mxu3 %v13527_v29  ;;  %7016 = vmatpush.bf16.msra.mxu0 %v8580_v35  ;;  %v8868_v35 = vor.u32 %v9457_v18, %v8867_v36  ;;  %v9369_v36 = vld [vmem:[#allocation4 + $0x3b4] sm:$0xf0] }
 0x5cf   :  { %6947 = vmatpush.bf16.msrb.mxu3 %v8292_v51  ;;  %v8644_v51 = vor.u32 %v9401_v49, %v8643_v20  ;;  %v8931_v20 = vld [vmem:[#allocation4 + $0x6f0] sm:$0xf]  ;;  %v9473_v49 = vld [vmem:[#allocation4 + $0x6f4] sm:$0xf0] }
 0x5d1   :  { %7029 = vmatpush.bf16.msrb.mxu1 %v8644_v51  ;;  %7040 = vmatpush.bf16.msra.mxu2 %v8724_v3  ;;  %v8932_v51 = vor.u32 %v9473_v49, %v8931_v20  ;;  %v8691_v3 = vld [vmem:[#allocation4 + $0x510] sm:$0xf] }
 0x5d2   :  { %7017 = vmatpush.bf16.msra.mxu0 %v8572_v34  ;;  %v8692_v44 = vor.u32 %v9413_v32, %v8691_v3  ;;  %v8835_v20 = vld [vmem:[#allocation4 + $0x630] sm:$0xf]  ;;  %v9485_v3 = vld [vmem:[#allocation4 + $0x754] sm:$0xf0] }
 0x5d3   :  { %6948 = vmatpush.bf16.msrb.mxu3 %v8284_v4  ;;  %v8243_v4 = vld [vmem:[#allocation4 + $0x190] sm:$0xf] }
 0x5d4   :  { %v8244_v42 = vor.u32 %v9301_v19, %v8243_v4  ;;  %v8683_v4 = vld [vmem:[#allocation4 + $0x500] sm:$0xf]  ;;  %v9411_v19 = vld [vmem:[#allocation4 + $0x504] sm:$0xf0]  ;;  %v8899_v49 = vld [vmem:[#allocation4 + $0x6b0] sm:$0xf] }
 0x5d5   :  { %7030 = vmatpush.bf16.msrb.mxu1 %v8636_v7  ;;  %7041 = vmatpush.bf16.msra.mxu2 %v8716_v62  ;;  %v8531_v7 = vld [vmem:[#allocation4 + $0x3d0] sm:$0xf]  ;;  %v9373_v62 = vld [vmem:[#allocation4 + $0x3d4] sm:$0xf0] }
 0x5d6   :  { %7018 = vmatpush.bf16.msra.mxu0 %v8564_v17  ;;  %v8684_v17 = vor.u32 %v9411_v19, %v8683_v4  ;;  %v8532_v23 = vor.u32 %v9373_v62, %v8531_v7  ;;  %v8971_v7 = vld [vmem:[#allocation4 + $0x740] sm:$0xf]  ;;  %v9483_v62 = vld [vmem:[#allocation4 + $0x744] sm:$0xf0] }
 0x5d7   :  { %6949 = vmatpush.bf16.msrb.mxu3 %v8276_v63  ;;  %v9299_v63 = vld [vmem:[#allocation4 + $0x184] sm:$0xf0]  ;;  %v8972_v19 = vor.u32 %v9483_v62, %v8971_v7  ;;  %v8787_v62 = vld [vmem:[#allocation4 + $0x5d0] sm:$0xf] }
 0x5d8   :  { %v8236_v41 = vor.u32 %v9299_v63, %v8235_v40  ;;  %v8523_v63 = vld [vmem:[#allocation4 + $0x3c0] sm:$0xf] }
 0x5d9   :  { %7031 = vmatpush.bf16.msrb.mxu1 %v8628_v57  ;;  %7042 = vmatpush.bf16.msra.mxu2 %v8708_v9  ;;  %v9489_v57 = vld [vmem:[#allocation4 + $0x774] sm:$0xf0]  ;;  %v8916_v9 = vor.u32 %v9469_v45, %v8915_v38  ;;  %v8819_v38 = vld [vmem:[#allocation4 + $0x610] sm:$0xf] }
 0x5da   :  { %7019 = vmatpush.bf16.msra.mxu0 %v8556_v50  ;;  %v8996_v40 = vor.u32 %v9489_v57, %v8995_v52  ;;  %v9467_v50 = vld [vmem:[#allocation4 + $0x6c4] sm:$0xf0]  ;;  %v9461_v52 = vld [vmem:[#allocation4 + $0x694] sm:$0xf0]  ;;  %v8963_v57 = vld [vmem:[#allocation4 + $0x730] sm:$0xf] }
 0x5db   :  { %6950 = vmatpush.bf16.msrb.mxu3 %v8268_v30  ;;  %v8700_v30 = vor.u32 %v9415_v1, %v8699_v37  ;;  %v9487_v37 = vld [vmem:[#allocation4 + $0x764] sm:$0xf0]  ;;  %v8908_v1 = vor.u32 %v9467_v50, %v8907_v61  ;;  %v9441_v61 = vld [vmem:[#allocation4 + $0x5f4] sm:$0xf0] }
 0x5dc   :  { %v9443_v50 = vld [vmem:[#allocation4 + $0x604] sm:$0xf0] }
 0x5dd   :  { %7032 = vmatpush.bf16.msrb.mxu1 %v8620_v31  ;;  %7043 = vmatpush.bf16.msra.mxu2 %v8700_v30  ;;  %v8988_v31 = vor.u32 %v9487_v37, %v8987_v56  ;;  %v8515_v30 = vld [vmem:[#allocation4 + $0x3b0] sm:$0xf]  ;;  %v8875_v56 = vld [vmem:[#allocation4 + $0x680] sm:$0xf] }
 0x5de   :  { %7064 = vmatpush.bf16.msrb.mxu0 %v8868_v35  ;;  %v9449_v35 = vld [vmem:[#allocation4 + $0x634] sm:$0xf0] }
 0x5df   :  { %6951 = vmatpush.bf16.msrb.mxu3 %v8260_v21  ;;  %v8859_v21 = vld [vmem:[#allocation4 + $0x660] sm:$0xf]  ;;  %7020 = vmatmul.bf16.vlgmr.msra.gmra.mxu0 %v13541_v43 }
 0x5e0   :  { %v8860_v34 = vor.u32 %v9455_v27, %v8859_v21  ;;  %7033 = vmatmul.bf16.vlgmr.msrb.gmra.mxu1 %v13543_v0  ;;  %v8507_v21 = vld [vmem:[#allocation4 + $0x3a0] sm:$0xf]  ;;  %v9367_v27 = vld [vmem:[#allocation4 + $0x3a4] sm:$0xf0] }
 0x5e1   :  { %7077 = vmatpush.bf16.msra.mxu1 %v8932_v51  ;;  %7044 = vmatpush.bf16.msra.mxu2 %v8692_v44  ;;  %v8979_v51 = vld [vmem:[#allocation4 + $0x750] sm:$0xf]  ;;  %v8827_v44 = vld [vmem:[#allocation4 + $0x620] sm:$0xf]  ;;  %v8508_v60 = vor.u32 %v9367_v27, %v8507_v21  ;;  %v8804_v21 = vor.u32 %v9441_v61, %v8803_v2  ;;  %v9477_v27 = vld [vmem:[#allocation4 + $0x714] sm:$0xf0] }
 0x5e2   :  { %7065 = vmatpush.bf16.msrb.mxu0 %v8860_v34  ;;  %v8980_v32 = vor.u32 %v9485_v3, %v8979_v51  ;;  %v9447_v34 = vld [vmem:[#allocation4 + $0x624] sm:$0xf0]  ;;  %v8795_v3 = vld [vmem:[#allocation4 + $0x5e0] sm:$0xf] }
 0x5e3   :  { %6952 = vmatpush.bf16.msrb.mxu3 %v8252_v46  ;;  %v8540_v46 = vor.u32 %v9375_v54, %v8539_v11  ;;  %v9465_v11 = vld [vmem:[#allocation4 + $0x6b4] sm:$0xf0]  ;;  %v8516_v54 = vor.u32 %v9369_v36, %v8515_v30  ;;  %v8828_v47 = vor.u32 %v9447_v34, %v8827_v44  ;;  %v9479_v30 = vld [vmem:[#allocation4 + $0x724] sm:$0xf0]  ;;  %v9099_v61 = vld [vmem:[#allocation4 + $0x840] sm:$0xf] }
 0x5e4   :  { %v9519_v44 = vld [vmem:[#allocation4 + $0x864] sm:$0xf0] }
 0x5e5   :  { %7078 = vmatpush.bf16.msra.mxu1 %v8924_v8  ;;  %7045 = vmatpush.bf16.msra.mxu2 %v8684_v17  ;;  %v9463_v8 = vld [vmem:[#allocation4 + $0x6a4] sm:$0xf0]  ;;  %v9445_v17 = vld [vmem:[#allocation4 + $0x614] sm:$0xf0] }
 0x5e6   :  { %7066 = vmatpush.bf16.msrb.mxu0 %v8852_v59  ;;  %v8892_v4 = vor.u32 %v9463_v8, %v8891_v14  ;;  %v8883_v59 = vld [vmem:[#allocation4 + $0x690] sm:$0xf]  ;;  %v8820_v45 = vor.u32 %v9445_v17, %v8819_v38  ;;  %v9439_v34 = vld [vmem:[#allocation4 + $0x5e4] sm:$0xf0]  ;;  %v8093_v8 = vld [vmem:[#allocation4 + $0x68] sm:$0xf0] }
 0x5e7   :  { %6953 = vmatpush.bf16.msrb.mxu3 %v8244_v42  ;;  %v9371_v42 = vld [vmem:[#allocation4 + $0x3c4] sm:$0xf0]  ;;  %v9107_v38 = vld [vmem:[#allocation4 + $0x850] sm:$0xf]  ;;  %v9517_v17 = vld [vmem:[#allocation4 + $0x854] sm:$0xf0] }
 0x5e8   :  { %v8524_v18 = vor.u32 %v9371_v42, %v8523_v63  ;;  %7046 = vmatmul.bf16.vlgmr.msra.gmra.mxu2 %v13545_v28  ;;  %v8491_v42 = vld [vmem:[#allocation4 + $0x380] sm:$0xf] }
 0x5e9   :  { %7079 = vmatpush.bf16.msra.mxu1 %v8916_v9  ;;  %7090 = vmatpush.bf16.msrb.mxu2 %v8996_v40  ;;  %v9481_v9 = vld [vmem:[#allocation4 + $0x734] sm:$0xf0]  ;;  %v8884_v40 = vor.u32 %v9461_v52, %v8883_v59  ;;  %v9260_v59 = vld [vmem:[#allocation4 + $0x54] sm:$0xf]  ;;  %v8085_v52 = vld [vmem:[#allocation4 + $0x58] sm:$0xf0] }
 0x5ea   :  { %7067 = vmatpush.bf16.msrb.mxu0 %v8844_v12  ;;  %v8964_v63 = vor.u32 %v9481_v9, %v8963_v57  ;;  %v8811_v12 = vld [vmem:[#allocation4 + $0x600] sm:$0xf]  ;;  %v9280_v57 = vld [vmem:[#allocation4 + $0xf4] sm:$0xf]  ;;  %v8165_v9 = vld [vmem:[#allocation4 + $0xf8] sm:$0xf0] }
 0x5eb   :  { %6954 = vmatpush.bf16.msrb.mxu3 %v8236_v41  ;;  %v8836_v41 = vor.u32 %v9449_v35, %v8835_v20  ;;  %v8812_v37 = vor.u32 %v9443_v50, %v8811_v12  ;;  %v9123_v20 = vld [vmem:[#allocation4 + $0x870] sm:$0xf]  ;;  %v9521_v35 = vld [vmem:[#allocation4 + $0x874] sm:$0xf0]  ;;  %v9515_v12 = vld [vmem:[#allocation4 + $0x844] sm:$0xf0] }
 0x5ec   :  { %v9258_v50 = vld [vmem:[#allocation4 + $0x44] sm:$0xf] }
 0x5ed   :  { %7080 = vmatpush.bf16.msra.mxu1 %v8908_v1  ;;  %7091 = vmatpush.bf16.msrb.mxu2 %v8988_v31  ;;  %v9459_v1 = vld [vmem:[#allocation4 + $0x684] sm:$0xf0]  ;;  %v8955_v31 = vld [vmem:[#allocation4 + $0x720] sm:$0xf] }
 0x5ee   :  { %6955 = vmatmul.bf16.vlgmr.msrb.gmra.mxu3 %v13529_v6  ;;  %7068 = vmatpush.bf16.msrb.mxu0 %v8836_v41  ;;  %v8876_v36 = vor.u32 %v9459_v1, %v8875_v56  ;;  %v9124_v41 = vor.u32 %v9521_v35, %v9123_v20  ;;  %v8077_v56 = vld [vmem:[#allocation4 + $0x48] sm:$0xf0] }
 0x5ef   :  { %6999 = vmatpush.bf16.msra.mxu3 %v8548_v39  ;;  %v8900_v39 = vor.u32 %v9465_v11, %v8899_v49  ;;  %v9264_v49 = vld [vmem:[#allocation4 + $0x74] sm:$0xf]  ;;  %v8101_v11 = vld [vmem:[#allocation4 + $0x78] sm:$0xf0]  ;;  %v8157_v1 = vld [vmem:[#allocation4 + $0xe8] sm:$0xf0]  ;;  %v8080_v20 = vor.u32 %v9258_v50, %v8077_v56 }
 0x5f0   :  { %v9059_v50 = vld [vmem:[#allocation4 + $0x7f0] sm:$0xf]  ;;  %v9505_v56 = vld [vmem:[#allocation4 + $0x7f4] sm:$0xf0] }
 0x5f1   :  { %7081 = vmatpush.bf16.msra.mxu1 %v8900_v39  ;;  %7092 = vmatpush.bf16.msrb.mxu2 %v8980_v32  ;;  %v8104_v39 = vor.u32 %v9264_v49, %v8101_v11  ;;  %v8947_v32 = vld [vmem:[#allocation4 + $0x710] sm:$0xf]  ;;  %v9256_v11 = vld [vmem:[#allocation4 + $0x34] sm:$0xf] }
 0x5f2   :  { %7069 = vmatpush.bf16.msrb.mxu0 %v8828_v47  ;;  %v8948_v14 = vor.u32 %v9477_v27, %v8947_v32  ;;  %v9262_v47 = vld [vmem:[#allocation4 + $0x64] sm:$0xf]  ;;  %v9091_v49 = vld [vmem:[#allocation4 + $0x830] sm:$0xf]  ;;  %v8763_v27 = vld [vmem:[#allocation4 + $0x5a0] sm:$0xf] }
 0x5f3   :  { %7000 = vmatpush.bf16.msra.mxu3 %v8540_v46  ;;  %v8499_v46 = vld [vmem:[#allocation4 + $0x390] sm:$0xf] }
 0x5f4   :  { %v8500_v22 = vor.u32 %v9365_v26, %v8499_v46  ;;  %v8939_v46 = vld [vmem:[#allocation4 + $0x700] sm:$0xf]  ;;  %v9475_v26 = vld [vmem:[#allocation4 + $0x704] sm:$0xf0] }
 0x5f5   :  { %7082 = vmatpush.bf16.msra.mxu1 %v8892_v4  ;;  %7093 = vmatpush.bf16.msrb.mxu2 %v8972_v19  ;;  %v9437_v4 = vld [vmem:[#allocation4 + $0x5d4] sm:$0xf0]  ;;  %v8096_v19 = vor.u32 %v9262_v47, %v8093_v8  ;;  %v9511_v47 = vld [vmem:[#allocation4 + $0x824] sm:$0xf0]  ;;  %v9254_v8 = vld [vmem:[#allocation4 + $0x24] sm:$0xf] }
 0x5f6   :  { %7070 = vmatpush.bf16.msrb.mxu0 %v8820_v45  ;;  %v8940_v45 = vor.u32 %v9475_v26, %v8939_v46  ;;  %v8788_v2 = vor.u32 %v9437_v4, %v8787_v62  ;;  %v9274_v62 = vld [vmem:[#allocation4 + $0xc4] sm:$0xf]  ;;  %v8141_v4 = vld [vmem:[#allocation4 + $0xc8] sm:$0xf0]  ;;  %v8755_v26 = vld [vmem:[#allocation4 + $0x590] sm:$0xf] }
 0x5f7   :  { %7001 = vmatpush.bf16.msra.mxu3 %v8532_v23  ;;  %v9363_v23 = vld [vmem:[#allocation4 + $0x384] sm:$0xf0]  ;;  %v8144_v46 = vor.u32 %v9274_v62, %v8141_v4  ;;  %v9326_v4 = vld [vmem:[#allocation4 + $0x264] sm:$0xf] }
 0x5f8   :  { %v8492_v51 = vor.u32 %v9363_v23, %v8491_v42  ;;  %v8779_v42 = vld [vmem:[#allocation4 + $0x5c0] sm:$0xf]  ;;  %v9435_v23 = vld [vmem:[#allocation4 + $0x5c4] sm:$0xf0] }
 0x5f9   :  { %7083 = vmatpush.bf16.msra.mxu1 %v8884_v40  ;;  %7094 = vmatpush.bf16.msrb.mxu2 %v8964_v63  ;;  %v9108_v40 = vor.u32 %v9517_v17, %v9107_v38  ;;  %v8168_v63 = vor.u32 %v9280_v57, %v8165_v9  ;;  %v8780_v35 = vor.u32 %v9435_v23, %v8779_v42  ;;  %v8053_v9 = vld [vmem:[#allocation4 + $0x18] sm:$0xf0] }
 0x5fa   :  { %7071 = vmatpush.bf16.msrb.mxu0 %v8812_v37  ;;  %v9278_v37 = vld [vmem:[#allocation4 + $0xe4] sm:$0xf] }
 0x5fb   :  { %7002 = vmatpush.bf16.msra.mxu3 %v8524_v18  ;;  %v8956_v18 = vor.u32 %v9479_v30, %v8955_v31  ;;  %v9100_v31 = vor.u32 %v9515_v12, %v9099_v61  ;;  %v8160_v30 = vor.u32 %v9278_v37, %v8157_v1  ;;  %v9067_v37 = vld [vmem:[#allocation4 + $0x800] sm:$0xf]  ;;  %v9507_v1 = vld [vmem:[#allocation4 + $0x804] sm:$0xf0] }
 0x5fd   :  { %7084 = vmatpush.bf16.msra.mxu1 %v8876_v36  ;;  %7095 = vmatpush.bf16.msrb.mxu2 %v8956_v18  ;;  %v8771_v36 = vld [vmem:[#allocation4 + $0x5b0] sm:$0xf]  ;;  %v9433_v18 = vld [vmem:[#allocation4 + $0x5b4] sm:$0xf0] }
 0x5fe   :  { %7116 = vmatpush.bf16.msra.mxu0 %v9124_v41  ;;  %v9513_v41 = vld [vmem:[#allocation4 + $0x834] sm:$0xf0] }
 0x5ff   :  { %7003 = vmatpush.bf16.msra.mxu3 %v8516_v54  ;;  %v9115_v54 = vld [vmem:[#allocation4 + $0x860] sm:$0xf]  ;;  %7072 = vmatmul.bf16.vlgmr.msrb.gmra.mxu0 %v13551_v53  ;;  %v9092_v32 = vor.u32 %v9513_v41, %v9091_v49  ;;  %v9312_v49 = vld [vmem:[#allocation4 + $0x1f4] sm:$0xf]  ;;  %v8293_v41 = vld [vmem:[#allocation4 + $0x1f8] sm:$0xf0] }
 0x600   :  { %v9116_v7 = vor.u32 %v9519_v44, %v9115_v54  ;;  %7085 = vmatmul.bf16.vlgmr.msra.gmra.mxu1 %v13553_v48  ;;  %v9431_v54 = vld [vmem:[#allocation4 + $0x5a4] sm:$0xf0] }
 0x601   :  { %7129 = vmatpush.bf16.msrb.mxu1 %v8104_v39  ;;  %7096 = vmatpush.bf16.msrb.mxu2 %v8948_v14  ;;  %v8149_v39 = vld [vmem:[#allocation4 + $0xd8] sm:$0xf0]  ;;  %v9083_v14 = vld [vmem:[#allocation4 + $0x820] sm:$0xf]  ;;  %v8764_v17 = vor.u32 %v9431_v54, %v8763_v27  ;;  %v9268_v54 = vld [vmem:[#allocation4 + $0x94] sm:$0xf] }
 0x602   :  { %7117 = vmatpush.bf16.msra.mxu0 %v9116_v7  ;;  %v8061_v7 = vld [vmem:[#allocation4 + $0x28] sm:$0xf0] }
 0x603   :  { %7004 = vmatpush.bf16.msra.mxu3 %v8508_v60  ;;  %v8796_v60 = vor.u32 %v9439_v34, %v8795_v3  ;;  %v9276_v3 = vld [vmem:[#allocation4 + $0xd4] sm:$0xf]  ;;  %v8772_v34 = vor.u32 %v9433_v18, %v8771_v36  ;;  %v8064_v38 = vor.u32 %v9254_v8, %v8061_v7  ;;  %v9270_v36 = vld [vmem:[#allocation4 + $0xa4] sm:$0xf]  ;;  %v8125_v18 = vld [vmem:[#allocation4 + $0xa8] sm:$0xf0] }
 0x604   :  { %v8285_v8 = vld [vmem:[#allocation4 + $0x1e8] sm:$0xf0]  ;;  %v9503_v7 = vld [vmem:[#allocation4 + $0x7e4] sm:$0xf0] }
 0x605   :  { %7130 = vmatpush.bf16.msrb.mxu1 %v8096_v19  ;;  %7097 = vmatpush.bf16.msrb.mxu2 %v8940_v45  ;;  %v9084_v19 = vor.u32 %v9511_v47, %v9083_v14  ;;  %v9509_v45 = vld [vmem:[#allocation4 + $0x814] sm:$0xf0]  ;;  %v8117_v14 = vld [vmem:[#allocation4 + $0x98] sm:$0xf0]  ;;  %v9310_v47 = vld [vmem:[#allocation4 + $0x1e4] sm:$0xf] }
 0x606   :  { %7118 = vmatpush.bf16.msra.mxu0 %v9108_v40  ;;  %v9272_v40 = vld [vmem:[#allocation4 + $0xb4] sm:$0xf]  ;;  %v8120_v62 = vor.u32 %v9268_v54, %v8117_v14 }
 0x607   :  { %7005 = vmatpush.bf16.msra.mxu3 %v8500_v22  ;;  %v8088_v22 = vor.u32 %v9260_v59, %v8085_v52  ;;  %v9075_v59 = vld [vmem:[#allocation4 + $0x810] sm:$0xf]  ;;  %v9252_v52 = vld [vmem:[#allocation4 + $0x14] sm:$0xf] }
 0x608   :  { %7098 = vmatmul.bf16.vlgmr.msrb.gmra.mxu2 %v13555_v15  ;;  %v9076_v42 = vor.u32 %v9509_v45, %v9075_v59  ;;  %v8056_v61 = vor.u32 %v9252_v52, %v8053_v9  ;;  %v8109_v59 = vld [vmem:[#allocation4 + $0x88] sm:$0xf0]  ;;  %v9308_v52 = vld [vmem:[#allocation4 + $0x1d4] sm:$0xf]  ;;  %v8277_v9 = vld [vmem:[#allocation4 + $0x1d8] sm:$0xf0] }
 0x609   :  { %7142 = vmatpush.bf16.msra.mxu2 %v8168_v63  ;;  %7131 = vmatpush.bf16.msrb.mxu1 %v8088_v22  ;;  %v8133_v63 = vld [vmem:[#allocation4 + $0xb8] sm:$0xf0]  ;;  %v8747_v22 = vld [vmem:[#allocation4 + $0x580] sm:$0xf]  ;;  %v9340_v54 = vld [vmem:[#allocation4 + $0x2d4] sm:$0xf] }
 0x60a   :  { %7119 = vmatpush.bf16.msra.mxu0 %v9100_v31  ;;  %v8136_v23 = vor.u32 %v9272_v40, %v8133_v63  ;;  %v9250_v31 = vld [vmem:[#allocation4 + $0x4] sm:$0xf]  ;;  %v9324_v40 = vld [vmem:[#allocation4 + $0x254] sm:$0xf] }
 0x60b   :  { %7006 = vmatpush.bf16.msra.mxu3 %v8492_v51  ;;  %v8069_v51 = vld [vmem:[#allocation4 + $0x38] sm:$0xf0] }
 0x60c   :  { %v8072_v44 = vor.u32 %v9256_v11, %v8069_v51  ;;  %v9328_v11 = vld [vmem:[#allocation4 + $0x274] sm:$0xf] }
 0x60d   :  { %7143 = vmatpush.bf16.msra.mxu2 %v8160_v30  ;;  %7132 = vmatpush.bf16.msrb.mxu1 %v8080_v20  ;;  %v8045_v30 = vld [vmem:[#allocation4 + $0x8] sm:$0xf0]  ;;  %v9068_v20 = vor.u32 %v9507_v1, %v9067_v37  ;;  %v9306_v1 = vld [vmem:[#allocation4 + $0x1c4] sm:$0xf] }
 0x60e   :  { %7007 = vmatmul.bf16.vlgmr.msra.gmra.mxu3 %v13539_v33  ;;  %7120 = vmatpush.bf16.msra.mxu0 %v9092_v32  ;;  %v8048_v51 = vor.u32 %v9250_v31, %v8045_v30  ;;  %v8269_v31 = vld [vmem:[#allocation4 + $0x1c8] sm:$0xf0]  ;;  %v9322_v30 = vld [vmem:[#allocation4 + $0x244] sm:$0xf] }
 0x60f   :  { %7051 = vmatpush.bf16.msrb.mxu3 %v8804_v21  ;;  %v8152_v21 = vor.u32 %v9276_v3, %v8149_v39  ;;  %v8296_v3 = vor.u32 %v9312_v49, %v8293_v41  ;;  %v8357_v39 = vld [vmem:[#allocation4 + $0x278] sm:$0xf0]  ;;  %v5542_v49 = vld [vmem:[#allocation18] sm:$0x3]  ;;  %v9027_v41 = vld [vmem:[#allocation4 + $0x7b0] sm:$0xf] }
 0x610   :  { %v8360_v27 = vor.u32 %v9328_v11, %v8357_v39  ;;  %v9497_v11 = vld [vmem:[#allocation4 + $0x7b4] sm:$0xf0]  ;;  %v9304_v39 = vld [vmem:[#allocation4 + $0x1b4] sm:$0xf] }
 0x611   :  { %7144 = vmatpush.bf16.msra.mxu2 %v8152_v21  ;;  %7133 = vmatpush.bf16.msrb.mxu1 %v8072_v44  ;;  %v13573_v57 = vpop.f32.mrf.mxu3  ;;  %v9051_v21 = vld [vmem:[#allocation4 + $0x7e0] sm:$0xf]  ;;  %v9060_v44 = vor.u32 %v9505_v56, %v9059_v50  ;;  %v9499_v50 = vld [vmem:[#allocation4 + $0x7c4] sm:$0xf0] }
 0x612   :  { %7121 = vmatpush.bf16.msra.mxu0 %v9084_v19  ;;  %v8349_v19 = vld [vmem:[#allocation4 + $0x268] sm:$0xf0]  ;;  %v9052_v45 = vor.u32 %v9503_v7, %v9051_v21  ;;  %v9320_v21 = vld [vmem:[#allocation4 + $0x234] sm:$0xf]  ;;  %v9495_v7 = vld [vmem:[#allocation4 + $0x7a4] sm:$0xf0] }
 0x613   :  { %7052 = vmatpush.bf16.msrb.mxu3 %v8796_v60  ;;  %v9429_v60 = vld [vmem:[#allocation4 + $0x594] sm:$0xf0] }
 0x614   :  { %v8756_v12 = vor.u32 %v9429_v60, %v8755_v26  ;;  %v9043_v26 = vld [vmem:[#allocation4 + $0x7d0] sm:$0xf]  ;;  %v9501_v60 = vld [vmem:[#allocation4 + $0x7d4] sm:$0xf0] }
 0x615   :  { %7145 = vmatpush.bf16.msra.mxu2 %v8144_v46  ;;  %7134 = vmatpush.bf16.msrb.mxu1 %v8064_v38  ;;  %v8288_v46 = vor.u32 %v9310_v47, %v8285_v8  ;;  %v8352_v38 = vor.u32 %v9326_v4, %v8349_v19  ;;  %v9044_v37 = vor.u32 %v9501_v60, %v9043_v26  ;;  %v9019_v8 = vld [vmem:[#allocation4 + $0x7a0] sm:$0xf]  ;;  %v9302_v19 = vld [vmem:[#allocation4 + $0x1a4] sm:$0xf]  ;;  %v8317_v60 = vld [vmem:[#allocation4 + $0x228] sm:$0xf0] }
 0x616   :  { %7122 = vmatpush.bf16.msra.mxu0 %v9076_v42  ;;  %v8341_v42 = vld [vmem:[#allocation4 + $0x258] sm:$0xf0]  ;;  %v9028_v4 = vor.u32 %v9497_v11, %v9027_v41  ;;  %v9318_v26 = vld [vmem:[#allocation4 + $0x224] sm:$0xf]  ;;  %v8301_v41 = vld [vmem:[#allocation4 + $0x208] sm:$0xf0] }
 0x617   :  { %7053 = vmatpush.bf16.msrb.mxu3 %v8788_v2  ;;  %v9427_v2 = vld [vmem:[#allocation4 + $0x584] sm:$0xf0]  ;;  %v8344_v56 = vor.u32 %v9324_v40, %v8341_v42  ;;  %v8320_v40 = vor.u32 %v9318_v26, %v8317_v60  ;;  %v9300_v42 = vld [vmem:[#allocation4 + $0x194] sm:$0xf]  ;;  %v9334_v11 = vld [vmem:[#allocation4 + $0x2a4] sm:$0xf] }
 0x618   :  { %v8748_v32 = vor.u32 %v9427_v2, %v8747_v22  ;;  %v8421_v22 = vld [vmem:[#allocation4 + $0x2f8] sm:$0xf0]  ;;  %v8280_v2 = vor.u32 %v9308_v52, %v8277_v9  ;;  %v9011_v52 = vld [vmem:[#allocation4 + $0x790] sm:$0xf]  ;;  %v9493_v9 = vld [vmem:[#allocation4 + $0x794] sm:$0xf0] }
 0x619   :  { %7146 = vmatpush.bf16.msra.mxu2 %v8136_v23  ;;  %7135 = vmatpush.bf16.msrb.mxu1 %v8056_v61  ;;  %v9344_v23 = vld [vmem:[#allocation4 + $0x2f4] sm:$0xf]  ;;  %v8541_v26 = vld [vmem:[#allocation4 + $0x3e8] sm:$0xf0] }
 0x61a   :  { %7123 = vmatpush.bf16.msra.mxu0 %v9068_v20  ;;  %v8424_v61 = vor.u32 %v9344_v23, %v8421_v22  ;;  %v8413_v20 = vld [vmem:[#allocation4 + $0x2e8] sm:$0xf0]  ;;  %v8245_v23 = vld [vmem:[#allocation4 + $0x198] sm:$0xf0]  ;;  %v9316_v22 = vld [vmem:[#allocation4 + $0x214] sm:$0xf] }
 0x61b   :  { %7054 = vmatpush.bf16.msrb.mxu3 %v8780_v35  ;;  %v8128_v35 = vor.u32 %v9270_v36, %v8125_v18  ;;  %v8333_v36 = vld [vmem:[#allocation4 + $0x248] sm:$0xf0]  ;;  %v9342_v18 = vld [vmem:[#allocation4 + $0x2e4] sm:$0xf] }
 0x61c   :  { %v8221_v60 = vld [vmem:[#allocation4 + $0x168] sm:$0xf0] }
 0x61d   :  { %7147 = vmatpush.bf16.msra.mxu2 %v8128_v35  ;;  %7136 = vmatpush.bf16.msrb.mxu1 %v8048_v51  ;;  %v8416_v35 = vor.u32 %v9342_v18, %v8413_v20  ;;  %v8336_v51 = vor.u32 %v9322_v30, %v8333_v36  ;;  %v9012_v36 = vor.u32 %v9493_v9, %v9011_v52  ;;  %v9296_v18 = vld [vmem:[#allocation4 + $0x174] sm:$0xf]  ;;  %v8229_v20 = vld [vmem:[#allocation4 + $0x178] sm:$0xf0] }
 0x61e   :  { %7168 = vmatpush.bf16.msrb.mxu0 %v8296_v3  ;;  %v8213_v52 = vld [vmem:[#allocation4 + $0x158] sm:$0xf0] }
 0x61f   :  { %7055 = vmatpush.bf16.msrb.mxu3 %v8772_v34  ;;  %v6919_v34 = vpop.f32.mrf.mxu3  ;;  %7124 = vmatmul.bf16.vlgmr.msra.gmra.mxu0 %v13549_v55 }
 0x620   :  { %7137 = vmatmul.bf16.vlgmr.msrb.gmra.mxu1 %v13523_v24  ;;  %v8272_v24 = vor.u32 %v9306_v1, %v8269_v31  ;;  %v5544_v34 = vperm.slane %v5542_v49, 0  ;;  %v9003_v1 = vld [vmem:[#allocation4 + $0x780] sm:$0xf]  ;;  %v9491_v31 = vld [vmem:[#allocation4 + $0x784] sm:$0xf0] }
 0x621   :  { %7181 = vmatpush.bf16.msra.mxu1 %v8360_v27  ;;  %7148 = vmatpush.bf16.msra.mxu2 %v8120_v62  ;;  %v8325_v27 = vld [vmem:[#allocation4 + $0x238] sm:$0xf0]  ;;  %v9314_v49 = vld [vmem:[#allocation4 + $0x204] sm:$0xf] }
 0x622   :  { %7169 = vmatpush.bf16.msrb.mxu0 %v8288_v46  ;;  %v8328_v62 = vor.u32 %v9320_v21, %v8325_v27  ;;  %v8253_v46 = vld [vmem:[#allocation4 + $0x1a8] sm:$0xf0]  ;;  %v8549_v21 = vld [vmem:[#allocation4 + $0x3f8] sm:$0xf0]  ;;  %v9392_v27 = vld [vmem:[#allocation4 + $0x474] sm:$0xf] }
 0x623   :  { %7056 = vmatpush.bf16.msrb.mxu3 %v8764_v17  ;;  %v9266_v17 = vld [vmem:[#allocation4 + $0x84] sm:$0xf] }
 0x624   :  { %v8112_v63 = vor.u32 %v9266_v17, %v8109_v59  ;;  %v6918_v17 = vadd.f32 %v13573_v57, %v5544_v34  ;;  %v8256_v59 = vor.u32 %v9302_v19, %v8253_v46  ;;  %v8248_v57 = vor.u32 %v9300_v42, %v8245_v23  ;;  %v8613_v34 = vld [vmem:[#allocation4 + $0x478] sm:$0xf0]  ;;  %v9374_v46 = vld [vmem:[#allocation4 + $0x3e4] sm:$0xf]  ;;  %v9372_v23 = vld [vmem:[#allocation4 + $0x3d4] sm:$0xf] }
 0x625   :  { %7182 = vmatpush.bf16.msra.mxu1 %v8352_v38  ;;  %v9338_v38 = vld [vmem:[#allocation4 + $0x2c4] sm:$0xf]  ;;  %v8373_v19 = vld [vmem:[#allocation4 + $0x298] sm:$0xf0] }
 0x626   :  { %7149 = vmatpush.bf16.msra.mxu2 %v8112_v63  ;;  %7170 = vmatpush.bf16.msrb.mxu0 %v8280_v2  ;;  %v9020_v63 = vor.u32 %v9495_v7, %v9019_v8  ;;  %v8616_v8 = vor.u32 %v9392_v27, %v8613_v34  ;;  %v9332_v7 = vld [vmem:[#allocation4 + $0x294] sm:$0xf]  ;;  %v8517_v27 = vld [vmem:[#allocation4 + $0x3b8] sm:$0xf0] }
 0x627   :  { %7057 = vmatpush.bf16.msrb.mxu3 %v8756_v12  ;;  %v9035_v12 = vld [vmem:[#allocation4 + $0x7c0] sm:$0xf]  ;;  %v9404_v34 = vld [vmem:[#allocation4 + $0x4d4] sm:$0xf] }
 0x628   :  { %v9036_v3 = vor.u32 %v9499_v50, %v9035_v12  ;;  %v9336_v12 = vld [vmem:[#allocation4 + $0x2b4] sm:$0xf]  ;;  %v8389_v50 = vld [vmem:[#allocation4 + $0x2b8] sm:$0xf0] }
 0x629   :  { %7183 = vmatpush.bf16.msra.mxu1 %v8344_v56  ;;  %7150 = vmatmul.bf16.vlgmr.msra.gmra.mxu2 %v13525_v16  ;;  %v8397_v16 = vld [vmem:[#allocation4 + $0x2c8] sm:$0xf0] }
 0x62a   :  { %7194 = vmatpush.bf16.msrb.mxu2 %v8424_v61  ;;  %7171 = vmatpush.bf16.msrb.mxu0 %v8272_v24  ;;  %v8309_v61 = vld [vmem:[#allocation4 + $0x218] sm:$0xf0]  ;;  %v9298_v24 = vld [vmem:[#allocation4 + $0x184] sm:$0xf] }
 0x62b   :  { %7058 = vmatpush.bf16.msrb.mxu3 %v8748_v32  ;;  %v8261_v32 = vld [vmem:[#allocation4 + $0x1b8] sm:$0xf0]  ;;  %v8312_v30 = vor.u32 %v9316_v22, %v8309_v61 }
 0x62c   :  { %v8264_v14 = vor.u32 %v9304_v39, %v8261_v32  ;;  %v9376_v32 = vld [vmem:[#allocation4 + $0x3f4] sm:$0xf]  ;;  %v8533_v22 = vld [vmem:[#allocation4 + $0x3d8] sm:$0xf0] }
 0x62d   :  { %7184 = vmatpush.bf16.msra.mxu1 %v8336_v51  ;;  %v8381_v51 = vld [vmem:[#allocation4 + $0x2a8] sm:$0xf0] }
 0x62e   :  { %7059 = vmatmul.bf16.vlgmr.msrb.gmra.mxu3 %v13547_v13  ;;  %7195 = vmatpush.bf16.msrb.mxu2 %v8416_v35  ;;  %v8237_v35 = vld [vmem:[#allocation4 + $0x188] sm:$0xf0]  ;;  %v8384_v39 = vor.u32 %v9334_v11, %v8381_v51  ;;  %v9288_v51 = vld [vmem:[#allocation4 + $0x134] sm:$0xf] }
 0x62f   :  { %7103 = vmatpush.bf16.msra.mxu3 %v9060_v44  ;;  %v8405_v44 = vld [vmem:[#allocation4 + $0x2d8] sm:$0xf0]  ;;  %7172 = vmatpush.bf16.msrb.mxu0 %v8264_v14  ;;  %v9004_v14 = vor.u32 %v9491_v31, %v9003_v1  ;;  %v9290_v31 = vld [vmem:[#allocation4 + $0x144] sm:$0xf] }
 0x630   :  { %v8408_v47 = vor.u32 %v9340_v54, %v8405_v44  ;;  %v8304_v54 = vor.u32 %v9314_v49, %v8301_v41  ;;  %v8552_v44 = vor.u32 %v9376_v32, %v8549_v21  ;;  %v9406_v49 = vld [vmem:[#allocation4 + $0x4e4] sm:$0xf]  ;;  %v8669_v41 = vld [vmem:[#allocation4 + $0x4e8] sm:$0xf0]  ;;  %v9368_v21 = vld [vmem:[#allocation4 + $0x3b4] sm:$0xf] }
 0x631   :  { %7185 = vmatpush.bf16.msra.mxu1 %v8328_v62  ;;  %v6930_v2 = vpop.f32.mrf.mxu3  ;;  %v8232_v62 = vor.u32 %v9296_v18, %v8229_v20  ;;  %v9370_v20 = vld [vmem:[#allocation4 + $0x3c4] sm:$0xf]  ;;  %v8672_v11 = vor.u32 %v9406_v49, %v8669_v41  ;;  %v8493_v49 = vld [vmem:[#allocation4 + $0x388] sm:$0xf0] }
 0x632   :  { %7196 = vmatpush.bf16.msrb.mxu2 %v8408_v47  ;;  %v13580_v56 = vadd.f32 %v6930_v2, %v6918_v17  ;;  %v9294_v47 = vld [vmem:[#allocation4 + $0x164] sm:$0xf]  ;;  %v8605_v17 = vld [vmem:[#allocation4 + $0x468] sm:$0xf0]  ;;  %v9388_v2 = vld [vmem:[#allocation4 + $0x454] sm:$0xf] }
 0x633   :  { %7104 = vmatpush.bf16.msra.mxu3 %v9052_v45  ;;  %v8400_v45 = vor.u32 %v9338_v38, %v8397_v16  ;;  %7173 = vmatpush.bf16.msrb.mxu0 %v8256_v59  ;;  %v8376_v38 = vor.u32 %v9332_v7, %v8373_v19  ;;  %v9390_v16 = vld [vmem:[#allocation4 + $0x464] sm:$0xf]  ;;  %v8544_v59 = vor.u32 %v9374_v46, %v8541_v26  ;;  %v8509_v26 = vld [vmem:[#allocation4 + $0x3a8] sm:$0xf0] }
 0x634   :  { %v8608_v9 = vor.u32 %v9390_v16, %v8605_v17  ;;  %v8224_v42 = vor.u32 %v9294_v47, %v8221_v60  ;;  %v8520_v47 = vor.u32 %v9368_v21, %v8517_v27  ;;  %v9286_v7 = vld [vmem:[#allocation4 + $0x124] sm:$0xf]  ;;  %v8653_v16 = vld [vmem:[#allocation4 + $0x4c8] sm:$0xf0]  ;;  %v8805_v21 = vld [vmem:[#allocation4 + $0x5f8] sm:$0xf0] }
 0x635   :  { %7186 = vmatpush.bf16.msra.mxu1 %v8320_v40  ;;  %v9330_v40 = vld [vmem:[#allocation4 + $0x284] sm:$0xf]  ;;  %v9456_v27 = vld [vmem:[#allocation4 + $0x674] sm:$0xf] }
 0x636   :  { %7197 = vmatpush.bf16.msrb.mxu2 %v8400_v45  ;;  %v9292_v45 = vld [vmem:[#allocation4 + $0x154] sm:$0xf]  ;;  %v9366_v46 = vld [vmem:[#allocation4 + $0x3a4] sm:$0xf] }
 0x637   :  { %7105 = vmatpush.bf16.msra.mxu3 %v9044_v37  ;;  %v8392_v37 = vor.u32 %v9336_v12, %v8389_v50  ;;  %7174 = vmatpush.bf16.msrb.mxu0 %v8248_v57  ;;  %v8597_v12 = vld [vmem:[#allocation4 + $0x458] sm:$0xf0]  ;;  %v9408_v50 = vld [vmem:[#allocation4 + $0x4f4] sm:$0xf]  ;;  %v8216_v18 = vor.u32 %v9292_v45, %v8213_v52  ;;  %v9382_v60 = vld [vmem:[#allocation4 + $0x424] sm:$0xf]  ;;  %v8512_v17 = vor.u32 %v9366_v46, %v8509_v26 }
 0x638   :  { %v8677_v57 = vld [vmem:[#allocation4 + $0x4f8] sm:$0xf0]  ;;  %v9284_v45 = vld [vmem:[#allocation4 + $0x114] sm:$0xf]  ;;  %v9378_v41 = vld [vmem:[#allocation4 + $0x404] sm:$0xf] }
 0x639   :  { %7187 = vmatpush.bf16.msra.mxu1 %v8312_v30  ;;  %v8680_v1 = vor.u32 %v9408_v50, %v8677_v57  ;;  %v8205_v30 = vld [vmem:[#allocation4 + $0x148] sm:$0xf0]  ;;  %v8181_v52 = vld [vmem:[#allocation4 + $0x118] sm:$0xf0]  ;;  %v9400_v50 = vld [vmem:[#allocation4 + $0x4b4] sm:$0xf] }
 0x63a   :  { %7198 = vmatpush.bf16.msrb.mxu2 %v8392_v37  ;;  %v8536_v37 = vor.u32 %v9372_v23, %v8533_v22  ;;  %v8208_v32 = vor.u32 %v9290_v31, %v8205_v30  ;;  %v8501_v23 = vld [vmem:[#allocation4 + $0x398] sm:$0xf0]  ;;  %v9380_v22 = vld [vmem:[#allocation4 + $0x414] sm:$0xf]  ;;  %v9282_v30 = vld [vmem:[#allocation4 + $0x104] sm:$0xf] }
 0x63b   :  { %7106 = vmatpush.bf16.msra.mxu3 %v9036_v3  ;;  %v8240_v3 = vor.u32 %v9298_v24, %v8237_v35  ;;  %v9386_v24 = vld [vmem:[#allocation4 + $0x444] sm:$0xf]  ;;  %v8589_v35 = vld [vmem:[#allocation4 + $0x448] sm:$0xf0]  ;;  %v8645_v57 = vld [vmem:[#allocation4 + $0x4b8] sm:$0xf0] }
 0x63c   :  { %v8648_v31 = vor.u32 %v9400_v50, %v8645_v57  ;;  %v8629_v46 = vld [vmem:[#allocation4 + $0x498] sm:$0xf0]  ;;  %v9438_v26 = vld [vmem:[#allocation4 + $0x5e4] sm:$0xf]  ;;  %v9452_v50 = vld [vmem:[#allocation4 + $0x654] sm:$0xf] }
 0x63d   :  { %7175 = vmatpush.bf16.msrb.mxu0 %v8240_v3  ;;  %7188 = vmatpush.bf16.msra.mxu1 %v8304_v54  ;;  %v8197_v3 = vld [vmem:[#allocation4 + $0x138] sm:$0xf0]  ;;  %v9384_v54 = vld [vmem:[#allocation4 + $0x434] sm:$0xf] }
 0x63e   :  { %7199 = vmatpush.bf16.msrb.mxu2 %v8384_v39  ;;  %v8592_v39 = vor.u32 %v9386_v24, %v8589_v35  ;;  %v8200_v19 = vor.u32 %v9288_v51, %v8197_v3  ;;  %v8485_v24 = vld [vmem:[#allocation4 + $0x378] sm:$0xf0]  ;;  %v9362_v35 = vld [vmem:[#allocation4 + $0x384] sm:$0xf]  ;;  %v8637_v51 = vld [vmem:[#allocation4 + $0x4a8] sm:$0xf0] }
 0x63f   :  { %7107 = vmatpush.bf16.msra.mxu3 %v9028_v4  ;;  %v6932_v4 = vpop.f32.mrf.mxu3  ;;  %v8496_v3 = vor.u32 %v9362_v35, %v8493_v49 }
 0x640   :  { %7176 = vmatmul.bf16.vlgmr.msrb.gmra.mxu0 %v13529_v6  ;;  %7189 = vmatmul.bf16.vlgmr.msra.gmra.mxu1 %v13533_v58  ;;  %v8525_v6 = vld [vmem:[#allocation4 + $0x3c8] sm:$0xf0] }
 0x641   :  { %7220 = vmatpush.bf16.msra.mxu0 %v8552_v44  ;;  %7233 = vmatpush.bf16.msrb.mxu1 %v8616_v8  ;;  %v8528_v58 = vor.u32 %v9370_v20, %v8525_v6  ;;  %v8581_v44 = vld [vmem:[#allocation4 + $0x438] sm:$0xf0]  ;;  %v8184_v20 = vor.u32 %v9284_v45, %v8181_v52  ;;  %v9360_v6 = vld [vmem:[#allocation4 + $0x374] sm:$0xf] }
 0x642   :  { %7200 = vmatpush.bf16.msrb.mxu2 %v8376_v38  ;;  %v8584_v4 = vor.u32 %v9384_v54, %v8581_v44  ;;  %v9402_v38 = vld [vmem:[#allocation4 + $0x4c4] sm:$0xf]  ;;  %v9356_v52 = vld [vmem:[#allocation4 + $0x354] sm:$0xf] }
 0x643   :  { %7108 = vmatpush.bf16.msra.mxu3 %v9020_v63  ;;  %v8365_v63 = vld [vmem:[#allocation4 + $0x288] sm:$0xf0] }
 0x644   :  { %v8368_v61 = vor.u32 %v9330_v40, %v8365_v63  ;;  %v13586_v40 = vpop.f32.mrf.mxu0 }
 0x645   :  { %7221 = vmatpush.bf16.msra.mxu0 %v8544_v59  ;;  %7234 = vmatpush.bf16.msrb.mxu1 %v8608_v9  ;;  %v8656_v59 = vor.u32 %v9402_v38, %v8653_v16  ;;  %v8477_v38 = vld [vmem:[#allocation4 + $0x368] sm:$0xf0] }
 0x646   :  { %7201 = vmatpush.bf16.msrb.mxu2 %v8368_v61  ;;  %v13588_v61 = vpop.f32.mrf.mxu1 }
 0x647   :  { %7109 = vmatpush.bf16.msra.mxu3 %v9012_v36  ;;  %v8600_v36 = vor.u32 %v9388_v2, %v8597_v12  ;;  %v8565_v12 = vld [vmem:[#allocation4 + $0x418] sm:$0xf0] }
 0x649   :  { %7222 = vmatpush.bf16.msra.mxu0 %v8536_v37  ;;  %7235 = vmatpush.bf16.msrb.mxu1 %v8600_v36  ;;  %v8173_v36 = vld [vmem:[#allocation4 + $0x108] sm:$0xf0] }
 0x64a   :  { %7246 = vmatpush.bf16.msra.mxu2 %v8680_v1 }
 0x64b   :  { %7110 = vmatpush.bf16.msra.mxu3 %v9004_v14  ;;  %7202 = vmatmul.bf16.vlgmr.msrb.gmra.mxu2 %v13535_v25  ;;  %v8661_v14 = vld [vmem:[#allocation4 + $0x4d8] sm:$0xf0]  ;;  %v8573_v25 = vld [vmem:[#allocation4 + $0x428] sm:$0xf0] }
 0x64c   :  { %v8664_v8 = vor.u32 %v9404_v34, %v8661_v14  ;;  %v8576_v9 = vor.u32 %v9382_v60, %v8573_v25  ;;  %v8869_v34 = vld [vmem:[#allocation4 + $0x678] sm:$0xf0]  ;;  %v6971_v14 = vpop.f32.mrf.mxu0  ;;  %v8797_v60 = vld [vmem:[#allocation4 + $0x5e8] sm:$0xf0] }
 0x64d   :  { %7223 = vmatpush.bf16.msra.mxu0 %v8528_v58  ;;  %7236 = vmatpush.bf16.msrb.mxu1 %v8592_v39  ;;  %v8557_v58 = vld [vmem:[#allocation4 + $0x408] sm:$0xf0]  ;;  %v8800_v45 = vor.u32 %v9438_v26, %v8797_v60  ;;  %v8837_v14 = vld [vmem:[#allocation4 + $0x638] sm:$0xf0]  ;;  %v9430_v60 = vld [vmem:[#allocation4 + $0x5a4] sm:$0xf] }
 0x64e   :  { %7111 = vmatmul.bf16.vlgmr.msra.gmra.mxu3 %v13557_v5  ;;  %7247 = vmatpush.bf16.msra.mxu2 %v8672_v11  ;;  %v9398_v11 = vld [vmem:[#allocation4 + $0x4a4] sm:$0xf]  ;;  %v8560_v54 = vor.u32 %v9378_v41, %v8557_v58  ;;  %v6984_v25 = vpop.f32.mrf.mxu1  ;;  %v8781_v41 = vld [vmem:[#allocation4 + $0x5c8] sm:$0xf0] }
 0x64f   :  { %7155 = vmatpush.bf16.msrb.mxu3 %v8232_v62  ;;  %v8189_v62 = vld [vmem:[#allocation4 + $0x128] sm:$0xf0]  ;;  %v8640_v39 = vor.u32 %v9398_v11, %v8637_v51  ;;  %v9450_v58 = vld [vmem:[#allocation4 + $0x644] sm:$0xf] }
 0x650   :  { %v8192_v63 = vor.u32 %v9286_v7, %v8189_v62  ;;  %v8872_v7 = vor.u32 %v9456_v27, %v8869_v34  ;;  %v9396_v62 = vld [vmem:[#allocation4 + $0x494] sm:$0xf]  ;;  %v8845_v11 = vld [vmem:[#allocation4 + $0x648] sm:$0xf0]  ;;  %v9470_v51 = vld [vmem:[#allocation4 + $0x6e4] sm:$0xf] }
 0x651   :  { %7224 = vmatpush.bf16.msra.mxu0 %v8520_v47  ;;  %7237 = vmatpush.bf16.msrb.mxu1 %v8584_v4  ;;  %v6943_v2 = vpop.f32.mrf.mxu3  ;;  %v8176_v47 = vor.u32 %v9282_v30, %v8173_v36  ;;  %v8488_v4 = vor.u32 %v9360_v6, %v8485_v24  ;;  %v8632_v16 = vor.u32 %v9396_v62, %v8629_v46  ;;  %v8933_v30 = vld [vmem:[#allocation4 + $0x6f8] sm:$0xf0]  ;;  %v9354_v6 = vld [vmem:[#allocation4 + $0x344] sm:$0xf]  ;;  %v8461_v24 = vld [vmem:[#allocation4 + $0x348] sm:$0xf0] }
 0x652   :  { %7248 = vmatpush.bf16.msra.mxu2 %v8664_v8  ;;  %v13591_v37 = vadd.f32 %v6943_v2, %v13580_v56  ;;  %v13593_v56 = vpop.f32.mrf.mxu2  ;;  %v9358_v8 = vld [vmem:[#allocation4 + $0x364] sm:$0xf]  ;;  %v9436_v2 = vld [vmem:[#allocation4 + $0x5d4] sm:$0xf]  ;;  %v8464_v27 = vor.u32 %v9354_v6, %v8461_v24  ;;  %v8765_v25 = vld [vmem:[#allocation4 + $0x5a8] sm:$0xf0] }
 0x653   :  { %7156 = vmatpush.bf16.msrb.mxu3 %v8224_v42  ;;  %v9364_v42 = vld [vmem:[#allocation4 + $0x394] sm:$0xf]  ;;  %v9346_v6 = vld [vmem:[#allocation4 + $0x304] sm:$0xf]  ;;  %v8429_v24 = vld [vmem:[#allocation4 + $0x308] sm:$0xf0] }
 0x654   :  { %v8504_v1 = vor.u32 %v9364_v42, %v8501_v23  ;;  %v9394_v42 = vld [vmem:[#allocation4 + $0x484] sm:$0xf]  ;;  %v8621_v23 = vld [vmem:[#allocation4 + $0x488] sm:$0xf0]  ;;  %v9448_v34 = vld [vmem:[#allocation4 + $0x634] sm:$0xf] }
 0x655   :  { %7225 = vmatpush.bf16.msra.mxu0 %v8512_v17  ;;  %7238 = vmatpush.bf16.msrb.mxu1 %v8576_v9  ;;  %v9454_v17 = vld [vmem:[#allocation4 + $0x664] sm:$0xf]  ;;  %v8469_v9 = vld [vmem:[#allocation4 + $0x358] sm:$0xf0]  ;;  %v8624_v57 = vor.u32 %v9394_v42, %v8621_v23  ;;  %v8840_v46 = vor.u32 %v9448_v34, %v8837_v14 }
 0x656   :  { %7249 = vmatpush.bf16.msra.mxu2 %v8656_v59  ;;  %v8861_v59 = vld [vmem:[#allocation4 + $0x668] sm:$0xf0]  ;;  %v8472_v49 = vor.u32 %v9356_v52, %v8469_v9  ;;  %v9348_v52 = vld [vmem:[#allocation4 + $0x314] sm:$0xf]  ;;  %v8437_v9 = vld [vmem:[#allocation4 + $0x318] sm:$0xf0] }
 0x657   :  { %7157 = vmatpush.bf16.msrb.mxu3 %v8216_v18  ;;  %v8568_v18 = vor.u32 %v9380_v22, %v8565_v12  ;;  %v8480_v22 = vor.u32 %v9358_v8, %v8477_v38  ;;  %v8789_v12 = vld [vmem:[#allocation4 + $0x5d8] sm:$0xf0]  ;;  %v9446_v38 = vld [vmem:[#allocation4 + $0x624] sm:$0xf] }
 0x658   :  { %v8917_v8 = vld [vmem:[#allocation4 + $0x6d8] sm:$0xf0] }
 0x659   :  { %7226 = vmatpush.bf16.msra.mxu0 %v8504_v1  ;;  %7239 = vmatpush.bf16.msrb.mxu1 %v8568_v18  ;;  %v8853_v1 = vld [vmem:[#allocation4 + $0x658] sm:$0xf0]  ;;  %v8792_v18 = vor.u32 %v9436_v2, %v8789_v12  ;;  %v9444_v12 = vld [vmem:[#allocation4 + $0x614] sm:$0xf] }
 0x65a   :  { %7250 = vmatpush.bf16.msra.mxu2 %v8648_v31  ;;  %v9472_v31 = vld [vmem:[#allocation4 + $0x6f4] sm:$0xf]  ;;  %v6997_v36 = vpop.f32.mrf.mxu2  ;;  %v8856_v35 = vor.u32 %v9452_v50, %v8853_v1  ;;  %v8757_v2 = vld [vmem:[#allocation4 + $0x598] sm:$0xf0] }
 0x65b   :  { %7158 = vmatpush.bf16.msrb.mxu3 %v8208_v32  ;;  %v9440_v32 = vld [vmem:[#allocation4 + $0x5f4] sm:$0xf]  ;;  %v8821_v1 = vld [vmem:[#allocation4 + $0x618] sm:$0xf0] }
 0x65c   :  { %v8808_v44 = vor.u32 %v9440_v32, %v8805_v21  ;;  %v8453_v32 = vld [vmem:[#allocation4 + $0x338] sm:$0xf0]  ;;  %v8848_v21 = vor.u32 %v9450_v58, %v8845_v11  ;;  %v13599_v42 = vpop.f32.mrf.mxu0  ;;  %v9426_v11 = vld [vmem:[#allocation4 + $0x584] sm:$0xf] }
 0x65d   :  { %7227 = vmatpush.bf16.msra.mxu0 %v8496_v3  ;;  %7240 = vmatpush.bf16.msrb.mxu1 %v8560_v54  ;;  %v8925_v3 = vld [vmem:[#allocation4 + $0x6e8] sm:$0xf0]  ;;  %v9432_v54 = vld [vmem:[#allocation4 + $0x5b4] sm:$0xf]  ;;  %v8741_v58 = vld [vmem:[#allocation4 + $0x578] sm:$0xf0] }
 0x65e   :  { %7251 = vmatpush.bf16.msra.mxu2 %v8640_v39  ;;  %v9352_v39 = vld [vmem:[#allocation4 + $0x334] sm:$0xf] }
 0x65f   :  { %7159 = vmatpush.bf16.msrb.mxu3 %v8200_v19  ;;  %v6945_v19 = vpop.f32.mrf.mxu3  ;;  %v8456_v26 = vor.u32 %v9352_v39, %v8453_v32 }
 0x660   :  { %7228 = vmatmul.bf16.vlgmr.msra.gmra.mxu0 %v13539_v33  ;;  %7241 = vmatmul.bf16.vlgmr.msrb.gmra.mxu1 %v13541_v43  ;;  %v9434_v33 = vld [vmem:[#allocation4 + $0x5c4] sm:$0xf]  ;;  %v8445_v19 = vld [vmem:[#allocation4 + $0x328] sm:$0xf0] }
 0x661   :  { %7272 = vmatpush.bf16.msrb.mxu0 %v8808_v44  ;;  %7285 = vmatpush.bf16.msra.mxu1 %v8872_v7  ;;  %v8784_v43 = vor.u32 %v9434_v33, %v8781_v41  ;;  %v8773_v44 = vld [vmem:[#allocation4 + $0x5b8] sm:$0xf0]  ;;  %v8440_v33 = vor.u32 %v9348_v52, %v8437_v9  ;;  %v9424_v41 = vld [vmem:[#allocation4 + $0x574] sm:$0xf]  ;;  %v9458_v9 = vld [vmem:[#allocation4 + $0x684] sm:$0xf] }
 0x662   :  { %7252 = vmatpush.bf16.msra.mxu2 %v8632_v16  ;;  %v8776_v7 = vor.u32 %v9432_v54, %v8773_v44  ;;  %v9466_v16 = vld [vmem:[#allocation4 + $0x6c4] sm:$0xf]  ;;  %v9061_v54 = vld [vmem:[#allocation4 + $0x7f8] sm:$0xf0]  ;;  %v9520_v44 = vld [vmem:[#allocation4 + $0x874] sm:$0xf] }
 0x663   :  { %7160 = vmatpush.bf16.msrb.mxu3 %v8192_v63  ;;  %v8864_v63 = vor.u32 %v9454_v17, %v8861_v59  ;;  %v8909_v17 = vld [vmem:[#allocation4 + $0x6c8] sm:$0xf0]  ;;  %v8768_v59 = vor.u32 %v9430_v60, %v8765_v25  ;;  %v8885_v60 = vld [vmem:[#allocation4 + $0x698] sm:$0xf0]  ;;  %v9502_v25 = vld [vmem:[#allocation4 + $0x7e4] sm:$0xf] }
 0x665   :  { %7273 = vmatpush.bf16.msrb.mxu0 %v8800_v45  ;;  %7286 = vmatpush.bf16.msra.mxu1 %v8864_v63  ;;  %v8912_v45 = vor.u32 %v9466_v16, %v8909_v17  ;;  %v8733_v16 = vld [vmem:[#allocation4 + $0x568] sm:$0xf0] }
 0x666   :  { %7253 = vmatpush.bf16.msra.mxu2 %v8624_v57  ;;  %v13601_v57 = vpop.f32.mrf.mxu1 }
 0x667   :  { %7161 = vmatpush.bf16.msrb.mxu3 %v8184_v20  ;;  %v8936_v20 = vor.u32 %v9472_v31, %v8933_v30  ;;  %v9464_v31 = vld [vmem:[#allocation4 + $0x6b4] sm:$0xf]  ;;  %v8901_v30 = vld [vmem:[#allocation4 + $0x6b8] sm:$0xf0] }
 0x669   :  { %7274 = vmatpush.bf16.msrb.mxu0 %v8792_v18  ;;  %7287 = vmatpush.bf16.msra.mxu1 %v8856_v35  ;;  %v8824_v35 = vor.u32 %v9444_v12, %v8821_v1  ;;  %v9516_v12 = vld [vmem:[#allocation4 + $0x854] sm:$0xf]  ;;  %v8725_v1 = vld [vmem:[#allocation4 + $0x558] sm:$0xf0] }
 0x66a   :  { %7298 = vmatpush.bf16.msrb.mxu2 %v8936_v20  ;;  %v8904_v20 = vor.u32 %v9464_v31, %v8901_v30  ;;  %v9109_v30 = vld [vmem:[#allocation4 + $0x858] sm:$0xf0] }
 0x66b   :  { %7162 = vmatpush.bf16.msrb.mxu3 %v8176_v47  ;;  %7254 = vmatmul.bf16.vlgmr.msra.gmra.mxu2 %v13543_v0  ;;  %v9468_v47 = vld [vmem:[#allocation4 + $0x6d4] sm:$0xf]  ;;  %v8829_v0 = vld [vmem:[#allocation4 + $0x628] sm:$0xf0] }
 0x66c   :  { %v8920_v62 = vor.u32 %v9468_v47, %v8917_v8  ;;  %v8832_v63 = vor.u32 %v9446_v38, %v8829_v0  ;;  %v9125_v47 = vld [vmem:[#allocation4 + $0x878] sm:$0xf0]  ;;  %v7023_v8 = vpop.f32.mrf.mxu0  ;;  %v9053_v38 = vld [vmem:[#allocation4 + $0x7e8] sm:$0xf0] }
 0x66d   :  { %7275 = vmatpush.bf16.msrb.mxu0 %v8784_v43  ;;  %7288 = vmatpush.bf16.msra.mxu1 %v8848_v21  ;;  %v8813_v43 = vld [vmem:[#allocation4 + $0x608] sm:$0xf0] }
 0x66e   :  { %7163 = vmatmul.bf16.vlgmr.msrb.gmra.mxu3 %v13527_v29  ;;  %v8928_v29 = vor.u32 %v9470_v51, %v8925_v3  ;;  %v8749_v51 = vld [vmem:[#allocation4 + $0x588] sm:$0xf0]  ;;  %v9442_v3 = vld [vmem:[#allocation4 + $0x604] sm:$0xf]  ;;  %v7036_v0 = vpop.f32.mrf.mxu1 }
 0x66f   :  { %7207 = vmatpush.bf16.msra.mxu3 %v8488_v4  ;;  %v9350_v4 = vld [vmem:[#allocation4 + $0x324] sm:$0xf]  ;;  %v8752_v32 = vor.u32 %v9426_v11, %v8749_v51  ;;  %v8816_v34 = vor.u32 %v9442_v3, %v8813_v43  ;;  %v9496_v11 = vld [vmem:[#allocation4 + $0x7b4] sm:$0xf]  ;;  %v9029_v51 = vld [vmem:[#allocation4 + $0x7b8] sm:$0xf0] }
 0x670   :  { %7299 = vmatpush.bf16.msrb.mxu2 %v8928_v29  ;;  %v8448_v23 = vor.u32 %v9350_v4, %v8445_v19  ;;  %v9462_v29 = vld [vmem:[#allocation4 + $0x6a4] sm:$0xf]  ;;  %v9128_v4 = vor.u32 %v9520_v44, %v9125_v47  ;;  %v9460_v19 = vld [vmem:[#allocation4 + $0x694] sm:$0xf]  ;;  %v9085_v47 = vld [vmem:[#allocation4 + $0x828] sm:$0xf0] }
 0x671   :  { %7276 = vmatpush.bf16.msrb.mxu0 %v8776_v7  ;;  %7289 = vmatpush.bf16.msra.mxu1 %v8840_v46  ;;  %v6956_v50 = vpop.f32.mrf.mxu3  ;;  %v8744_v46 = vor.u32 %v9424_v41, %v8741_v58  ;;  %v8888_v17 = vor.u32 %v9460_v19, %v8885_v60  ;;  %v9101_v41 = vld [vmem:[#allocation4 + $0x848] sm:$0xf0]  ;;  %v9512_v3 = vld [vmem:[#allocation4 + $0x834] sm:$0xf]  ;;  %v9510_v44 = vld [vmem:[#allocation4 + $0x824] sm:$0xf] }
 0x672   :  { %v6957_v36 = vadd.f32 %v6956_v50, %v13591_v37  ;;  %v8893_v37 = vld [vmem:[#allocation4 + $0x6a8] sm:$0xf0]  ;;  %v9420_v50 = vld [vmem:[#allocation4 + $0x554] sm:$0xf]  ;;  %v9088_v8 = vor.u32 %v9510_v44, %v9085_v47  ;;  %v9013_v19 = vld [vmem:[#allocation4 + $0x798] sm:$0xf0] }
 0x673   :  { %7208 = vmatpush.bf16.msra.mxu3 %v8480_v22  ;;  %v9428_v22 = vld [vmem:[#allocation4 + $0x594] sm:$0xf]  ;;  %v8896_v21 = vor.u32 %v9462_v29, %v8893_v37  ;;  %v8709_v29 = vld [vmem:[#allocation4 + $0x538] sm:$0xf0]  ;;  %v8941_v47 = vld [vmem:[#allocation4 + $0x708] sm:$0xf0] }
 0x674   :  { %7300 = vmatpush.bf16.msrb.mxu2 %v8920_v62  ;;  %v8760_v18 = vor.u32 %v9428_v22, %v8757_v2  ;;  %v8432_v62 = vor.u32 %v9346_v6, %v8429_v24  ;;  %v9500_v22 = vld [vmem:[#allocation4 + $0x7d4] sm:$0xf]  ;;  %v9045_v2 = vld [vmem:[#allocation4 + $0x7d8] sm:$0xf0]  ;;  %v8728_v6 = vor.u32 %v9420_v50, %v8725_v1  ;;  %v9498_v24 = vld [vmem:[#allocation4 + $0x7c4] sm:$0xf] }
 0x675   :  { %7277 = vmatpush.bf16.msrb.mxu0 %v8768_v59  ;;  %7290 = vmatpush.bf16.msra.mxu1 %v8832_v63  ;;  %v9518_v59 = vld [vmem:[#allocation4 + $0x864] sm:$0xf]  ;;  %v8877_v63 = vld [vmem:[#allocation4 + $0x688] sm:$0xf0]  ;;  %v9416_v43 = vld [vmem:[#allocation4 + $0x534] sm:$0xf] }
 0x676   :  { %v8880_v31 = vor.u32 %v9458_v9, %v8877_v63  ;;  %v9093_v37 = vld [vmem:[#allocation4 + $0x838] sm:$0xf0]  ;;  %v9412_v60 = vld [vmem:[#allocation4 + $0x514] sm:$0xf]  ;;  %v9005_v9 = vld [vmem:[#allocation4 + $0x788] sm:$0xf0] }
 0x677   :  { %7209 = vmatpush.bf16.msra.mxu3 %v8472_v49  ;;  %v6970_v49 = vadd.f32 %v13586_v40, %v6957_v36  ;;  %v13606_v40 = vpop.f32.mrf.mxu2  ;;  %v9048_v36 = vor.u32 %v9500_v22, %v9045_v2  ;;  %v9077_v0 = vld [vmem:[#allocation4 + $0x818] sm:$0xf0]  ;;  %v9506_v63 = vld [vmem:[#allocation4 + $0x804] sm:$0xf]  ;;  %v8685_v22 = vld [vmem:[#allocation4 + $0x508] sm:$0xf0] }
 0x678   :  { %7301 = vmatpush.bf16.msrb.mxu2 %v8912_v45  ;;  %v9117_v45 = vld [vmem:[#allocation4 + $0x868] sm:$0xf0]  ;;  %v9488_v50 = vld [vmem:[#allocation4 + $0x774] sm:$0xf]  ;;  %v8997_v1 = vld [vmem:[#allocation4 + $0x778] sm:$0xf0] }
 0x679   :  { %v6983_v39 = vadd.f32 %v13588_v61, %v6970_v49  ;;  %7278 = vmatpush.bf16.msrb.mxu0 %v8760_v18  ;;  %7291 = vmatpush.bf16.msra.mxu1 %v8824_v35  ;;  %v9422_v61 = vld [vmem:[#allocation4 + $0x564] sm:$0xf]  ;;  %v9120_v52 = vor.u32 %v9518_v59, %v9117_v45  ;;  %v9037_v35 = vld [vmem:[#allocation4 + $0x7c8] sm:$0xf0] }
 0x67a   :  { %v9514_v49 = vld [vmem:[#allocation4 + $0x844] sm:$0xf]  ;;  %v9040_v58 = vor.u32 %v9498_v24, %v9037_v35  ;;  %v9069_v2 = vld [vmem:[#allocation4 + $0x808] sm:$0xf0] }
 0x67b   :  { %7210 = vmatpush.bf16.msra.mxu3 %v8464_v27  ;;  %v9504_v27 = vld [vmem:[#allocation4 + $0x7f4] sm:$0xf]  ;;  %v13609_v7 = vadd.f32 %v13593_v56, %v6983_v39  ;;  %v9056_v56 = vor.u32 %v9502_v25, %v9053_v38  ;;  %v9032_v39 = vor.u32 %v9496_v11, %v9029_v51  ;;  %v8693_v25 = vld [vmem:[#allocation4 + $0x518] sm:$0xf0]  ;;  %v9486_v35 = vld [vmem:[#allocation4 + $0x764] sm:$0xf] }
 0x67c   :  { %7302 = vmatpush.bf16.msrb.mxu2 %v8904_v20  ;;  %v9064_v14 = vor.u32 %v9504_v27, %v9061_v54  ;;  %v9112_v20 = vor.u32 %v9516_v12, %v9109_v30  ;;  %v9494_v27 = vld [vmem:[#allocation4 + $0x7a4] sm:$0xf]  ;;  %v9021_v54 = vld [vmem:[#allocation4 + $0x7a8] sm:$0xf0]  ;;  %v9072_v30 = vor.u32 %v9506_v63, %v9069_v2  ;;  %v9480_v11 = vld [vmem:[#allocation4 + $0x734] sm:$0xf] }
 0x67d   :  { %7279 = vmatpush.bf16.msrb.mxu0 %v8752_v32  ;;  %7292 = vmatpush.bf16.msra.mxu1 %v8816_v34  ;;  %v9096_v32 = vor.u32 %v9512_v3, %v9093_v37  ;;  %v9414_v34 = vld [vmem:[#allocation4 + $0x524] sm:$0xf]  ;;  %v13617_v38 = vpop.f32.mrf.mxu1  ;;  %v8965_v51 = vld [vmem:[#allocation4 + $0x738] sm:$0xf0] }
 0x67e   :  { %v8968_v3 = vor.u32 %v9480_v11, %v8965_v51 }
 0x67f   :  { %7211 = vmatpush.bf16.msra.mxu3 %v8456_v26  ;;  %v6958_v26 = vpop.f32.mrf.mxu3  ;;  %v7049_v18 = vpop.f32.mrf.mxu2 }
 0x680   :  { %7303 = vmatpush.bf16.msrb.mxu2 %v8896_v21  ;;  %7280 = vmatmul.bf16.vlgmr.msrb.gmra.mxu0 %v13547_v13  ;;  %v9418_v13 = vld [vmem:[#allocation4 + $0x544] sm:$0xf]  ;;  %v8712_v21 = vor.u32 %v9416_v43, %v8709_v29  ;;  %v8957_v29 = vld [vmem:[#allocation4 + $0x728] sm:$0xf0] }
 0x681   :  { %7324 = vmatpush.bf16.msra.mxu0 %v9064_v14  ;;  %7337 = vmatpush.bf16.msrb.mxu1 %v9128_v4  ;;  %v8701_v14 = vld [vmem:[#allocation4 + $0x528] sm:$0xf0]  ;;  %v9492_v4 = vld [vmem:[#allocation4 + $0x794] sm:$0xf]  ;;  %v9478_v43 = vld [vmem:[#allocation4 + $0x724] sm:$0xf] }
 0x682   :  { %7293 = vmatmul.bf16.vlgmr.msra.gmra.mxu1 %v13551_v53  ;;  %v9104_v53 = vor.u32 %v9514_v49, %v9101_v41  ;;  %v8989_v49 = vld [vmem:[#allocation4 + $0x768] sm:$0xf0]  ;;  %v8960_v37 = vor.u32 %v9478_v43, %v8957_v29 }
 0x683   :  { %7212 = vmatpush.bf16.msra.mxu3 %v8448_v23  ;;  %v8736_v23 = vor.u32 %v9422_v61, %v8733_v16  ;;  %v8704_v61 = vor.u32 %v9414_v34, %v8701_v14  ;;  %v9474_v14 = vld [vmem:[#allocation4 + $0x704] sm:$0xf] }
 0x684   :  { %7304 = vmatpush.bf16.msrb.mxu2 %v8888_v17  ;;  %v9016_v17 = vor.u32 %v9492_v4, %v9013_v19 }
 0x685   :  { %7325 = vmatpush.bf16.msra.mxu0 %v9056_v56  ;;  %7338 = vmatpush.bf16.msrb.mxu1 %v9120_v52  ;;  %v8696_v56 = vor.u32 %v9412_v60, %v8693_v25  ;;  %v9490_v52 = vld [vmem:[#allocation4 + $0x784] sm:$0xf]  ;;  %v7088_v24 = vpop.f32.mrf.mxu1 }
 0x687   :  { %7213 = vmatpush.bf16.msra.mxu3 %v8440_v33  ;;  %v8717_v33 = vld [vmem:[#allocation4 + $0x548] sm:$0xf0] }
 0x688   :  { %7305 = vmatpush.bf16.msrb.mxu2 %v8880_v31 }
 0x689   :  { %7326 = vmatpush.bf16.msra.mxu0 %v9048_v36  ;;  %7339 = vmatpush.bf16.msrb.mxu1 %v9112_v20  ;;  %v9000_v20 = vor.u32 %v9488_v50, %v8997_v1 }
 0x68b   :  { %7214 = vmatpush.bf16.msra.mxu3 %v8432_v62  ;;  %7306 = vmatmul.bf16.vlgmr.msrb.gmra.mxu2 %v13553_v48  ;;  %v9024_v48 = vor.u32 %v9494_v27, %v9021_v54  ;;  %v13615_v62 = vpop.f32.mrf.mxu0  ;;  %v7099_v31 = vpop.f32.mrf.mxu2 }
 0x68d   :  { %7327 = vmatpush.bf16.msra.mxu0 %v9040_v58  ;;  %7340 = vmatpush.bf16.msrb.mxu1 %v9104_v53  ;;  %v9482_v58 = vld [vmem:[#allocation4 + $0x744] sm:$0xf]  ;;  %v8973_v53 = vld [vmem:[#allocation4 + $0x748] sm:$0xf0] }
 0x68e   :  { %7215 = vmatmul.bf16.vlgmr.msra.gmra.mxu3 %v13537_v10  ;;  %v8720_v10 = vor.u32 %v9418_v13, %v8717_v33  ;;  %v9484_v13 = vld [vmem:[#allocation4 + $0x754] sm:$0xf]  ;;  %v8981_v33 = vld [vmem:[#allocation4 + $0x758] sm:$0xf0] }
 0x68f   :  { %7259 = vmatpush.bf16.msrb.mxu3 %v8744_v46  ;;  %v9508_v46 = vld [vmem:[#allocation4 + $0x814] sm:$0xf]  ;;  %v8984_v41 = vor.u32 %v9484_v13, %v8981_v33 }
 0x690   :  { %v9080_v59 = vor.u32 %v9508_v46, %v9077_v0  ;;  %v8944_v46 = vor.u32 %v9474_v14, %v8941_v47 }
 0x691   :  { %7328 = vmatpush.bf16.msra.mxu0 %v9032_v39  ;;  %7341 = vmatpush.bf16.msrb.mxu1 %v9096_v32  ;;  %v7008_v26 = vpop.f32.mrf.mxu3  ;;  %v8949_v32 = vld [vmem:[#allocation4 + $0x718] sm:$0xf0] }
 0x692   :  { %v7009_v16 = vadd.f32 %v7008_v26, %v13609_v7  ;;  %v9008_v7 = vor.u32 %v9490_v52, %v9005_v9 }
 0x693   :  { %7260 = vmatpush.bf16.msrb.mxu3 %v8736_v23  ;;  %v9410_v23 = vld [vmem:[#allocation4 + $0x504] sm:$0xf]  ;;  %v7075_v36 = vpop.f32.mrf.mxu0 }
 0x694   :  { %v7022_v45 = vadd.f32 %v13599_v42, %v7009_v16  ;;  %v8688_v18 = vor.u32 %v9410_v23, %v8685_v22 }
 0x695   :  { %7329 = vmatpush.bf16.msra.mxu0 %v9024_v48  ;;  %7342 = vmatpush.bf16.msrb.mxu1 %v9088_v8 }
 0x696   :  { %v7035_v12 = vadd.f32 %v13601_v57, %v7022_v45  ;;  %v8992_v57 = vor.u32 %v9486_v35, %v8989_v49 }
 0x697   :  { %7261 = vmatpush.bf16.msrb.mxu3 %v8728_v6 }
 0x698   :  { %v7048_v42 = vadd.f32 %v13606_v40, %v7035_v12  ;;  %v7101_v40 = vpop.f32.mrf.mxu2 }
 0x699   :  { %7330 = vmatpush.bf16.msra.mxu0 %v9016_v17  ;;  %7343 = vmatpush.bf16.msrb.mxu1 %v9080_v59  ;;  %v7010_v6 = vpop.f32.mrf.mxu3 }
 0x69b   :  { %7262 = vmatpush.bf16.msrb.mxu3 %v8720_v10  ;;  %v8976_v10 = vor.u32 %v9482_v58, %v8973_v53 }
 0x69d   :  { %7331 = vmatpush.bf16.msra.mxu0 %v9008_v7  ;;  %7344 = vmatpush.bf16.msrb.mxu1 %v9072_v30  ;;  %v7138_v54 = vpop.f32.mrf.mxu1 }
 0x69f   :  { %7263 = vmatpush.bf16.msrb.mxu3 %v8712_v21  ;;  %v9564_v21 = vld [vmem:[#allocation18] sm:$0x3] }
 0x6a0   :  { %7332 = vmatmul.bf16.vlgmr.msra.gmra.mxu0 %v13557_v5  ;;  %7345 = vmatmul.bf16.vlgmr.msrb.gmra.mxu1 %v13549_v55  ;;  %v7125_v5 = vpop.f32.mrf.mxu0  ;;  %v9476_v55 = vld [vmem:[#allocation4 + $0x714] sm:$0xf]  ;;  %v5545_v27 = vperm.slane %v9564_v21, 1 }
 0x6a1   :  { %v8952_v34 = vor.u32 %v9476_v55, %v8949_v32 }
 0x6a2   :  { %v7139_v48 = vadd.f32 %v7138_v54, %v5545_v27 }
 0x6a3   :  { %7264 = vmatpush.bf16.msrb.mxu3 %v8704_v61 }
 0x6a5   :  { %v7140_v25 = vpop.f32.mrf.mxu1 }
 0x6a7   :  { %7265 = vmatpush.bf16.msrb.mxu3 %v8696_v56 }
 0x6a8   :  { %v7127_v4 = vpop.f32.mrf.mxu0 }
 0x6ab   :  { %7266 = vmatpush.bf16.msrb.mxu3 %v8688_v18 }
 0x6ac   :  { %v7151_v61 = vpop.f32.mrf.mxu2 }
 0x6ad   :  { %v7152_v26 = vadd.f32 %v7151_v61, %v7139_v48 }
 0x6ae   :  { %7267 = vmatmul.bf16.vlgmr.msrb.gmra.mxu3 %v13545_v28 }
 0x6af   :  { %7311 = vmatpush.bf16.msra.mxu3 %v9000_v20 }
 0x6b1   :  { %v7060_v39 = vpop.f32.mrf.mxu3 }
 0x6b2   :  { %v7061_v28 = vadd.f32 %v7060_v39, %v7048_v42 }
 0x6b3   :  { %7312 = vmatpush.bf16.msra.mxu3 %v8992_v57 }
 0x6b4   :  { %v7074_v44 = vadd.f32 %v13615_v62, %v7061_v28  ;;  %v7153_v0 = vpop.f32.mrf.mxu2 }
 0x6b6   :  { %v7087_v8 = vadd.f32 %v13617_v38, %v7074_v44 }
 0x6b7   :  { %7313 = vmatpush.bf16.msra.mxu3 %v8984_v41 }
 0x6b8   :  { %v7100_v19 = vadd.f32 %v7099_v31, %v7087_v8 }
 0x6b9   :  { %v7062_v60 = vpop.f32.mrf.mxu3 }
 0x6bb   :  { %7314 = vmatpush.bf16.msra.mxu3 %v8976_v10 }
 0x6bd   :  { %v7177_v62 = vpop.f32.mrf.mxu0  ;;  %v7190_v17 = vpop.f32.mrf.mxu1 }
 0x6bf   :  { %7315 = vmatpush.bf16.msra.mxu3 %v8968_v3 }
 0x6c3   :  { %7316 = vmatpush.bf16.msra.mxu3 %v8960_v37 }
 0x6c5   :  { %v7179_v52 = vpop.f32.mrf.mxu0  ;;  %v7192_v63 = vpop.f32.mrf.mxu1 }
 0x6c7   :  { %7317 = vmatpush.bf16.msra.mxu3 %v8952_v34 }
 0x6cb   :  { %7318 = vmatpush.bf16.msra.mxu3 %v8944_v46 }
 0x6ce   :  { %7319 = vmatmul.bf16.vlgmr.msra.gmra.mxu3 %v13555_v15  ;;  %v7203_v56 = vpop.f32.mrf.mxu2 }
 0x6d1   :  { %v7112_v16 = vpop.f32.mrf.mxu3 }
 0x6d2   :  { %v7113_v59 = vadd.f32 %v7112_v16, %v7100_v19 }
 0x6d4   :  { %v13629_v45 = vadd.f32 %v7125_v5, %v7113_v59 }
 0x6d6   :  { %v7350_v38 = vmax.f32 %v13629_v45, 0.0  ;;  %v7205_v23 = vpop.f32.mrf.mxu2 }
 0x6d9   :  { %v7114_v9 = vpop.f32.mrf.mxu3 }
 0x6dd   :  { %v7229_v22 = vpop.f32.mrf.mxu0  ;;  %v7242_v12 = vpop.f32.mrf.mxu1 }
 0x6e5   :  { %v7231_v31 = vpop.f32.mrf.mxu0  ;;  %v7244_v42 = vpop.f32.mrf.mxu1 }
 0x6ee   :  { %v7255_v7 = vpop.f32.mrf.mxu2 }
 0x6f1   :  { %v7164_v2 = vpop.f32.mrf.mxu3 }
 0x6f2   :  { %v7165_v50 = vadd.f32 %v7164_v2, %v7152_v26 }
 0x6f4   :  { %v7178_v1 = vadd.f32 %v7177_v62, %v7165_v50 }
 0x6f6   :  { %v7191_v15 = vadd.f32 %v7190_v17, %v7178_v1  ;;  %v7257_v18 = vpop.f32.mrf.mxu2 }
 0x6f8   :  { %v7204_v30 = vadd.f32 %v7203_v56, %v7191_v15 }
 0x6f9   :  { %v7166_v36 = vpop.f32.mrf.mxu3 }
 0x6fd   :  { %v7281_v20 = vpop.f32.mrf.mxu0 }
 0x6ff   :  { %v7294_v24 = vpop.f32.mrf.mxu1 }
 0x705   :  { %v7283_v33 = vpop.f32.mrf.mxu0 }
 0x707   :  { %v7296_v58 = vpop.f32.mrf.mxu1 }
 0x70e   :  { %v7307_v13 = vpop.f32.mrf.mxu2 }
 0x711   :  { %v7216_v6 = vpop.f32.mrf.mxu3 }
 0x712   :  { %v7217_v35 = vadd.f32 %v7216_v6, %v7204_v30 }
 0x714   :  { %v7230_v49 = vadd.f32 %v7229_v22, %v7217_v35 }
 0x716   :  { %v7243_v57 = vadd.f32 %v7242_v12, %v7230_v49  ;;  %v7309_v53 = vpop.f32.mrf.mxu2 }
 0x718   :  { %v7256_v40 = vadd.f32 %v7255_v7, %v7243_v57 }
 0x719   :  { %v7218_v41 = vpop.f32.mrf.mxu3 }
 0x71d   :  { %v7333_v10 = vpop.f32.mrf.mxu0  ;;  %v7346_v11 = vpop.f32.mrf.mxu1 }
 0x725   :  { %v7335_v3 = vpop.f32.mrf.mxu0  ;;  %v7348_v43 = vpop.f32.mrf.mxu1 }
 0x731   :  { %v7268_v51 = vpop.f32.mrf.mxu3 }
 0x732   :  { %v7269_v5 = vadd.f32 %v7268_v51, %v7256_v40 }
 0x734   :  { %v7282_v37 = vadd.f32 %v7281_v20, %v7269_v5 }
 0x736   :  { %v7295_v39 = vadd.f32 %v7294_v24, %v7282_v37 }
 0x738   :  { %v7308_v55 = vadd.f32 %v7307_v13, %v7295_v39 }
 0x739   :  { %v7270_v29 = vpop.f32.mrf.mxu3 }
 0x751   :  { %v7320_v32 = vpop.f32.mrf.mxu3 }
 0x752   :  { %v7321_v28 = vadd.f32 %v7320_v32, %v7308_v55 }
 0x754   :  { %v7334_v21 = vadd.f32 %v7333_v10, %v7321_v28 }
 0x756   :  { %v7347_v27 = vadd.f32 %v7346_v11, %v7334_v21 }
 0x758   :  { %v7351_v54 = vmax.f32 %v7347_v27, 0.0 }
 0x759   :  { %v7322_v44 = vpop.f32.mrf.mxu3 }
 0x75a   :  { %9871 = dma.done.wait [#allocation7 + $0x1], 2048 }
 0x75b   :  { %9872 = vsyncadd [#allocation7 + $0x1], 4294965248  ;;  %v9529_v34 = vld [vmem:[#allocation5 + $0x38] sm:$0xff]  ;;  %v9528_v47 = vld [vmem:[#allocation5 + $0x30] sm:$0xff]  ;;  %v7356_v59 = vpack.c.bf16 %v7350_v38, %v7350_v38  ;;  %v7357_v56 = vpack.c.bf16 %v7351_v54, %v7351_v54 }
 0x75c   :  { %v9537_v14 = vld [vmem:[#allocation5 + $0x78] sm:$0xff]  ;;  %7490 = vmatpush.bf16.msra.mxu2 %v9529_v34  ;;  %v9536_v48 = vld [vmem:[#allocation5 + $0x70] sm:$0xff]  ;;  %v9527_v8 = vld [vmem:[#allocation5 + $0x28] sm:$0xff] }
 0x75d   :  { %7503 = vmatpush.bf16.msrb.mxu3 %v9537_v14  ;;  %v9535_v61 = vld [vmem:[#allocation5 + $0x68] sm:$0xff]  ;;  %v9526_v4 = vld [vmem:[#allocation5 + $0x20] sm:$0xff]  ;;  %v9525_v46 = vld [vmem:[#allocation5 + $0x18] sm:$0xff] }
 0x75e   :  { %v9534_v19 = vld [vmem:[#allocation5 + $0x60] sm:$0xff]  ;;  %v9533_v26 = vld [vmem:[#allocation5 + $0x58] sm:$0xff]  ;;  %v9524_v60 = vld [vmem:[#allocation5 + $0x10] sm:$0xff] }
 0x75f   :  { %v9532_v25 = vld [vmem:[#allocation5 + $0x50] sm:$0xff]  ;;  %v9523_v0 = vld [vmem:[#allocation5 + $0x8] sm:$0xff]  ;;  %v9522_v16 = vld [vmem:[#allocation5] sm:$0xff] }
 0x760   :  { %7491 = vmatpush.bf16.msra.mxu2 %v9528_v47  ;;  %v9531_v62 = vld [vmem:[#allocation5 + $0x48] sm:$0xff]  ;;  %v9530_v17 = vld [vmem:[#allocation5 + $0x40] sm:$0xff]  ;;  %v9565_v52 = vld [vmem:[#allocation19] ss:$0 sm:$0xff] }
 0x761   :  { %7504 = vmatpush.bf16.msrb.mxu3 %v9536_v48 }
 0x764   :  { %7492 = vmatpush.bf16.msra.mxu2 %v9527_v8 }
 0x765   :  { %7505 = vmatpush.bf16.msrb.mxu3 %v9535_v61 }
 0x768   :  { %7493 = vmatpush.bf16.msra.mxu2 %v9526_v4 }
 0x769   :  { %7506 = vmatpush.bf16.msrb.mxu3 %v9534_v19 }
 0x76c   :  { %7494 = vmatpush.bf16.msra.mxu2 %v9525_v46 }
 0x76d   :  { %7507 = vmatpush.bf16.msrb.mxu3 %v9533_v26 }
 0x770   :  { %7495 = vmatpush.bf16.msra.mxu2 %v9524_v60 }
 0x771   :  { %7508 = vmatpush.bf16.msrb.mxu3 %v9532_v25 }
 0x774   :  { %7496 = vmatpush.bf16.msra.mxu2 %v9523_v0 }
 0x775   :  { %7509 = vmatpush.bf16.msrb.mxu3 %v9531_v62 }
 0x778   :  { %7497 = vmatpush.bf16.msra.mxu2 %v9522_v16 }
 0x779   :  { %7510 = vmatpush.bf16.msrb.mxu3 %v9530_v17 }
 0x77b   :  { %7498 = vmatmul.bf16.vlgmr.msra.gmra.mxu2 %v7356_v59 }
 0x77c   :  { %7511 = vmatmul.bf16.vlgmr.msrb.gmra.mxu3 %v7357_v56 }
 0x7fe   :  { %v7499_v9 = vpop.f32.mrf.mxu2 }
 0x7ff   :  { %v7512_v63 = vpop.f32.mrf.mxu3  ;;  %v7500_v23 = vadd.f32 %v9565_v52, %v7499_v9 }
 0x801   :  { %v7513_v22 = vadd.f32 %v7512_v63, %v7500_v23 }
 0x803   :  { %v7516_v2 = vmax.f32 %v7513_v22, 0.0 }
 0x806   :  { %v7501_v12 = vpop.f32.mrf.mxu2 }
 0x807   :  { %v7514_v50 = vpop.f32.mrf.mxu3 }
 0x808   :  { %9873 = dma.done.wait [#allocation7 + $0x2], 2048 }
 0x809   :  { %9874 = vsyncadd [#allocation7 + $0x2], 4294965248  ;;  %v7535_v1 = vld [vmem:[#allocation6 + $0x78] sm:$0xff]  ;;  %v7534_v15 = vld [vmem:[#allocation6 + $0x70] sm:$0xff] }
 0x80a   :  { %7540 = vmatpush.msrb.mxu0 %v7535_v1  ;;  %v7533_v45 = vld [vmem:[#allocation6 + $0x68] sm:$0xff]  ;;  %v7532_v38 = vld [vmem:[#allocation6 + $0x60] sm:$0xff]  ;;  %v7531_v7 = vld [vmem:[#allocation6 + $0x58] sm:$0xff] }
 0x80b   :  { %v7530_v31 = vld [vmem:[#allocation6 + $0x50] sm:$0xff]  ;;  %v7529_v30 = vld [vmem:[#allocation6 + $0x48] sm:$0xff]  ;;  %v7528_v36 = vld [vmem:[#allocation6 + $0x40] sm:$0xff] }
 0x80c   :  { %7541 = vmatpush.msrb.mxu0 %v7534_v15  ;;  %v7527_v42 = vld [vmem:[#allocation6 + $0x38] sm:$0xff]  ;;  %v7526_v18 = vld [vmem:[#allocation6 + $0x30] sm:$0xff]  ;;  %v7525_v20 = vld [vmem:[#allocation6 + $0x28] sm:$0xff] }
 0x80d   :  { %v7524_v6 = vld [vmem:[#allocation6 + $0x20] sm:$0xff]  ;;  %v7523_v24 = vld [vmem:[#allocation6 + $0x18] sm:$0xff]  ;;  %v7522_v35 = vld [vmem:[#allocation6 + $0x10] sm:$0xff] }
 0x80e   :  { %7542 = vmatpush.msrb.mxu0 %v7533_v45  ;;  %v7521_v49 = vld [vmem:[#allocation6 + $0x8] sm:$0xff]  ;;  %v7520_v57 = vld [vmem:[#allocation6] sm:$0xff]  ;;  %v9566_v13 = vld [vmem:[#allocation21] ss:$0 sm:$0xff] }
 0x810   :  { %7543 = vmatpush.msrb.mxu0 %v7532_v38 }
 0x812   :  { %7544 = vmatpush.msrb.mxu0 %v7531_v7 }
 0x814   :  { %7545 = vmatpush.msrb.mxu0 %v7530_v31 }
 0x816   :  { %7546 = vmatpush.msrb.mxu0 %v7529_v30 }
 0x818   :  { %7547 = vmatpush.msrb.mxu0 %v7528_v36 }
 0x81a   :  { %7548 = vmatpush.msrb.mxu0 %v7527_v42 }
 0x81c   :  { %7549 = vmatpush.msrb.mxu0 %v7526_v18 }
 0x81e   :  { %7550 = vmatpush.msrb.mxu0 %v7525_v20 }
 0x820   :  { %7551 = vmatpush.msrb.mxu0 %v7524_v6 }
 0x822   :  { %7552 = vmatpush.msrb.mxu0 %v7523_v24 }
 0x824   :  { %7553 = vmatpush.msrb.mxu0 %v7522_v35 }
 0x826   :  { %7554 = vmatpush.msrb.mxu0 %v7521_v49 }
 0x828   :  { %7555 = vmatpush.msrb.mxu0 %v7520_v57 }
 0x829   :  { %7556 = vmatmul.f32.vlgmr.msrb.gmra.mxu0 %v7516_v2 }
 0x8a6   :  { %v7557_v33 = vpop.f32.mrf.mxu0 }
 0x8a7   :  { %v7558_v40 = vadd.f32 %v9566_v13, %v7557_v33 }
 0x8a9   :  { %v7560_v41 = vsub.f32 0.0, %v7558_v40 }
 0x8ab   :  { %v7561_v58 = vmul.f32 1.442695, %v7560_v41 }
 0x8ad   :  { %9567 = vpow2.f32 %v7561_v58 }
 0x8b3   :  { %v9568_v53 = vpop.eup %9567 }
 0x8b4   :  { %v7563_v10 = vadd.f32 1.0, %v9568_v53 }
 0x8b6   :  { %9569 = vrcp.f32 %v7563_v10  ;;  %v7575_v43 = vand.u32 2147483648, %v7563_v10  ;;  %v7573_v5 = vand.u32 2147483647, %v7563_v10  ;;  %vm7569_vm4 = vweird.f32 %v7563_v10 }
 0x8b8   :  { %v7576_v39 = vor.u32 1.1754944e-38, %v7575_v43  ;;  %vm7574_vm2 = vcmp.eq.f32.partialorder %v7573_v5, 8.507059e+37 }
 0x8bc   :  { %v9570_v11 = vpop.eup %9569 }
 0x8bd   :  { %v7565_v51 = vmul.f32 %v9570_v11, %v7563_v10  ;;  %vm7570_vm9 = vweird.f32 %v9570_v11 }
 0x8be   :  { %vm7571_vm0 = vmor %vm7569_vm4, %vm7570_vm9 }
 0x8bf   :  { %v7566_v3 = vsub.f32 1.0, %v7565_v51 }
 0x8c1   :  { %v7567_v29 = vmul.f32 %v9570_v11, %v7566_v3 }
 0x8c3   :  { %v7568_v37 = vadd.f32 %v9570_v11, %v7567_v29 }
 0x8c5   :  { %v7572_v55 = vsel %vm7571_vm0, %v9570_v11, %v7568_v37 }
 0x8c6   :  { %v7577_v32 = vsel %vm7574_vm2, %v7576_v39, %v7572_v55 }
 0x8c7   :  { %7579 = vst [vmem:[%s13652_s14] sm:$0x3] %v7577_v32 }
 0x8c8   :  { %7584 = vsyncpa [#allocation9], 1 }
 0x8c9   :  { %7585 = vsyncpa [#allocation11], 1 }
 0x8ca   :  { %7586 = vsyncpa [#allocation14], 1 }
 0x8cb   :  { %7587 = vsyncpa [#allocation17], 1 }
 0x8cc   :  { %7588 = vsyncpa [#allocation20], 1 }
 0x8cd   :  { %7589 = vsyncmov [#allocation7] }
 0x8d0   :  { %s7590_s16 = vpop.sfrf %7589 }
 0x8d1   :  { %p9193_p0 = scmp.ne.s32.totalorder %s7590_s16, 0 }
 0x8d3   :  { %7594 = shalt.err (%p9193_p0)  }
 0x8d4   :  { %7596 = vsyncmov [#allocation7 + $0x1] }
 0x8d7   :  { %s7597_s17 = vpop.sfrf %7596 }
 0x8d8   :  { %p9194_p1 = scmp.ne.s32.totalorder %s7597_s17, 0 }
 0x8da   :  { %7601 = shalt.err (%p9194_p1)  }
 0x8db   :  { %7603 = vsyncmov [#allocation7 + $0x2] }
 0x8de   :  { %s7604_s6 = vpop.sfrf %7603 }
 0x8df   :  { %p9195_p2 = scmp.ne.s32.totalorder %s7604_s6, 0 }
 0x8e1   :  { %7608 = shalt.err (%p9195_p2)  }

</bundles_post_ra>
